<compile_context>
chip_gen: v6e
topology: v6e:2x2x1
jax: 0.10.0
libtpu: 0.0.40
codegen_flags: <defaults>
</compile_context>

<pallas_src>
import functools
import math

import jax
import jax.numpy as jnp
from jax import lax
from jax.experimental import pallas as pl
from jax.experimental.pallas import tpu as pltpu


# ----------------------------------------------------------------------------
# Fused 2-layer LSTM kernel.
# ----------------------------------------------------------------------------
def _lstm_cell(gates, c, H):
    # PyTorch gate order: i, f, g, o
    i = jax.nn.sigmoid(gates[:, 0:H])
    f = jax.nn.sigmoid(gates[:, H:2 * H])
    g = jnp.tanh(gates[:, 2 * H:3 * H])
    o = jax.nn.sigmoid(gates[:, 3 * H:4 * H])
    c_new = f * c + i * g
    h_new = o * jnp.tanh(c_new)
    return h_new, c_new


def lstm2_kernel(x_ref, wih0_ref, whh0_ref, b0_ref, wih1_ref, whh1_ref, b1_ref,
                 out_ref, gx_ref, h0_ref, *, n_time, n_batch):
    # x_ref:   (T*Bp, Din) f32, row = t*Bp + b
    # wih*:    (Din, 4H) / (H, 4H) bf16 ; whh*: (H, 4H) bf16 ; b*: (1, 4H) f32
    # out_ref: (T*Bp, H) f32
    # gx_ref:  (T*Bp, 4H) f32 scratch (input-projection gates, reused by layer 1)
    # h0_ref:  (T*Bp, H)  f32 scratch (layer-0 hidden sequence)
    T, Bp = n_time, n_batch
    H = whh0_ref.shape[0]
    zeros = jnp.zeros((Bp, H), jnp.float32)

    # ---- layer 0: hoisted input projection for all time steps (one matmul) ----
    gx_ref[...] = (jnp.dot(x_ref[...].astype(jnp.bfloat16), wih0_ref[...],
                           preferred_element_type=jnp.float32) + b0_ref[...])
    whh0 = whh0_ref[...]

    def step0(t, carry):
        h, c = carry
        row = pl.multiple_of(t * Bp, Bp)
        gates = gx_ref[pl.ds(row, Bp), :] + jnp.dot(
            h.astype(jnp.bfloat16), whh0, preferred_element_type=jnp.float32)
        h, c = _lstm_cell(gates, c, H)
        h0_ref[pl.ds(row, Bp), :] = h
        return h, c

    lax.fori_loop(0, T, step0, (zeros, zeros), unroll=True)

    # ---- layer 1: hoisted input projection over the full layer-0 output ----
    gx_ref[...] = (jnp.dot(h0_ref[...].astype(jnp.bfloat16), wih1_ref[...],
                           preferred_element_type=jnp.float32) + b1_ref[...])
    whh1 = whh1_ref[...]

    def step1(t, carry):
        h, c = carry
        row = pl.multiple_of(t * Bp, Bp)
        gates = gx_ref[pl.ds(row, Bp), :] + jnp.dot(
            h.astype(jnp.bfloat16), whh1, preferred_element_type=jnp.float32)
        h, c = _lstm_cell(gates, c, H)
        out_ref[pl.ds(row, Bp), :] = h
        return h, c

    lax.fori_loop(0, T, step1, (zeros, zeros), unroll=True)


def lstm2(x_flat, p, *, n_time, n_batch):
    N, _ = x_flat.shape
    H = p['whh0_t'].shape[0]
    kernel = functools.partial(lstm2_kernel, n_time=n_time, n_batch=n_batch)
    args = (x_flat,
            p['wih0_t'].astype(jnp.bfloat16), p['whh0_t'].astype(jnp.bfloat16),
            p['b0'],
            p['wih1_t'].astype(jnp.bfloat16), p['whh1_t'].astype(jnp.bfloat16),
            p['b1'])
    return pl.pallas_call(
        kernel,
        out_shape=jax.ShapeDtypeStruct((N, H), jnp.float32),
        in_specs=[pl.BlockSpec(memory_space=pltpu.MemorySpace.VMEM)] * len(args),
        out_specs=pl.BlockSpec(memory_space=pltpu.MemorySpace.VMEM),
        scratch_shapes=[pltpu.VMEM((N, 4 * H), jnp.float32),
                        pltpu.VMEM((N, H), jnp.float32)],
        compiler_params=pltpu.CompilerParams(vmem_limit_bytes=32 * 1024 * 1024),
    )(*args)


# ----------------------------------------------------------------------------
# TransformerEncoderLayer kernel (post-norm, ReLU, eval mode),
# block-diagonal (per-time-step over batch) attention, gridded over time tiles.
# ----------------------------------------------------------------------------
def _layer_norm(x, gamma, beta, eps=1e-5):
    mu = jnp.mean(x, axis=-1, keepdims=True)
    var = jnp.mean(jnp.square(x - mu), axis=-1, keepdims=True)
    return (x - mu) * lax.rsqrt(var + eps) * gamma + beta


def encoder_layer_kernel(x_ref, wqkv_ref, bqkv_ref, wo_ref, bo_ref,
                         w1_ref, b1_ref, w2_ref, b2_ref,
                         g1_ref, be1_ref, g2_ref, be2_ref, out_ref,
                         *, n_heads, n_batch, b_real):
    # x_ref / out_ref: (R, E) token rows of this tile, row = t*Bp + b, R = Tt*Bp.
    R, E = x_ref.shape
    Bp = n_batch
    Tt = R // Bp
    hd = E // n_heads
    scale = 1.0 / math.sqrt(hd)

    x = x_ref[...]                                   # f32
    x_bf = x.astype(jnp.bfloat16)

    # Fused QKV projection, f32 accumulate.
    qkv = jnp.dot(x_bf, wqkv_ref[...],
                  preferred_element_type=jnp.float32) + bqkv_ref[...]
    q = qkv[:, 0:E]
    k = qkv[:, E:2 * E]
    v = qkv[:, 2 * E:3 * E]

    # Attention mixes only tokens of equal time index (= PyTorch attention over
    # the original batch axis, batch_first=False).  Mask out padded batch rows
    # on the key side; mask fill and softmax statistics stay in f32.
    need_mask = b_real < Bp
    if need_mask:
        key_ok = lax.broadcasted_iota(jnp.int32, (Tt, Bp, Bp), 2) < b_real

    attn = jnp.zeros((R, E), jnp.float32) + bo_ref[...]
    for h in range(n_heads):
        sl = slice(h * hd, (h + 1) * hd)
        qh = q[:, sl].reshape(Tt, Bp, hd).astype(jnp.bfloat16)
        kh = k[:, sl].reshape(Tt, Bp, hd).astype(jnp.bfloat16)
        vh = v[:, sl].reshape(Tt, Bp, hd).astype(jnp.bfloat16)
        s = jnp.einsum('tbd,tcd->tbc', qh, kh,
                       preferred_element_type=jnp.float32) * scale
        if need_mask:
            s = jnp.where(key_ok, s, -1e30)
        m = jnp.max(s, axis=-1, keepdims=True)
        e = jnp.exp(s - m)
        prob = e / jnp.sum(e, axis=-1, keepdims=True)
        oh = jnp.einsum('tbc,tcd->tbd', prob.astype(jnp.bfloat16), vh,
                        preferred_element_type=jnp.float32)
        # concat(o_h) @ Wo == sum_h o_h @ Wo[h*hd:(h+1)*hd, :]  -> no concat.
        attn = attn + jnp.dot(oh.reshape(R, hd).astype(jnp.bfloat16),
                              wo_ref[sl, :],
                              preferred_element_type=jnp.float32)

    # residual + LayerNorm 1 (post-norm, PyTorch default)
    y = _layer_norm(x + attn, g1_ref[...], be1_ref[...])

    # feed-forward (ReLU), residual + LayerNorm 2
    h1 = jnp.maximum(
        jnp.dot(y.astype(jnp.bfloat16), w1_ref[...],
                preferred_element_type=jnp.float32) + b1_ref[...], 0.0)
    h2 = jnp.dot(h1.astype(jnp.bfloat16), w2_ref[...],
                 preferred_element_type=jnp.float32) + b2_ref[...]
    out_ref[...] = _layer_norm(y + h2, g2_ref[...], be2_ref[...])


def _pick_time_tile(n_time, n_batch):
    # ~256 token rows per tile; keep >= 2 grid steps when possible (v7x megacore).
    t_tile = max(1, min(n_time, 256 // n_batch))
    while n_time % t_tile:
        t_tile -= 1
    if t_tile == n_time and n_time % 2 == 0:
        t_tile = n_time // 2
    return t_tile


def encoder_layer(tokens, lp, *, n_time, n_batch, n_heads, b_real):
    N, E = tokens.shape
    t_tile = _pick_time_tile(n_time, n_batch)
    rows = t_tile * n_batch
    grid = (N // rows,)

    kernel = functools.partial(encoder_layer_kernel, n_heads=n_heads,
                               n_batch=n_batch, b_real=b_real)
    tok_spec = pl.BlockSpec((rows, E), lambda i: (i, 0))

    def full(a):
        return pl.BlockSpec(a.shape, lambda i: (0, 0))

    weights = (lp['wqkv_t'].astype(jnp.bfloat16), lp['bqkv'],
               lp['wo_t'].astype(jnp.bfloat16), lp['bo'],
               lp['w1_t'].astype(jnp.bfloat16), lp['b1'],
               lp['w2_t'].astype(jnp.bfloat16), lp['b2'],
               lp['g1'], lp['be1'], lp['g2'], lp['be2'])

    return pl.pallas_call(
        kernel,
        out_shape=jax.ShapeDtypeStruct((N, E), jnp.float32),
        grid=grid,
        in_specs=[tok_spec] + [full(w) for w in weights],
        out_specs=tok_spec,
        compiler_params=pltpu.CompilerParams(
            dimension_semantics=("parallel",),
            vmem_limit_bytes=32 * 1024 * 1024),
    )(tokens, *weights)


# ----------------------------------------------------------------------------
# Full forward (eval mode).
# ----------------------------------------------------------------------------
def lstm_trans_forward(x, p, *, n_heads=4):
    B, C, T, D = x.shape            # C must be 1 (matches the torch reshape)
    x = x.reshape(B, T, D)
    H = p['whh0_t'].shape[0]

    # Pad batch to a full f32 sublane tile: unmasked stores, better MXU fill.
    Bp = max(8, -(-B // 8) * 8)
    x_tb = jnp.transpose(x, (1, 0, 2))              # (T, B, D) time-major
    if Bp != B:
        x_tb = jnp.pad(x_tb, ((0, 0), (0, Bp - B), (0, 0)))
    x_flat = x_tb.reshape(T * Bp, D)                # row = t*Bp + b

    tokens = lstm2(x_flat, p, n_time=T, n_batch=Bp)           # (T*Bp, H)

    for lp in p['enc_layers']:
        tokens = encoder_layer(tokens, lp, n_time=T, n_batch=Bp,
                               n_heads=n_heads, b_real=B)

    # mean over time + Linear(H -> 2): tiny, 2-lane output -> plain XLA.
    seq = tokens.reshape(T, Bp, H)[:, :B, :]        # drop padded batch rows
    pooled = jnp.mean(seq, axis=0)                  # (B, H)
    out = pooled @ p['w_out_t'] + p['b_out']
    return out, out


# ----------------------------------------------------------------------------
# Deterministic synthetic parameters (shapes from LSTMTrans.__init__).
# ----------------------------------------------------------------------------
def init_params(key, input_dim=40, hidden_dim=128, output_dim=2, dim_ff=2048,
                n_enc_layers=2):
    ks = list(jax.random.split(key, 64))
    it = iter(ks)

    def rnd(shape, scale):
        return jax.random.normal(next(it), shape, jnp.float32) * scale

    H = hidden_dim
    p = {
        # LSTM layer 0
        'wih0_t': rnd((input_dim, 4 * H), 0.05),
        'whh0_t': rnd((H, 4 * H), 0.05),
        'b0': rnd((1, 4 * H), 0.05),       # b_ih + b_hh combined
        # LSTM layer 1
        'wih1_t': rnd((H, 4 * H), 0.05),
        'whh1_t': rnd((H, 4 * H), 0.05),
        'b1': rnd((1, 4 * H), 0.05),
        'enc_layers': [],
        # hidden2out
        'w_out_t': rnd((H, output_dim), 0.1),
        'b_out': rnd((1, output_dim), 0.02),
    }
    for _ in range(n_enc_layers):
        p['enc_layers'].append({
            'wqkv_t': rnd((H, 3 * H), 0.05),
            'bqkv': rnd((1, 3 * H), 0.02),
            'wo_t': rnd((H, H), 0.05),
            'bo': rnd((1, H), 0.02),
            'w1_t': rnd((H, dim_ff), 0.03),
            'b1': rnd((1, dim_ff), 0.02),
            'w2_t': rnd((dim_ff, H), 0.03),
            'b2': rnd((1, H), 0.02),
            'g1': jnp.ones((1, H), jnp.float32),
            'be1': jnp.zeros((1, H), jnp.float32),
            'g2': jnp.ones((1, H), jnp.float32),
            'be2': jnp.zeros((1, H), jnp.float32),
        })
    return p


if __name__ == "__main__":
    key = jax.random.PRNGKey(0)
    pkey, xkey = jax.random.split(key)

    params = init_params(pkey)                      # default dims from the module
    B, C, T, D = 2, 1, 8, 40                        # C=1, as forward() implies
    x = jax.random.normal(xkey, (B, C, T, D), jnp.float32)

    fwd = jax.jit(lambda x: lstm_trans_forward(x, params))
    out1, out2 = fwd(x)
    jax.block_until_ready(out1)

    assert out1.shape == (B, 2) and out2.shape == (B, 2)
    assert bool(jnp.all(jnp.isfinite(out1)))
    print("KERNEL_OK")
</pallas_src>

<mosaic_0001>
module attributes {stable_mosaic.version = 11 : i64} {
  func.func @lstm2_kernel(%arg0: memref<64x40xf32, #tpu.memory_space<vmem>>, %arg1: memref<40x512xbf16, #tpu.memory_space<vmem>>, %arg2: memref<128x512xbf16, #tpu.memory_space<vmem>>, %arg3: memref<1x512xf32, #tpu.memory_space<vmem>>, %arg4: memref<128x512xbf16, #tpu.memory_space<vmem>>, %arg5: memref<128x512xbf16, #tpu.memory_space<vmem>>, %arg6: memref<1x512xf32, #tpu.memory_space<vmem>>, %arg7: memref<64x128xf32, #tpu.memory_space<vmem>>, %arg8: memref<64x512xf32, #tpu.memory_space<vmem>>, %arg9: memref<64x128xf32, #tpu.memory_space<vmem>>) attributes {dimension_semantics = [], scalar_prefetch = 0 : i64, scratch_operands = 2 : i64, tpu.core_type = #tpu.core_type<tc>} {
    %cst = arith.constant 0.000000e+00 : f32
    %0 = vector.broadcast %cst : f32 to vector<8x128xf32>
    %c0 = arith.constant 0 : index
    %c0_0 = arith.constant 0 : index
    %1 = vector.load %arg0[%c0, %c0_0] : memref<64x40xf32, #tpu.memory_space<vmem>>, vector<64x40xf32>
    %2 = arith.truncf %1 : vector<64x40xf32> to vector<64x40xbf16>
    %c0_1 = arith.constant 0 : index
    %c0_2 = arith.constant 0 : index
    %3 = vector.load %arg1[%c0_1, %c0_2] : memref<40x512xbf16, #tpu.memory_space<vmem>>, vector<40x512xbf16>
    %cst_3 = arith.constant dense<0.000000e+00> : vector<64x512xf32>
    %4 = tpu.matmul %2, %3, %cst_3 {dimension_numbers = #tpu.dot_dimension_numbers<[1], [0], [0], [1], [0, 0, 1, 1], [], []>} : vector<64x40xbf16>, vector<40x512xbf16>, vector<64x512xf32> -> vector<64x512xf32>
    %c0_4 = arith.constant 0 : index
    %c0_5 = arith.constant 0 : index
    %5 = vector.load %arg3[%c0_4, %c0_5] : memref<1x512xf32, #tpu.memory_space<vmem>>, vector<1x512xf32>
    %6 = vector.broadcast %5 : vector<1x512xf32> to vector<64x512xf32>
    %7 = arith.addf %4, %6 : vector<64x512xf32>
    %c0_6 = arith.constant 0 : index
    %c0_7 = arith.constant 0 : index
    %8 = vector.load %arg8[%c0_6, %c0_7] : memref<64x512xf32, #tpu.memory_space<vmem>>, vector<64x512xf32>
    tpu.vector_store %arg8[%c0_6, %c0_7], %7 {strides = array<i32>} : memref<64x512xf32, #tpu.memory_space<vmem>>, vector<64x512xf32>,
    %c0_8 = arith.constant 0 : index
    %c0_9 = arith.constant 0 : index
    %9 = vector.load %arg2[%c0_8, %c0_9] : memref<128x512xbf16, #tpu.memory_space<vmem>>, vector<128x512xbf16>
    %c0_i32 = arith.constant 0 : i32
    %c8_i32 = arith.constant 8 : i32
    %10 = arith.muli %c0_i32, %c8_i32 : i32
    %11 = tpu.assume_multiple %10, 8 : i32
    %12 = arith.index_cast %11 : i32 to index
    %c0_10 = arith.constant 0 : index
    %13 = vector.load %arg8[%12, %c0_10] : memref<64x512xf32, #tpu.memory_space<vmem>>, vector<8x512xf32>
    %14 = arith.truncf %0 : vector<8x128xf32> to vector<8x128xbf16>
    %cst_11 = arith.constant dense<0.000000e+00> : vector<8x512xf32>
    %15 = tpu.matmul %14, %9, %cst_11 {dimension_numbers = #tpu.dot_dimension_numbers<[1], [0], [0], [1], [0, 0, 1, 1], [], []>} : vector<8x128xbf16>, vector<128x512xbf16>, vector<8x512xf32> -> vector<8x512xf32>
    %16 = arith.addf %13, %15 : vector<8x512xf32>
    %17 = vector.extract_strided_slice %16 {offsets = [0, 0], sizes = [8, 128], strides = [1, 1]} : vector<8x512xf32> to vector<8x128xf32>
    %18 = arith.negf %17 : vector<8x128xf32>
    %19 = math.exp %18 : vector<8x128xf32>
    %cst_12 = arith.constant 1.000000e+00 : f32
    %20 = vector.broadcast %cst_12 : f32 to vector<8x128xf32>
    %21 = arith.addf %20, %19 : vector<8x128xf32>
    %22 = arith.divf %20, %21 : vector<8x128xf32>
    %23 = vector.extract_strided_slice %16 {offsets = [0, 128], sizes = [8, 128], strides = [1, 1]} : vector<8x512xf32> to vector<8x128xf32>
    %24 = arith.negf %23 : vector<8x128xf32>
    %25 = math.exp %24 : vector<8x128xf32>
    %cst_13 = arith.constant 1.000000e+00 : f32
    %26 = vector.broadcast %cst_13 : f32 to vector<8x128xf32>
    %27 = arith.addf %26, %25 : vector<8x128xf32>
    %28 = arith.divf %26, %27 : vector<8x128xf32>
    %29 = vector.extract_strided_slice %16 {offsets = [0, 256], sizes = [8, 128], strides = [1, 1]} : vector<8x512xf32> to vector<8x128xf32>
    %30 = math.tanh %29 : vector<8x128xf32>
    %31 = vector.extract_strided_slice %16 {offsets = [0, 384], sizes = [8, 128], strides = [1, 1]} : vector<8x512xf32> to vector<8x128xf32>
    %32 = arith.negf %31 : vector<8x128xf32>
    %33 = math.exp %32 : vector<8x128xf32>
    %cst_14 = arith.constant 1.000000e+00 : f32
    %34 = vector.broadcast %cst_14 : f32 to vector<8x128xf32>
    %35 = arith.addf %34, %33 : vector<8x128xf32>
    %36 = arith.divf %34, %35 : vector<8x128xf32>
    %37 = arith.mulf %28, %0 : vector<8x128xf32>
    %38 = arith.mulf %22, %30 : vector<8x128xf32>
    %39 = arith.addf %37, %38 : vector<8x128xf32>
    %40 = math.tanh %39 : vector<8x128xf32>
    %41 = arith.mulf %36, %40 : vector<8x128xf32>
    %42 = arith.index_cast %11 : i32 to index
    %c0_15 = arith.constant 0 : index
    %43 = vector.load %arg9[%42, %c0_15] : memref<64x128xf32, #tpu.memory_space<vmem>>, vector<8x128xf32>
    tpu.vector_store %arg9[%42, %c0_15], %41 {strides = array<i32>} : memref<64x128xf32, #tpu.memory_space<vmem>>, vector<8x128xf32>,
    %c1_i32 = arith.constant 1 : i32
    %c8_i32_16 = arith.constant 8 : i32
    %44 = arith.muli %c1_i32, %c8_i32_16 : i32
    %45 = tpu.assume_multiple %44, 8 : i32
    %46 = arith.index_cast %45 : i32 to index
    %c0_17 = arith.constant 0 : index
    %47 = vector.load %arg8[%46, %c0_17] : memref<64x512xf32, #tpu.memory_space<vmem>>, vector<8x512xf32>
    %48 = arith.truncf %41 : vector<8x128xf32> to vector<8x128xbf16>
    %cst_18 = arith.constant dense<0.000000e+00> : vector<8x512xf32>
    %49 = tpu.matmul %48, %9, %cst_18 {dimension_numbers = #tpu.dot_dimension_numbers<[1], [0], [0], [1], [0, 0, 1, 1], [], []>} : vector<8x128xbf16>, vector<128x512xbf16>, vector<8x512xf32> -> vector<8x512xf32>
    %50 = arith.addf %47, %49 : vector<8x512xf32>
    %51 = vector.extract_strided_slice %50 {offsets = [0, 0], sizes = [8, 128], strides = [1, 1]} : vector<8x512xf32> to vector<8x128xf32>
    %52 = arith.negf %51 : vector<8x128xf32>
    %53 = math.exp %52 : vector<8x128xf32>
    %cst_19 = arith.constant 1.000000e+00 : f32
    %54 = vector.broadcast %cst_19 : f32 to vector<8x128xf32>
    %55 = arith.addf %54, %53 : vector<8x128xf32>
    %56 = arith.divf %54, %55 : vector<8x128xf32>
    %57 = vector.extract_strided_slice %50 {offsets = [0, 128], sizes = [8, 128], strides = [1, 1]} : vector<8x512xf32> to vector<8x128xf32>
    %58 = arith.negf %57 : vector<8x128xf32>
    %59 = math.exp %58 : vector<8x128xf32>
    %cst_20 = arith.constant 1.000000e+00 : f32
    %60 = vector.broadcast %cst_20 : f32 to vector<8x128xf32>
    %61 = arith.addf %60, %59 : vector<8x128xf32>
    %62 = arith.divf %60, %61 : vector<8x128xf32>
    %63 = vector.extract_strided_slice %50 {offsets = [0, 256], sizes = [8, 128], strides = [1, 1]} : vector<8x512xf32> to vector<8x128xf32>
    %64 = math.tanh %63 : vector<8x128xf32>
    %65 = vector.extract_strided_slice %50 {offsets = [0, 384], sizes = [8, 128], strides = [1, 1]} : vector<8x512xf32> to vector<8x128xf32>
    %66 = arith.negf %65 : vector<8x128xf32>
    %67 = math.exp %66 : vector<8x128xf32>
    %cst_21 = arith.constant 1.000000e+00 : f32
    %68 = vector.broadcast %cst_21 : f32 to vector<8x128xf32>
    %69 = arith.addf %68, %67 : vector<8x128xf32>
    %70 = arith.divf %68, %69 : vector<8x128xf32>
    %71 = arith.mulf %62, %39 : vector<8x128xf32>
    %72 = arith.mulf %56, %64 : vector<8x128xf32>
    %73 = arith.addf %71, %72 : vector<8x128xf32>
    %74 = math.tanh %73 : vector<8x128xf32>
    %75 = arith.mulf %70, %74 : vector<8x128xf32>
    %76 = arith.index_cast %45 : i32 to index
    %c0_22 = arith.constant 0 : index
    %77 = vector.load %arg9[%76, %c0_22] : memref<64x128xf32, #tpu.memory_space<vmem>>, vector<8x128xf32>
    tpu.vector_store %arg9[%76, %c0_22], %75 {strides = array<i32>} : memref<64x128xf32, #tpu.memory_space<vmem>>, vector<8x128xf32>,
    %c2_i32 = arith.constant 2 : i32
    %c8_i32_23 = arith.constant 8 : i32
    %78 = arith.muli %c2_i32, %c8_i32_23 : i32
    %79 = tpu.assume_multiple %78, 8 : i32
    %80 = arith.index_cast %79 : i32 to index
    %c0_24 = arith.constant 0 : index
    %81 = vector.load %arg8[%80, %c0_24] : memref<64x512xf32, #tpu.memory_space<vmem>>, vector<8x512xf32>
    %82 = arith.truncf %75 : vector<8x128xf32> to vector<8x128xbf16>
    %cst_25 = arith.constant dense<0.000000e+00> : vector<8x512xf32>
    %83 = tpu.matmul %82, %9, %cst_25 {dimension_numbers = #tpu.dot_dimension_numbers<[1], [0], [0], [1], [0, 0, 1, 1], [], []>} : vector<8x128xbf16>, vector<128x512xbf16>, vector<8x512xf32> -> vector<8x512xf32>
    %84 = arith.addf %81, %83 : vector<8x512xf32>
    %85 = vector.extract_strided_slice %84 {offsets = [0, 0], sizes = [8, 128], strides = [1, 1]} : vector<8x512xf32> to vector<8x128xf32>
    %86 = arith.negf %85 : vector<8x128xf32>
    %87 = math.exp %86 : vector<8x128xf32>
    %cst_26 = arith.constant 1.000000e+00 : f32
    %88 = vector.broadcast %cst_26 : f32 to vector<8x128xf32>
    %89 = arith.addf %88, %87 : vector<8x128xf32>
    %90 = arith.divf %88, %89 : vector<8x128xf32>
    %91 = vector.extract_strided_slice %84 {offsets = [0, 128], sizes = [8, 128], strides = [1, 1]} : vector<8x512xf32> to vector<8x128xf32>
    %92 = arith.negf %91 : vector<8x128xf32>
    %93 = math.exp %92 : vector<8x128xf32>
    %cst_27 = arith.constant 1.000000e+00 : f32
    %94 = vector.broadcast %cst_27 : f32 to vector<8x128xf32>
    %95 = arith.addf %94, %93 : vector<8x128xf32>
    %96 = arith.divf %94, %95 : vector<8x128xf32>
    %97 = vector.extract_strided_slice %84 {offsets = [0, 256], sizes = [8, 128], strides = [1, 1]} : vector<8x512xf32> to vector<8x128xf32>
    %98 = math.tanh %97 : vector<8x128xf32>
    %99 = vector.extract_strided_slice %84 {offsets = [0, 384], sizes = [8, 128], strides = [1, 1]} : vector<8x512xf32> to vector<8x128xf32>
    %100 = arith.negf %99 : vector<8x128xf32>
    %101 = math.exp %100 : vector<8x128xf32>
    %cst_28 = arith.constant 1.000000e+00 : f32
    %102 = vector.broadcast %cst_28 : f32 to vector<8x128xf32>
    %103 = arith.addf %102, %101 : vector<8x128xf32>
    %104 = arith.divf %102, %103 : vector<8x128xf32>
    %105 = arith.mulf %96, %73 : vector<8x128xf32>
    %106 = arith.mulf %90, %98 : vector<8x128xf32>
    %107 = arith.addf %105, %106 : vector<8x128xf32>
    %108 = math.tanh %107 : vector<8x128xf32>
    %109 = arith.mulf %104, %108 : vector<8x128xf32>
    %110 = arith.index_cast %79 : i32 to index
    %c0_29 = arith.constant 0 : index
    %111 = vector.load %arg9[%110, %c0_29] : memref<64x128xf32, #tpu.memory_space<vmem>>, vector<8x128xf32>
    tpu.vector_store %arg9[%110, %c0_29], %109 {strides = array<i32>} : memref<64x128xf32, #tpu.memory_space<vmem>>, vector<8x128xf32>,
    %c3_i32 = arith.constant 3 : i32
    %c8_i32_30 = arith.constant 8 : i32
    %112 = arith.muli %c3_i32, %c8_i32_30 : i32
    %113 = tpu.assume_multiple %112, 8 : i32
    %114 = arith.index_cast %113 : i32 to index
    %c0_31 = arith.constant 0 : index
    %115 = vector.load %arg8[%114, %c0_31] : memref<64x512xf32, #tpu.memory_space<vmem>>, vector<8x512xf32>
    %116 = arith.truncf %109 : vector<8x128xf32> to vector<8x128xbf16>
    %cst_32 = arith.constant dense<0.000000e+00> : vector<8x512xf32>
    %117 = tpu.matmul %116, %9, %cst_32 {dimension_numbers = #tpu.dot_dimension_numbers<[1], [0], [0], [1], [0, 0, 1, 1], [], []>} : vector<8x128xbf16>, vector<128x512xbf16>, vector<8x512xf32> -> vector<8x512xf32>
    %118 = arith.addf %115, %117 : vector<8x512xf32>
    %119 = vector.extract_strided_slice %118 {offsets = [0, 0], sizes = [8, 128], strides = [1, 1]} : vector<8x512xf32> to vector<8x128xf32>
    %120 = arith.negf %119 : vector<8x128xf32>
    %121 = math.exp %120 : vector<8x128xf32>
    %cst_33 = arith.constant 1.000000e+00 : f32
    %122 = vector.broadcast %cst_33 : f32 to vector<8x128xf32>
    %123 = arith.addf %122, %121 : vector<8x128xf32>
    %124 = arith.divf %122, %123 : vector<8x128xf32>
    %125 = vector.extract_strided_slice %118 {offsets = [0, 128], sizes = [8, 128], strides = [1, 1]} : vector<8x512xf32> to vector<8x128xf32>
    %126 = arith.negf %125 : vector<8x128xf32>
    %127 = math.exp %126 : vector<8x128xf32>
    %cst_34 = arith.constant 1.000000e+00 : f32
    %128 = vector.broadcast %cst_34 : f32 to vector<8x128xf32>
    %129 = arith.addf %128, %127 : vector<8x128xf32>
    %130 = arith.divf %128, %129 : vector<8x128xf32>
    %131 = vector.extract_strided_slice %118 {offsets = [0, 256], sizes = [8, 128], strides = [1, 1]} : vector<8x512xf32> to vector<8x128xf32>
    %132 = math.tanh %131 : vector<8x128xf32>
    %133 = vector.extract_strided_slice %118 {offsets = [0, 384], sizes = [8, 128], strides = [1, 1]} : vector<8x512xf32> to vector<8x128xf32>
    %134 = arith.negf %133 : vector<8x128xf32>
    %135 = math.exp %134 : vector<8x128xf32>
    %cst_35 = arith.constant 1.000000e+00 : f32
    %136 = vector.broadcast %cst_35 : f32 to vector<8x128xf32>
    %137 = arith.addf %136, %135 : vector<8x128xf32>
    %138 = arith.divf %136, %137 : vector<8x128xf32>
    %139 = arith.mulf %130, %107 : vector<8x128xf32>
    %140 = arith.mulf %124, %132 : vector<8x128xf32>
    %141 = arith.addf %139, %140 : vector<8x128xf32>
    %142 = math.tanh %141 : vector<8x128xf32>
    %143 = arith.mulf %138, %142 : vector<8x128xf32>
    %144 = arith.index_cast %113 : i32 to index
    %c0_36 = arith.constant 0 : index
    %145 = vector.load %arg9[%144, %c0_36] : memref<64x128xf32, #tpu.memory_space<vmem>>, vector<8x128xf32>
    tpu.vector_store %arg9[%144, %c0_36], %143 {strides = array<i32>} : memref<64x128xf32, #tpu.memory_space<vmem>>, vector<8x128xf32>,
    %c4_i32 = arith.constant 4 : i32
    %c8_i32_37 = arith.constant 8 : i32
    %146 = arith.muli %c4_i32, %c8_i32_37 : i32
    %147 = tpu.assume_multiple %146, 8 : i32
    %148 = arith.index_cast %147 : i32 to index
    %c0_38 = arith.constant 0 : index
    %149 = vector.load %arg8[%148, %c0_38] : memref<64x512xf32, #tpu.memory_space<vmem>>, vector<8x512xf32>
    %150 = arith.truncf %143 : vector<8x128xf32> to vector<8x128xbf16>
    %cst_39 = arith.constant dense<0.000000e+00> : vector<8x512xf32>
    %151 = tpu.matmul %150, %9, %cst_39 {dimension_numbers = #tpu.dot_dimension_numbers<[1], [0], [0], [1], [0, 0, 1, 1], [], []>} : vector<8x128xbf16>, vector<128x512xbf16>, vector<8x512xf32> -> vector<8x512xf32>
    %152 = arith.addf %149, %151 : vector<8x512xf32>
    %153 = vector.extract_strided_slice %152 {offsets = [0, 0], sizes = [8, 128], strides = [1, 1]} : vector<8x512xf32> to vector<8x128xf32>
    %154 = arith.negf %153 : vector<8x128xf32>
    %155 = math.exp %154 : vector<8x128xf32>
    %cst_40 = arith.constant 1.000000e+00 : f32
    %156 = vector.broadcast %cst_40 : f32 to vector<8x128xf32>
    %157 = arith.addf %156, %155 : vector<8x128xf32>
    %158 = arith.divf %156, %157 : vector<8x128xf32>
    %159 = vector.extract_strided_slice %152 {offsets = [0, 128], sizes = [8, 128], strides = [1, 1]} : vector<8x512xf32> to vector<8x128xf32>
    %160 = arith.negf %159 : vector<8x128xf32>
    %161 = math.exp %160 : vector<8x128xf32>
    %cst_41 = arith.constant 1.000000e+00 : f32
    %162 = vector.broadcast %cst_41 : f32 to vector<8x128xf32>
    %163 = arith.addf %162, %161 : vector<8x128xf32>
    %164 = arith.divf %162, %163 : vector<8x128xf32>
    %165 = vector.extract_strided_slice %152 {offsets = [0, 256], sizes = [8, 128], strides = [1, 1]} : vector<8x512xf32> to vector<8x128xf32>
    %166 = math.tanh %165 : vector<8x128xf32>
    %167 = vector.extract_strided_slice %152 {offsets = [0, 384], sizes = [8, 128], strides = [1, 1]} : vector<8x512xf32> to vector<8x128xf32>
    %168 = arith.negf %167 : vector<8x128xf32>
    %169 = math.exp %168 : vector<8x128xf32>
    %cst_42 = arith.constant 1.000000e+00 : f32
    %170 = vector.broadcast %cst_42 : f32 to vector<8x128xf32>
    %171 = arith.addf %170, %169 : vector<8x128xf32>
    %172 = arith.divf %170, %171 : vector<8x128xf32>
    %173 = arith.mulf %164, %141 : vector<8x128xf32>
    %174 = arith.mulf %158, %166 : vector<8x128xf32>
    %175 = arith.addf %173, %174 : vector<8x128xf32>
    %176 = math.tanh %175 : vector<8x128xf32>
    %177 = arith.mulf %172, %176 : vector<8x128xf32>
    %178 = arith.index_cast %147 : i32 to index
    %c0_43 = arith.constant 0 : index
    %179 = vector.load %arg9[%178, %c0_43] : memref<64x128xf32, #tpu.memory_space<vmem>>, vector<8x128xf32>
    tpu.vector_store %arg9[%178, %c0_43], %177 {strides = array<i32>} : memref<64x128xf32, #tpu.memory_space<vmem>>, vector<8x128xf32>,
    %c5_i32 = arith.constant 5 : i32
    %c8_i32_44 = arith.constant 8 : i32
    %180 = arith.muli %c5_i32, %c8_i32_44 : i32
    %181 = tpu.assume_multiple %180, 8 : i32
    %182 = arith.index_cast %181 : i32 to index
    %c0_45 = arith.constant 0 : index
    %183 = vector.load %arg8[%182, %c0_45] : memref<64x512xf32, #tpu.memory_space<vmem>>, vector<8x512xf32>
    %184 = arith.truncf %177 : vector<8x128xf32> to vector<8x128xbf16>
    %cst_46 = arith.constant dense<0.000000e+00> : vector<8x512xf32>
    %185 = tpu.matmul %184, %9, %cst_46 {dimension_numbers = #tpu.dot_dimension_numbers<[1], [0], [0], [1], [0, 0, 1, 1], [], []>} : vector<8x128xbf16>, vector<128x512xbf16>, vector<8x512xf32> -> vector<8x512xf32>
    %186 = arith.addf %183, %185 : vector<8x512xf32>
    %187 = vector.extract_strided_slice %186 {offsets = [0, 0], sizes = [8, 128], strides = [1, 1]} : vector<8x512xf32> to vector<8x128xf32>
    %188 = arith.negf %187 : vector<8x128xf32>
    %189 = math.exp %188 : vector<8x128xf32>
    %cst_47 = arith.constant 1.000000e+00 : f32
    %190 = vector.broadcast %cst_47 : f32 to vector<8x128xf32>
    %191 = arith.addf %190, %189 : vector<8x128xf32>
    %192 = arith.divf %190, %191 : vector<8x128xf32>
    %193 = vector.extract_strided_slice %186 {offsets = [0, 128], sizes = [8, 128], strides = [1, 1]} : vector<8x512xf32> to vector<8x128xf32>
    %194 = arith.negf %193 : vector<8x128xf32>
    %195 = math.exp %194 : vector<8x128xf32>
    %cst_48 = arith.constant 1.000000e+00 : f32
    %196 = vector.broadcast %cst_48 : f32 to vector<8x128xf32>
    %197 = arith.addf %196, %195 : vector<8x128xf32>
    %198 = arith.divf %196, %197 : vector<8x128xf32>
    %199 = vector.extract_strided_slice %186 {offsets = [0, 256], sizes = [8, 128], strides = [1, 1]} : vector<8x512xf32> to vector<8x128xf32>
    %200 = math.tanh %199 : vector<8x128xf32>
    %201 = vector.extract_strided_slice %186 {offsets = [0, 384], sizes = [8, 128], strides = [1, 1]} : vector<8x512xf32> to vector<8x128xf32>
    %202 = arith.negf %201 : vector<8x128xf32>
    %203 = math.exp %202 : vector<8x128xf32>
    %cst_49 = arith.constant 1.000000e+00 : f32
    %204 = vector.broadcast %cst_49 : f32 to vector<8x128xf32>
    %205 = arith.addf %204, %203 : vector<8x128xf32>
    %206 = arith.divf %204, %205 : vector<8x128xf32>
    %207 = arith.mulf %198, %175 : vector<8x128xf32>
    %208 = arith.mulf %192, %200 : vector<8x128xf32>
    %209 = arith.addf %207, %208 : vector<8x128xf32>
    %210 = math.tanh %209 : vector<8x128xf32>
    %211 = arith.mulf %206, %210 : vector<8x128xf32>
    %212 = arith.index_cast %181 : i32 to index
    %c0_50 = arith.constant 0 : index
    %213 = vector.load %arg9[%212, %c0_50] : memref<64x128xf32, #tpu.memory_space<vmem>>, vector<8x128xf32>
    tpu.vector_store %arg9[%212, %c0_50], %211 {strides = array<i32>} : memref<64x128xf32, #tpu.memory_space<vmem>>, vector<8x128xf32>,
    %c6_i32 = arith.constant 6 : i32
    %c8_i32_51 = arith.constant 8 : i32
    %214 = arith.muli %c6_i32, %c8_i32_51 : i32
    %215 = tpu.assume_multiple %214, 8 : i32
    %216 = arith.index_cast %215 : i32 to index
    %c0_52 = arith.constant 0 : index
    %217 = vector.load %arg8[%216, %c0_52] : memref<64x512xf32, #tpu.memory_space<vmem>>, vector<8x512xf32>
    %218 = arith.truncf %211 : vector<8x128xf32> to vector<8x128xbf16>
    %cst_53 = arith.constant dense<0.000000e+00> : vector<8x512xf32>
    %219 = tpu.matmul %218, %9, %cst_53 {dimension_numbers = #tpu.dot_dimension_numbers<[1], [0], [0], [1], [0, 0, 1, 1], [], []>} : vector<8x128xbf16>, vector<128x512xbf16>, vector<8x512xf32> -> vector<8x512xf32>
    %220 = arith.addf %217, %219 : vector<8x512xf32>
    %221 = vector.extract_strided_slice %220 {offsets = [0, 0], sizes = [8, 128], strides = [1, 1]} : vector<8x512xf32> to vector<8x128xf32>
    %222 = arith.negf %221 : vector<8x128xf32>
    %223 = math.exp %222 : vector<8x128xf32>
    %cst_54 = arith.constant 1.000000e+00 : f32
    %224 = vector.broadcast %cst_54 : f32 to vector<8x128xf32>
    %225 = arith.addf %224, %223 : vector<8x128xf32>
    %226 = arith.divf %224, %225 : vector<8x128xf32>
    %227 = vector.extract_strided_slice %220 {offsets = [0, 128], sizes = [8, 128], strides = [1, 1]} : vector<8x512xf32> to vector<8x128xf32>
    %228 = arith.negf %227 : vector<8x128xf32>
    %229 = math.exp %228 : vector<8x128xf32>
    %cst_55 = arith.constant 1.000000e+00 : f32
    %230 = vector.broadcast %cst_55 : f32 to vector<8x128xf32>
    %231 = arith.addf %230, %229 : vector<8x128xf32>
    %232 = arith.divf %230, %231 : vector<8x128xf32>
    %233 = vector.extract_strided_slice %220 {offsets = [0, 256], sizes = [8, 128], strides = [1, 1]} : vector<8x512xf32> to vector<8x128xf32>
    %234 = math.tanh %233 : vector<8x128xf32>
    %235 = vector.extract_strided_slice %220 {offsets = [0, 384], sizes = [8, 128], strides = [1, 1]} : vector<8x512xf32> to vector<8x128xf32>
    %236 = arith.negf %235 : vector<8x128xf32>
    %237 = math.exp %236 : vector<8x128xf32>
    %cst_56 = arith.constant 1.000000e+00 : f32
    %238 = vector.broadcast %cst_56 : f32 to vector<8x128xf32>
    %239 = arith.addf %238, %237 : vector<8x128xf32>
    %240 = arith.divf %238, %239 : vector<8x128xf32>
    %241 = arith.mulf %232, %209 : vector<8x128xf32>
    %242 = arith.mulf %226, %234 : vector<8x128xf32>
    %243 = arith.addf %241, %242 : vector<8x128xf32>
    %244 = math.tanh %243 : vector<8x128xf32>
    %245 = arith.mulf %240, %244 : vector<8x128xf32>
    %246 = arith.index_cast %215 : i32 to index
    %c0_57 = arith.constant 0 : index
    %247 = vector.load %arg9[%246, %c0_57] : memref<64x128xf32, #tpu.memory_space<vmem>>, vector<8x128xf32>
    tpu.vector_store %arg9[%246, %c0_57], %245 {strides = array<i32>} : memref<64x128xf32, #tpu.memory_space<vmem>>, vector<8x128xf32>,
    %c7_i32 = arith.constant 7 : i32
    %c8_i32_58 = arith.constant 8 : i32
    %248 = arith.muli %c7_i32, %c8_i32_58 : i32
    %249 = tpu.assume_multiple %248, 8 : i32
    %250 = arith.index_cast %249 : i32 to index
    %c0_59 = arith.constant 0 : index
    %251 = vector.load %arg8[%250, %c0_59] : memref<64x512xf32, #tpu.memory_space<vmem>>, vector<8x512xf32>
    %252 = arith.truncf %245 : vector<8x128xf32> to vector<8x128xbf16>
    %cst_60 = arith.constant dense<0.000000e+00> : vector<8x512xf32>
    %253 = tpu.matmul %252, %9, %cst_60 {dimension_numbers = #tpu.dot_dimension_numbers<[1], [0], [0], [1], [0, 0, 1, 1], [], []>} : vector<8x128xbf16>, vector<128x512xbf16>, vector<8x512xf32> -> vector<8x512xf32>
    %254 = arith.addf %251, %253 : vector<8x512xf32>
    %255 = vector.extract_strided_slice %254 {offsets = [0, 0], sizes = [8, 128], strides = [1, 1]} : vector<8x512xf32> to vector<8x128xf32>
    %256 = arith.negf %255 : vector<8x128xf32>
    %257 = math.exp %256 : vector<8x128xf32>
    %cst_61 = arith.constant 1.000000e+00 : f32
    %258 = vector.broadcast %cst_61 : f32 to vector<8x128xf32>
    %259 = arith.addf %258, %257 : vector<8x128xf32>
    %260 = arith.divf %258, %259 : vector<8x128xf32>
    %261 = vector.extract_strided_slice %254 {offsets = [0, 128], sizes = [8, 128], strides = [1, 1]} : vector<8x512xf32> to vector<8x128xf32>
    %262 = arith.negf %261 : vector<8x128xf32>
    %263 = math.exp %262 : vector<8x128xf32>
    %cst_62 = arith.constant 1.000000e+00 : f32
    %264 = vector.broadcast %cst_62 : f32 to vector<8x128xf32>
    %265 = arith.addf %264, %263 : vector<8x128xf32>
    %266 = arith.divf %264, %265 : vector<8x128xf32>
    %267 = vector.extract_strided_slice %254 {offsets = [0, 256], sizes = [8, 128], strides = [1, 1]} : vector<8x512xf32> to vector<8x128xf32>
    %268 = math.tanh %267 : vector<8x128xf32>
    %269 = vector.extract_strided_slice %254 {offsets = [0, 384], sizes = [8, 128], strides = [1, 1]} : vector<8x512xf32> to vector<8x128xf32>
    %270 = arith.negf %269 : vector<8x128xf32>
    %271 = math.exp %270 : vector<8x128xf32>
    %cst_63 = arith.constant 1.000000e+00 : f32
    %272 = vector.broadcast %cst_63 : f32 to vector<8x128xf32>
    %273 = arith.addf %272, %271 : vector<8x128xf32>
    %274 = arith.divf %272, %273 : vector<8x128xf32>
    %275 = arith.mulf %266, %243 : vector<8x128xf32>
    %276 = arith.mulf %260, %268 : vector<8x128xf32>
    %277 = arith.addf %275, %276 : vector<8x128xf32>
    %278 = math.tanh %277 : vector<8x128xf32>
    %279 = arith.mulf %274, %278 : vector<8x128xf32>
    %280 = arith.index_cast %249 : i32 to index
    %c0_64 = arith.constant 0 : index
    %281 = vector.load %arg9[%280, %c0_64] : memref<64x128xf32, #tpu.memory_space<vmem>>, vector<8x128xf32>
    tpu.vector_store %arg9[%280, %c0_64], %279 {strides = array<i32>} : memref<64x128xf32, #tpu.memory_space<vmem>>, vector<8x128xf32>,
    %c8_i32_65 = arith.constant 8 : i32
    %c0_66 = arith.constant 0 : index
    %c0_67 = arith.constant 0 : index
    %282 = vector.load %arg9[%c0_66, %c0_67] : memref<64x128xf32, #tpu.memory_space<vmem>>, vector<64x128xf32>
    %283 = arith.truncf %282 : vector<64x128xf32> to vector<64x128xbf16>
    %c0_68 = arith.constant 0 : index
    %c0_69 = arith.constant 0 : index
    %284 = vector.load %arg4[%c0_68, %c0_69] : memref<128x512xbf16, #tpu.memory_space<vmem>>, vector<128x512xbf16>
    %cst_70 = arith.constant dense<0.000000e+00> : vector<64x512xf32>
    %285 = tpu.matmul %283, %284, %cst_70 {dimension_numbers = #tpu.dot_dimension_numbers<[1], [0], [0], [1], [0, 0, 1, 1], [], []>} : vector<64x128xbf16>, vector<128x512xbf16>, vector<64x512xf32> -> vector<64x512xf32>
    %c0_71 = arith.constant 0 : index
    %c0_72 = arith.constant 0 : index
    %286 = vector.load %arg6[%c0_71, %c0_72] : memref<1x512xf32, #tpu.memory_space<vmem>>, vector<1x512xf32>
    %287 = vector.broadcast %286 : vector<1x512xf32> to vector<64x512xf32>
    %288 = arith.addf %285, %287 : vector<64x512xf32>
    %c0_73 = arith.constant 0 : index
    %c0_74 = arith.constant 0 : index
    %289 = vector.load %arg8[%c0_73, %c0_74] : memref<64x512xf32, #tpu.memory_space<vmem>>, vector<64x512xf32>
    tpu.vector_store %arg8[%c0_73, %c0_74], %288 {strides = array<i32>} : memref<64x512xf32, #tpu.memory_space<vmem>>, vector<64x512xf32>,
    %c0_75 = arith.constant 0 : index
    %c0_76 = arith.constant 0 : index
    %290 = vector.load %arg5[%c0_75, %c0_76] : memref<128x512xbf16, #tpu.memory_space<vmem>>, vector<128x512xbf16>
    %c0_i32_77 = arith.constant 0 : i32
    %c8_i32_78 = arith.constant 8 : i32
    %291 = arith.muli %c0_i32_77, %c8_i32_78 : i32
    %292 = tpu.assume_multiple %291, 8 : i32
    %293 = arith.index_cast %292 : i32 to index
    %c0_79 = arith.constant 0 : index
    %294 = vector.load %arg8[%293, %c0_79] : memref<64x512xf32, #tpu.memory_space<vmem>>, vector<8x512xf32>
    %295 = arith.truncf %0 : vector<8x128xf32> to vector<8x128xbf16>
    %cst_80 = arith.constant dense<0.000000e+00> : vector<8x512xf32>
    %296 = tpu.matmul %295, %290, %cst_80 {dimension_numbers = #tpu.dot_dimension_numbers<[1], [0], [0], [1], [0, 0, 1, 1], [], []>} : vector<8x128xbf16>, vector<128x512xbf16>, vector<8x512xf32> -> vector<8x512xf32>
    %297 = arith.addf %294, %296 : vector<8x512xf32>
    %298 = vector.extract_strided_slice %297 {offsets = [0, 0], sizes = [8, 128], strides = [1, 1]} : vector<8x512xf32> to vector<8x128xf32>
    %299 = arith.negf %298 : vector<8x128xf32>
    %300 = math.exp %299 : vector<8x128xf32>
    %cst_81 = arith.constant 1.000000e+00 : f32
    %301 = vector.broadcast %cst_81 : f32 to vector<8x128xf32>
    %302 = arith.addf %301, %300 : vector<8x128xf32>
    %303 = arith.divf %301, %302 : vector<8x128xf32>
    %304 = vector.extract_strided_slice %297 {offsets = [0, 128], sizes = [8, 128], strides = [1, 1]} : vector<8x512xf32> to vector<8x128xf32>
    %305 = arith.negf %304 : vector<8x128xf32>
    %306 = math.exp %305 : vector<8x128xf32>
    %cst_82 = arith.constant 1.000000e+00 : f32
    %307 = vector.broadcast %cst_82 : f32 to vector<8x128xf32>
    %308 = arith.addf %307, %306 : vector<8x128xf32>
    %309 = arith.divf %307, %308 : vector<8x128xf32>
    %310 = vector.extract_strided_slice %297 {offsets = [0, 256], sizes = [8, 128], strides = [1, 1]} : vector<8x512xf32> to vector<8x128xf32>
    %311 = math.tanh %310 : vector<8x128xf32>
    %312 = vector.extract_strided_slice %297 {offsets = [0, 384], sizes = [8, 128], strides = [1, 1]} : vector<8x512xf32> to vector<8x128xf32>
    %313 = arith.negf %312 : vector<8x128xf32>
    %314 = math.exp %313 : vector<8x128xf32>
    %cst_83 = arith.constant 1.000000e+00 : f32
    %315 = vector.broadcast %cst_83 : f32 to vector<8x128xf32>
    %316 = arith.addf %315, %314 : vector<8x128xf32>
    %317 = arith.divf %315, %316 : vector<8x128xf32>
    %318 = arith.mulf %309, %0 : vector<8x128xf32>
    %319 = arith.mulf %303, %311 : vector<8x128xf32>
    %320 = arith.addf %318, %319 : vector<8x128xf32>
    %321 = math.tanh %320 : vector<8x128xf32>
    %322 = arith.mulf %317, %321 : vector<8x128xf32>
    %323 = arith.index_cast %292 : i32 to index
    %c0_84 = arith.constant 0 : index
    %324 = vector.load %arg7[%323, %c0_84] : memref<64x128xf32, #tpu.memory_space<vmem>>, vector<8x128xf32>
    tpu.vector_store %arg7[%323, %c0_84], %322 {strides = array<i32>} : memref<64x128xf32, #tpu.memory_space<vmem>>, vector<8x128xf32>,
    %c1_i32_85 = arith.constant 1 : i32
    %c8_i32_86 = arith.constant 8 : i32
    %325 = arith.muli %c1_i32_85, %c8_i32_86 : i32
    %326 = tpu.assume_multiple %325, 8 : i32
    %327 = arith.index_cast %326 : i32 to index
    %c0_87 = arith.constant 0 : index
    %328 = vector.load %arg8[%327, %c0_87] : memref<64x512xf32, #tpu.memory_space<vmem>>, vector<8x512xf32>
    %329 = arith.truncf %322 : vector<8x128xf32> to vector<8x128xbf16>
    %cst_88 = arith.constant dense<0.000000e+00> : vector<8x512xf32>
    %330 = tpu.matmul %329, %290, %cst_88 {dimension_numbers = #tpu.dot_dimension_numbers<[1], [0], [0], [1], [0, 0, 1, 1], [], []>} : vector<8x128xbf16>, vector<128x512xbf16>, vector<8x512xf32> -> vector<8x512xf32>
    %331 = arith.addf %328, %330 : vector<8x512xf32>
    %332 = vector.extract_strided_slice %331 {offsets = [0, 0], sizes = [8, 128], strides = [1, 1]} : vector<8x512xf32> to vector<8x128xf32>
    %333 = arith.negf %332 : vector<8x128xf32>
    %334 = math.exp %333 : vector<8x128xf32>
    %cst_89 = arith.constant 1.000000e+00 : f32
    %335 = vector.broadcast %cst_89 : f32 to vector<8x128xf32>
    %336 = arith.addf %335, %334 : vector<8x128xf32>
    %337 = arith.divf %335, %336 : vector<8x128xf32>
    %338 = vector.extract_strided_slice %331 {offsets = [0, 128], sizes = [8, 128], strides = [1, 1]} : vector<8x512xf32> to vector<8x128xf32>
    %339 = arith.negf %338 : vector<8x128xf32>
    %340 = math.exp %339 : vector<8x128xf32>
    %cst_90 = arith.constant 1.000000e+00 : f32
    %341 = vector.broadcast %cst_90 : f32 to vector<8x128xf32>
    %342 = arith.addf %341, %340 : vector<8x128xf32>
    %343 = arith.divf %341, %342 : vector<8x128xf32>
    %344 = vector.extract_strided_slice %331 {offsets = [0, 256], sizes = [8, 128], strides = [1, 1]} : vector<8x512xf32> to vector<8x128xf32>
    %345 = math.tanh %344 : vector<8x128xf32>
    %346 = vector.extract_strided_slice %331 {offsets = [0, 384], sizes = [8, 128], strides = [1, 1]} : vector<8x512xf32> to vector<8x128xf32>
    %347 = arith.negf %346 : vector<8x128xf32>
    %348 = math.exp %347 : vector<8x128xf32>
    %cst_91 = arith.constant 1.000000e+00 : f32
    %349 = vector.broadcast %cst_91 : f32 to vector<8x128xf32>
    %350 = arith.addf %349, %348 : vector<8x128xf32>
    %351 = arith.divf %349, %350 : vector<8x128xf32>
    %352 = arith.mulf %343, %320 : vector<8x128xf32>
    %353 = arith.mulf %337, %345 : vector<8x128xf32>
    %354 = arith.addf %352, %353 : vector<8x128xf32>
    %355 = math.tanh %354 : vector<8x128xf32>
    %356 = arith.mulf %351, %355 : vector<8x128xf32>
    %357 = arith.index_cast %326 : i32 to index
    %c0_92 = arith.constant 0 : index
    %358 = vector.load %arg7[%357, %c0_92] : memref<64x128xf32, #tpu.memory_space<vmem>>, vector<8x128xf32>
    tpu.vector_store %arg7[%357, %c0_92], %356 {strides = array<i32>} : memref<64x128xf32, #tpu.memory_space<vmem>>, vector<8x128xf32>,
    %c2_i32_93 = arith.constant 2 : i32
    %c8_i32_94 = arith.constant 8 : i32
    %359 = arith.muli %c2_i32_93, %c8_i32_94 : i32
    %360 = tpu.assume_multiple %359, 8 : i32
    %361 = arith.index_cast %360 : i32 to index
    %c0_95 = arith.constant 0 : index
    %362 = vector.load %arg8[%361, %c0_95] : memref<64x512xf32, #tpu.memory_space<vmem>>, vector<8x512xf32>
    %363 = arith.truncf %356 : vector<8x128xf32> to vector<8x128xbf16>
    %cst_96 = arith.constant dense<0.000000e+00> : vector<8x512xf32>
    %364 = tpu.matmul %363, %290, %cst_96 {dimension_numbers = #tpu.dot_dimension_numbers<[1], [0], [0], [1], [0, 0, 1, 1], [], []>} : vector<8x128xbf16>, vector<128x512xbf16>, vector<8x512xf32> -> vector<8x512xf32>
    %365 = arith.addf %362, %364 : vector<8x512xf32>
    %366 = vector.extract_strided_slice %365 {offsets = [0, 0], sizes = [8, 128], strides = [1, 1]} : vector<8x512xf32> to vector<8x128xf32>
    %367 = arith.negf %366 : vector<8x128xf32>
    %368 = math.exp %367 : vector<8x128xf32>
    %cst_97 = arith.constant 1.000000e+00 : f32
    %369 = vector.broadcast %cst_97 : f32 to vector<8x128xf32>
    %370 = arith.addf %369, %368 : vector<8x128xf32>
    %371 = arith.divf %369, %370 : vector<8x128xf32>
    %372 = vector.extract_strided_slice %365 {offsets = [0, 128], sizes = [8, 128], strides = [1, 1]} : vector<8x512xf32> to vector<8x128xf32>
    %373 = arith.negf %372 : vector<8x128xf32>
    %374 = math.exp %373 : vector<8x128xf32>
    %cst_98 = arith.constant 1.000000e+00 : f32
    %375 = vector.broadcast %cst_98 : f32 to vector<8x128xf32>
    %376 = arith.addf %375, %374 : vector<8x128xf32>
    %377 = arith.divf %375, %376 : vector<8x128xf32>
    %378 = vector.extract_strided_slice %365 {offsets = [0, 256], sizes = [8, 128], strides = [1, 1]} : vector<8x512xf32> to vector<8x128xf32>
    %379 = math.tanh %378 : vector<8x128xf32>
    %380 = vector.extract_strided_slice %365 {offsets = [0, 384], sizes = [8, 128], strides = [1, 1]} : vector<8x512xf32> to vector<8x128xf32>
    %381 = arith.negf %380 : vector<8x128xf32>
    %382 = math.exp %381 : vector<8x128xf32>
    %cst_99 = arith.constant 1.000000e+00 : f32
    %383 = vector.broadcast %cst_99 : f32 to vector<8x128xf32>
    %384 = arith.addf %383, %382 : vector<8x128xf32>
    %385 = arith.divf %383, %384 : vector<8x128xf32>
    %386 = arith.mulf %377, %354 : vector<8x128xf32>
    %387 = arith.mulf %371, %379 : vector<8x128xf32>
    %388 = arith.addf %386, %387 : vector<8x128xf32>
    %389 = math.tanh %388 : vector<8x128xf32>
    %390 = arith.mulf %385, %389 : vector<8x128xf32>
    %391 = arith.index_cast %360 : i32 to index
    %c0_100 = arith.constant 0 : index
    %392 = vector.load %arg7[%391, %c0_100] : memref<64x128xf32, #tpu.memory_space<vmem>>, vector<8x128xf32>
    tpu.vector_store %arg7[%391, %c0_100], %390 {strides = array<i32>} : memref<64x128xf32, #tpu.memory_space<vmem>>, vector<8x128xf32>,
    %c3_i32_101 = arith.constant 3 : i32
    %c8_i32_102 = arith.constant 8 : i32
    %393 = arith.muli %c3_i32_101, %c8_i32_102 : i32
    %394 = tpu.assume_multiple %393, 8 : i32
    %395 = arith.index_cast %394 : i32 to index
    %c0_103 = arith.constant 0 : index
    %396 = vector.load %arg8[%395, %c0_103] : memref<64x512xf32, #tpu.memory_space<vmem>>, vector<8x512xf32>
    %397 = arith.truncf %390 : vector<8x128xf32> to vector<8x128xbf16>
    %cst_104 = arith.constant dense<0.000000e+00> : vector<8x512xf32>
    %398 = tpu.matmul %397, %290, %cst_104 {dimension_numbers = #tpu.dot_dimension_numbers<[1], [0], [0], [1], [0, 0, 1, 1], [], []>} : vector<8x128xbf16>, vector<128x512xbf16>, vector<8x512xf32> -> vector<8x512xf32>
    %399 = arith.addf %396, %398 : vector<8x512xf32>
    %400 = vector.extract_strided_slice %399 {offsets = [0, 0], sizes = [8, 128], strides = [1, 1]} : vector<8x512xf32> to vector<8x128xf32>
    %401 = arith.negf %400 : vector<8x128xf32>
    %402 = math.exp %401 : vector<8x128xf32>
    %cst_105 = arith.constant 1.000000e+00 : f32
    %403 = vector.broadcast %cst_105 : f32 to vector<8x128xf32>
    %404 = arith.addf %403, %402 : vector<8x128xf32>
    %405 = arith.divf %403, %404 : vector<8x128xf32>
    %406 = vector.extract_strided_slice %399 {offsets = [0, 128], sizes = [8, 128], strides = [1, 1]} : vector<8x512xf32> to vector<8x128xf32>
    %407 = arith.negf %406 : vector<8x128xf32>
    %408 = math.exp %407 : vector<8x128xf32>
    %cst_106 = arith.constant 1.000000e+00 : f32
    %409 = vector.broadcast %cst_106 : f32 to vector<8x128xf32>
    %410 = arith.addf %409, %408 : vector<8x128xf32>
    %411 = arith.divf %409, %410 : vector<8x128xf32>
    %412 = vector.extract_strided_slice %399 {offsets = [0, 256], sizes = [8, 128], strides = [1, 1]} : vector<8x512xf32> to vector<8x128xf32>
    %413 = math.tanh %412 : vector<8x128xf32>
    %414 = vector.extract_strided_slice %399 {offsets = [0, 384], sizes = [8, 128], strides = [1, 1]} : vector<8x512xf32> to vector<8x128xf32>
    %415 = arith.negf %414 : vector<8x128xf32>
    %416 = math.exp %415 : vector<8x128xf32>
    %cst_107 = arith.constant 1.000000e+00 : f32
    %417 = vector.broadcast %cst_107 : f32 to vector<8x128xf32>
    %418 = arith.addf %417, %416 : vector<8x128xf32>
    %419 = arith.divf %417, %418 : vector<8x128xf32>
    %420 = arith.mulf %411, %388 : vector<8x128xf32>
    %421 = arith.mulf %405, %413 : vector<8x128xf32>
    %422 = arith.addf %420, %421 : vector<8x128xf32>
    %423 = math.tanh %422 : vector<8x128xf32>
    %424 = arith.mulf %419, %423 : vector<8x128xf32>
    %425 = arith.index_cast %394 : i32 to index
    %c0_108 = arith.constant 0 : index
    %426 = vector.load %arg7[%425, %c0_108] : memref<64x128xf32, #tpu.memory_space<vmem>>, vector<8x128xf32>
    tpu.vector_store %arg7[%425, %c0_108], %424 {strides = array<i32>} : memref<64x128xf32, #tpu.memory_space<vmem>>, vector<8x128xf32>,
    %c4_i32_109 = arith.constant 4 : i32
    %c8_i32_110 = arith.constant 8 : i32
    %427 = arith.muli %c4_i32_109, %c8_i32_110 : i32
    %428 = tpu.assume_multiple %427, 8 : i32
    %429 = arith.index_cast %428 : i32 to index
    %c0_111 = arith.constant 0 : index
    %430 = vector.load %arg8[%429, %c0_111] : memref<64x512xf32, #tpu.memory_space<vmem>>, vector<8x512xf32>
    %431 = arith.truncf %424 : vector<8x128xf32> to vector<8x128xbf16>
    %cst_112 = arith.constant dense<0.000000e+00> : vector<8x512xf32>
    %432 = tpu.matmul %431, %290, %cst_112 {dimension_numbers = #tpu.dot_dimension_numbers<[1], [0], [0], [1], [0, 0, 1, 1], [], []>} : vector<8x128xbf16>, vector<128x512xbf16>, vector<8x512xf32> -> vector<8x512xf32>
    %433 = arith.addf %430, %432 : vector<8x512xf32>
    %434 = vector.extract_strided_slice %433 {offsets = [0, 0], sizes = [8, 128], strides = [1, 1]} : vector<8x512xf32> to vector<8x128xf32>
    %435 = arith.negf %434 : vector<8x128xf32>
    %436 = math.exp %435 : vector<8x128xf32>
    %cst_113 = arith.constant 1.000000e+00 : f32
    %437 = vector.broadcast %cst_113 : f32 to vector<8x128xf32>
    %438 = arith.addf %437, %436 : vector<8x128xf32>
    %439 = arith.divf %437, %438 : vector<8x128xf32>
    %440 = vector.extract_strided_slice %433 {offsets = [0, 128], sizes = [8, 128], strides = [1, 1]} : vector<8x512xf32> to vector<8x128xf32>
    %441 = arith.negf %440 : vector<8x128xf32>
    %442 = math.exp %441 : vector<8x128xf32>
    %cst_114 = arith.constant 1.000000e+00 : f32
    %443 = vector.broadcast %cst_114 : f32 to vector<8x128xf32>
    %444 = arith.addf %443, %442 : vector<8x128xf32>
    %445 = arith.divf %443, %444 : vector<8x128xf32>
    %446 = vector.extract_strided_slice %433 {offsets = [0, 256], sizes = [8, 128], strides = [1, 1]} : vector<8x512xf32> to vector<8x128xf32>
    %447 = math.tanh %446 : vector<8x128xf32>
    %448 = vector.extract_strided_slice %433 {offsets = [0, 384], sizes = [8, 128], strides = [1, 1]} : vector<8x512xf32> to vector<8x128xf32>
    %449 = arith.negf %448 : vector<8x128xf32>
    %450 = math.exp %449 : vector<8x128xf32>
    %cst_115 = arith.constant 1.000000e+00 : f32
    %451 = vector.broadcast %cst_115 : f32 to vector<8x128xf32>
    %452 = arith.addf %451, %450 : vector<8x128xf32>
    %453 = arith.divf %451, %452 : vector<8x128xf32>
    %454 = arith.mulf %445, %422 : vector<8x128xf32>
    %455 = arith.mulf %439, %447 : vector<8x128xf32>
    %456 = arith.addf %454, %455 : vector<8x128xf32>
    %457 = math.tanh %456 : vector<8x128xf32>
    %458 = arith.mulf %453, %457 : vector<8x128xf32>
    %459 = arith.index_cast %428 : i32 to index
    %c0_116 = arith.constant 0 : index
    %460 = vector.load %arg7[%459, %c0_116] : memref<64x128xf32, #tpu.memory_space<vmem>>, vector<8x128xf32>
    tpu.vector_store %arg7[%459, %c0_116], %458 {strides = array<i32>} : memref<64x128xf32, #tpu.memory_space<vmem>>, vector<8x128xf32>,
    %c5_i32_117 = arith.constant 5 : i32
    %c8_i32_118 = arith.constant 8 : i32
    %461 = arith.muli %c5_i32_117, %c8_i32_118 : i32
    %462 = tpu.assume_multiple %461, 8 : i32
    %463 = arith.index_cast %462 : i32 to index
    %c0_119 = arith.constant 0 : index
    %464 = vector.load %arg8[%463, %c0_119] : memref<64x512xf32, #tpu.memory_space<vmem>>, vector<8x512xf32>
    %465 = arith.truncf %458 : vector<8x128xf32> to vector<8x128xbf16>
    %cst_120 = arith.constant dense<0.000000e+00> : vector<8x512xf32>
    %466 = tpu.matmul %465, %290, %cst_120 {dimension_numbers = #tpu.dot_dimension_numbers<[1], [0], [0], [1], [0, 0, 1, 1], [], []>} : vector<8x128xbf16>, vector<128x512xbf16>, vector<8x512xf32> -> vector<8x512xf32>
    %467 = arith.addf %464, %466 : vector<8x512xf32>
    %468 = vector.extract_strided_slice %467 {offsets = [0, 0], sizes = [8, 128], strides = [1, 1]} : vector<8x512xf32> to vector<8x128xf32>
    %469 = arith.negf %468 : vector<8x128xf32>
    %470 = math.exp %469 : vector<8x128xf32>
    %cst_121 = arith.constant 1.000000e+00 : f32
    %471 = vector.broadcast %cst_121 : f32 to vector<8x128xf32>
    %472 = arith.addf %471, %470 : vector<8x128xf32>
    %473 = arith.divf %471, %472 : vector<8x128xf32>
    %474 = vector.extract_strided_slice %467 {offsets = [0, 128], sizes = [8, 128], strides = [1, 1]} : vector<8x512xf32> to vector<8x128xf32>
    %475 = arith.negf %474 : vector<8x128xf32>
    %476 = math.exp %475 : vector<8x128xf32>
    %cst_122 = arith.constant 1.000000e+00 : f32
    %477 = vector.broadcast %cst_122 : f32 to vector<8x128xf32>
    %478 = arith.addf %477, %476 : vector<8x128xf32>
    %479 = arith.divf %477, %478 : vector<8x128xf32>
    %480 = vector.extract_strided_slice %467 {offsets = [0, 256], sizes = [8, 128], strides = [1, 1]} : vector<8x512xf32> to vector<8x128xf32>
    %481 = math.tanh %480 : vector<8x128xf32>
    %482 = vector.extract_strided_slice %467 {offsets = [0, 384], sizes = [8, 128], strides = [1, 1]} : vector<8x512xf32> to vector<8x128xf32>
    %483 = arith.negf %482 : vector<8x128xf32>
    %484 = math.exp %483 : vector<8x128xf32>
    %cst_123 = arith.constant 1.000000e+00 : f32
    %485 = vector.broadcast %cst_123 : f32 to vector<8x128xf32>
    %486 = arith.addf %485, %484 : vector<8x128xf32>
    %487 = arith.divf %485, %486 : vector<8x128xf32>
    %488 = arith.mulf %479, %456 : vector<8x128xf32>
    %489 = arith.mulf %473, %481 : vector<8x128xf32>
    %490 = arith.addf %488, %489 : vector<8x128xf32>
    %491 = math.tanh %490 : vector<8x128xf32>
    %492 = arith.mulf %487, %491 : vector<8x128xf32>
    %493 = arith.index_cast %462 : i32 to index
    %c0_124 = arith.constant 0 : index
    %494 = vector.load %arg7[%493, %c0_124] : memref<64x128xf32, #tpu.memory_space<vmem>>, vector<8x128xf32>
    tpu.vector_store %arg7[%493, %c0_124], %492 {strides = array<i32>} : memref<64x128xf32, #tpu.memory_space<vmem>>, vector<8x128xf32>,
    %c6_i32_125 = arith.constant 6 : i32
    %c8_i32_126 = arith.constant 8 : i32
    %495 = arith.muli %c6_i32_125, %c8_i32_126 : i32
    %496 = tpu.assume_multiple %495, 8 : i32
    %497 = arith.index_cast %496 : i32 to index
    %c0_127 = arith.constant 0 : index
    %498 = vector.load %arg8[%497, %c0_127] : memref<64x512xf32, #tpu.memory_space<vmem>>, vector<8x512xf32>
    %499 = arith.truncf %492 : vector<8x128xf32> to vector<8x128xbf16>
    %cst_128 = arith.constant dense<0.000000e+00> : vector<8x512xf32>
    %500 = tpu.matmul %499, %290, %cst_128 {dimension_numbers = #tpu.dot_dimension_numbers<[1], [0], [0], [1], [0, 0, 1, 1], [], []>} : vector<8x128xbf16>, vector<128x512xbf16>, vector<8x512xf32> -> vector<8x512xf32>
    %501 = arith.addf %498, %500 : vector<8x512xf32>
    %502 = vector.extract_strided_slice %501 {offsets = [0, 0], sizes = [8, 128], strides = [1, 1]} : vector<8x512xf32> to vector<8x128xf32>
    %503 = arith.negf %502 : vector<8x128xf32>
    %504 = math.exp %503 : vector<8x128xf32>
    %cst_129 = arith.constant 1.000000e+00 : f32
    %505 = vector.broadcast %cst_129 : f32 to vector<8x128xf32>
    %506 = arith.addf %505, %504 : vector<8x128xf32>
    %507 = arith.divf %505, %506 : vector<8x128xf32>
    %508 = vector.extract_strided_slice %501 {offsets = [0, 128], sizes = [8, 128], strides = [1, 1]} : vector<8x512xf32> to vector<8x128xf32>
    %509 = arith.negf %508 : vector<8x128xf32>
    %510 = math.exp %509 : vector<8x128xf32>
    %cst_130 = arith.constant 1.000000e+00 : f32
    %511 = vector.broadcast %cst_130 : f32 to vector<8x128xf32>
    %512 = arith.addf %511, %510 : vector<8x128xf32>
    %513 = arith.divf %511, %512 : vector<8x128xf32>
    %514 = vector.extract_strided_slice %501 {offsets = [0, 256], sizes = [8, 128], strides = [1, 1]} : vector<8x512xf32> to vector<8x128xf32>
    %515 = math.tanh %514 : vector<8x128xf32>
    %516 = vector.extract_strided_slice %501 {offsets = [0, 384], sizes = [8, 128], strides = [1, 1]} : vector<8x512xf32> to vector<8x128xf32>
    %517 = arith.negf %516 : vector<8x128xf32>
    %518 = math.exp %517 : vector<8x128xf32>
    %cst_131 = arith.constant 1.000000e+00 : f32
    %519 = vector.broadcast %cst_131 : f32 to vector<8x128xf32>
    %520 = arith.addf %519, %518 : vector<8x128xf32>
    %521 = arith.divf %519, %520 : vector<8x128xf32>
    %522 = arith.mulf %513, %490 : vector<8x128xf32>
    %523 = arith.mulf %507, %515 : vector<8x128xf32>
    %524 = arith.addf %522, %523 : vector<8x128xf32>
    %525 = math.tanh %524 : vector<8x128xf32>
    %526 = arith.mulf %521, %525 : vector<8x128xf32>
    %527 = arith.index_cast %496 : i32 to index
    %c0_132 = arith.constant 0 : index
    %528 = vector.load %arg7[%527, %c0_132] : memref<64x128xf32, #tpu.memory_space<vmem>>, vector<8x128xf32>
    tpu.vector_store %arg7[%527, %c0_132], %526 {strides = array<i32>} : memref<64x128xf32, #tpu.memory_space<vmem>>, vector<8x128xf32>,
    %c7_i32_133 = arith.constant 7 : i32
    %c8_i32_134 = arith.constant 8 : i32
    %529 = arith.muli %c7_i32_133, %c8_i32_134 : i32
    %530 = tpu.assume_multiple %529, 8 : i32
    %531 = arith.index_cast %530 : i32 to index
    %c0_135 = arith.constant 0 : index
    %532 = vector.load %arg8[%531, %c0_135] : memref<64x512xf32, #tpu.memory_space<vmem>>, vector<8x512xf32>
    %533 = arith.truncf %526 : vector<8x128xf32> to vector<8x128xbf16>
    %cst_136 = arith.constant dense<0.000000e+00> : vector<8x512xf32>
    %534 = tpu.matmul %533, %290, %cst_136 {dimension_numbers = #tpu.dot_dimension_numbers<[1], [0], [0], [1], [0, 0, 1, 1], [], []>} : vector<8x128xbf16>, vector<128x512xbf16>, vector<8x512xf32> -> vector<8x512xf32>
    %535 = arith.addf %532, %534 : vector<8x512xf32>
    %536 = vector.extract_strided_slice %535 {offsets = [0, 0], sizes = [8, 128], strides = [1, 1]} : vector<8x512xf32> to vector<8x128xf32>
    %537 = arith.negf %536 : vector<8x128xf32>
    %538 = math.exp %537 : vector<8x128xf32>
    %cst_137 = arith.constant 1.000000e+00 : f32
    %539 = vector.broadcast %cst_137 : f32 to vector<8x128xf32>
    %540 = arith.addf %539, %538 : vector<8x128xf32>
    %541 = arith.divf %539, %540 : vector<8x128xf32>
    %542 = vector.extract_strided_slice %535 {offsets = [0, 128], sizes = [8, 128], strides = [1, 1]} : vector<8x512xf32> to vector<8x128xf32>
    %543 = arith.negf %542 : vector<8x128xf32>
    %544 = math.exp %543 : vector<8x128xf32>
    %cst_138 = arith.constant 1.000000e+00 : f32
    %545 = vector.broadcast %cst_138 : f32 to vector<8x128xf32>
    %546 = arith.addf %545, %544 : vector<8x128xf32>
    %547 = arith.divf %545, %546 : vector<8x128xf32>
    %548 = vector.extract_strided_slice %535 {offsets = [0, 256], sizes = [8, 128], strides = [1, 1]} : vector<8x512xf32> to vector<8x128xf32>
    %549 = math.tanh %548 : vector<8x128xf32>
    %550 = vector.extract_strided_slice %535 {offsets = [0, 384], sizes = [8, 128], strides = [1, 1]} : vector<8x512xf32> to vector<8x128xf32>
    %551 = arith.negf %550 : vector<8x128xf32>
    %552 = math.exp %551 : vector<8x128xf32>
    %cst_139 = arith.constant 1.000000e+00 : f32
    %553 = vector.broadcast %cst_139 : f32 to vector<8x128xf32>
    %554 = arith.addf %553, %552 : vector<8x128xf32>
    %555 = arith.divf %553, %554 : vector<8x128xf32>
    %556 = arith.mulf %547, %524 : vector<8x128xf32>
    %557 = arith.mulf %541, %549 : vector<8x128xf32>
    %558 = arith.addf %556, %557 : vector<8x128xf32>
    %559 = math.tanh %558 : vector<8x128xf32>
    %560 = arith.mulf %555, %559 : vector<8x128xf32>
    %561 = arith.index_cast %530 : i32 to index
    %c0_140 = arith.constant 0 : index
    %562 = vector.load %arg7[%561, %c0_140] : memref<64x128xf32, #tpu.memory_space<vmem>>, vector<8x128xf32>
    tpu.vector_store %arg7[%561, %c0_140], %560 {strides = array<i32>} : memref<64x128xf32, #tpu.memory_space<vmem>>, vector<8x128xf32>,
    %c8_i32_141 = arith.constant 8 : i32
    return
  }
}

module attributes {stable_mosaic.version = 11 : i64} {
  func.func @encoder_layer_kernel(%arg0: i32, %arg1: memref<32x128xf32, #tpu.memory_space<vmem>>, %arg2: memref<128x384xbf16, #tpu.memory_space<vmem>>, %arg3: memref<1x384xf32, #tpu.memory_space<vmem>>, %arg4: memref<128x128xbf16, #tpu.memory_space<vmem>>, %arg5: memref<1x128xf32, #tpu.memory_space<vmem>>, %arg6: memref<128x2048xbf16, #tpu.memory_space<vmem>>, %arg7: memref<1x2048xf32, #tpu.memory_space<vmem>>, %arg8: memref<2048x128xbf16, #tpu.memory_space<vmem>>, %arg9: memref<1x128xf32, #tpu.memory_space<vmem>>, %arg10: memref<1x128xf32, #tpu.memory_space<vmem>>, %arg11: memref<1x128xf32, #tpu.memory_space<vmem>>, %arg12: memref<1x128xf32, #tpu.memory_space<vmem>>, %arg13: memref<1x128xf32, #tpu.memory_space<vmem>>, %arg14: memref<32x128xf32, #tpu.memory_space<vmem>>) attributes {dimension_semantics = [#tpu.dimension_semantics<parallel>], iteration_bounds = array<i64: 2>, scalar_prefetch = 0 : i64, scratch_operands = 0 : i64, tpu.core_type = #tpu.core_type<tc>, window_params = [{transform_indices = @transform_0, window_bounds = array<i64: 32, 128>}, {pipeline_mode = #tpu.pipeline_mode<synchronous>, transform_indices = @transform_1, window_bounds = array<i64: 128, 384>}, {pipeline_mode = #tpu.pipeline_mode<synchronous>, transform_indices = @transform_2, window_bounds = array<i64: 1, 384>}, {pipeline_mode = #tpu.pipeline_mode<synchronous>, transform_indices = @transform_3, window_bounds = array<i64: 128, 128>}, {pipeline_mode = #tpu.pipeline_mode<synchronous>, transform_indices = @transform_4, window_bounds = array<i64: 1, 128>}, {pipeline_mode = #tpu.pipeline_mode<synchronous>, transform_indices = @transform_5, window_bounds = array<i64: 128, 2048>}, {pipeline_mode = #tpu.pipeline_mode<synchronous>, transform_indices = @transform_6, window_bounds = array<i64: 1, 2048>}, {pipeline_mode = #tpu.pipeline_mode<synchronous>, transform_indices = @transform_7, window_bounds = array<i64: 2048, 128>}, {pipeline_mode = #tpu.pipeline_mode<synchronous>, transform_indices = @transform_8, window_bounds = array<i64: 1, 128>}, {pipeline_mode = #tpu.pipeline_mode<synchronous>, transform_indices = @transform_9, window_bounds = array<i64: 1, 128>}, {pipeline_mode = #tpu.pipeline_mode<synchronous>, transform_indices = @transform_10, window_bounds = array<i64: 1, 128>}, {pipeline_mode = #tpu.pipeline_mode<synchronous>, transform_indices = @transform_11, window_bounds = array<i64: 1, 128>}, {pipeline_mode = #tpu.pipeline_mode<synchronous>, transform_indices = @transform_12, window_bounds = array<i64: 1, 128>}, {transform_indices = @transform_13, window_bounds = array<i64: 32, 128>}]} {
    %c0 = arith.constant 0 : index
    %c0_0 = arith.constant 0 : index
    %0 = vector.load %arg1[%c0, %c0_0] : memref<32x128xf32, #tpu.memory_space<vmem>>, vector<32x128xf32>
    %1 = arith.truncf %0 : vector<32x128xf32> to vector<32x128xbf16>
    %c0_1 = arith.constant 0 : index
    %c0_2 = arith.constant 0 : index
    %2 = vector.load %arg2[%c0_1, %c0_2] : memref<128x384xbf16, #tpu.memory_space<vmem>>, vector<128x384xbf16>
    %cst = arith.constant dense<0.000000e+00> : vector<32x384xf32>
    %3 = tpu.matmul %1, %2, %cst {dimension_numbers = #tpu.dot_dimension_numbers<[1], [0], [0], [1], [0, 0, 1, 1], [], []>} : vector<32x128xbf16>, vector<128x384xbf16>, vector<32x384xf32> -> vector<32x384xf32>
    %c0_3 = arith.constant 0 : index
    %c0_4 = arith.constant 0 : index
    %4 = vector.load %arg3[%c0_3, %c0_4] : memref<1x384xf32, #tpu.memory_space<vmem>>, vector<1x384xf32>
    %5 = vector.broadcast %4 : vector<1x384xf32> to vector<32x384xf32>
    %6 = arith.addf %3, %5 : vector<32x384xf32>
    %7 = vector.extract_strided_slice %6 {offsets = [0, 0], sizes = [32, 128], strides = [1, 1]} : vector<32x384xf32> to vector<32x128xf32>
    %8 = vector.extract_strided_slice %6 {offsets = [0, 128], sizes = [32, 128], strides = [1, 1]} : vector<32x384xf32> to vector<32x128xf32>
    %9 = vector.extract_strided_slice %6 {offsets = [0, 256], sizes = [32, 128], strides = [1, 1]} : vector<32x384xf32> to vector<32x128xf32>
    %10 = tpu.iota {dimensions = array<i32: 2>} : vector<4x8x8xi32>
    %c2_i32 = arith.constant 2 : i32
    %11 = vector.broadcast %c2_i32 : i32 to vector<4x8x8xi32>
    %12 = arith.cmpi slt, %10, %11 : vector<4x8x8xi32>
    %cst_5 = arith.constant 0.000000e+00 : f32
    %13 = vector.broadcast %cst_5 : f32 to vector<32x128xf32>
    %c0_6 = arith.constant 0 : index
    %c0_7 = arith.constant 0 : index
    %14 = vector.load %arg5[%c0_6, %c0_7] : memref<1x128xf32, #tpu.memory_space<vmem>>, vector<1x128xf32>
    %15 = vector.broadcast %14 : vector<1x128xf32> to vector<32x128xf32>
    %16 = arith.addf %13, %15 : vector<32x128xf32>
    %17 = vector.extract_strided_slice %7 {offsets = [0, 0], sizes = [32, 32], strides = [1, 1]} : vector<32x128xf32> to vector<32x32xf32>
    %18 = vector.shape_cast %17 : vector<32x32xf32> to vector<4x8x32xf32>
    %19 = arith.truncf %18 : vector<4x8x32xf32> to vector<4x8x32xbf16>
    %20 = vector.extract_strided_slice %8 {offsets = [0, 0], sizes = [32, 32], strides = [1, 1]} : vector<32x128xf32> to vector<32x32xf32>
    %21 = vector.shape_cast %20 : vector<32x32xf32> to vector<4x8x32xf32>
    %22 = arith.truncf %21 : vector<4x8x32xf32> to vector<4x8x32xbf16>
    %23 = vector.extract_strided_slice %9 {offsets = [0, 0], sizes = [32, 32], strides = [1, 1]} : vector<32x128xf32> to vector<32x32xf32>
    %24 = vector.shape_cast %23 : vector<32x32xf32> to vector<4x8x32xf32>
    %25 = arith.truncf %24 : vector<4x8x32xf32> to vector<4x8x32xbf16>
    "tpu.trace_start"() <{level = 10 : i32, message = "tbd,tcd->tbc"}> : () -> ()
    %cst_8 = arith.constant dense<0.000000e+00> : vector<4x8x8xf32>
    %26 = tpu.matmul %19, %22, %cst_8 {dimension_numbers = #tpu.dot_dimension_numbers<[2], [2], [1], [1], [0, 0, 0, 1, 1, 1], [0], [0]>} : vector<4x8x32xbf16>, vector<4x8x32xbf16>, vector<4x8x8xf32> -> vector<4x8x8xf32>
    "tpu.trace_stop"() : () -> ()
    %cst_9 = arith.constant 0.176776692 : f32
    %27 = vector.broadcast %cst_9 : f32 to vector<4x8x8xf32>
    %28 = arith.mulf %26, %27 : vector<4x8x8xf32>
    %cst_10 = arith.constant -1.000000e+30 : f32
    %29 = vector.broadcast %cst_10 : f32 to vector<4x8x8xf32>
    %30 = arith.select %12, %28, %29 : vector<4x8x8xi1>, vector<4x8x8xf32>
    %cst_11 = arith.constant dense<0xFF800000> : vector<4x8xf32>
    %31 = vector.multi_reduction <maximumf>, %30, %cst_11 [2] : vector<4x8x8xf32> to vector<4x8xf32>
    %32 = vector.shape_cast %31 : vector<4x8xf32> to vector<4x8x1xf32>
    %33 = vector.broadcast %32 : vector<4x8x1xf32> to vector<4x8x8xf32>
    %34 = arith.subf %30, %33 : vector<4x8x8xf32>
    %35 = math.exp %34 : vector<4x8x8xf32>
    %cst_12 = arith.constant dense<0.000000e+00> : vector<4x8xf32>
    %36 = vector.multi_reduction <add>, %35, %cst_12 [2] : vector<4x8x8xf32> to vector<4x8xf32>
    %37 = vector.shape_cast %36 : vector<4x8xf32> to vector<4x8x1xf32>
    %38 = vector.broadcast %37 : vector<4x8x1xf32> to vector<4x8x8xf32>
    %39 = arith.divf %35, %38 : vector<4x8x8xf32>
    %40 = arith.truncf %39 : vector<4x8x8xf32> to vector<4x8x8xbf16>
    "tpu.trace_start"() <{level = 10 : i32, message = "tbc,tcd->tbd"}> : () -> ()
    %cst_13 = arith.constant dense<0.000000e+00> : vector<4x8x32xf32>
    %41 = tpu.matmul %40, %25, %cst_13 {dimension_numbers = #tpu.dot_dimension_numbers<[2], [1], [1], [2], [0, 0, 0, 1, 1, 2], [0], [0]>} : vector<4x8x8xbf16>, vector<4x8x32xbf16>, vector<4x8x32xf32> -> vector<4x8x32xf32>
    "tpu.trace_stop"() : () -> ()
    %42 = vector.shape_cast %41 : vector<4x8x32xf32> to vector<32x32xf32>
    %43 = arith.truncf %42 : vector<32x32xf32> to vector<32x32xbf16>
    %c0_14 = arith.constant 0 : index
    %c0_15 = arith.constant 0 : index
    %44 = vector.load %arg4[%c0_14, %c0_15] : memref<128x128xbf16, #tpu.memory_space<vmem>>, vector<32x128xbf16>
    %cst_16 = arith.constant dense<0.000000e+00> : vector<32x128xf32>
    %45 = tpu.matmul %43, %44, %cst_16 {dimension_numbers = #tpu.dot_dimension_numbers<[1], [0], [0], [1], [0, 0, 1, 1], [], []>} : vector<32x32xbf16>, vector<32x128xbf16>, vector<32x128xf32> -> vector<32x128xf32>
    %46 = arith.addf %16, %45 : vector<32x128xf32>
    %47 = vector.extract_strided_slice %7 {offsets = [0, 32], sizes = [32, 32], strides = [1, 1]} : vector<32x128xf32> to vector<32x32xf32>
    %48 = vector.shape_cast %47 : vector<32x32xf32> to vector<4x8x32xf32>
    %49 = arith.truncf %48 : vector<4x8x32xf32> to vector<4x8x32xbf16>
    %50 = vector.extract_strided_slice %8 {offsets = [0, 32], sizes = [32, 32], strides = [1, 1]} : vector<32x128xf32> to vector<32x32xf32>
    %51 = vector.shape_cast %50 : vector<32x32xf32> to vector<4x8x32xf32>
    %52 = arith.truncf %51 : vector<4x8x32xf32> to vector<4x8x32xbf16>
    %53 = vector.extract_strided_slice %9 {offsets = [0, 32], sizes = [32, 32], strides = [1, 1]} : vector<32x128xf32> to vector<32x32xf32>
    %54 = vector.shape_cast %53 : vector<32x32xf32> to vector<4x8x32xf32>
    %55 = arith.truncf %54 : vector<4x8x32xf32> to vector<4x8x32xbf16>
    "tpu.trace_start"() <{level = 10 : i32, message = "tbd,tcd->tbc"}> : () -> ()
    %cst_17 = arith.constant dense<0.000000e+00> : vector<4x8x8xf32>
    %56 = tpu.matmul %49, %52, %cst_17 {dimension_numbers = #tpu.dot_dimension_numbers<[2], [2], [1], [1], [0, 0, 0, 1, 1, 1], [0], [0]>} : vector<4x8x32xbf16>, vector<4x8x32xbf16>, vector<4x8x8xf32> -> vector<4x8x8xf32>
    "tpu.trace_stop"() : () -> ()
    %cst_18 = arith.constant 0.176776692 : f32
    %57 = vector.broadcast %cst_18 : f32 to vector<4x8x8xf32>
    %58 = arith.mulf %56, %57 : vector<4x8x8xf32>
    %cst_19 = arith.constant -1.000000e+30 : f32
    %59 = vector.broadcast %cst_19 : f32 to vector<4x8x8xf32>
    %60 = arith.select %12, %58, %59 : vector<4x8x8xi1>, vector<4x8x8xf32>
    %cst_20 = arith.constant dense<0xFF800000> : vector<4x8xf32>
    %61 = vector.multi_reduction <maximumf>, %60, %cst_20 [2] : vector<4x8x8xf32> to vector<4x8xf32>
    %62 = vector.shape_cast %61 : vector<4x8xf32> to vector<4x8x1xf32>
    %63 = vector.broadcast %62 : vector<4x8x1xf32> to vector<4x8x8xf32>
    %64 = arith.subf %60, %63 : vector<4x8x8xf32>
    %65 = math.exp %64 : vector<4x8x8xf32>
    %cst_21 = arith.constant dense<0.000000e+00> : vector<4x8xf32>
    %66 = vector.multi_reduction <add>, %65, %cst_21 [2] : vector<4x8x8xf32> to vector<4x8xf32>
    %67 = vector.shape_cast %66 : vector<4x8xf32> to vector<4x8x1xf32>
    %68 = vector.broadcast %67 : vector<4x8x1xf32> to vector<4x8x8xf32>
    %69 = arith.divf %65, %68 : vector<4x8x8xf32>
    %70 = arith.truncf %69 : vector<4x8x8xf32> to vector<4x8x8xbf16>
    "tpu.trace_start"() <{level = 10 : i32, message = "tbc,tcd->tbd"}> : () -> ()
    %cst_22 = arith.constant dense<0.000000e+00> : vector<4x8x32xf32>
    %71 = tpu.matmul %70, %55, %cst_22 {dimension_numbers = #tpu.dot_dimension_numbers<[2], [1], [1], [2], [0, 0, 0, 1, 1, 2], [0], [0]>} : vector<4x8x8xbf16>, vector<4x8x32xbf16>, vector<4x8x32xf32> -> vector<4x8x32xf32>
    "tpu.trace_stop"() : () -> ()
    %72 = vector.shape_cast %71 : vector<4x8x32xf32> to vector<32x32xf32>
    %73 = arith.truncf %72 : vector<32x32xf32> to vector<32x32xbf16>
    %c32 = arith.constant 32 : index
    %c0_23 = arith.constant 0 : index
    %74 = vector.load %arg4[%c32, %c0_23] : memref<128x128xbf16, #tpu.memory_space<vmem>>, vector<32x128xbf16>
    %cst_24 = arith.constant dense<0.000000e+00> : vector<32x128xf32>
    %75 = tpu.matmul %73, %74, %cst_24 {dimension_numbers = #tpu.dot_dimension_numbers<[1], [0], [0], [1], [0, 0, 1, 1], [], []>} : vector<32x32xbf16>, vector<32x128xbf16>, vector<32x128xf32> -> vector<32x128xf32>
    %76 = arith.addf %46, %75 : vector<32x128xf32>
    %77 = vector.extract_strided_slice %7 {offsets = [0, 64], sizes = [32, 32], strides = [1, 1]} : vector<32x128xf32> to vector<32x32xf32>
    %78 = vector.shape_cast %77 : vector<32x32xf32> to vector<4x8x32xf32>
    %79 = arith.truncf %78 : vector<4x8x32xf32> to vector<4x8x32xbf16>
    %80 = vector.extract_strided_slice %8 {offsets = [0, 64], sizes = [32, 32], strides = [1, 1]} : vector<32x128xf32> to vector<32x32xf32>
    %81 = vector.shape_cast %80 : vector<32x32xf32> to vector<4x8x32xf32>
    %82 = arith.truncf %81 : vector<4x8x32xf32> to vector<4x8x32xbf16>
    %83 = vector.extract_strided_slice %9 {offsets = [0, 64], sizes = [32, 32], strides = [1, 1]} : vector<32x128xf32> to vector<32x32xf32>
    %84 = vector.shape_cast %83 : vector<32x32xf32> to vector<4x8x32xf32>
    %85 = arith.truncf %84 : vector<4x8x32xf32> to vector<4x8x32xbf16>
    "tpu.trace_start"() <{level = 10 : i32, message = "tbd,tcd->tbc"}> : () -> ()
    %cst_25 = arith.constant dense<0.000000e+00> : vector<4x8x8xf32>
    %86 = tpu.matmul %79, %82, %cst_25 {dimension_numbers = #tpu.dot_dimension_numbers<[2], [2], [1], [1], [0, 0, 0, 1, 1, 1], [0], [0]>} : vector<4x8x32xbf16>, vector<4x8x32xbf16>, vector<4x8x8xf32> -> vector<4x8x8xf32>
    "tpu.trace_stop"() : () -> ()
    %cst_26 = arith.constant 0.176776692 : f32
    %87 = vector.broadcast %cst_26 : f32 to vector<4x8x8xf32>
    %88 = arith.mulf %86, %87 : vector<4x8x8xf32>
    %cst_27 = arith.constant -1.000000e+30 : f32
    %89 = vector.broadcast %cst_27 : f32 to vector<4x8x8xf32>
    %90 = arith.select %12, %88, %89 : vector<4x8x8xi1>, vector<4x8x8xf32>
    %cst_28 = arith.constant dense<0xFF800000> : vector<4x8xf32>
    %91 = vector.multi_reduction <maximumf>, %90, %cst_28 [2] : vector<4x8x8xf32> to vector<4x8xf32>
    %92 = vector.shape_cast %91 : vector<4x8xf32> to vector<4x8x1xf32>
    %93 = vector.broadcast %92 : vector<4x8x1xf32> to vector<4x8x8xf32>
    %94 = arith.subf %90, %93 : vector<4x8x8xf32>
    %95 = math.exp %94 : vector<4x8x8xf32>
    %cst_29 = arith.constant dense<0.000000e+00> : vector<4x8xf32>
    %96 = vector.multi_reduction <add>, %95, %cst_29 [2] : vector<4x8x8xf32> to vector<4x8xf32>
    %97 = vector.shape_cast %96 : vector<4x8xf32> to vector<4x8x1xf32>
    %98 = vector.broadcast %97 : vector<4x8x1xf32> to vector<4x8x8xf32>
    %99 = arith.divf %95, %98 : vector<4x8x8xf32>
    %100 = arith.truncf %99 : vector<4x8x8xf32> to vector<4x8x8xbf16>
    "tpu.trace_start"() <{level = 10 : i32, message = "tbc,tcd->tbd"}> : () -> ()
    %cst_30 = arith.constant dense<0.000000e+00> : vector<4x8x32xf32>
    %101 = tpu.matmul %100, %85, %cst_30 {dimension_numbers = #tpu.dot_dimension_numbers<[2], [1], [1], [2], [0, 0, 0, 1, 1, 2], [0], [0]>} : vector<4x8x8xbf16>, vector<4x8x32xbf16>, vector<4x8x32xf32> -> vector<4x8x32xf32>
    "tpu.trace_stop"() : () -> ()
    %102 = vector.shape_cast %101 : vector<4x8x32xf32> to vector<32x32xf32>
    %103 = arith.truncf %102 : vector<32x32xf32> to vector<32x32xbf16>
    %c64 = arith.constant 64 : index
    %c0_31 = arith.constant 0 : index
    %104 = vector.load %arg4[%c64, %c0_31] : memref<128x128xbf16, #tpu.memory_space<vmem>>, vector<32x128xbf16>
    %cst_32 = arith.constant dense<0.000000e+00> : vector<32x128xf32>
    %105 = tpu.matmul %103, %104, %cst_32 {dimension_numbers = #tpu.dot_dimension_numbers<[1], [0], [0], [1], [0, 0, 1, 1], [], []>} : vector<32x32xbf16>, vector<32x128xbf16>, vector<32x128xf32> -> vector<32x128xf32>
    %106 = arith.addf %76, %105 : vector<32x128xf32>
    %107 = vector.extract_strided_slice %7 {offsets = [0, 96], sizes = [32, 32], strides = [1, 1]} : vector<32x128xf32> to vector<32x32xf32>
    %108 = vector.shape_cast %107 : vector<32x32xf32> to vector<4x8x32xf32>
    %109 = arith.truncf %108 : vector<4x8x32xf32> to vector<4x8x32xbf16>
    %110 = vector.extract_strided_slice %8 {offsets = [0, 96], sizes = [32, 32], strides = [1, 1]} : vector<32x128xf32> to vector<32x32xf32>
    %111 = vector.shape_cast %110 : vector<32x32xf32> to vector<4x8x32xf32>
    %112 = arith.truncf %111 : vector<4x8x32xf32> to vector<4x8x32xbf16>
    %113 = vector.extract_strided_slice %9 {offsets = [0, 96], sizes = [32, 32], strides = [1, 1]} : vector<32x128xf32> to vector<32x32xf32>
    %114 = vector.shape_cast %113 : vector<32x32xf32> to vector<4x8x32xf32>
    %115 = arith.truncf %114 : vector<4x8x32xf32> to vector<4x8x32xbf16>
    "tpu.trace_start"() <{level = 10 : i32, message = "tbd,tcd->tbc"}> : () -> ()
    %cst_33 = arith.constant dense<0.000000e+00> : vector<4x8x8xf32>
    %116 = tpu.matmul %109, %112, %cst_33 {dimension_numbers = #tpu.dot_dimension_numbers<[2], [2], [1], [1], [0, 0, 0, 1, 1, 1], [0], [0]>} : vector<4x8x32xbf16>, vector<4x8x32xbf16>, vector<4x8x8xf32> -> vector<4x8x8xf32>
    "tpu.trace_stop"() : () -> ()
    %cst_34 = arith.constant 0.176776692 : f32
    %117 = vector.broadcast %cst_34 : f32 to vector<4x8x8xf32>
    %118 = arith.mulf %116, %117 : vector<4x8x8xf32>
    %cst_35 = arith.constant -1.000000e+30 : f32
    %119 = vector.broadcast %cst_35 : f32 to vector<4x8x8xf32>
    %120 = arith.select %12, %118, %119 : vector<4x8x8xi1>, vector<4x8x8xf32>
    %cst_36 = arith.constant dense<0xFF800000> : vector<4x8xf32>
    %121 = vector.multi_reduction <maximumf>, %120, %cst_36 [2] : vector<4x8x8xf32> to vector<4x8xf32>
    %122 = vector.shape_cast %121 : vector<4x8xf32> to vector<4x8x1xf32>
    %123 = vector.broadcast %122 : vector<4x8x1xf32> to vector<4x8x8xf32>
    %124 = arith.subf %120, %123 : vector<4x8x8xf32>
    %125 = math.exp %124 : vector<4x8x8xf32>
    %cst_37 = arith.constant dense<0.000000e+00> : vector<4x8xf32>
    %126 = vector.multi_reduction <add>, %125, %cst_37 [2] : vector<4x8x8xf32> to vector<4x8xf32>
    %127 = vector.shape_cast %126 : vector<4x8xf32> to vector<4x8x1xf32>
    %128 = vector.broadcast %127 : vector<4x8x1xf32> to vector<4x8x8xf32>
    %129 = arith.divf %125, %128 : vector<4x8x8xf32>
    %130 = arith.truncf %129 : vector<4x8x8xf32> to vector<4x8x8xbf16>
    "tpu.trace_start"() <{level = 10 : i32, message = "tbc,tcd->tbd"}> : () -> ()
    %cst_38 = arith.constant dense<0.000000e+00> : vector<4x8x32xf32>
    %131 = tpu.matmul %130, %115, %cst_38 {dimension_numbers = #tpu.dot_dimension_numbers<[2], [1], [1], [2], [0, 0, 0, 1, 1, 2], [0], [0]>} : vector<4x8x8xbf16>, vector<4x8x32xbf16>, vector<4x8x32xf32> -> vector<4x8x32xf32>
    "tpu.trace_stop"() : () -> ()
    %132 = vector.shape_cast %131 : vector<4x8x32xf32> to vector<32x32xf32>
    %133 = arith.truncf %132 : vector<32x32xf32> to vector<32x32xbf16>
    %c96 = arith.constant 96 : index
    %c0_39 = arith.constant 0 : index
    %134 = vector.load %arg4[%c96, %c0_39] : memref<128x128xbf16, #tpu.memory_space<vmem>>, vector<32x128xbf16>
    %cst_40 = arith.constant dense<0.000000e+00> : vector<32x128xf32>
    %135 = tpu.matmul %133, %134, %cst_40 {dimension_numbers = #tpu.dot_dimension_numbers<[1], [0], [0], [1], [0, 0, 1, 1], [], []>} : vector<32x32xbf16>, vector<32x128xbf16>, vector<32x128xf32> -> vector<32x128xf32>
    %136 = arith.addf %106, %135 : vector<32x128xf32>
    %137 = arith.addf %0, %136 : vector<32x128xf32>
    %c0_41 = arith.constant 0 : index
    %c0_42 = arith.constant 0 : index
    %138 = vector.load %arg10[%c0_41, %c0_42] : memref<1x128xf32, #tpu.memory_space<vmem>>, vector<1x128xf32>
    %c0_43 = arith.constant 0 : index
    %c0_44 = arith.constant 0 : index
    %139 = vector.load %arg11[%c0_43, %c0_44] : memref<1x128xf32, #tpu.memory_space<vmem>>, vector<1x128xf32>
    %cst_45 = arith.constant dense<0.000000e+00> : vector<32xf32>
    %140 = vector.multi_reduction <add>, %137, %cst_45 [1] : vector<32x128xf32> to vector<32xf32>
    %141 = vector.shape_cast %140 : vector<32xf32> to vector<32x1xf32>
    %cst_46 = arith.constant 1.280000e+02 : f32
    %142 = vector.broadcast %cst_46 : f32 to vector<32x1xf32>
    %143 = arith.divf %141, %142 : vector<32x1xf32>
    %144 = vector.broadcast %143 : vector<32x1xf32> to vector<32x128xf32>
    %145 = arith.subf %137, %144 : vector<32x128xf32>
    %146 = arith.mulf %145, %145 : vector<32x128xf32>
    %cst_47 = arith.constant dense<0.000000e+00> : vector<32xf32>
    %147 = vector.multi_reduction <add>, %146, %cst_47 [1] : vector<32x128xf32> to vector<32xf32>
    %148 = vector.shape_cast %147 : vector<32xf32> to vector<32x1xf32>
    %cst_48 = arith.constant 1.280000e+02 : f32
    %149 = vector.broadcast %cst_48 : f32 to vector<32x1xf32>
    %150 = arith.divf %148, %149 : vector<32x1xf32>
    %151 = vector.broadcast %143 : vector<32x1xf32> to vector<32x128xf32>
    %152 = arith.subf %137, %151 : vector<32x128xf32>
    %cst_49 = arith.constant 9.99999974E-6 : f32
    %153 = vector.broadcast %cst_49 : f32 to vector<32x1xf32>
    %154 = arith.addf %150, %153 : vector<32x1xf32>
    %155 = math.rsqrt %154 : vector<32x1xf32>
    %156 = vector.broadcast %155 : vector<32x1xf32> to vector<32x128xf32>
    %157 = arith.mulf %152, %156 : vector<32x128xf32>
    %158 = vector.broadcast %138 : vector<1x128xf32> to vector<32x128xf32>
    %159 = arith.mulf %157, %158 : vector<32x128xf32>
    %160 = vector.broadcast %139 : vector<1x128xf32> to vector<32x128xf32>
    %161 = arith.addf %159, %160 : vector<32x128xf32>
    %162 = arith.truncf %161 : vector<32x128xf32> to vector<32x128xbf16>
    %c0_50 = arith.constant 0 : index
    %c0_51 = arith.constant 0 : index
    %163 = vector.load %arg6[%c0_50, %c0_51] : memref<128x2048xbf16, #tpu.memory_space<vmem>>, vector<128x2048xbf16>
    %cst_52 = arith.constant dense<0.000000e+00> : vector<32x2048xf32>
    %164 = tpu.matmul %162, %163, %cst_52 {dimension_numbers = #tpu.dot_dimension_numbers<[1], [0], [0], [1], [0, 0, 1, 1], [], []>} : vector<32x128xbf16>, vector<128x2048xbf16>, vector<32x2048xf32> -> vector<32x2048xf32>
    %c0_53 = arith.constant 0 : index
    %c0_54 = arith.constant 0 : index
    %165 = vector.load %arg7[%c0_53, %c0_54] : memref<1x2048xf32, #tpu.memory_space<vmem>>, vector<1x2048xf32>
    %166 = vector.broadcast %165 : vector<1x2048xf32> to vector<32x2048xf32>
    %167 = arith.addf %164, %166 : vector<32x2048xf32>
    %cst_55 = arith.constant 0.000000e+00 : f32
    %168 = vector.broadcast %cst_55 : f32 to vector<32x2048xf32>
    %169 = arith.maximumf %167, %168 : vector<32x2048xf32>
    %170 = arith.truncf %169 : vector<32x2048xf32> to vector<32x2048xbf16>
    %c0_56 = arith.constant 0 : index
    %c0_57 = arith.constant 0 : index
    %171 = vector.load %arg8[%c0_56, %c0_57] : memref<2048x128xbf16, #tpu.memory_space<vmem>>, vector<2048x128xbf16>
    %cst_58 = arith.constant dense<0.000000e+00> : vector<32x128xf32>
    %172 = tpu.matmul %170, %171, %cst_58 {dimension_numbers = #tpu.dot_dimension_numbers<[1], [0], [0], [1], [0, 0, 1, 1], [], []>} : vector<32x2048xbf16>, vector<2048x128xbf16>, vector<32x128xf32> -> vector<32x128xf32>
    %c0_59 = arith.constant 0 : index
    %c0_60 = arith.constant 0 : index
    %173 = vector.load %arg9[%c0_59, %c0_60] : memref<1x128xf32, #tpu.memory_space<vmem>>, vector<1x128xf32>
    %174 = vector.broadcast %173 : vector<1x128xf32> to vector<32x128xf32>
    %175 = arith.addf %172, %174 : vector<32x128xf32>
    %176 = arith.addf %161, %175 : vector<32x128xf32>
    %c0_61 = arith.constant 0 : index
    %c0_62 = arith.constant 0 : index
    %177 = vector.load %arg12[%c0_61, %c0_62] : memref<1x128xf32, #tpu.memory_space<vmem>>, vector<1x128xf32>
    %c0_63 = arith.constant 0 : index
    %c0_64 = arith.constant 0 : index
    %178 = vector.load %arg13[%c0_63, %c0_64] : memref<1x128xf32, #tpu.memory_space<vmem>>, vector<1x128xf32>
    %cst_65 = arith.constant dense<0.000000e+00> : vector<32xf32>
    %179 = vector.multi_reduction <add>, %176, %cst_65 [1] : vector<32x128xf32> to vector<32xf32>
    %180 = vector.shape_cast %179 : vector<32xf32> to vector<32x1xf32>
    %cst_66 = arith.constant 1.280000e+02 : f32
    %181 = vector.broadcast %cst_66 : f32 to vector<32x1xf32>
    %182 = arith.divf %180, %181 : vector<32x1xf32>
    %183 = vector.broadcast %182 : vector<32x1xf32> to vector<32x128xf32>
    %184 = arith.subf %176, %183 : vector<32x128xf32>
    %185 = arith.mulf %184, %184 : vector<32x128xf32>
    %cst_67 = arith.constant dense<0.000000e+00> : vector<32xf32>
    %186 = vector.multi_reduction <add>, %185, %cst_67 [1] : vector<32x128xf32> to vector<32xf32>
    %187 = vector.shape_cast %186 : vector<32xf32> to vector<32x1xf32>
    %cst_68 = arith.constant 1.280000e+02 : f32
    %188 = vector.broadcast %cst_68 : f32 to vector<32x1xf32>
    %189 = arith.divf %187, %188 : vector<32x1xf32>
    %190 = vector.broadcast %182 : vector<32x1xf32> to vector<32x128xf32>
    %191 = arith.subf %176, %190 : vector<32x128xf32>
    %cst_69 = arith.constant 9.99999974E-6 : f32
    %192 = vector.broadcast %cst_69 : f32 to vector<32x1xf32>
    %193 = arith.addf %189, %192 : vector<32x1xf32>
    %194 = math.rsqrt %193 : vector<32x1xf32>
    %195 = vector.broadcast %194 : vector<32x1xf32> to vector<32x128xf32>
    %196 = arith.mulf %191, %195 : vector<32x128xf32>
    %197 = vector.broadcast %177 : vector<1x128xf32> to vector<32x128xf32>
    %198 = arith.mulf %196, %197 : vector<32x128xf32>
    %199 = vector.broadcast %178 : vector<1x128xf32> to vector<32x128xf32>
    %200 = arith.addf %198, %199 : vector<32x128xf32>
    %c0_70 = arith.constant 0 : index
    %c0_71 = arith.constant 0 : index
    %201 = vector.load %arg14[%c0_70, %c0_71] : memref<32x128xf32, #tpu.memory_space<vmem>>, vector<32x128xf32>
    tpu.vector_store %arg14[%c0_70, %c0_71], %200 {strides = array<i32>} : memref<32x128xf32, #tpu.memory_space<vmem>>, vector<32x128xf32>,
    return
  }
  func.func @transform_0(%arg0: i32) -> (i32, i32) {
    %c0_i32 = arith.constant 0 : i32
    %c0_i32_0 = arith.constant 0 : i32
    return %arg0, %c0_i32 : i32, i32
  }
  func.func @transform_1(%arg0: i32) -> (i32, i32) {
    %c0_i32 = arith.constant 0 : i32
    %c0_i32_0 = arith.constant 0 : i32
    %c0_i32_1 = arith.constant 0 : i32
    return %c0_i32, %c0_i32_0 : i32, i32
  }
  func.func @transform_2(%arg0: i32) -> (i32, i32) {
    %c0_i32 = arith.constant 0 : i32
    %c0_i32_0 = arith.constant 0 : i32
    %c0_i32_1 = arith.constant 0 : i32
    return %c0_i32, %c0_i32_0 : i32, i32
  }
  func.func @transform_3(%arg0: i32) -> (i32, i32) {
    %c0_i32 = arith.constant 0 : i32
    %c0_i32_0 = arith.constant 0 : i32
    %c0_i32_1 = arith.constant 0 : i32
    return %c0_i32, %c0_i32_0 : i32, i32
  }
  func.func @transform_4(%arg0: i32) -> (i32, i32) {
    %c0_i32 = arith.constant 0 : i32
    %c0_i32_0 = arith.constant 0 : i32
    %c0_i32_1 = arith.constant 0 : i32
    return %c0_i32, %c0_i32_0 : i32, i32
  }
  func.func @transform_5(%arg0: i32) -> (i32, i32) {
    %c0_i32 = arith.constant 0 : i32
    %c0_i32_0 = arith.constant 0 : i32
    %c0_i32_1 = arith.constant 0 : i32
    return %c0_i32, %c0_i32_0 : i32, i32
  }
  func.func @transform_6(%arg0: i32) -> (i32, i32) {
    %c0_i32 = arith.constant 0 : i32
    %c0_i32_0 = arith.constant 0 : i32
    %c0_i32_1 = arith.constant 0 : i32
    return %c0_i32, %c0_i32_0 : i32, i32
  }
  func.func @transform_7(%arg0: i32) -> (i32, i32) {
    %c0_i32 = arith.constant 0 : i32
    %c0_i32_0 = arith.constant 0 : i32
    %c0_i32_1 = arith.constant 0 : i32
    return %c0_i32, %c0_i32_0 : i32, i32
  }
  func.func @transform_8(%arg0: i32) -> (i32, i32) {
    %c0_i32 = arith.constant 0 : i32
    %c0_i32_0 = arith.constant 0 : i32
    %c0_i32_1 = arith.constant 0 : i32
    return %c0_i32, %c0_i32_0 : i32, i32
  }
  func.func @transform_9(%arg0: i32) -> (i32, i32) {
    %c0_i32 = arith.constant 0 : i32
    %c0_i32_0 = arith.constant 0 : i32
    %c0_i32_1 = arith.constant 0 : i32
    return %c0_i32, %c0_i32_0 : i32, i32
  }
  func.func @transform_10(%arg0: i32) -> (i32, i32) {
    %c0_i32 = arith.constant 0 : i32
    %c0_i32_0 = arith.constant 0 : i32
    %c0_i32_1 = arith.constant 0 : i32
    return %c0_i32, %c0_i32_0 : i32, i32
  }
  func.func @transform_11(%arg0: i32) -> (i32, i32) {
    %c0_i32 = arith.constant 0 : i32
    %c0_i32_0 = arith.constant 0 : i32
    %c0_i32_1 = arith.constant 0 : i32
    return %c0_i32, %c0_i32_0 : i32, i32
  }
  func.func @transform_12(%arg0: i32) -> (i32, i32) {
    %c0_i32 = arith.constant 0 : i32
    %c0_i32_0 = arith.constant 0 : i32
    %c0_i32_1 = arith.constant 0 : i32
    return %c0_i32, %c0_i32_0 : i32, i32
  }
  func.func @transform_13(%arg0: i32) -> (i32, i32) {
    %c0_i32 = arith.constant 0 : i32
    %c0_i32_0 = arith.constant 0 : i32
    return %arg0, %c0_i32 : i32, i32
  }
}

module attributes {stable_mosaic.version = 11 : i64} {
  func.func @encoder_layer_kernel(%arg0: i32, %arg1: memref<32x128xf32, #tpu.memory_space<vmem>>, %arg2: memref<128x384xbf16, #tpu.memory_space<vmem>>, %arg3: memref<1x384xf32, #tpu.memory_space<vmem>>, %arg4: memref<128x128xbf16, #tpu.memory_space<vmem>>, %arg5: memref<1x128xf32, #tpu.memory_space<vmem>>, %arg6: memref<128x2048xbf16, #tpu.memory_space<vmem>>, %arg7: memref<1x2048xf32, #tpu.memory_space<vmem>>, %arg8: memref<2048x128xbf16, #tpu.memory_space<vmem>>, %arg9: memref<1x128xf32, #tpu.memory_space<vmem>>, %arg10: memref<1x128xf32, #tpu.memory_space<vmem>>, %arg11: memref<1x128xf32, #tpu.memory_space<vmem>>, %arg12: memref<1x128xf32, #tpu.memory_space<vmem>>, %arg13: memref<1x128xf32, #tpu.memory_space<vmem>>, %arg14: memref<32x128xf32, #tpu.memory_space<vmem>>) attributes {dimension_semantics = [#tpu.dimension_semantics<parallel>], iteration_bounds = array<i64: 2>, scalar_prefetch = 0 : i64, scratch_operands = 0 : i64, tpu.core_type = #tpu.core_type<tc>, window_params = [{transform_indices = @transform_0, window_bounds = array<i64: 32, 128>}, {pipeline_mode = #tpu.pipeline_mode<synchronous>, transform_indices = @transform_1, window_bounds = array<i64: 128, 384>}, {pipeline_mode = #tpu.pipeline_mode<synchronous>, transform_indices = @transform_2, window_bounds = array<i64: 1, 384>}, {pipeline_mode = #tpu.pipeline_mode<synchronous>, transform_indices = @transform_3, window_bounds = array<i64: 128, 128>}, {pipeline_mode = #tpu.pipeline_mode<synchronous>, transform_indices = @transform_4, window_bounds = array<i64: 1, 128>}, {pipeline_mode = #tpu.pipeline_mode<synchronous>, transform_indices = @transform_5, window_bounds = array<i64: 128, 2048>}, {pipeline_mode = #tpu.pipeline_mode<synchronous>, transform_indices = @transform_6, window_bounds = array<i64: 1, 2048>}, {pipeline_mode = #tpu.pipeline_mode<synchronous>, transform_indices = @transform_7, window_bounds = array<i64: 2048, 128>}, {pipeline_mode = #tpu.pipeline_mode<synchronous>, transform_indices = @transform_8, window_bounds = array<i64: 1, 128>}, {pipeline_mode = #tpu.pipeline_mode<synchronous>, transform_indices = @transform_9, window_bounds = array<i64: 1, 128>}, {pipeline_mode = #tpu.pipeline_mode<synchronous>, transform_indices = @transform_10, window_bounds = array<i64: 1, 128>}, {pipeline_mode = #tpu.pipeline_mode<synchronous>, transform_indices = @transform_11, window_bounds = array<i64: 1, 128>}, {pipeline_mode = #tpu.pipeline_mode<synchronous>, transform_indices = @transform_12, window_bounds = array<i64: 1, 128>}, {transform_indices = @transform_13, window_bounds = array<i64: 32, 128>}]} {
    %c0 = arith.constant 0 : index
    %c0_0 = arith.constant 0 : index
    %0 = vector.load %arg1[%c0, %c0_0] : memref<32x128xf32, #tpu.memory_space<vmem>>, vector<32x128xf32>
    %1 = arith.truncf %0 : vector<32x128xf32> to vector<32x128xbf16>
    %c0_1 = arith.constant 0 : index
    %c0_2 = arith.constant 0 : index
    %2 = vector.load %arg2[%c0_1, %c0_2] : memref<128x384xbf16, #tpu.memory_space<vmem>>, vector<128x384xbf16>
    %cst = arith.constant dense<0.000000e+00> : vector<32x384xf32>
    %3 = tpu.matmul %1, %2, %cst {dimension_numbers = #tpu.dot_dimension_numbers<[1], [0], [0], [1], [0, 0, 1, 1], [], []>} : vector<32x128xbf16>, vector<128x384xbf16>, vector<32x384xf32> -> vector<32x384xf32>
    %c0_3 = arith.constant 0 : index
    %c0_4 = arith.constant 0 : index
    %4 = vector.load %arg3[%c0_3, %c0_4] : memref<1x384xf32, #tpu.memory_space<vmem>>, vector<1x384xf32>
    %5 = vector.broadcast %4 : vector<1x384xf32> to vector<32x384xf32>
    %6 = arith.addf %3, %5 : vector<32x384xf32>
    %7 = vector.extract_strided_slice %6 {offsets = [0, 0], sizes = [32, 128], strides = [1, 1]} : vector<32x384xf32> to vector<32x128xf32>
    %8 = vector.extract_strided_slice %6 {offsets = [0, 128], sizes = [32, 128], strides = [1, 1]} : vector<32x384xf32> to vector<32x128xf32>
    %9 = vector.extract_strided_slice %6 {offsets = [0, 256], sizes = [32, 128], strides = [1, 1]} : vector<32x384xf32> to vector<32x128xf32>
    %10 = tpu.iota {dimensions = array<i32: 2>} : vector<4x8x8xi32>
    %c2_i32 = arith.constant 2 : i32
    %11 = vector.broadcast %c2_i32 : i32 to vector<4x8x8xi32>
    %12 = arith.cmpi slt, %10, %11 : vector<4x8x8xi32>
    %cst_5 = arith.constant 0.000000e+00 : f32
    %13 = vector.broadcast %cst_5 : f32 to vector<32x128xf32>
    %c0_6 = arith.constant 0 : index
    %c0_7 = arith.constant 0 : index
    %14 = vector.load %arg5[%c0_6, %c0_7] : memref<1x128xf32, #tpu.memory_space<vmem>>, vector<1x128xf32>
    %15 = vector.broadcast %14 : vector<1x128xf32> to vector<32x128xf32>
    %16 = arith.addf %13, %15 : vector<32x128xf32>
    %17 = vector.extract_strided_slice %7 {offsets = [0, 0], sizes = [32, 32], strides = [1, 1]} : vector<32x128xf32> to vector<32x32xf32>
    %18 = vector.shape_cast %17 : vector<32x32xf32> to vector<4x8x32xf32>
    %19 = arith.truncf %18 : vector<4x8x32xf32> to vector<4x8x32xbf16>
    %20 = vector.extract_strided_slice %8 {offsets = [0, 0], sizes = [32, 32], strides = [1, 1]} : vector<32x128xf32> to vector<32x32xf32>
    %21 = vector.shape_cast %20 : vector<32x32xf32> to vector<4x8x32xf32>
    %22 = arith.truncf %21 : vector<4x8x32xf32> to vector<4x8x32xbf16>
    %23 = vector.extract_strided_slice %9 {offsets = [0, 0], sizes = [32, 32], strides = [1, 1]} : vector<32x128xf32> to vector<32x32xf32>
    %24 = vector.shape_cast %23 : vector<32x32xf32> to vector<4x8x32xf32>
    %25 = arith.truncf %24 : vector<4x8x32xf32> to vector<4x8x32xbf16>
    "tpu.trace_start"() <{level = 10 : i32, message = "tbd,tcd->tbc"}> : () -> ()
    %cst_8 = arith.constant dense<0.000000e+00> : vector<4x8x8xf32>
    %26 = tpu.matmul %19, %22, %cst_8 {dimension_numbers = #tpu.dot_dimension_numbers<[2], [2], [1], [1], [0, 0, 0, 1, 1, 1], [0], [0]>} : vector<4x8x32xbf16>, vector<4x8x32xbf16>, vector<4x8x8xf32> -> vector<4x8x8xf32>
    "tpu.trace_stop"() : () -> ()
    %cst_9 = arith.constant 0.176776692 : f32
    %27 = vector.broadcast %cst_9 : f32 to vector<4x8x8xf32>
    %28 = arith.mulf %26, %27 : vector<4x8x8xf32>
    %cst_10 = arith.constant -1.000000e+30 : f32
    %29 = vector.broadcast %cst_10 : f32 to vector<4x8x8xf32>
    %30 = arith.select %12, %28, %29 : vector<4x8x8xi1>, vector<4x8x8xf32>
    %cst_11 = arith.constant dense<0xFF800000> : vector<4x8xf32>
    %31 = vector.multi_reduction <maximumf>, %30, %cst_11 [2] : vector<4x8x8xf32> to vector<4x8xf32>
    %32 = vector.shape_cast %31 : vector<4x8xf32> to vector<4x8x1xf32>
    %33 = vector.broadcast %32 : vector<4x8x1xf32> to vector<4x8x8xf32>
    %34 = arith.subf %30, %33 : vector<4x8x8xf32>
    %35 = math.exp %34 : vector<4x8x8xf32>
    %cst_12 = arith.constant dense<0.000000e+00> : vector<4x8xf32>
    %36 = vector.multi_reduction <add>, %35, %cst_12 [2] : vector<4x8x8xf32> to vector<4x8xf32>
    %37 = vector.shape_cast %36 : vector<4x8xf32> to vector<4x8x1xf32>
    %38 = vector.broadcast %37 : vector<4x8x1xf32> to vector<4x8x8xf32>
    %39 = arith.divf %35, %38 : vector<4x8x8xf32>
    %40 = arith.truncf %39 : vector<4x8x8xf32> to vector<4x8x8xbf16>
    "tpu.trace_start"() <{level = 10 : i32, message = "tbc,tcd->tbd"}> : () -> ()
    %cst_13 = arith.constant dense<0.000000e+00> : vector<4x8x32xf32>
    %41 = tpu.matmul %40, %25, %cst_13 {dimension_numbers = #tpu.dot_dimension_numbers<[2], [1], [1], [2], [0, 0, 0, 1, 1, 2], [0], [0]>} : vector<4x8x8xbf16>, vector<4x8x32xbf16>, vector<4x8x32xf32> -> vector<4x8x32xf32>
    "tpu.trace_stop"() : () -> ()
    %42 = vector.shape_cast %41 : vector<4x8x32xf32> to vector<32x32xf32>
    %43 = arith.truncf %42 : vector<32x32xf32> to vector<32x32xbf16>
    %c0_14 = arith.constant 0 : index
    %c0_15 = arith.constant 0 : index
    %44 = vector.load %arg4[%c0_14, %c0_15] : memref<128x128xbf16, #tpu.memory_space<vmem>>, vector<32x128xbf16>
    %cst_16 = arith.constant dense<0.000000e+00> : vector<32x128xf32>
    %45 = tpu.matmul %43, %44, %cst_16 {dimension_numbers = #tpu.dot_dimension_numbers<[1], [0], [0], [1], [0, 0, 1, 1], [], []>} : vector<32x32xbf16>, vector<32x128xbf16>, vector<32x128xf32> -> vector<32x128xf32>
    %46 = arith.addf %16, %45 : vector<32x128xf32>
    %47 = vector.extract_strided_slice %7 {offsets = [0, 32], sizes = [32, 32], strides = [1, 1]} : vector<32x128xf32> to vector<32x32xf32>
    %48 = vector.shape_cast %47 : vector<32x32xf32> to vector<4x8x32xf32>
    %49 = arith.truncf %48 : vector<4x8x32xf32> to vector<4x8x32xbf16>
    %50 = vector.extract_strided_slice %8 {offsets = [0, 32], sizes = [32, 32], strides = [1, 1]} : vector<32x128xf32> to vector<32x32xf32>
    %51 = vector.shape_cast %50 : vector<32x32xf32> to vector<4x8x32xf32>
    %52 = arith.truncf %51 : vector<4x8x32xf32> to vector<4x8x32xbf16>
    %53 = vector.extract_strided_slice %9 {offsets = [0, 32], sizes = [32, 32], strides = [1, 1]} : vector<32x128xf32> to vector<32x32xf32>
    %54 = vector.shape_cast %53 : vector<32x32xf32> to vector<4x8x32xf32>
    %55 = arith.truncf %54 : vector<4x8x32xf32> to vector<4x8x32xbf16>
    "tpu.trace_start"() <{level = 10 : i32, message = "tbd,tcd->tbc"}> : () -> ()
    %cst_17 = arith.constant dense<0.000000e+00> : vector<4x8x8xf32>
    %56 = tpu.matmul %49, %52, %cst_17 {dimension_numbers = #tpu.dot_dimension_numbers<[2], [2], [1], [1], [0, 0, 0, 1, 1, 1], [0], [0]>} : vector<4x8x32xbf16>, vector<4x8x32xbf16>, vector<4x8x8xf32> -> vector<4x8x8xf32>
    "tpu.trace_stop"() : () -> ()
    %cst_18 = arith.constant 0.176776692 : f32
    %57 = vector.broadcast %cst_18 : f32 to vector<4x8x8xf32>
    %58 = arith.mulf %56, %57 : vector<4x8x8xf32>
    %cst_19 = arith.constant -1.000000e+30 : f32
    %59 = vector.broadcast %cst_19 : f32 to vector<4x8x8xf32>
    %60 = arith.select %12, %58, %59 : vector<4x8x8xi1>, vector<4x8x8xf32>
    %cst_20 = arith.constant dense<0xFF800000> : vector<4x8xf32>
    %61 = vector.multi_reduction <maximumf>, %60, %cst_20 [2] : vector<4x8x8xf32> to vector<4x8xf32>
    %62 = vector.shape_cast %61 : vector<4x8xf32> to vector<4x8x1xf32>
    %63 = vector.broadcast %62 : vector<4x8x1xf32> to vector<4x8x8xf32>
    %64 = arith.subf %60, %63 : vector<4x8x8xf32>
    %65 = math.exp %64 : vector<4x8x8xf32>
    %cst_21 = arith.constant dense<0.000000e+00> : vector<4x8xf32>
    %66 = vector.multi_reduction <add>, %65, %cst_21 [2] : vector<4x8x8xf32> to vector<4x8xf32>
    %67 = vector.shape_cast %66 : vector<4x8xf32> to vector<4x8x1xf32>
    %68 = vector.broadcast %67 : vector<4x8x1xf32> to vector<4x8x8xf32>
    %69 = arith.divf %65, %68 : vector<4x8x8xf32>
    %70 = arith.truncf %69 : vector<4x8x8xf32> to vector<4x8x8xbf16>
    "tpu.trace_start"() <{level = 10 : i32, message = "tbc,tcd->tbd"}> : () -> ()
    %cst_22 = arith.constant dense<0.000000e+00> : vector<4x8x32xf32>
    %71 = tpu.matmul %70, %55, %cst_22 {dimension_numbers = #tpu.dot_dimension_numbers<[2], [1], [1], [2], [0, 0, 0, 1, 1, 2], [0], [0]>} : vector<4x8x8xbf16>, vector<4x8x32xbf16>, vector<4x8x32xf32> -> vector<4x8x32xf32>
    "tpu.trace_stop"() : () -> ()
    %72 = vector.shape_cast %71 : vector<4x8x32xf32> to vector<32x32xf32>
    %73 = arith.truncf %72 : vector<32x32xf32> to vector<32x32xbf16>
    %c32 = arith.constant 32 : index
    %c0_23 = arith.constant 0 : index
    %74 = vector.load %arg4[%c32, %c0_23] : memref<128x128xbf16, #tpu.memory_space<vmem>>, vector<32x128xbf16>
    %cst_24 = arith.constant dense<0.000000e+00> : vector<32x128xf32>
    %75 = tpu.matmul %73, %74, %cst_24 {dimension_numbers = #tpu.dot_dimension_numbers<[1], [0], [0], [1], [0, 0, 1, 1], [], []>} : vector<32x32xbf16>, vector<32x128xbf16>, vector<32x128xf32> -> vector<32x128xf32>
    %76 = arith.addf %46, %75 : vector<32x128xf32>
    %77 = vector.extract_strided_slice %7 {offsets = [0, 64], sizes = [32, 32], strides = [1, 1]} : vector<32x128xf32> to vector<32x32xf32>
    %78 = vector.shape_cast %77 : vector<32x32xf32> to vector<4x8x32xf32>
    %79 = arith.truncf %78 : vector<4x8x32xf32> to vector<4x8x32xbf16>
    %80 = vector.extract_strided_slice %8 {offsets = [0, 64], sizes = [32, 32], strides = [1, 1]} : vector<32x128xf32> to vector<32x32xf32>
    %81 = vector.shape_cast %80 : vector<32x32xf32> to vector<4x8x32xf32>
    %82 = arith.truncf %81 : vector<4x8x32xf32> to vector<4x8x32xbf16>
    %83 = vector.extract_strided_slice %9 {offsets = [0, 64], sizes = [32, 32], strides = [1, 1]} : vector<32x128xf32> to vector<32x32xf32>
    %84 = vector.shape_cast %83 : vector<32x32xf32> to vector<4x8x32xf32>
    %85 = arith.truncf %84 : vector<4x8x32xf32> to vector<4x8x32xbf16>
    "tpu.trace_start"() <{level = 10 : i32, message = "tbd,tcd->tbc"}> : () -> ()
    %cst_25 = arith.constant dense<0.000000e+00> : vector<4x8x8xf32>
    %86 = tpu.matmul %79, %82, %cst_25 {dimension_numbers = #tpu.dot_dimension_numbers<[2], [2], [1], [1], [0, 0, 0, 1, 1, 1], [0], [0]>} : vector<4x8x32xbf16>, vector<4x8x32xbf16>, vector<4x8x8xf32> -> vector<4x8x8xf32>
    "tpu.trace_stop"() : () -> ()
    %cst_26 = arith.constant 0.176776692 : f32
    %87 = vector.broadcast %cst_26 : f32 to vector<4x8x8xf32>
    %88 = arith.mulf %86, %87 : vector<4x8x8xf32>
    %cst_27 = arith.constant -1.000000e+30 : f32
    %89 = vector.broadcast %cst_27 : f32 to vector<4x8x8xf32>
    %90 = arith.select %12, %88, %89 : vector<4x8x8xi1>, vector<4x8x8xf32>
    %cst_28 = arith.constant dense<0xFF800000> : vector<4x8xf32>
    %91 = vector.multi_reduction <maximumf>, %90, %cst_28 [2] : vector<4x8x8xf32> to vector<4x8xf32>
    %92 = vector.shape_cast %91 : vector<4x8xf32> to vector<4x8x1xf32>
    %93 = vector.broadcast %92 : vector<4x8x1xf32> to vector<4x8x8xf32>
    %94 = arith.subf %90, %93 : vector<4x8x8xf32>
    %95 = math.exp %94 : vector<4x8x8xf32>
    %cst_29 = arith.constant dense<0.000000e+00> : vector<4x8xf32>
    %96 = vector.multi_reduction <add>, %95, %cst_29 [2] : vector<4x8x8xf32> to vector<4x8xf32>
    %97 = vector.shape_cast %96 : vector<4x8xf32> to vector<4x8x1xf32>
    %98 = vector.broadcast %97 : vector<4x8x1xf32> to vector<4x8x8xf32>
    %99 = arith.divf %95, %98 : vector<4x8x8xf32>
    %100 = arith.truncf %99 : vector<4x8x8xf32> to vector<4x8x8xbf16>
    "tpu.trace_start"() <{level = 10 : i32, message = "tbc,tcd->tbd"}> : () -> ()
    %cst_30 = arith.constant dense<0.000000e+00> : vector<4x8x32xf32>
    %101 = tpu.matmul %100, %85, %cst_30 {dimension_numbers = #tpu.dot_dimension_numbers<[2], [1], [1], [2], [0, 0, 0, 1, 1, 2], [0], [0]>} : vector<4x8x8xbf16>, vector<4x8x32xbf16>, vector<4x8x32xf32> -> vector<4x8x32xf32>
    "tpu.trace_stop"() : () -> ()
    %102 = vector.shape_cast %101 : vector<4x8x32xf32> to vector<32x32xf32>
    %103 = arith.truncf %102 : vector<32x32xf32> to vector<32x32xbf16>
    %c64 = arith.constant 64 : index
    %c0_31 = arith.constant 0 : index
    %104 = vector.load %arg4[%c64, %c0_31] : memref<128x128xbf16, #tpu.memory_space<vmem>>, vector<32x128xbf16>
    %cst_32 = arith.constant dense<0.000000e+00> : vector<32x128xf32>
    %105 = tpu.matmul %103, %104, %cst_32 {dimension_numbers = #tpu.dot_dimension_numbers<[1], [0], [0], [1], [0, 0, 1, 1], [], []>} : vector<32x32xbf16>, vector<32x128xbf16>, vector<32x128xf32> -> vector<32x128xf32>
    %106 = arith.addf %76, %105 : vector<32x128xf32>
    %107 = vector.extract_strided_slice %7 {offsets = [0, 96], sizes = [32, 32], strides = [1, 1]} : vector<32x128xf32> to vector<32x32xf32>
    %108 = vector.shape_cast %107 : vector<32x32xf32> to vector<4x8x32xf32>
    %109 = arith.truncf %108 : vector<4x8x32xf32> to vector<4x8x32xbf16>
    %110 = vector.extract_strided_slice %8 {offsets = [0, 96], sizes = [32, 32], strides = [1, 1]} : vector<32x128xf32> to vector<32x32xf32>
    %111 = vector.shape_cast %110 : vector<32x32xf32> to vector<4x8x32xf32>
    %112 = arith.truncf %111 : vector<4x8x32xf32> to vector<4x8x32xbf16>
    %113 = vector.extract_strided_slice %9 {offsets = [0, 96], sizes = [32, 32], strides = [1, 1]} : vector<32x128xf32> to vector<32x32xf32>
    %114 = vector.shape_cast %113 : vector<32x32xf32> to vector<4x8x32xf32>
    %115 = arith.truncf %114 : vector<4x8x32xf32> to vector<4x8x32xbf16>
    "tpu.trace_start"() <{level = 10 : i32, message = "tbd,tcd->tbc"}> : () -> ()
    %cst_33 = arith.constant dense<0.000000e+00> : vector<4x8x8xf32>
    %116 = tpu.matmul %109, %112, %cst_33 {dimension_numbers = #tpu.dot_dimension_numbers<[2], [2], [1], [1], [0, 0, 0, 1, 1, 1], [0], [0]>} : vector<4x8x32xbf16>, vector<4x8x32xbf16>, vector<4x8x8xf32> -> vector<4x8x8xf32>
    "tpu.trace_stop"() : () -> ()
    %cst_34 = arith.constant 0.176776692 : f32
    %117 = vector.broadcast %cst_34 : f32 to vector<4x8x8xf32>
    %118 = arith.mulf %116, %117 : vector<4x8x8xf32>
    %cst_35 = arith.constant -1.000000e+30 : f32
    %119 = vector.broadcast %cst_35 : f32 to vector<4x8x8xf32>
    %120 = arith.select %12, %118, %119 : vector<4x8x8xi1>, vector<4x8x8xf32>
    %cst_36 = arith.constant dense<0xFF800000> : vector<4x8xf32>
    %121 = vector.multi_reduction <maximumf>, %120, %cst_36 [2] : vector<4x8x8xf32> to vector<4x8xf32>
    %122 = vector.shape_cast %121 : vector<4x8xf32> to vector<4x8x1xf32>
    %123 = vector.broadcast %122 : vector<4x8x1xf32> to vector<4x8x8xf32>
    %124 = arith.subf %120, %123 : vector<4x8x8xf32>
    %125 = math.exp %124 : vector<4x8x8xf32>
    %cst_37 = arith.constant dense<0.000000e+00> : vector<4x8xf32>
    %126 = vector.multi_reduction <add>, %125, %cst_37 [2] : vector<4x8x8xf32> to vector<4x8xf32>
    %127 = vector.shape_cast %126 : vector<4x8xf32> to vector<4x8x1xf32>
    %128 = vector.broadcast %127 : vector<4x8x1xf32> to vector<4x8x8xf32>
    %129 = arith.divf %125, %128 : vector<4x8x8xf32>
    %130 = arith.truncf %129 : vector<4x8x8xf32> to vector<4x8x8xbf16>
    "tpu.trace_start"() <{level = 10 : i32, message = "tbc,tcd->tbd"}> : () -> ()
    %cst_38 = arith.constant dense<0.000000e+00> : vector<4x8x32xf32>
    %131 = tpu.matmul %130, %115, %cst_38 {dimension_numbers = #tpu.dot_dimension_numbers<[2], [1], [1], [2], [0, 0, 0, 1, 1, 2], [0], [0]>} : vector<4x8x8xbf16>, vector<4x8x32xbf16>, vector<4x8x32xf32> -> vector<4x8x32xf32>
    "tpu.trace_stop"() : () -> ()
    %132 = vector.shape_cast %131 : vector<4x8x32xf32> to vector<32x32xf32>
    %133 = arith.truncf %132 : vector<32x32xf32> to vector<32x32xbf16>
    %c96 = arith.constant 96 : index
    %c0_39 = arith.constant 0 : index
    %134 = vector.load %arg4[%c96, %c0_39] : memref<128x128xbf16, #tpu.memory_space<vmem>>, vector<32x128xbf16>
    %cst_40 = arith.constant dense<0.000000e+00> : vector<32x128xf32>
    %135 = tpu.matmul %133, %134, %cst_40 {dimension_numbers = #tpu.dot_dimension_numbers<[1], [0], [0], [1], [0, 0, 1, 1], [], []>} : vector<32x32xbf16>, vector<32x128xbf16>, vector<32x128xf32> -> vector<32x128xf32>
    %136 = arith.addf %106, %135 : vector<32x128xf32>
    %137 = arith.addf %0, %136 : vector<32x128xf32>
    %c0_41 = arith.constant 0 : index
    %c0_42 = arith.constant 0 : index
    %138 = vector.load %arg10[%c0_41, %c0_42] : memref<1x128xf32, #tpu.memory_space<vmem>>, vector<1x128xf32>
    %c0_43 = arith.constant 0 : index
    %c0_44 = arith.constant 0 : index
    %139 = vector.load %arg11[%c0_43, %c0_44] : memref<1x128xf32, #tpu.memory_space<vmem>>, vector<1x128xf32>
    %cst_45 = arith.constant dense<0.000000e+00> : vector<32xf32>
    %140 = vector.multi_reduction <add>, %137, %cst_45 [1] : vector<32x128xf32> to vector<32xf32>
    %141 = vector.shape_cast %140 : vector<32xf32> to vector<32x1xf32>
    %cst_46 = arith.constant 1.280000e+02 : f32
    %142 = vector.broadcast %cst_46 : f32 to vector<32x1xf32>
    %143 = arith.divf %141, %142 : vector<32x1xf32>
    %144 = vector.broadcast %143 : vector<32x1xf32> to vector<32x128xf32>
    %145 = arith.subf %137, %144 : vector<32x128xf32>
    %146 = arith.mulf %145, %145 : vector<32x128xf32>
    %cst_47 = arith.constant dense<0.000000e+00> : vector<32xf32>
    %147 = vector.multi_reduction <add>, %146, %cst_47 [1] : vector<32x128xf32> to vector<32xf32>
    %148 = vector.shape_cast %147 : vector<32xf32> to vector<32x1xf32>
    %cst_48 = arith.constant 1.280000e+02 : f32
    %149 = vector.broadcast %cst_48 : f32 to vector<32x1xf32>
    %150 = arith.divf %148, %149 : vector<32x1xf32>
    %151 = vector.broadcast %143 : vector<32x1xf32> to vector<32x128xf32>
    %152 = arith.subf %137, %151 : vector<32x128xf32>
    %cst_49 = arith.constant 9.99999974E-6 : f32
    %153 = vector.broadcast %cst_49 : f32 to vector<32x1xf32>
    %154 = arith.addf %150, %153 : vector<32x1xf32>
    %155 = math.rsqrt %154 : vector<32x1xf32>
    %156 = vector.broadcast %155 : vector<32x1xf32> to vector<32x128xf32>
    %157 = arith.mulf %152, %156 : vector<32x128xf32>
    %158 = vector.broadcast %138 : vector<1x128xf32> to vector<32x128xf32>
    %159 = arith.mulf %157, %158 : vector<32x128xf32>
    %160 = vector.broadcast %139 : vector<1x128xf32> to vector<32x128xf32>
    %161 = arith.addf %159, %160 : vector<32x128xf32>
    %162 = arith.truncf %161 : vector<32x128xf32> to vector<32x128xbf16>
    %c0_50 = arith.constant 0 : index
    %c0_51 = arith.constant 0 : index
    %163 = vector.load %arg6[%c0_50, %c0_51] : memref<128x2048xbf16, #tpu.memory_space<vmem>>, vector<128x2048xbf16>
    %cst_52 = arith.constant dense<0.000000e+00> : vector<32x2048xf32>
    %164 = tpu.matmul %162, %163, %cst_52 {dimension_numbers = #tpu.dot_dimension_numbers<[1], [0], [0], [1], [0, 0, 1, 1], [], []>} : vector<32x128xbf16>, vector<128x2048xbf16>, vector<32x2048xf32> -> vector<32x2048xf32>
    %c0_53 = arith.constant 0 : index
    %c0_54 = arith.constant 0 : index
    %165 = vector.load %arg7[%c0_53, %c0_54] : memref<1x2048xf32, #tpu.memory_space<vmem>>, vector<1x2048xf32>
    %166 = vector.broadcast %165 : vector<1x2048xf32> to vector<32x2048xf32>
    %167 = arith.addf %164, %166 : vector<32x2048xf32>
    %cst_55 = arith.constant 0.000000e+00 : f32
    %168 = vector.broadcast %cst_55 : f32 to vector<32x2048xf32>
    %169 = arith.maximumf %167, %168 : vector<32x2048xf32>
    %170 = arith.truncf %169 : vector<32x2048xf32> to vector<32x2048xbf16>
    %c0_56 = arith.constant 0 : index
    %c0_57 = arith.constant 0 : index
    %171 = vector.load %arg8[%c0_56, %c0_57] : memref<2048x128xbf16, #tpu.memory_space<vmem>>, vector<2048x128xbf16>
    %cst_58 = arith.constant dense<0.000000e+00> : vector<32x128xf32>
    %172 = tpu.matmul %170, %171, %cst_58 {dimension_numbers = #tpu.dot_dimension_numbers<[1], [0], [0], [1], [0, 0, 1, 1], [], []>} : vector<32x2048xbf16>, vector<2048x128xbf16>, vector<32x128xf32> -> vector<32x128xf32>
    %c0_59 = arith.constant 0 : index
    %c0_60 = arith.constant 0 : index
    %173 = vector.load %arg9[%c0_59, %c0_60] : memref<1x128xf32, #tpu.memory_space<vmem>>, vector<1x128xf32>
    %174 = vector.broadcast %173 : vector<1x128xf32> to vector<32x128xf32>
    %175 = arith.addf %172, %174 : vector<32x128xf32>
    %176 = arith.addf %161, %175 : vector<32x128xf32>
    %c0_61 = arith.constant 0 : index
    %c0_62 = arith.constant 0 : index
    %177 = vector.load %arg12[%c0_61, %c0_62] : memref<1x128xf32, #tpu.memory_space<vmem>>, vector<1x128xf32>
    %c0_63 = arith.constant 0 : index
    %c0_64 = arith.constant 0 : index
    %178 = vector.load %arg13[%c0_63, %c0_64] : memref<1x128xf32, #tpu.memory_space<vmem>>, vector<1x128xf32>
    %cst_65 = arith.constant dense<0.000000e+00> : vector<32xf32>
    %179 = vector.multi_reduction <add>, %176, %cst_65 [1] : vector<32x128xf32> to vector<32xf32>
    %180 = vector.shape_cast %179 : vector<32xf32> to vector<32x1xf32>
    %cst_66 = arith.constant 1.280000e+02 : f32
    %181 = vector.broadcast %cst_66 : f32 to vector<32x1xf32>
    %182 = arith.divf %180, %181 : vector<32x1xf32>
    %183 = vector.broadcast %182 : vector<32x1xf32> to vector<32x128xf32>
    %184 = arith.subf %176, %183 : vector<32x128xf32>
    %185 = arith.mulf %184, %184 : vector<32x128xf32>
    %cst_67 = arith.constant dense<0.000000e+00> : vector<32xf32>
    %186 = vector.multi_reduction <add>, %185, %cst_67 [1] : vector<32x128xf32> to vector<32xf32>
    %187 = vector.shape_cast %186 : vector<32xf32> to vector<32x1xf32>
    %cst_68 = arith.constant 1.280000e+02 : f32
    %188 = vector.broadcast %cst_68 : f32 to vector<32x1xf32>
    %189 = arith.divf %187, %188 : vector<32x1xf32>
    %190 = vector.broadcast %182 : vector<32x1xf32> to vector<32x128xf32>
    %191 = arith.subf %176, %190 : vector<32x128xf32>
    %cst_69 = arith.constant 9.99999974E-6 : f32
    %192 = vector.broadcast %cst_69 : f32 to vector<32x1xf32>
    %193 = arith.addf %189, %192 : vector<32x1xf32>
    %194 = math.rsqrt %193 : vector<32x1xf32>
    %195 = vector.broadcast %194 : vector<32x1xf32> to vector<32x128xf32>
    %196 = arith.mulf %191, %195 : vector<32x128xf32>
    %197 = vector.broadcast %177 : vector<1x128xf32> to vector<32x128xf32>
    %198 = arith.mulf %196, %197 : vector<32x128xf32>
    %199 = vector.broadcast %178 : vector<1x128xf32> to vector<32x128xf32>
    %200 = arith.addf %198, %199 : vector<32x128xf32>
    %c0_70 = arith.constant 0 : index
    %c0_71 = arith.constant 0 : index
    %201 = vector.load %arg14[%c0_70, %c0_71] : memref<32x128xf32, #tpu.memory_space<vmem>>, vector<32x128xf32>
    tpu.vector_store %arg14[%c0_70, %c0_71], %200 {strides = array<i32>} : memref<32x128xf32, #tpu.memory_space<vmem>>, vector<32x128xf32>,
    return
  }
  func.func @transform_0(%arg0: i32) -> (i32, i32) {
    %c0_i32 = arith.constant 0 : i32
    %c0_i32_0 = arith.constant 0 : i32
    return %arg0, %c0_i32 : i32, i32
  }
  func.func @transform_1(%arg0: i32) -> (i32, i32) {
    %c0_i32 = arith.constant 0 : i32
    %c0_i32_0 = arith.constant 0 : i32
    %c0_i32_1 = arith.constant 0 : i32
    return %c0_i32, %c0_i32_0 : i32, i32
  }
  func.func @transform_2(%arg0: i32) -> (i32, i32) {
    %c0_i32 = arith.constant 0 : i32
    %c0_i32_0 = arith.constant 0 : i32
    %c0_i32_1 = arith.constant 0 : i32
    return %c0_i32, %c0_i32_0 : i32, i32
  }
  func.func @transform_3(%arg0: i32) -> (i32, i32) {
    %c0_i32 = arith.constant 0 : i32
    %c0_i32_0 = arith.constant 0 : i32
    %c0_i32_1 = arith.constant 0 : i32
    return %c0_i32, %c0_i32_0 : i32, i32
  }
  func.func @transform_4(%arg0: i32) -> (i32, i32) {
    %c0_i32 = arith.constant 0 : i32
    %c0_i32_0 = arith.constant 0 : i32
    %c0_i32_1 = arith.constant 0 : i32
    return %c0_i32, %c0_i32_0 : i32, i32
  }
  func.func @transform_5(%arg0: i32) -> (i32, i32) {
    %c0_i32 = arith.constant 0 : i32
    %c0_i32_0 = arith.constant 0 : i32
    %c0_i32_1 = arith.constant 0 : i32
    return %c0_i32, %c0_i32_0 : i32, i32
  }
  func.func @transform_6(%arg0: i32) -> (i32, i32) {
    %c0_i32 = arith.constant 0 : i32
    %c0_i32_0 = arith.constant 0 : i32
    %c0_i32_1 = arith.constant 0 : i32
    return %c0_i32, %c0_i32_0 : i32, i32
  }
  func.func @transform_7(%arg0: i32) -> (i32, i32) {
    %c0_i32 = arith.constant 0 : i32
    %c0_i32_0 = arith.constant 0 : i32
    %c0_i32_1 = arith.constant 0 : i32
    return %c0_i32, %c0_i32_0 : i32, i32
  }
  func.func @transform_8(%arg0: i32) -> (i32, i32) {
    %c0_i32 = arith.constant 0 : i32
    %c0_i32_0 = arith.constant 0 : i32
    %c0_i32_1 = arith.constant 0 : i32
    return %c0_i32, %c0_i32_0 : i32, i32
  }
  func.func @transform_9(%arg0: i32) -> (i32, i32) {
    %c0_i32 = arith.constant 0 : i32
    %c0_i32_0 = arith.constant 0 : i32
    %c0_i32_1 = arith.constant 0 : i32
    return %c0_i32, %c0_i32_0 : i32, i32
  }
  func.func @transform_10(%arg0: i32) -> (i32, i32) {
    %c0_i32 = arith.constant 0 : i32
    %c0_i32_0 = arith.constant 0 : i32
    %c0_i32_1 = arith.constant 0 : i32
    return %c0_i32, %c0_i32_0 : i32, i32
  }
  func.func @transform_11(%arg0: i32) -> (i32, i32) {
    %c0_i32 = arith.constant 0 : i32
    %c0_i32_0 = arith.constant 0 : i32
    %c0_i32_1 = arith.constant 0 : i32
    return %c0_i32, %c0_i32_0 : i32, i32
  }
  func.func @transform_12(%arg0: i32) -> (i32, i32) {
    %c0_i32 = arith.constant 0 : i32
    %c0_i32_0 = arith.constant 0 : i32
    %c0_i32_1 = arith.constant 0 : i32
    return %c0_i32, %c0_i32_0 : i32, i32
  }
  func.func @transform_13(%arg0: i32) -> (i32, i32) {
    %c0_i32 = arith.constant 0 : i32
    %c0_i32_0 = arith.constant 0 : i32
    return %arg0, %c0_i32 : i32, i32
  }
}

</mosaic_0001>

<bundles_post_ra>
// kernel: _lambda_.3
= control target key start
LH: loop header
LB: loop body
LE: loop exit
PB: predicated region body
PF: predicated region fallthrough
CT: control target
= control target key end

     0   :  { %12 = vsyncpa [#allocation5], 0  ;;  %s5092_s0 = inlined_call_operand.vmem [shape: f32[64,40], index: 0, kind: input, shape index: {}]   ;;  %s5093_s1 = inlined_call_operand.vmem [shape: bf16[40,512], index: 1, kind: input, shape index: {}]   ;;  %s5094_s2 = inlined_call_operand.hbm [shape: bf16[128,512], index: 2, kind: input, shape index: {}]   ;;  %s5095_s3 = inlined_call_operand.vmem [shape: f32[1,512], index: 3, kind: input, shape index: {}]   ;;  %s5096_s4 = inlined_call_operand.hbm [shape: bf16[128,512], index: 4, kind: input, shape index: {}]   ;;  %s5097_s5 = inlined_call_operand.hbm [shape: bf16[128,512], index: 5, kind: input, shape index: {}]   ;;  %s5098_s6 = inlined_call_operand.vmem [shape: f32[1,512], index: 6, kind: input, shape index: {}]   ;;  %s5099_s7 = inlined_call_operand.vmem [shape: f32[64,128], index: 7, kind: output, shape index: {}]  }
   0x1   :  { %13 = vsyncpa [#allocation7], 0  ;;  %s3782_s24 = smov [#allocation6]   ;;  %s3783_s26 = smov [#allocation4]  }
   0x2   :  { %s37_s25 = sshll.u32 %s3782_s24, 4  ;;  %s23_s27 = sshll.u32 %s3783_s26, 4  ;;  %s38_s25 = int_to_ptr.vmem [resolvable:$true] %s37_s25  ;;  %s24_s27 = int_to_ptr.vmem [resolvable:$true] %s23_s27 }
   0x3   :  { %s3726_s28 = scalar_lea.vmem %s38_s25, 4096  ;;  %p3731_p1 = scmp.lt.s32.totalorder %s38_s25, %s38_s25 }
   0x4   :  { %p3727_p0 = scmp.ne.s32.totalorder %s38_s25, %s3726_s28  ;;  %p3732_p2 = scmp.lt.s32.totalorder %s3726_s28, %s3726_s28 }
   0x6   :  { %p3733_p3 = por %p3732_p2, %p3731_p1 }
   0x8   :  { %p3734_p4 = pnand %p3733_p3, %p3727_p0 }
   0xa   :  { %3737 = shalt.err (!%p3734_p4)
}
   0xb   :  { %s3784_s29 = smov 256   ;;  %s3785_s30 = smov 16  }
   0xc   :  { %43 = dma.hbm_to_vmem [thread:$0]  %s5096_s4, 4096, %s38_s25, [#allocation7], %s3784_s29, %s3784_s29, %s3785_s30  }
   0xd   :  { %s3746_s10 = scalar_lea.vmem %s24_s27, 4096  ;;  %p3751_p6 = scmp.lt.s32.totalorder %s24_s27, %s24_s27 }
   0xe   :  { %p3747_p5 = scmp.ne.s32.totalorder %s24_s27, %s3746_s10  ;;  %p3752_p7 = scmp.lt.s32.totalorder %s3746_s10, %s3746_s10 }
  0x10   :  { %p3753_p8 = por %p3752_p7, %p3751_p6 }
  0x12   :  { %p3754_p9 = pnand %p3753_p8, %p3747_p5 }
  0x14   :  { %3757 = shalt.err (!%p3754_p9)
}
  0x15   :  { %29 = dma.hbm_to_vmem [thread:$0]  %s5094_s2, 4096, %s24_s27, [#allocation5], %s3784_s29, %s3784_s29, %s3785_s30  }
  0x16   :  { %s3786_s13 = smov [#allocation8]  }
  0x17   :  { %s49_s14 = sshll.u32 %s3786_s13, 4  ;;  %s50_s14 = int_to_ptr.vmem [resolvable:$true] %s49_s14 }
  0x18   :  { %s3766_s15 = scalar_lea.vmem %s50_s14, 4096  ;;  %p3771_p11 = scmp.lt.s32.totalorder %s50_s14, %s50_s14 }
  0x19   :  { %p3767_p10 = scmp.ne.s32.totalorder %s50_s14, %s3766_s15  ;;  %p3772_p12 = scmp.lt.s32.totalorder %s3766_s15, %s3766_s15 }
  0x1b   :  { %p3773_p13 = por %p3772_p12, %p3771_p11 }
  0x1d   :  { %p3774_p0 = pnand %p3773_p13, %p3767_p10 }
  0x1f   :  { %3777 = shalt.err (!%p3774_p0)
}
  0x20   :  { %55 = dma.hbm_to_vmem [thread:$0]  %s5097_s5, 4096, %s50_s14, [#allocation7], %s3784_s29, %s3784_s29, %s3785_s30  }
  0x21   :  { %3778 = dma.done.wait [#allocation5], 4096  }
  0x22   :  { %3779 = vsyncadd [#allocation5], 4294963200 }
  0x23   :  { %3780 = dma.done.wait [#allocation7], 8192  }
  0x24   :  { %3781 = vsyncadd [#allocation7], 4294959104  ;;  %v5104_v0 = vmov 0   ;;  %v88_v1 = vld [vmem:[%s5093_s1 + $0x40] sm:$0xff]  ;;  %vm175_vm0 = vcmask 1043456   ;;  %v89_v2 = vld [vmem:[%s5093_s1 + $0x48] sm:$0xff]  ;;  %v92_v61 = vlaneseq }
  0x25   :  { %220 = vmatprep.mubr.bf16.mxu0 %v5104_v0  ;;  %293 = vmatprep.mubr.bf16.mxu1 %v5104_v0  ;;  %v3068_v3 = vcombine.high %v88_v1, %v88_v1  ;;  %v3070_v4 = vcombine.high %v89_v2, %v89_v2  ;;  %v3067_v5 = vcombine.low %v88_v1, %v88_v1  ;;  %v3242_v7 = vld [vmem:[%s5093_s1 + $0x24] ss:$16 sps:$4 sm:$0xff]   ;;  %v3244_v8 = vld [vmem:[%s5093_s1 + $0x2c] ss:$16 sps:$4 sm:$0xff]   ;;  %v3246_v11 = vld [vmem:[%s5093_s1 + $0x20] ss:$16 sps:$4 sm:$0xff]  }
  0x26   :  { %v3069_v6 = vcombine.low %v89_v2, %v89_v2  ;;  %v3247_v12 = vld [vmem:[%s5093_s1 + $0x28] ss:$16 sps:$4 sm:$0xff]   ;;  %v3248_v13 = vld [vmem:[%s5093_s1 + $0x4] ss:$16 sps:$4 sm:$0xff]   ;;  %v3250_v14 = vld [vmem:[%s5093_s1 + $0xc] ss:$16 sps:$4 sm:$0xff]  }
  0x27   :  { %3071 = vmatprep.subr.msk.bf16.mxu0 %vm175_vm0, %v3068_v3  ;;  %3076 = vmatprep.subr.msk.bf16.mxu1 %vm175_vm0, %v3070_v4  ;;  %v177_v9 = vsel %vm175_vm0, %v3067_v5, 0  ;;  %v3252_v15 = vld [vmem:[%s5093_s1] ss:$16 sps:$4 sm:$0xff]   ;;  %v3253_v16 = vld [vmem:[%s5093_s1 + $0x8] ss:$16 sps:$4 sm:$0xff]   ;;  %vm162_vm1 = vcmask 326656  }
  0x28   :  { %v183_v10 = vsel %vm175_vm0, %v3069_v6, 0  ;;  %199 = vmatpush1.bf16.msra.mxu0 %v177_v9  ;;  %v68_v17 = vld [vmem:[%s5092_s0] sm:$0xff]  ;;  %v69_v18 = vld [vmem:[%s5092_s0 + $0x8] sm:$0xff]  ;;  %v70_v28 = vld [vmem:[%s5092_s0 + $0x10] sm:$0xff]  ;;  %v4043_v62 = vshrl.u32 %v92_v61, 7 }
  0x29   :  { %272 = vmatpush1.bf16.msra.mxu1 %v183_v10  ;;  %200 = vmatprep.subr.bf16.mxu0 %v3242_v7  ;;  %v3875_v19 = vld [vmem:[#allocation4 + $0xe4] ss:$16 sps:$4 sm:$0xff]   ;;  %v3877_v20 = vld [vmem:[#allocation4 + $0xec] ss:$16 sps:$4 sm:$0xff]   ;;  %v76_v21 = vpack.c.bf16 %v69_v18, %v68_v17  ;;  %v3879_v22 = vld [vmem:[#allocation4 + $0xe0] ss:$16 sps:$4 sm:$0xff]  }
  0x2a   :  { %273 = vmatprep.subr.bf16.mxu1 %v3244_v8  ;;  %v3881_v23 = vld [vmem:[#allocation4 + $0xe8] ss:$16 sps:$4 sm:$0xff]   ;;  %v3883_v24 = vld [vmem:[#allocation4 + $0xc4] ss:$16 sps:$4 sm:$0xff]   ;;  %v3887_v25 = vld [vmem:[#allocation4 + $0xcc] ss:$16 sps:$4 sm:$0xff]  }
  0x2b   :  { %v3889_v26 = vld [vmem:[#allocation4 + $0xc0] ss:$16 sps:$4 sm:$0xff]   ;;  %v3891_v27 = vld [vmem:[#allocation4 + $0xc8] ss:$16 sps:$4 sm:$0xff]   ;;  %v3905_v30 = vld [vmem:[#allocation4 + $0xa4] ss:$16 sps:$4 sm:$0xff]  }
  0x2c   :  { %201 = vmatpush1.bf16.msra.mxu0 %v3246_v11  ;;  %v71_v29 = vld [vmem:[%s5092_s0 + $0x18] sm:$0xff]  ;;  %v3911_v33 = vld [vmem:[#allocation4 + $0xa0] ss:$16 sps:$4 sm:$0xff]   ;;  %v3917_v35 = vld [vmem:[#allocation4 + $0x84] ss:$16 sps:$4 sm:$0xff]   ;;  %5108 = vst [vmem:[#allocation11_spill] sm:$0xff] %v4043_v62 }
  0x2d   :  { %274 = vmatpush1.bf16.msra.mxu1 %v3247_v12  ;;  %202 = vmatprep.subr.bf16.mxu0 %v3248_v13  ;;  %v3907_v31 = vld [vmem:[#allocation4 + $0xac] ss:$16 sps:$4 sm:$0xff]   ;;  %v77_v32 = vpack.c.bf16 %v71_v29, %v70_v28  ;;  %v3915_v34 = vld [vmem:[#allocation4 + $0xa8] ss:$16 sps:$4 sm:$0xff]   ;;  %v3925_v37 = vld [vmem:[#allocation4 + $0x80] ss:$16 sps:$4 sm:$0xff]  }
  0x2e   :  { %275 = vmatprep.subr.bf16.mxu1 %v3250_v14  ;;  %v3921_v36 = vld [vmem:[#allocation4 + $0x8c] ss:$16 sps:$4 sm:$0xff]   ;;  %v3927_v38 = vld [vmem:[#allocation4 + $0x88] ss:$16 sps:$4 sm:$0xff]   ;;  %v72_v39 = vld [vmem:[%s5092_s0 + $0x20] sm:$0xff]  ;;  %v5100_v63 = vsub.s32 2, %v4043_v62 }
  0x2f   :  { %v73_v40 = vld [vmem:[%s5092_s0 + $0x28] sm:$0xff]  ;;  %v3937_v41 = vld [vmem:[#allocation4 + $0x64] ss:$16 sps:$4 sm:$0xff]   ;;  %v3945_v44 = vld [vmem:[#allocation4 + $0x60] ss:$16 sps:$4 sm:$0xff]   ;;  %v5103_v1 = vsub.s32 0, %v4043_v62 }
  0x30   :  { %203 = vmatpush1.bf16.msra.mxu0 %v3252_v15  ;;  %v3941_v42 = vld [vmem:[#allocation4 + $0x6c] ss:$16 sps:$4 sm:$0xff]   ;;  %v78_v43 = vpack.c.bf16 %v73_v40, %v72_v39  ;;  %v3949_v45 = vld [vmem:[#allocation4 + $0x68] ss:$16 sps:$4 sm:$0xff]   ;;  %v3953_v46 = vld [vmem:[#allocation4 + $0x44] ss:$16 sps:$4 sm:$0xff]  }
  0x31   :  { %276 = vmatpush1.bf16.msra.mxu1 %v3253_v16  ;;  %565 = vmatprep.subr.bf16.mxu0 %v3875_v19  ;;  %v3955_v47 = vld [vmem:[#allocation4 + $0x4c] ss:$16 sps:$4 sm:$0xff]   ;;  %v3957_v48 = vld [vmem:[#allocation4 + $0x40] ss:$16 sps:$4 sm:$0xff]   ;;  %v3959_v49 = vld [vmem:[#allocation4 + $0x48] ss:$16 sps:$4 sm:$0xff]  }
  0x32   :  { %606 = vmatprep.subr.bf16.mxu1 %v3877_v20  ;;  %v74_v50 = vld [vmem:[%s5092_s0 + $0x30] sm:$0xff]  ;;  %v75_v51 = vld [vmem:[%s5092_s0 + $0x38] sm:$0xff]  ;;  %v5101_v2 = vsub.s32 3, %v4043_v62  ;;  %v90_v3 = vld [vmem:[%s5095_s3] sm:$0xf]  ;;  %v5102_v7 = vsub.s32 1, %v4043_v62 }
  0x33   :  { %3072 = vmatmul.mubr.msk.bf16.vlgmr.msra.gmra.mxu0 %vm162_vm1, %v76_v21  ;;  %v3969_v52 = vld [vmem:[#allocation4 + $0x24] ss:$16 sps:$4 sm:$0xff]   ;;  %v3971_v53 = vld [vmem:[#allocation4 + $0x2c] ss:$16 sps:$4 sm:$0xff]   ;;  %v3979_v54 = vld [vmem:[#allocation4 + $0x20] ss:$16 sps:$4 sm:$0xff]   ;;  %v79_v56 = vpack.c.bf16 %v75_v51, %v74_v50  ;;  %v4057_v6 = vrot.slane %v90_v3, %v5100_v63  ;;  %v95_v10 = vrot.slane %v90_v3, %v5103_v1 }
  0x34   :  { %3077 = vmatmul.mubr.msk.bf16.vlgmr.msra.gmra.mxu1 %vm162_vm1, %v76_v21  ;;  %566 = vmatpush1.bf16.msra.mxu0 %v3879_v22  ;;  %v3981_v55 = vld [vmem:[#allocation4 + $0x28] ss:$16 sps:$4 sm:$0xff]   ;;  %v3983_v57 = vld [vmem:[#allocation4 + $0x4] ss:$16 sps:$4 sm:$0xff]   ;;  %v3985_v58 = vld [vmem:[#allocation4 + $0xc] ss:$16 sps:$4 sm:$0xff]   ;;  %v4068_v11 = vrot.slane %v90_v3, %v5101_v2  ;;  %v99_v14 = vrot.slane %v90_v3, %v5102_v7 }
  0x35   :  { %607 = vmatpush1.bf16.msra.mxu1 %v3881_v23  ;;  %567 = vmatprep.subr.bf16.mxu0 %v3883_v24  ;;  %v3991_v59 = vld [vmem:[#allocation4] ss:$16 sps:$4 sm:$0xff]   ;;  %v3993_v60 = vld [vmem:[#allocation4 + $0x8] ss:$16 sps:$4 sm:$0xff]  }
  0x36   :  { %608 = vmatprep.subr.bf16.mxu1 %v3887_v25  ;;  %230 = vmatprep.mubr.bf16.mxu0 %v5104_v0 }
  0x37   :  { %303 = vmatprep.mubr.bf16.mxu1 %v5104_v0 }
  0x38   :  { %568 = vmatpush1.bf16.msra.mxu0 %v3889_v26 }
  0x39   :  { %609 = vmatpush1.bf16.msra.mxu1 %v3891_v27  ;;  %569 = vmatprep.subr.bf16.mxu0 %v3905_v30 }
  0x3a   :  { %610 = vmatprep.subr.bf16.mxu1 %v3907_v31 }
  0x3b   :  { %3073 = vmatmul.mubr.msk.bf16.gmra.mxu0 %vm162_vm1, %v77_v32 }
  0x3c   :  { %3078 = vmatmul.mubr.msk.bf16.gmra.mxu1 %vm162_vm1, %v77_v32  ;;  %570 = vmatpush1.bf16.msra.mxu0 %v3911_v33 }
  0x3d   :  { %611 = vmatpush1.bf16.msra.mxu1 %v3915_v34  ;;  %571 = vmatprep.subr.bf16.mxu0 %v3917_v35 }
  0x3e   :  { %612 = vmatprep.subr.bf16.mxu1 %v3921_v36  ;;  %240 = vmatprep.mubr.bf16.mxu0 %v5104_v0 }
  0x3f   :  { %313 = vmatprep.mubr.bf16.mxu1 %v5104_v0 }
  0x40   :  { %572 = vmatpush1.bf16.msra.mxu0 %v3925_v37 }
  0x41   :  { %613 = vmatpush1.bf16.msra.mxu1 %v3927_v38  ;;  %573 = vmatprep.subr.bf16.mxu0 %v3937_v41 }
  0x42   :  { %614 = vmatprep.subr.bf16.mxu1 %v3941_v42 }
  0x43   :  { %3074 = vmatmul.mubr.msk.bf16.gmra.mxu0 %vm162_vm1, %v78_v43 }
  0x44   :  { %3079 = vmatmul.mubr.msk.bf16.gmra.mxu1 %vm162_vm1, %v78_v43  ;;  %574 = vmatpush1.bf16.msra.mxu0 %v3945_v44 }
  0x45   :  { %615 = vmatpush1.bf16.msra.mxu1 %v3949_v45  ;;  %575 = vmatprep.subr.bf16.mxu0 %v3953_v46 }
  0x46   :  { %616 = vmatprep.subr.bf16.mxu1 %v3955_v47  ;;  %250 = vmatprep.mubr.bf16.mxu0 %v5104_v0 }
  0x47   :  { %323 = vmatprep.mubr.bf16.mxu1 %v5104_v0 }
  0x48   :  { %576 = vmatpush1.bf16.msra.mxu0 %v3957_v48 }
  0x49   :  { %617 = vmatpush1.bf16.msra.mxu1 %v3959_v49  ;;  %577 = vmatprep.subr.bf16.mxu0 %v3969_v52 }
  0x4a   :  { %618 = vmatprep.subr.bf16.mxu1 %v3971_v53 }
  0x4b   :  { %3075 = vmatmul.mubr.msk.bf16.gmra.mxu0 %vm162_vm1, %v79_v56 }
  0x4c   :  { %3080 = vmatmul.mubr.msk.bf16.gmra.mxu1 %vm162_vm1, %v79_v56  ;;  %578 = vmatpush1.bf16.msra.mxu0 %v3979_v54 }
  0x4d   :  { %619 = vmatpush1.bf16.msra.mxu1 %v3981_v55  ;;  %579 = vmatprep.subr.bf16.mxu0 %v3983_v57 }
  0x4e   :  { %620 = vmatprep.subr.bf16.mxu1 %v3985_v58  ;;  %597 = vmatprep.mubr.bf16.mxu0 %v5104_v0 }
  0x4f   :  { %638 = vmatprep.mubr.bf16.mxu1 %v5104_v0 }
  0x50   :  { %580 = vmatpush1.bf16.msra.mxu0 %v3991_v59 }
  0x51   :  { %621 = vmatpush1.bf16.msra.mxu1 %v3993_v60  ;;  %684 = vmatprep.subr.bf16.mxu0 %v3875_v19 }
  0x52   :  { %725 = vmatprep.subr.bf16.mxu1 %v3877_v20 }
  0x53   :  { %598 = vmatmul.mubr.bf16.vlgmr.msra.gmra.mxu0 %v5104_v0 }
  0x54   :  { %639 = vmatmul.mubr.bf16.vlgmr.msra.gmra.mxu1 %v5104_v0  ;;  %685 = vmatpush1.bf16.msra.mxu0 %v3879_v22 }
  0x55   :  { %726 = vmatpush1.bf16.msra.mxu1 %v3881_v23  ;;  %686 = vmatprep.subr.bf16.mxu0 %v3883_v24 }
  0x56   :  { %727 = vmatprep.subr.bf16.mxu1 %v3887_v25  ;;  %716 = vmatprep.mubr.bf16.mxu0 %v5104_v0 }
  0x57   :  { %757 = vmatprep.mubr.bf16.mxu1 %v5104_v0 }
  0x58   :  { %687 = vmatpush1.bf16.msra.mxu0 %v3889_v26 }
  0x59   :  { %728 = vmatpush1.bf16.msra.mxu1 %v3891_v27  ;;  %688 = vmatprep.subr.bf16.mxu0 %v3905_v30 }
  0x5a   :  { %729 = vmatprep.subr.bf16.mxu1 %v3907_v31 }
  0x5c   :  { %689 = vmatpush1.bf16.msra.mxu0 %v3911_v33 }
  0x5d   :  { %730 = vmatpush1.bf16.msra.mxu1 %v3915_v34  ;;  %690 = vmatprep.subr.bf16.mxu0 %v3917_v35 }
  0x5e   :  { %731 = vmatprep.subr.bf16.mxu1 %v3921_v36 }
  0x60   :  { %691 = vmatpush1.bf16.msra.mxu0 %v3925_v37 }
  0x61   :  { %732 = vmatpush1.bf16.msra.mxu1 %v3927_v38  ;;  %692 = vmatprep.subr.bf16.mxu0 %v3937_v41 }
  0x62   :  { %733 = vmatprep.subr.bf16.mxu1 %v3941_v42 }
  0x64   :  { %693 = vmatpush1.bf16.msra.mxu0 %v3945_v44 }
  0x65   :  { %734 = vmatpush1.bf16.msra.mxu1 %v3949_v45  ;;  %694 = vmatprep.subr.bf16.mxu0 %v3953_v46 }
  0x66   :  { %735 = vmatprep.subr.bf16.mxu1 %v3955_v47 }
  0x68   :  { %695 = vmatpush1.bf16.msra.mxu0 %v3957_v48 }
  0x69   :  { %736 = vmatpush1.bf16.msra.mxu1 %v3959_v49  ;;  %696 = vmatprep.subr.bf16.mxu0 %v3969_v52 }
  0x6a   :  { %737 = vmatprep.subr.bf16.mxu1 %v3971_v53 }
  0x6c   :  { %697 = vmatpush1.bf16.msra.mxu0 %v3979_v54 }
  0x6d   :  { %738 = vmatpush1.bf16.msra.mxu1 %v3981_v55  ;;  %698 = vmatprep.subr.bf16.mxu0 %v3983_v57 }
  0x6e   :  { %739 = vmatprep.subr.bf16.mxu1 %v3985_v58 }
  0x70   :  { %699 = vmatpush1.bf16.msra.mxu0 %v3991_v59 }
  0x71   :  { %740 = vmatpush1.bf16.msra.mxu1 %v3993_v60  ;;  %804 = vmatprep.subr.bf16.mxu0 %v3875_v19 }
  0x72   :  { %845 = vmatprep.subr.bf16.mxu1 %v3877_v20 }
  0xf3   :  { %v4051_v4 = vpop.f32.mrf.mxu0 }
  0xf4   :  { %v4053_v5 = vpop.f32.mrf.mxu1 }
  0xf5   :  { %v4060_v8 = vpop.f32.mrf.mxu0 }
  0xf6   :  { %v4062_v9 = vpop.f32.mrf.mxu1 }
  0xf7   :  { %v226_v12 = vpop.f32.mrf.mxu0 }
  0xf8   :  { %v299_v13 = vpop.f32.mrf.mxu1  ;;  %v4072_v15 = vadd.f32 %v226_v12, %v95_v10 }
  0xf9   :  { %v4075_v16 = vadd.f32 %v299_v13, %v4057_v6  ;;  %v228_v17 = vpop.f32.mrf.mxu0 }
  0xfa   :  { %v301_v18 = vpop.f32.mrf.mxu1  ;;  %v4077_v21 = vadd.f32 %v228_v17, %v99_v14 }
  0xfb   :  { %v4080_v28 = vadd.f32 %v301_v18, %v4068_v11  ;;  %v232_v29 = vpop.f32.mrf.mxu0 }
  0xfc   :  { %v305_v32 = vpop.f32.mrf.mxu1  ;;  %v4082_v39 = vadd.f32 %v232_v29, %v95_v10 }
  0xfd   :  { %v4085_v40 = vadd.f32 %v305_v32, %v4057_v6  ;;  %v234_v43 = vpop.f32.mrf.mxu0 }
  0xfe   :  { %v307_v50 = vpop.f32.mrf.mxu1  ;;  %v4087_v51 = vadd.f32 %v234_v43, %v99_v14 }
  0xff   :  { %5109 = vst [vmem:[#allocation12_spill] sm:$0xff] %v4085_v40  ;;  %v4090_v56 = vadd.f32 %v307_v50, %v4068_v11  ;;  %v236_v61 = vpop.f32.mrf.mxu0 }
 0x100   :  { %v309_v3 = vpop.f32.mrf.mxu1  ;;  %v4092_v12 = vadd.f32 %v236_v61, %v95_v10 }
 0x101   :  { %v4095_v13 = vadd.f32 %v309_v3, %v4057_v6  ;;  %v238_v17 = vpop.f32.mrf.mxu0 }
 0x102   :  { %5110 = vst [vmem:[#allocation13_spill] sm:$0xff] %v4092_v12  ;;  %v311_v18 = vpop.f32.mrf.mxu1  ;;  %v4097_v29 = vadd.f32 %v238_v17, %v99_v14 }
 0x103   :  { %5111 = vst [vmem:[#allocation14_spill] sm:$0xff] %v4095_v13  ;;  %v4100_v32 = vadd.f32 %v311_v18, %v4068_v11  ;;  %v242_v63 = vpop.f32.mrf.mxu0 }
 0x104   :  { %5112 = vst [vmem:[#allocation15_spill] sm:$0xff] %v4097_v29  ;;  %v315_v43 = vpop.f32.mrf.mxu1  ;;  %v4102_v2 = vadd.f32 %v242_v63, %v95_v10 }
 0x105   :  { %5113 = vst [vmem:[#allocation16_spill] sm:$0xff] %v4100_v32  ;;  %v4105_v50 = vadd.f32 %v315_v43, %v4057_v6  ;;  %v244_v7 = vpop.f32.mrf.mxu0 }
 0x106   :  { %5114 = vst [vmem:[#allocation17_spill] sm:$0xff] %v4102_v2  ;;  %v317_v61 = vpop.f32.mrf.mxu1  ;;  %v4107_v1 = vadd.f32 %v244_v7, %v99_v14 }
 0x107   :  { %5115 = vst [vmem:[#allocation18_spill] sm:$0xff] %v4105_v50  ;;  %v4110_v3 = vadd.f32 %v317_v61, %v4068_v11  ;;  %v246_v0 = vpop.f32.mrf.mxu0 }
 0x108   :  { %5116 = vst [vmem:[#allocation19_spill] sm:$0xff] %v4107_v1  ;;  %v319_v17 = vpop.f32.mrf.mxu1  ;;  %v4112_v62 = vadd.f32 %v246_v0, %v95_v10 }
 0x109   :  { %5117 = vst [vmem:[#allocation20_spill] sm:$0xff] %v4110_v3  ;;  %v4115_v18 = vadd.f32 %v319_v17, %v4057_v6  ;;  %v248_v13 = vpop.f32.mrf.mxu0 }
 0x10a   :  { %5118 = vst [vmem:[#allocation21_spill] sm:$0xff] %v4112_v62  ;;  %v321_v63 = vpop.f32.mrf.mxu1  ;;  %v4117_v2 = vadd.f32 %v248_v13, %v99_v14 }
 0x10b   :  { %5119 = vst [vmem:[#allocation22_spill] sm:$0xff] %v4115_v18  ;;  %v4120_v43 = vadd.f32 %v321_v63, %v4068_v11  ;;  %v252_v50 = vpop.f32.mrf.mxu0 }
 0x10c   :  { %5120 = vst [vmem:[#allocation23_spill] sm:$0xff] %v4117_v2  ;;  %v325_v7 = vpop.f32.mrf.mxu1  ;;  %v4122_v1 = vadd.f32 %v252_v50, %v95_v10 }
 0x10d   :  { %5121 = vst [vmem:[#allocation24_spill] sm:$0xff] %v4120_v43  ;;  %v4125_v61 = vadd.f32 %v325_v7, %v4057_v6  ;;  %v254_v3 = vpop.f32.mrf.mxu0 }
 0x10e   :  { %5122 = vst [vmem:[#allocation25_spill] sm:$0xff] %v4122_v1  ;;  %v327_v0 = vpop.f32.mrf.mxu1  ;;  %v4127_v62 = vadd.f32 %v254_v3, %v99_v14  ;;  %v223_v1 = vadd.f32 %v4051_v4, %v95_v10 }
 0x10f   :  { %5123 = vst [vmem:[#allocation26_spill] sm:$0xff] %v4125_v61  ;;  %v4130_v17 = vadd.f32 %v327_v0, %v4068_v11  ;;  %v256_v18 = vpop.f32.mrf.mxu0  ;;  %v225_v0 = vadd.f32 %v4060_v8, %v99_v14 }
 0x110   :  { %5124 = vst [vmem:[#allocation27_spill] sm:$0xff] %v4127_v62  ;;  %v329_v13 = vpop.f32.mrf.mxu1  ;;  %v4132_v2 = vadd.f32 %v256_v18, %v95_v10  ;;  %v298_v10 = vadd.f32 %v4062_v9, %v4068_v11 }
 0x111   :  { %5125 = vst [vmem:[#allocation28_spill] sm:$0xff] %v4130_v17  ;;  %v4135_v63 = vadd.f32 %v329_v13, %v4057_v6  ;;  %v258_v43 = vpop.f32.mrf.mxu0 }
 0x112   :  { %5126 = vst [vmem:[#allocation29_spill] sm:$0xff] %v4132_v2  ;;  %v331_v50 = vpop.f32.mrf.mxu1  ;;  %v4138_v7 = vadd.f32 %v258_v43, %v99_v14 }
 0x113   :  { %5127 = vst [vmem:[#allocation30_spill] sm:$0xff] %v4135_v63  ;;  %v4141_v61 = vadd.f32 %v331_v50, %v4068_v11  ;;  %v599_v3 = vpop.f32.mrf.mxu0  ;;  %v296_v50 = vadd.f32 %v4053_v5, %v4057_v6 }
 0x114   :  { %v640_v62 = vpop.f32.mrf.mxu1  ;;  %v647_v17 = vadd.f32 %v599_v3, %v223_v1 }
 0x115   :  { %v601_v32 = vpop.f32.mrf.mxu0  ;;  %v649_v14 = vadd.f32 %v640_v62, %v296_v50 }
 0x116   :  { %v642_v18 = vpop.f32.mrf.mxu1  ;;  %v3113_v2 = vmul.f32 -1.442695, %v647_v17  ;;  %v648_v29 = vadd.f32 %v601_v32, %v225_v0 }
 0x117   :  { %v603_v13 = vpop.f32.mrf.mxu0  ;;  %v650_v43 = vadd.f32 %v642_v18, %v298_v10 }
 0x118   :  { %v644_v63 = vpop.f32.mrf.mxu1  ;;  %3398 = vpow2.f32 %v3113_v2  ;;  %v3114_v12 = vmul.f32 -1.442695, %v648_v29  ;;  %v5128_v13 = vmov 0  }
 0x119   :  { %v604_v40 = vpop.f32.mrf.mxu0  ;;  %v3115_v8 = vmul.f32 -1.442695, %v650_v43 }
 0x11a   :  { %v645_v4 = vpop.f32.mrf.mxu1  ;;  %3400 = vpow2.f32 %v3114_v12 }
 0x11b   :  { %3402 = vpow2.f32 %v3115_v8 }
 0x125   :  { %v3399_v1 = vpop.eup %3398 }
 0x126   :  { %v654_v3 = vadd.f32 1.0, %v3399_v1 }
 0x127   :  { %v3401_v17 = vpop.eup %3400 }
 0x128   :  { %3404 = vrcp.f32 %v654_v3  ;;  %v660_v32 = vadd.f32 1.0, %v3401_v17  ;;  %v3403_v2 = vpop.eup %3402 }
 0x129   :  { %3406 = vtanh.f32 %v649_v14  ;;  %v667_v63 = vadd.f32 1.0, %v3403_v2 }
 0x12a   :  { %3408 = vrcp.f32 %v660_v32 }
 0x12b   :  { %3410 = vrcp.f32 %v667_v63 }
 0x135   :  { %v3405_v40 = vpop.eup %3404 }
 0x136   :  { %v3407_v12 = vpop.eup %3406 }
 0x137   :  { %v3409_v29 = vpop.eup %3408  ;;  %v671_v11 = vmul.f32 %v3407_v12, %v3405_v40 }
 0x138   :  { %v670_v9 = vmul.f32 0.0, %v3409_v29  ;;  %v3411_v62 = vpop.eup %3410 }
 0x13a   :  { %v4148_v0 = vadd.f32 %v671_v11, %v670_v9 }
 0x13c   :  { %3412 = vtanh.f32 %v4148_v0 }
 0x149   :  { %v3413_v5 = vpop.eup %3412 }
 0x14a   :  { %v4151_v6 = vmul.f32 %v3413_v5, %v3411_v62 }
 0x14c   :  { %v683_v18 = vpack.c.bf16 %v4151_v6, %v4151_v6 }
 0x14e   :  { %717 = vmatmul.mubr.bf16.vlgmr.msra.gmra.mxu0 %v683_v18  ;;  %758 = vmatmul.mubr.bf16.vlgmr.msra.gmra.mxu1 %v683_v18 }
 0x14f   :  { %805 = vmatpush1.bf16.msra.mxu0 %v3879_v22  ;;  %846 = vmatpush1.bf16.msra.mxu1 %v3881_v23 }
 0x150   :  { %806 = vmatprep.subr.bf16.mxu0 %v3883_v24  ;;  %847 = vmatprep.subr.bf16.mxu1 %v3887_v25 }
 0x151   :  { %836 = vmatprep.mubr.bf16.mxu0 %v5128_v13  ;;  %877 = vmatprep.mubr.bf16.mxu1 %v5128_v13 }
 0x153   :  { %807 = vmatpush1.bf16.msra.mxu0 %v3889_v26  ;;  %848 = vmatpush1.bf16.msra.mxu1 %v3891_v27 }
 0x154   :  { %808 = vmatprep.subr.bf16.mxu0 %v3905_v30  ;;  %849 = vmatprep.subr.bf16.mxu1 %v3907_v31 }
 0x157   :  { %809 = vmatpush1.bf16.msra.mxu0 %v3911_v33  ;;  %850 = vmatpush1.bf16.msra.mxu1 %v3915_v34 }
 0x158   :  { %810 = vmatprep.subr.bf16.mxu0 %v3917_v35  ;;  %851 = vmatprep.subr.bf16.mxu1 %v3921_v36 }
 0x15b   :  { %811 = vmatpush1.bf16.msra.mxu0 %v3925_v37  ;;  %852 = vmatpush1.bf16.msra.mxu1 %v3927_v38 }
 0x15c   :  { %812 = vmatprep.subr.bf16.mxu0 %v3937_v41  ;;  %853 = vmatprep.subr.bf16.mxu1 %v3941_v42 }
 0x15f   :  { %813 = vmatpush1.bf16.msra.mxu0 %v3945_v44  ;;  %854 = vmatpush1.bf16.msra.mxu1 %v3949_v45 }
 0x160   :  { %814 = vmatprep.subr.bf16.mxu0 %v3953_v46  ;;  %855 = vmatprep.subr.bf16.mxu1 %v3955_v47 }
 0x163   :  { %815 = vmatpush1.bf16.msra.mxu0 %v3957_v48  ;;  %856 = vmatpush1.bf16.msra.mxu1 %v3959_v49 }
 0x164   :  { %816 = vmatprep.subr.bf16.mxu0 %v3969_v52  ;;  %857 = vmatprep.subr.bf16.mxu1 %v3971_v53 }
 0x167   :  { %817 = vmatpush1.bf16.msra.mxu0 %v3979_v54  ;;  %858 = vmatpush1.bf16.msra.mxu1 %v3981_v55 }
 0x168   :  { %818 = vmatprep.subr.bf16.mxu0 %v3983_v57  ;;  %859 = vmatprep.subr.bf16.mxu1 %v3985_v58 }
 0x16b   :  { %819 = vmatpush1.bf16.msra.mxu0 %v3991_v59  ;;  %860 = vmatpush1.bf16.msra.mxu1 %v3993_v60 }
 0x16c   :  { %924 = vmatprep.subr.bf16.mxu0 %v3875_v19  ;;  %965 = vmatprep.subr.bf16.mxu1 %v3877_v20 }
 0x20e   :  { %v718_v4 = vpop.f32.mrf.mxu0  ;;  %v759_v10 = vpop.f32.mrf.mxu1 }
 0x20f   :  { %v766_v43 = vadd.f32 %v718_v4, %v4072_v15  ;;  %v768_v29 = vadd.f32 %v759_v10, %v4075_v16 }
 0x210   :  { %v720_v50 = vpop.f32.mrf.mxu0  ;;  %v761_v8 = vpop.f32.mrf.mxu1 }
 0x211   :  { %v3116_v1 = vmul.f32 -1.442695, %v766_v43  ;;  %v767_v14 = vadd.f32 %v720_v50, %v4077_v21  ;;  %v769_v12 = vadd.f32 %v761_v8, %v4080_v28 }
 0x212   :  { %v722_v3 = vpop.f32.mrf.mxu0  ;;  %v763_v17 = vpop.f32.mrf.mxu1 }
 0x213   :  { %3414 = vpow2.f32 %v3116_v1  ;;  %v3117_v32 = vmul.f32 -1.442695, %v767_v14  ;;  %v3118_v63 = vmul.f32 -1.442695, %v769_v12 }
 0x214   :  { %v723_v2 = vpop.f32.mrf.mxu0  ;;  %v764_v40 = vpop.f32.mrf.mxu1 }
 0x215   :  { %3416 = vpow2.f32 %v3117_v32 }
 0x216   :  { %3418 = vtanh.f32 %v768_v29 }
 0x217   :  { %3420 = vpow2.f32 %v3118_v63 }
 0x220   :  { %v3415_v9 = vpop.eup %3414 }
 0x221   :  { %v773_v11 = vadd.f32 1.0, %v3415_v9 }
 0x222   :  { %v3417_v15 = vpop.eup %3416 }
 0x223   :  { %3422 = vrcp.f32 %v773_v11  ;;  %v779_v62 = vadd.f32 1.0, %v3417_v15  ;;  %v3419_v21 = vpop.eup %3418 }
 0x224   :  { %v3421_v5 = vpop.eup %3420 }
 0x225   :  { %3424 = vrcp.f32 %v779_v62  ;;  %v786_v50 = vadd.f32 1.0, %v3421_v5  ;;  %v5129_v62 = vld [vmem:[#allocation12_spill] sm:$0xff] }
 0x227   :  { %3426 = vrcp.f32 %v786_v50 }
 0x230   :  { %v3423_v18 = vpop.eup %3422 }
 0x231   :  { %v790_v4 = vmul.f32 %v3423_v18, %v3419_v21 }
 0x232   :  { %v3425_v43 = vpop.eup %3424 }
 0x233   :  { %v789_v1 = vmul.f32 %v3425_v43, %v4148_v0 }
 0x234   :  { %v3427_v16 = vpop.eup %3426 }
 0x235   :  { %v4194_v28 = vadd.f32 %v790_v4, %v789_v1 }
 0x237   :  { %3428 = vtanh.f32 %v4194_v28 }
 0x244   :  { %v3429_v10 = vpop.eup %3428 }
 0x245   :  { %v4197_v8 = vmul.f32 %v3429_v10, %v3427_v16 }
 0x247   :  { %v803_v14 = vpack.c.bf16 %v4197_v8, %v4197_v8 }
 0x249   :  { %837 = vmatmul.mubr.bf16.vlgmr.msra.gmra.mxu0 %v803_v14  ;;  %878 = vmatmul.mubr.bf16.vlgmr.msra.gmra.mxu1 %v803_v14 }
 0x24a   :  { %925 = vmatpush1.bf16.msra.mxu0 %v3879_v22  ;;  %966 = vmatpush1.bf16.msra.mxu1 %v3881_v23 }
 0x24b   :  { %926 = vmatprep.subr.bf16.mxu0 %v3883_v24  ;;  %967 = vmatprep.subr.bf16.mxu1 %v3887_v25 }
 0x24c   :  { %956 = vmatprep.mubr.bf16.mxu0 %v5128_v13  ;;  %997 = vmatprep.mubr.bf16.mxu1 %v5128_v13 }
 0x24e   :  { %927 = vmatpush1.bf16.msra.mxu0 %v3889_v26  ;;  %968 = vmatpush1.bf16.msra.mxu1 %v3891_v27 }
 0x24f   :  { %928 = vmatprep.subr.bf16.mxu0 %v3905_v30  ;;  %969 = vmatprep.subr.bf16.mxu1 %v3907_v31 }
 0x252   :  { %929 = vmatpush1.bf16.msra.mxu0 %v3911_v33  ;;  %970 = vmatpush1.bf16.msra.mxu1 %v3915_v34 }
 0x253   :  { %930 = vmatprep.subr.bf16.mxu0 %v3917_v35  ;;  %971 = vmatprep.subr.bf16.mxu1 %v3921_v36 }
 0x256   :  { %931 = vmatpush1.bf16.msra.mxu0 %v3925_v37  ;;  %972 = vmatpush1.bf16.msra.mxu1 %v3927_v38 }
 0x257   :  { %932 = vmatprep.subr.bf16.mxu0 %v3937_v41  ;;  %973 = vmatprep.subr.bf16.mxu1 %v3941_v42 }
 0x25a   :  { %933 = vmatpush1.bf16.msra.mxu0 %v3945_v44  ;;  %974 = vmatpush1.bf16.msra.mxu1 %v3949_v45 }
 0x25b   :  { %934 = vmatprep.subr.bf16.mxu0 %v3953_v46  ;;  %975 = vmatprep.subr.bf16.mxu1 %v3955_v47 }
 0x25e   :  { %935 = vmatpush1.bf16.msra.mxu0 %v3957_v48  ;;  %976 = vmatpush1.bf16.msra.mxu1 %v3959_v49 }
 0x25f   :  { %936 = vmatprep.subr.bf16.mxu0 %v3969_v52  ;;  %977 = vmatprep.subr.bf16.mxu1 %v3971_v53 }
 0x262   :  { %937 = vmatpush1.bf16.msra.mxu0 %v3979_v54  ;;  %978 = vmatpush1.bf16.msra.mxu1 %v3981_v55 }
 0x263   :  { %938 = vmatprep.subr.bf16.mxu0 %v3983_v57  ;;  %979 = vmatprep.subr.bf16.mxu1 %v3985_v58 }
 0x266   :  { %939 = vmatpush1.bf16.msra.mxu0 %v3991_v59  ;;  %980 = vmatpush1.bf16.msra.mxu1 %v3993_v60 }
 0x267   :  { %1044 = vmatprep.subr.bf16.mxu0 %v3875_v19  ;;  %1085 = vmatprep.subr.bf16.mxu1 %v3877_v20 }
 0x309   :  { %v838_v0 = vpop.f32.mrf.mxu0  ;;  %v879_v3 = vpop.f32.mrf.mxu1 }
 0x30a   :  { %v886_v17 = vadd.f32 %v838_v0, %v4082_v39  ;;  %v888_v20 = vadd.f32 %v879_v3, %v5129_v62 }
 0x30b   :  { %v840_v32 = vpop.f32.mrf.mxu0  ;;  %v881_v2 = vpop.f32.mrf.mxu1 }
 0x30c   :  { %v3119_v40 = vmul.f32 -1.442695, %v886_v17  ;;  %v887_v12 = vadd.f32 %v840_v32, %v4087_v51  ;;  %v889_v19 = vadd.f32 %v881_v2, %v4090_v56 }
 0x30d   :  { %v842_v29 = vpop.f32.mrf.mxu0  ;;  %v883_v63 = vpop.f32.mrf.mxu1 }
 0x30e   :  { %3430 = vpow2.f32 %v3119_v40  ;;  %v3120_v9 = vmul.f32 -1.442695, %v887_v12  ;;  %v3121_v21 = vmul.f32 -1.442695, %v889_v19  ;;  %v5133_v40 = vld [vmem:[#allocation14_spill] sm:$0xff] }
 0x30f   :  { %v843_v11 = vpop.f32.mrf.mxu0  ;;  %v884_v15 = vpop.f32.mrf.mxu1 }
 0x310   :  { %3432 = vpow2.f32 %v3120_v9 }
 0x311   :  { %3434 = vtanh.f32 %v888_v20 }
 0x312   :  { %3436 = vpow2.f32 %v3121_v21 }
 0x31b   :  { %v3431_v5 = vpop.eup %3430 }
 0x31c   :  { %v893_v18 = vadd.f32 1.0, %v3431_v5 }
 0x31d   :  { %v3433_v39 = vpop.eup %3432 }
 0x31e   :  { %3438 = vrcp.f32 %v893_v18  ;;  %v899_v4 = vadd.f32 1.0, %v3433_v39  ;;  %v3435_v51 = vpop.eup %3434 }
 0x31f   :  { %v3437_v43 = vpop.eup %3436 }
 0x320   :  { %3440 = vrcp.f32 %v899_v4  ;;  %v906_v10 = vadd.f32 1.0, %v3437_v43 }
 0x322   :  { %3442 = vrcp.f32 %v906_v10  ;;  %v4300_v10 = vld [vmem:[#allocation4 + $0xe8] ss:$16 sps:$4 sm:$0xff]  }
 0x32b   :  { %v3439_v50 = vpop.eup %3438 }
 0x32c   :  { %v910_v1 = vmul.f32 %v3439_v50, %v3435_v51 }
 0x32d   :  { %v3441_v16 = vpop.eup %3440 }
 0x32e   :  { %v909_v14 = vmul.f32 %v3441_v16, %v4194_v28  ;;  %v5132_v28 = vld [vmem:[#allocation16_spill] sm:$0xff]  ;;  %v4297_v16 = vld [vmem:[#allocation4 + $0xe0] ss:$16 sps:$4 sm:$0xff]  }
 0x32f   :  { %v3443_v0 = vpop.eup %3442 }
 0x330   :  { %v4240_v56 = vadd.f32 %v910_v1, %v909_v14  ;;  %v4303_v14 = vld [vmem:[#allocation4 + $0xc4] ss:$16 sps:$4 sm:$0xff]  }
 0x332   :  { %3444 = vtanh.f32 %v4240_v56 }
 0x33f   :  { %v3445_v3 = vpop.eup %3444 }
 0x340   :  { %v4243_v17 = vmul.f32 %v3445_v3, %v3443_v0  ;;  %v4311_v0 = vld [vmem:[#allocation4 + $0xc0] ss:$16 sps:$4 sm:$0xff]   ;;  %v4314_v3 = vld [vmem:[#allocation4 + $0xc8] ss:$16 sps:$4 sm:$0xff]  }
 0x342   :  { %v923_v32 = vpack.c.bf16 %v4243_v17, %v4243_v17 }
 0x344   :  { %957 = vmatmul.mubr.bf16.vlgmr.msra.gmra.mxu0 %v923_v32  ;;  %998 = vmatmul.mubr.bf16.vlgmr.msra.gmra.mxu1 %v923_v32  ;;  %v4317_v32 = vld [vmem:[#allocation4 + $0xa4] ss:$16 sps:$4 sm:$0xff]  }
 0x345   :  { %1045 = vmatpush1.bf16.msra.mxu0 %v3879_v22  ;;  %1086 = vmatpush1.bf16.msra.mxu1 %v3881_v23  ;;  %v4279_v22 = vld [vmem:[#allocation4 + $0xe4] ss:$16 sps:$4 sm:$0xff]   ;;  %v4282_v23 = vld [vmem:[#allocation4 + $0xec] ss:$16 sps:$4 sm:$0xff]  }
 0x346   :  { %1046 = vmatprep.subr.bf16.mxu0 %v3883_v24  ;;  %1087 = vmatprep.subr.bf16.mxu1 %v3887_v25 }
 0x347   :  { %1076 = vmatprep.mubr.bf16.mxu0 %v5128_v13  ;;  %1117 = vmatprep.mubr.bf16.mxu1 %v5128_v13 }
 0x349   :  { %1047 = vmatpush1.bf16.msra.mxu0 %v3889_v26  ;;  %1088 = vmatpush1.bf16.msra.mxu1 %v3891_v27  ;;  %v5130_v26 = vld [vmem:[#allocation13_spill] sm:$0xff] }
 0x34a   :  { %1048 = vmatprep.subr.bf16.mxu0 %v3905_v30  ;;  %1089 = vmatprep.subr.bf16.mxu1 %v3907_v31 }
 0x34d   :  { %1049 = vmatpush1.bf16.msra.mxu0 %v3911_v33  ;;  %1090 = vmatpush1.bf16.msra.mxu1 %v3915_v34  ;;  %v5131_v34 = vld [vmem:[#allocation15_spill] sm:$0xff] }
 0x34e   :  { %1050 = vmatprep.subr.bf16.mxu0 %v3917_v35  ;;  %1091 = vmatprep.subr.bf16.mxu1 %v3921_v36 }
 0x351   :  { %1051 = vmatpush1.bf16.msra.mxu0 %v3925_v37  ;;  %1092 = vmatpush1.bf16.msra.mxu1 %v3927_v38 }
 0x352   :  { %1052 = vmatprep.subr.bf16.mxu0 %v3937_v41  ;;  %1093 = vmatprep.subr.bf16.mxu1 %v3941_v42 }
 0x355   :  { %1053 = vmatpush1.bf16.msra.mxu0 %v3945_v44  ;;  %1094 = vmatpush1.bf16.msra.mxu1 %v3949_v45 }
 0x356   :  { %1054 = vmatprep.subr.bf16.mxu0 %v3953_v46  ;;  %1095 = vmatprep.subr.bf16.mxu1 %v3955_v47 }
 0x359   :  { %1055 = vmatpush1.bf16.msra.mxu0 %v3957_v48  ;;  %1096 = vmatpush1.bf16.msra.mxu1 %v3959_v49 }
 0x35a   :  { %1056 = vmatprep.subr.bf16.mxu0 %v3969_v52  ;;  %1097 = vmatprep.subr.bf16.mxu1 %v3971_v53 }
 0x35d   :  { %1057 = vmatpush1.bf16.msra.mxu0 %v3979_v54  ;;  %1098 = vmatpush1.bf16.msra.mxu1 %v3981_v55 }
 0x35e   :  { %1058 = vmatprep.subr.bf16.mxu0 %v3983_v57  ;;  %1099 = vmatprep.subr.bf16.mxu1 %v3985_v58 }
 0x361   :  { %1059 = vmatpush1.bf16.msra.mxu0 %v3991_v59  ;;  %1100 = vmatpush1.bf16.msra.mxu1 %v3993_v60 }
 0x362   :  { %1164 = vmatprep.subr.bf16.mxu0 %v4279_v22  ;;  %1205 = vmatprep.subr.bf16.mxu1 %v4282_v23 }
 0x404   :  { %v958_v24 = vpop.f32.mrf.mxu0  ;;  %v999_v25 = vpop.f32.mrf.mxu1 }
 0x405   :  { %v1006_v27 = vadd.f32 %v958_v24, %v5130_v26  ;;  %v1008_v12 = vadd.f32 %v999_v25, %v5133_v40  ;;  %v4320_v24 = vld [vmem:[#allocation4 + $0xac] ss:$16 sps:$4 sm:$0xff]   ;;  %v4323_v25 = vld [vmem:[#allocation4 + $0xa0] ss:$16 sps:$4 sm:$0xff]   ;;  %v4326_v26 = vld [vmem:[#allocation4 + $0xa8] ss:$16 sps:$4 sm:$0xff]  }
 0x406   :  { %v960_v30 = vpop.f32.mrf.mxu0  ;;  %v1001_v31 = vpop.f32.mrf.mxu1 }
 0x407   :  { %v3122_v33 = vmul.f32 -1.442695, %v1006_v27  ;;  %v1007_v35 = vadd.f32 %v960_v30, %v5131_v34  ;;  %v1009_v2 = vadd.f32 %v1001_v31, %v5132_v28  ;;  %v4329_v27 = vld [vmem:[#allocation4 + $0x84] ss:$16 sps:$4 sm:$0xff]   ;;  %v4332_v30 = vld [vmem:[#allocation4 + $0x8c] ss:$16 sps:$4 sm:$0xff]  }
 0x408   :  { %v962_v36 = vpop.f32.mrf.mxu0  ;;  %v1003_v37 = vpop.f32.mrf.mxu1  ;;  %v4335_v31 = vld [vmem:[#allocation4 + $0x80] ss:$16 sps:$4 sm:$0xff]   ;;  %v4341_v34 = vld [vmem:[#allocation4 + $0x64] ss:$16 sps:$4 sm:$0xff]  }
 0x409   :  { %3446 = vpow2.f32 %v3122_v33  ;;  %v3123_v38 = vmul.f32 -1.442695, %v1007_v35  ;;  %v3124_v29 = vmul.f32 -1.442695, %v1009_v2  ;;  %v4338_v33 = vld [vmem:[#allocation4 + $0x88] ss:$16 sps:$4 sm:$0xff]  }
 0x40a   :  { %v963_v41 = vpop.f32.mrf.mxu0  ;;  %v1004_v42 = vpop.f32.mrf.mxu1  ;;  %v4344_v35 = vld [vmem:[#allocation4 + $0x6c] ss:$16 sps:$4 sm:$0xff]  }
 0x40b   :  { %3448 = vpow2.f32 %v3123_v38  ;;  %v5137_v38 = vld [vmem:[#allocation18_spill] sm:$0xff] }
 0x40c   :  { %3450 = vtanh.f32 %v1008_v12 }
 0x40d   :  { %3452 = vpow2.f32 %v3124_v29 }
 0x416   :  { %v3447_v63 = vpop.eup %3446 }
 0x417   :  { %v1013_v9 = vadd.f32 1.0, %v3447_v63 }
 0x418   :  { %v3449_v11 = vpop.eup %3448 }
 0x419   :  { %3454 = vrcp.f32 %v1013_v9  ;;  %v1019_v15 = vadd.f32 1.0, %v3449_v11  ;;  %v3451_v19 = vpop.eup %3450 }
 0x41a   :  { %v3453_v62 = vpop.eup %3452 }
 0x41b   :  { %3456 = vrcp.f32 %v1019_v15  ;;  %v1026_v18 = vadd.f32 1.0, %v3453_v62 }
 0x41d   :  { %3458 = vrcp.f32 %v1026_v18 }
 0x426   :  { %v3455_v20 = vpop.eup %3454 }
 0x427   :  { %v1030_v21 = vmul.f32 %v3455_v20, %v3451_v19 }
 0x428   :  { %v3457_v5 = vpop.eup %3456 }
 0x429   :  { %v1029_v39 = vmul.f32 %v3457_v5, %v4240_v56  ;;  %v4306_v56 = vld [vmem:[#allocation4 + $0xcc] ss:$16 sps:$4 sm:$0xff]  }
 0x42a   :  { %v3459_v51 = vpop.eup %3458 }
 0x42b   :  { %v4290_v4 = vadd.f32 %v1030_v21, %v1029_v39 }
 0x42d   :  { %3460 = vtanh.f32 %v4290_v4 }
 0x43a   :  { %v3461_v43 = vpop.eup %3460 }
 0x43b   :  { %v4293_v50 = vmul.f32 %v3461_v43, %v3459_v51  ;;  %v4396_v51 = vld [vmem:[#allocation4 + $0x68] ss:$16 sps:$4 sm:$0xff]   ;;  %v4399_v43 = vld [vmem:[#allocation4 + $0x44] ss:$16 sps:$4 sm:$0xff]  }
 0x43d   :  { %v1043_v1 = vpack.c.bf16 %v4293_v50, %v4293_v50 }
 0x43f   :  { %1077 = vmatmul.mubr.bf16.vlgmr.msra.gmra.mxu0 %v1043_v1  ;;  %1118 = vmatmul.mubr.bf16.vlgmr.msra.gmra.mxu1 %v1043_v1  ;;  %v4402_v1 = vld [vmem:[#allocation4 + $0x4c] ss:$16 sps:$4 sm:$0xff]  }
 0x440   :  { %1165 = vmatpush1.bf16.msra.mxu0 %v4297_v16  ;;  %1206 = vmatpush1.bf16.msra.mxu1 %v4300_v10 }
 0x441   :  { %1166 = vmatprep.subr.bf16.mxu0 %v4303_v14  ;;  %1207 = vmatprep.subr.bf16.mxu1 %v4306_v56 }
 0x442   :  { %1196 = vmatprep.mubr.bf16.mxu0 %v5128_v13  ;;  %1237 = vmatprep.mubr.bf16.mxu1 %v5128_v13 }
 0x444   :  { %1167 = vmatpush1.bf16.msra.mxu0 %v4311_v0  ;;  %1208 = vmatpush1.bf16.msra.mxu1 %v4314_v3 }
 0x445   :  { %1168 = vmatprep.subr.bf16.mxu0 %v4317_v32  ;;  %1209 = vmatprep.subr.bf16.mxu1 %v4320_v24 }
 0x448   :  { %1169 = vmatpush1.bf16.msra.mxu0 %v4323_v25  ;;  %1210 = vmatpush1.bf16.msra.mxu1 %v4326_v26 }
 0x449   :  { %1170 = vmatprep.subr.bf16.mxu0 %v4329_v27  ;;  %1211 = vmatprep.subr.bf16.mxu1 %v4332_v30 }
 0x44c   :  { %1171 = vmatpush1.bf16.msra.mxu0 %v4335_v31  ;;  %1212 = vmatpush1.bf16.msra.mxu1 %v4338_v33 }
 0x44d   :  { %1172 = vmatprep.subr.bf16.mxu0 %v4341_v34  ;;  %1213 = vmatprep.subr.bf16.mxu1 %v4344_v35 }
 0x450   :  { %1173 = vmatpush1.bf16.msra.mxu0 %v3945_v44  ;;  %1214 = vmatpush1.bf16.msra.mxu1 %v3949_v45 }
 0x451   :  { %1174 = vmatprep.subr.bf16.mxu0 %v3953_v46  ;;  %1215 = vmatprep.subr.bf16.mxu1 %v3955_v47  ;;  %v5134_v46 = vld [vmem:[#allocation17_spill] sm:$0xff] }
 0x454   :  { %1175 = vmatpush1.bf16.msra.mxu0 %v3957_v48  ;;  %1216 = vmatpush1.bf16.msra.mxu1 %v3959_v49 }
 0x455   :  { %1176 = vmatprep.subr.bf16.mxu0 %v3969_v52  ;;  %1217 = vmatprep.subr.bf16.mxu1 %v3971_v53  ;;  %v5135_v53 = vld [vmem:[#allocation19_spill] sm:$0xff] }
 0x458   :  { %1177 = vmatpush1.bf16.msra.mxu0 %v3979_v54  ;;  %1218 = vmatpush1.bf16.msra.mxu1 %v3981_v55 }
 0x459   :  { %1178 = vmatprep.subr.bf16.mxu0 %v3983_v57  ;;  %1219 = vmatprep.subr.bf16.mxu1 %v3985_v58 }
 0x45c   :  { %1179 = vmatpush1.bf16.msra.mxu0 %v3991_v59  ;;  %1220 = vmatpush1.bf16.msra.mxu1 %v3993_v60  ;;  %v5136_v60 = vld [vmem:[#allocation20_spill] sm:$0xff] }
 0x45d   :  { %1284 = vmatprep.subr.bf16.mxu0 %v4279_v22  ;;  %1325 = vmatprep.subr.bf16.mxu1 %v4282_v23 }
 0x4ff   :  { %v1078_v44 = vpop.f32.mrf.mxu0  ;;  %v1119_v45 = vpop.f32.mrf.mxu1 }
 0x500   :  { %v1126_v47 = vadd.f32 %v1078_v44, %v5134_v46  ;;  %v1128_v41 = vadd.f32 %v1119_v45, %v5137_v38  ;;  %v4405_v44 = vld [vmem:[#allocation4 + $0x40] ss:$16 sps:$4 sm:$0xff]   ;;  %v4408_v45 = vld [vmem:[#allocation4 + $0x48] ss:$16 sps:$4 sm:$0xff]   ;;  %v4411_v46 = vld [vmem:[#allocation4 + $0x24] ss:$16 sps:$4 sm:$0xff]  }
 0x501   :  { %v1080_v48 = vpop.f32.mrf.mxu0  ;;  %v1121_v49 = vpop.f32.mrf.mxu1 }
 0x502   :  { %v3125_v52 = vmul.f32 -1.442695, %v1126_v47  ;;  %v1127_v54 = vadd.f32 %v1080_v48, %v5135_v53  ;;  %v1129_v37 = vadd.f32 %v1121_v49, %v5136_v60  ;;  %v4414_v47 = vld [vmem:[#allocation4 + $0x2c] ss:$16 sps:$4 sm:$0xff]   ;;  %v4417_v48 = vld [vmem:[#allocation4 + $0x20] ss:$16 sps:$4 sm:$0xff]  }
 0x503   :  { %v1082_v55 = vpop.f32.mrf.mxu0  ;;  %v1123_v57 = vpop.f32.mrf.mxu1  ;;  %v4420_v49 = vld [vmem:[#allocation4 + $0x28] ss:$16 sps:$4 sm:$0xff]   ;;  %v4426_v53 = vld [vmem:[#allocation4 + $0xc] ss:$16 sps:$4 sm:$0xff]  }
 0x504   :  { %3462 = vpow2.f32 %v3125_v52  ;;  %v3126_v58 = vmul.f32 -1.442695, %v1127_v54  ;;  %v3127_v42 = vmul.f32 -1.442695, %v1129_v37  ;;  %v4423_v52 = vld [vmem:[#allocation4 + $0x4] ss:$16 sps:$4 sm:$0xff]  }
 0x505   :  { %v1083_v59 = vpop.f32.mrf.mxu0  ;;  %v1124_v36 = vpop.f32.mrf.mxu1  ;;  %v4429_v54 = vld [vmem:[#allocation4] ss:$16 sps:$4 sm:$0xff]   ;;  %v4432_v55 = vld [vmem:[#allocation4 + $0x8] ss:$16 sps:$4 sm:$0xff]  }
 0x506   :  { %3464 = vpow2.f32 %v3126_v58  ;;  %v5138_v59 = vld [vmem:[#allocation21_spill] sm:$0xff] }
 0x507   :  { %3466 = vtanh.f32 %v1128_v41  ;;  %v5139_v41 = vld [vmem:[#allocation23_spill] sm:$0xff] }
 0x508   :  { %3468 = vpow2.f32 %v3127_v42 }
 0x511   :  { %v3463_v28 = vpop.eup %3462 }
 0x512   :  { %v1133_v2 = vadd.f32 1.0, %v3463_v28 }
 0x513   :  { %v3465_v40 = vpop.eup %3464 }
 0x514   :  { %3470 = vrcp.f32 %v1133_v2  ;;  %v1139_v12 = vadd.f32 1.0, %v3465_v40  ;;  %v3467_v29 = vpop.eup %3466 }
 0x515   :  { %v3469_v63 = vpop.eup %3468 }
 0x516   :  { %3472 = vrcp.f32 %v1139_v12  ;;  %v1146_v19 = vadd.f32 1.0, %v3469_v63  ;;  %v5140_v63 = vld [vmem:[#allocation24_spill] sm:$0xff] }
 0x518   :  { %3474 = vrcp.f32 %v1146_v19 }
 0x521   :  { %v3471_v9 = vpop.eup %3470 }
 0x522   :  { %v1150_v11 = vmul.f32 %v3471_v9, %v3467_v29  ;;  %v5141_v9 = vld [vmem:[#allocation22_spill] sm:$0xff] }
 0x523   :  { %v3473_v15 = vpop.eup %3472 }
 0x524   :  { %v1149_v62 = vmul.f32 %v3473_v15, %v4290_v4  ;;  %v4393_v4 = vld [vmem:[#allocation4 + $0x60] ss:$16 sps:$4 sm:$0xff]  }
 0x525   :  { %v3475_v21 = vpop.eup %3474 }
 0x526   :  { %v4368_v20 = vadd.f32 %v1150_v11, %v1149_v62 }
 0x528   :  { %3476 = vtanh.f32 %v4368_v20 }
 0x535   :  { %v3477_v5 = vpop.eup %3476 }
 0x536   :  { %v4371_v18 = vmul.f32 %v3477_v5, %v3475_v21 }
 0x538   :  { %v1163_v39 = vpack.c.bf16 %v4371_v18, %v4371_v18 }
 0x53a   :  { %1197 = vmatmul.mubr.bf16.vlgmr.msra.gmra.mxu0 %v1163_v39  ;;  %1238 = vmatmul.mubr.bf16.vlgmr.msra.gmra.mxu1 %v1163_v39 }
 0x53b   :  { %1285 = vmatpush1.bf16.msra.mxu0 %v4297_v16  ;;  %1326 = vmatpush1.bf16.msra.mxu1 %v4300_v10 }
 0x53c   :  { %1286 = vmatprep.subr.bf16.mxu0 %v4303_v14  ;;  %1327 = vmatprep.subr.bf16.mxu1 %v4306_v56 }
 0x53d   :  { %1316 = vmatprep.mubr.bf16.mxu0 %v5128_v13  ;;  %1357 = vmatprep.mubr.bf16.mxu1 %v5128_v13 }
 0x53f   :  { %1287 = vmatpush1.bf16.msra.mxu0 %v4311_v0  ;;  %1328 = vmatpush1.bf16.msra.mxu1 %v4314_v3 }
 0x540   :  { %1288 = vmatprep.subr.bf16.mxu0 %v4317_v32  ;;  %1329 = vmatprep.subr.bf16.mxu1 %v4320_v24 }
 0x543   :  { %1289 = vmatpush1.bf16.msra.mxu0 %v4323_v25  ;;  %1330 = vmatpush1.bf16.msra.mxu1 %v4326_v26 }
 0x544   :  { %1290 = vmatprep.subr.bf16.mxu0 %v4329_v27  ;;  %1331 = vmatprep.subr.bf16.mxu1 %v4332_v30 }
 0x547   :  { %1291 = vmatpush1.bf16.msra.mxu0 %v4335_v31  ;;  %1332 = vmatpush1.bf16.msra.mxu1 %v4338_v33 }
 0x548   :  { %1292 = vmatprep.subr.bf16.mxu0 %v4341_v34  ;;  %1333 = vmatprep.subr.bf16.mxu1 %v4344_v35 }
 0x54b   :  { %1293 = vmatpush1.bf16.msra.mxu0 %v4393_v4  ;;  %1334 = vmatpush1.bf16.msra.mxu1 %v4396_v51 }
 0x54c   :  { %1294 = vmatprep.subr.bf16.mxu0 %v4399_v43  ;;  %1335 = vmatprep.subr.bf16.mxu1 %v4402_v1 }
 0x54f   :  { %1295 = vmatpush1.bf16.msra.mxu0 %v4405_v44  ;;  %1336 = vmatpush1.bf16.msra.mxu1 %v4408_v45 }
 0x550   :  { %1296 = vmatprep.subr.bf16.mxu0 %v4411_v46  ;;  %1337 = vmatprep.subr.bf16.mxu1 %v4414_v47 }
 0x553   :  { %1297 = vmatpush1.bf16.msra.mxu0 %v4417_v48  ;;  %1338 = vmatpush1.bf16.msra.mxu1 %v4420_v49 }
 0x554   :  { %1298 = vmatprep.subr.bf16.mxu0 %v4423_v52  ;;  %1339 = vmatprep.subr.bf16.mxu1 %v4426_v53 }
 0x557   :  { %1299 = vmatpush1.bf16.msra.mxu0 %v4429_v54  ;;  %1340 = vmatpush1.bf16.msra.mxu1 %v4432_v55 }
 0x558   :  { %1404 = vmatprep.subr.bf16.mxu0 %v4279_v22  ;;  %1445 = vmatprep.subr.bf16.mxu1 %v4282_v23 }
 0x5fa   :  { %v1198_v57 = vpop.f32.mrf.mxu0  ;;  %v1239_v58 = vpop.f32.mrf.mxu1 }
 0x5fb   :  { %v1246_v36 = vadd.f32 %v1198_v57, %v5138_v59  ;;  %v1248_v23 = vadd.f32 %v1239_v58, %v5141_v9  ;;  %v3305_v9 = vld [vmem:[#allocation6 + $0xe8] ss:$16 sps:$4 sm:$0xff]  }
 0x5fc   :  { %v1200_v60 = vpop.f32.mrf.mxu0  ;;  %v1241_v37 = vpop.f32.mrf.mxu1 }
 0x5fd   :  { %v3128_v38 = vmul.f32 -1.442695, %v1246_v36  ;;  %v1247_v42 = vadd.f32 %v1200_v60, %v5139_v41  ;;  %v1249_v22 = vadd.f32 %v1241_v37, %v5140_v63 }
 0x5fe   :  { %v1202_v28 = vpop.f32.mrf.mxu0  ;;  %v1243_v2 = vpop.f32.mrf.mxu1 }
 0x5ff   :  { %3478 = vpow2.f32 %v3128_v38  ;;  %v3129_v40 = vmul.f32 -1.442695, %v1247_v42  ;;  %v3130_v11 = vmul.f32 -1.442695, %v1249_v22  ;;  %v3302_v22 = vld [vmem:[#allocation6 + $0xe0] ss:$16 sps:$4 sm:$0xff]  }
 0x600   :  { %v1203_v12 = vpop.f32.mrf.mxu0  ;;  %v1244_v29 = vpop.f32.mrf.mxu1 }
 0x601   :  { %3480 = vpow2.f32 %v3129_v40 }
 0x602   :  { %3482 = vtanh.f32 %v1248_v23 }
 0x603   :  { %3484 = vpow2.f32 %v3130_v11  ;;  %v3310_v11 = vld [vmem:[#allocation6 + $0xc4] ss:$16 sps:$4 sm:$0xff]  }
 0x60c   :  { %v3479_v15 = vpop.eup %3478 }
 0x60d   :  { %v1253_v19 = vadd.f32 1.0, %v3479_v15  ;;  %v3313_v15 = vld [vmem:[#allocation6 + $0xcc] ss:$16 sps:$4 sm:$0xff]  }
 0x60e   :  { %v3481_v62 = vpop.eup %3480 }
 0x60f   :  { %3486 = vrcp.f32 %v1253_v19  ;;  %v1259_v21 = vadd.f32 1.0, %v3481_v62  ;;  %v3483_v5 = vpop.eup %3482  ;;  %v3308_v19 = vld [vmem:[#allocation6 + $0xc0] ss:$16 sps:$4 sm:$0xff]   ;;  %v3311_v62 = vld [vmem:[#allocation6 + $0xc8] ss:$16 sps:$4 sm:$0xff]  }
 0x610   :  { %v3485_v39 = vpop.eup %3484 }
 0x611   :  { %3488 = vrcp.f32 %v1259_v21  ;;  %v1266_v60 = vadd.f32 1.0, %v3485_v39  ;;  %v3316_v21 = vld [vmem:[#allocation6 + $0xa4] ss:$16 sps:$4 sm:$0xff]   ;;  %v3314_v39 = vld [vmem:[#allocation6 + $0xa0] ss:$16 sps:$4 sm:$0xff]  }
 0x613   :  { %3490 = vrcp.f32 %v1266_v60  ;;  %v3320_v60 = vld [vmem:[#allocation6 + $0x80] ss:$16 sps:$4 sm:$0xff]  }
 0x61c   :  { %v3487_v57 = vpop.eup %3486 }
 0x61d   :  { %v1270_v59 = vmul.f32 %v3487_v57, %v3483_v5  ;;  %v3319_v5 = vld [vmem:[#allocation6 + $0xac] ss:$16 sps:$4 sm:$0xff]   ;;  %v3317_v57 = vld [vmem:[#allocation6 + $0xa8] ss:$16 sps:$4 sm:$0xff]  }
 0x61e   :  { %v3489_v36 = vpop.eup %3488 }
 0x61f   :  { %v1269_v38 = vmul.f32 %v3489_v36, %v4368_v20  ;;  %v5144_v20 = vld [vmem:[#allocation28_spill] sm:$0xff] }
 0x620   :  { %v3491_v58 = vpop.eup %3490  ;;  %v3325_v36 = vld [vmem:[#allocation6 + $0x8c] ss:$16 sps:$4 sm:$0xff]  }
 0x621   :  { %v4442_v37 = vadd.f32 %v1270_v59, %v1269_v38  ;;  %v3322_v59 = vld [vmem:[#allocation6 + $0x84] ss:$16 sps:$4 sm:$0xff]   ;;  %v3323_v38 = vld [vmem:[#allocation6 + $0x88] ss:$16 sps:$4 sm:$0xff]  }
 0x623   :  { %3492 = vtanh.f32 %v4442_v37 }
 0x630   :  { %v3493_v41 = vpop.eup %3492 }
 0x631   :  { %v4445_v42 = vmul.f32 %v3493_v41, %v3491_v58  ;;  %v3331_v58 = vld [vmem:[#allocation6 + $0x6c] ss:$16 sps:$4 sm:$0xff]   ;;  %v3326_v41 = vld [vmem:[#allocation6 + $0x60] ss:$16 sps:$4 sm:$0xff]  }
 0x633   :  { %v1283_v28 = vpack.c.bf16 %v4445_v42, %v4445_v42 }
 0x635   :  { %1317 = vmatmul.mubr.bf16.vlgmr.msra.gmra.mxu0 %v1283_v28  ;;  %1358 = vmatmul.mubr.bf16.vlgmr.msra.gmra.mxu1 %v1283_v28  ;;  %v3329_v28 = vld [vmem:[#allocation6 + $0x68] ss:$16 sps:$4 sm:$0xff]  }
 0x636   :  { %1405 = vmatpush1.bf16.msra.mxu0 %v4297_v16  ;;  %1446 = vmatpush1.bf16.msra.mxu1 %v4300_v10  ;;  %v3304_v16 = vld [vmem:[#allocation6 + $0xe4] ss:$16 sps:$4 sm:$0xff]   ;;  %v3307_v10 = vld [vmem:[#allocation6 + $0xec] ss:$16 sps:$4 sm:$0xff]  }
 0x637   :  { %1406 = vmatprep.subr.bf16.mxu0 %v4303_v14  ;;  %1447 = vmatprep.subr.bf16.mxu1 %v4306_v56 }
 0x638   :  { %1436 = vmatprep.mubr.bf16.mxu0 %v5128_v13  ;;  %1477 = vmatprep.mubr.bf16.mxu1 %v5128_v13 }
 0x63a   :  { %1407 = vmatpush1.bf16.msra.mxu0 %v4311_v0  ;;  %1448 = vmatpush1.bf16.msra.mxu1 %v4314_v3  ;;  %v5142_v0 = vld [vmem:[#allocation25_spill] sm:$0xff] }
 0x63b   :  { %1408 = vmatprep.subr.bf16.mxu0 %v4317_v32  ;;  %1449 = vmatprep.subr.bf16.mxu1 %v4320_v24 }
 0x63e   :  { %1409 = vmatpush1.bf16.msra.mxu0 %v4323_v25  ;;  %1450 = vmatpush1.bf16.msra.mxu1 %v4326_v26  ;;  %v5143_v26 = vld [vmem:[#allocation27_spill] sm:$0xff] }
 0x63f   :  { %1410 = vmatprep.subr.bf16.mxu0 %v4329_v27  ;;  %1451 = vmatprep.subr.bf16.mxu1 %v4332_v30 }
 0x642   :  { %1411 = vmatpush1.bf16.msra.mxu0 %v4335_v31  ;;  %1452 = vmatpush1.bf16.msra.mxu1 %v4338_v33 }
 0x643   :  { %1412 = vmatprep.subr.bf16.mxu0 %v4341_v34  ;;  %1453 = vmatprep.subr.bf16.mxu1 %v4344_v35 }
 0x646   :  { %1413 = vmatpush1.bf16.msra.mxu0 %v4393_v4  ;;  %1454 = vmatpush1.bf16.msra.mxu1 %v4396_v51  ;;  %v5145_v51 = vld [vmem:[#allocation26_spill] sm:$0xff] }
 0x647   :  { %1414 = vmatprep.subr.bf16.mxu0 %v4399_v43  ;;  %1455 = vmatprep.subr.bf16.mxu1 %v4402_v1 }
 0x64a   :  { %1415 = vmatpush1.bf16.msra.mxu0 %v4405_v44  ;;  %1456 = vmatpush1.bf16.msra.mxu1 %v4408_v45 }
 0x64b   :  { %1416 = vmatprep.subr.bf16.mxu0 %v4411_v46  ;;  %1457 = vmatprep.subr.bf16.mxu1 %v4414_v47 }
 0x64e   :  { %1417 = vmatpush1.bf16.msra.mxu0 %v4417_v48  ;;  %1458 = vmatpush1.bf16.msra.mxu1 %v4420_v49 }
 0x64f   :  { %1418 = vmatprep.subr.bf16.mxu0 %v4423_v52  ;;  %1459 = vmatprep.subr.bf16.mxu1 %v4426_v53 }
 0x652   :  { %1419 = vmatpush1.bf16.msra.mxu0 %v4429_v54  ;;  %1460 = vmatpush1.bf16.msra.mxu1 %v4432_v55 }
 0x653   :  { %1742 = vmatprep.subr.bf16.mxu0 %v3304_v16  ;;  %1815 = vmatprep.subr.bf16.mxu1 %v3307_v10  ;;  %v3334_v16 = vld [vmem:[#allocation6 + $0x44] ss:$16 sps:$4 sm:$0xff]   ;;  %v3337_v10 = vld [vmem:[#allocation6 + $0x4c] ss:$16 sps:$4 sm:$0xff]  }
 0x6f5   :  { %v1318_v14 = vpop.f32.mrf.mxu0  ;;  %v1359_v56 = vpop.f32.mrf.mxu1 }
 0x6f6   :  { %v1366_v3 = vadd.f32 %v1318_v14, %v5142_v0  ;;  %v1368_v43 = vadd.f32 %v1359_v56, %v5145_v51  ;;  %v3332_v14 = vld [vmem:[#allocation6 + $0x40] ss:$16 sps:$4 sm:$0xff]   ;;  %v3335_v56 = vld [vmem:[#allocation6 + $0x48] ss:$16 sps:$4 sm:$0xff]   ;;  %v3340_v0 = vld [vmem:[#allocation6 + $0x24] ss:$16 sps:$4 sm:$0xff]  }
 0x6f7   :  { %v1320_v32 = vpop.f32.mrf.mxu0  ;;  %v1361_v24 = vpop.f32.mrf.mxu1  ;;  %v4533_v51 = vld [vmem:[#allocation8 + $0xac] ss:$16 sps:$4 sm:$0xff]  }
 0x6f8   :  { %v3131_v25 = vmul.f32 -1.442695, %v1366_v3  ;;  %v1367_v27 = vadd.f32 %v1320_v32, %v5143_v26  ;;  %v1369_v4 = vadd.f32 %v1361_v24, %v5144_v20  ;;  %v3343_v3 = vld [vmem:[#allocation6 + $0x2c] ss:$16 sps:$4 sm:$0xff]   ;;  %v3338_v32 = vld [vmem:[#allocation6 + $0x20] ss:$16 sps:$4 sm:$0xff]  }
 0x6f9   :  { %v1322_v30 = vpop.f32.mrf.mxu0  ;;  %v1363_v31 = vpop.f32.mrf.mxu1  ;;  %v3341_v24 = vld [vmem:[#allocation6 + $0x28] ss:$16 sps:$4 sm:$0xff]   ;;  %v3349_v26 = vld [vmem:[#allocation6 + $0xc] ss:$16 sps:$4 sm:$0xff]  }
 0x6fa   :  { %3494 = vpow2.f32 %v3131_v25  ;;  %v3132_v33 = vmul.f32 -1.442695, %v1367_v27  ;;  %v3133_v1 = vmul.f32 -1.442695, %v1369_v4  ;;  %v3346_v25 = vld [vmem:[#allocation6 + $0x4] ss:$16 sps:$4 sm:$0xff]   ;;  %v1524_v31 = vpack.c.bf16 %v4197_v8, %v4151_v6 }
 0x6fb   :  { %v1323_v34 = vpop.f32.mrf.mxu0  ;;  %v1364_v35 = vpop.f32.mrf.mxu1  ;;  %v3344_v27 = vld [vmem:[#allocation6] ss:$16 sps:$4 sm:$0xff]   ;;  %v3347_v30 = vld [vmem:[#allocation6 + $0x8] ss:$16 sps:$4 sm:$0xff]   ;;  %v4507_v6 = vld [vmem:[#allocation8 + $0xe4] ss:$16 sps:$4 sm:$0xff]  }
 0x6fc   :  { %3496 = vpow2.f32 %v3132_v33  ;;  %v1525_v33 = vpack.c.bf16 %v4293_v50, %v4243_v17  ;;  %v1526_v34 = vpack.c.bf16 %v4445_v42, %v4371_v18  ;;  %v4509_v8 = vld [vmem:[#allocation8 + $0xec] ss:$16 sps:$4 sm:$0xff]   ;;  %v4511_v17 = vld [vmem:[#allocation8 + $0xe0] ss:$16 sps:$4 sm:$0xff]   ;;  %v4513_v50 = vld [vmem:[#allocation8 + $0xe8] ss:$16 sps:$4 sm:$0xff]  }
 0x6fd   :  { %3498 = vtanh.f32 %v1368_v43  ;;  %v4519_v18 = vld [vmem:[#allocation8 + $0xc4] ss:$16 sps:$4 sm:$0xff]   ;;  %v4521_v42 = vld [vmem:[#allocation8 + $0xcc] ss:$16 sps:$4 sm:$0xff]   ;;  %v4523_v35 = vld [vmem:[#allocation8 + $0xc0] ss:$16 sps:$4 sm:$0xff]  }
 0x6fe   :  { %3500 = vpow2.f32 %v3133_v1  ;;  %v4525_v20 = vld [vmem:[#allocation8 + $0xc8] ss:$16 sps:$4 sm:$0xff]   ;;  %v4531_v4 = vld [vmem:[#allocation8 + $0xa4] ss:$16 sps:$4 sm:$0xff]   ;;  %v4535_v43 = vld [vmem:[#allocation8 + $0xa0] ss:$16 sps:$4 sm:$0xff]  }
 0x6ff   :  { %v4537_v1 = vld [vmem:[#allocation8 + $0xa8] ss:$16 sps:$4 sm:$0xff]  }
 0x707   :  { %v3495_v44 = vpop.eup %3494 }
 0x708   :  { %v1373_v45 = vadd.f32 1.0, %v3495_v44  ;;  %v4543_v44 = vld [vmem:[#allocation8 + $0x84] ss:$16 sps:$4 sm:$0xff]  }
 0x709   :  { %v3497_v46 = vpop.eup %3496 }
 0x70a   :  { %3502 = vrcp.f32 %v1373_v45  ;;  %v1379_v47 = vadd.f32 1.0, %v3497_v46  ;;  %v3499_v48 = vpop.eup %3498  ;;  %v4545_v45 = vld [vmem:[#allocation8 + $0x8c] ss:$16 sps:$4 sm:$0xff]   ;;  %v4547_v46 = vld [vmem:[#allocation8 + $0x80] ss:$16 sps:$4 sm:$0xff]  }
 0x70b   :  { %v3501_v49 = vpop.eup %3500 }
 0x70c   :  { %3504 = vrcp.f32 %v1379_v47  ;;  %v1386_v55 = vadd.f32 1.0, %v3501_v49  ;;  %v4549_v47 = vld [vmem:[#allocation8 + $0x88] ss:$16 sps:$4 sm:$0xff]   ;;  %v4557_v49 = vld [vmem:[#allocation8 + $0x6c] ss:$16 sps:$4 sm:$0xff]  }
 0x70e   :  { %3506 = vrcp.f32 %v1386_v55  ;;  %v4569_v55 = vld [vmem:[#allocation8 + $0x4c] ss:$16 sps:$4 sm:$0xff]  }
 0x717   :  { %v3503_v52 = vpop.eup %3502 }
 0x718   :  { %v1390_v53 = vmul.f32 %v3503_v52, %v3499_v48  ;;  %v4555_v48 = vld [vmem:[#allocation8 + $0x64] ss:$16 sps:$4 sm:$0xff]   ;;  %v4559_v52 = vld [vmem:[#allocation8 + $0x60] ss:$16 sps:$4 sm:$0xff]  }
 0x719   :  { %v3505_v54 = vpop.eup %3504 }
 0x71a   :  { %v1389_v2 = vmul.f32 %v3505_v54, %v4442_v37  ;;  %v3328_v37 = vld [vmem:[#allocation6 + $0x64] ss:$16 sps:$4 sm:$0xff]  }
 0x71b   :  { %v3507_v12 = vpop.eup %3506  ;;  %v4567_v54 = vld [vmem:[#allocation8 + $0x44] ss:$16 sps:$4 sm:$0xff]  }
 0x71c   :  { %v4486_v40 = vadd.f32 %v1390_v53, %v1389_v2  ;;  %v4561_v53 = vld [vmem:[#allocation8 + $0x68] ss:$16 sps:$4 sm:$0xff]   ;;  %v4571_v2 = vld [vmem:[#allocation8 + $0x40] ss:$16 sps:$4 sm:$0xff]  }
 0x71e   :  { %3508 = vtanh.f32 %v4486_v40 }
 0x72b   :  { %v3509_v29 = vpop.eup %3508 }
 0x72c   :  { %v4489_v63 = vmul.f32 %v3509_v29, %v3507_v12  ;;  %v4573_v12 = vld [vmem:[#allocation8 + $0x48] ss:$16 sps:$4 sm:$0xff]   ;;  %v4579_v29 = vld [vmem:[#allocation8 + $0x24] ss:$16 sps:$4 sm:$0xff]  }
 0x72e   :  { %v1403_v23 = vpack.c.bf16 %v4489_v63, %v4489_v63 }
 0x730   :  { %1437 = vmatmul.mubr.bf16.vlgmr.msra.gmra.mxu0 %v1403_v23  ;;  %1478 = vmatmul.mubr.bf16.vlgmr.msra.gmra.mxu1 %v1403_v23  ;;  %v4585_v23 = vld [vmem:[#allocation8 + $0x28] ss:$16 sps:$4 sm:$0xff]  }
 0x731   :  { %1743 = vmatpush1.bf16.msra.mxu0 %v3302_v22  ;;  %1816 = vmatpush1.bf16.msra.mxu1 %v3305_v9  ;;  %v4581_v22 = vld [vmem:[#allocation8 + $0x2c] ss:$16 sps:$4 sm:$0xff]   ;;  %v4583_v9 = vld [vmem:[#allocation8 + $0x20] ss:$16 sps:$4 sm:$0xff]  }
 0x732   :  { %1744 = vmatprep.subr.bf16.mxu0 %v3310_v11  ;;  %1817 = vmatprep.subr.bf16.mxu1 %v3313_v15  ;;  %v4587_v11 = vld [vmem:[#allocation8 + $0x4] ss:$16 sps:$4 sm:$0xff]   ;;  %v4591_v15 = vld [vmem:[#allocation8 + $0xc] ss:$16 sps:$4 sm:$0xff]  }
 0x733   :  { %1774 = vmatprep.mubr.bf16.mxu0 %v5128_v13  ;;  %1847 = vmatprep.mubr.bf16.mxu1 %v5128_v13 }
 0x735   :  { %1745 = vmatpush1.bf16.msra.mxu0 %v3308_v19  ;;  %1818 = vmatpush1.bf16.msra.mxu1 %v3311_v62  ;;  %v4595_v19 = vld [vmem:[#allocation8] ss:$16 sps:$4 sm:$0xff]   ;;  %v4597_v62 = vld [vmem:[#allocation8 + $0x8] ss:$16 sps:$4 sm:$0xff]  }
 0x736   :  { %1746 = vmatprep.subr.bf16.mxu0 %v3316_v21  ;;  %1819 = vmatprep.subr.bf16.mxu1 %v3319_v5 }
 0x739   :  { %1747 = vmatpush1.bf16.msra.mxu0 %v3314_v39  ;;  %1820 = vmatpush1.bf16.msra.mxu1 %v3317_v57  ;;  %v5146_v39 = vld [vmem:[#allocation29_spill] sm:$0xff] }
 0x73a   :  { %1748 = vmatprep.subr.bf16.mxu0 %v3322_v59  ;;  %1821 = vmatprep.subr.bf16.mxu1 %v3325_v36 }
 0x73d   :  { %1749 = vmatpush1.bf16.msra.mxu0 %v3320_v60  ;;  %1822 = vmatpush1.bf16.msra.mxu1 %v3323_v38 }
 0x73e   :  { %1750 = vmatprep.subr.bf16.mxu0 %v3328_v37  ;;  %1823 = vmatprep.subr.bf16.mxu1 %v3331_v58 }
 0x741   :  { %1751 = vmatpush1.bf16.msra.mxu0 %v3326_v41  ;;  %1824 = vmatpush1.bf16.msra.mxu1 %v3329_v28 }
 0x742   :  { %1752 = vmatprep.subr.bf16.mxu0 %v3334_v16  ;;  %1825 = vmatprep.subr.bf16.mxu1 %v3337_v10 }
 0x745   :  { %1753 = vmatpush1.bf16.msra.mxu0 %v3332_v14  ;;  %1826 = vmatpush1.bf16.msra.mxu1 %v3335_v56  ;;  %v5147_v14 = vld [vmem:[#allocation30_spill] sm:$0xff] }
 0x746   :  { %1754 = vmatprep.subr.bf16.mxu0 %v3340_v0  ;;  %1827 = vmatprep.subr.bf16.mxu1 %v3343_v3 }
 0x749   :  { %1755 = vmatpush1.bf16.msra.mxu0 %v3338_v32  ;;  %1828 = vmatpush1.bf16.msra.mxu1 %v3341_v24 }
 0x74a   :  { %1756 = vmatprep.subr.bf16.mxu0 %v3346_v25  ;;  %1829 = vmatprep.subr.bf16.mxu1 %v3349_v26 }
 0x74d   :  { %1757 = vmatpush1.bf16.msra.mxu0 %v3344_v27  ;;  %1830 = vmatpush1.bf16.msra.mxu1 %v3347_v30 }
 0x74e   :  { %2116 = vmatprep.subr.bf16.mxu0 %v4507_v6  ;;  %2157 = vmatprep.subr.bf16.mxu1 %v4509_v8 }
 0x750   :  { %1775 = vmatmul.mubr.bf16.vlgmr.msra.gmra.mxu0 %v1524_v31  ;;  %1848 = vmatmul.mubr.bf16.vlgmr.msra.gmra.mxu1 %v1524_v31 }
 0x751   :  { %1784 = vmatprep.mubr.bf16.mxu0 %v5128_v13  ;;  %1857 = vmatprep.mubr.bf16.mxu1 %v5128_v13 }
 0x752   :  { %2117 = vmatpush1.bf16.msra.mxu0 %v4511_v17  ;;  %2158 = vmatpush1.bf16.msra.mxu1 %v4513_v50 }
 0x753   :  { %2118 = vmatprep.subr.bf16.mxu0 %v4519_v18  ;;  %2159 = vmatprep.subr.bf16.mxu1 %v4521_v42 }
 0x756   :  { %2119 = vmatpush1.bf16.msra.mxu0 %v4523_v35  ;;  %2160 = vmatpush1.bf16.msra.mxu1 %v4525_v20 }
 0x757   :  { %2120 = vmatprep.subr.bf16.mxu0 %v4531_v4  ;;  %2161 = vmatprep.subr.bf16.mxu1 %v4533_v51 }
 0x758   :  { %1785 = vmatmul.mubr.bf16.gmra.mxu0 %v1525_v33  ;;  %1858 = vmatmul.mubr.bf16.gmra.mxu1 %v1525_v33 }
 0x759   :  { %1794 = vmatprep.mubr.bf16.mxu0 %v5128_v13  ;;  %1867 = vmatprep.mubr.bf16.mxu1 %v5128_v13 }
 0x75a   :  { %2121 = vmatpush1.bf16.msra.mxu0 %v4535_v43  ;;  %2162 = vmatpush1.bf16.msra.mxu1 %v4537_v1 }
 0x75b   :  { %2122 = vmatprep.subr.bf16.mxu0 %v4543_v44  ;;  %2163 = vmatprep.subr.bf16.mxu1 %v4545_v45 }
 0x75e   :  { %2123 = vmatpush1.bf16.msra.mxu0 %v4547_v46  ;;  %2164 = vmatpush1.bf16.msra.mxu1 %v4549_v47 }
 0x75f   :  { %2124 = vmatprep.subr.bf16.mxu0 %v4555_v48  ;;  %2165 = vmatprep.subr.bf16.mxu1 %v4557_v49 }
 0x760   :  { %1795 = vmatmul.mubr.bf16.gmra.mxu0 %v1526_v34  ;;  %1868 = vmatmul.mubr.bf16.gmra.mxu1 %v1526_v34 }
 0x761   :  { %1804 = vmatprep.mubr.bf16.mxu0 %v5128_v13  ;;  %1877 = vmatprep.mubr.bf16.mxu1 %v5128_v13 }
 0x762   :  { %2125 = vmatpush1.bf16.msra.mxu0 %v4559_v52  ;;  %2166 = vmatpush1.bf16.msra.mxu1 %v4561_v53 }
 0x763   :  { %2126 = vmatprep.subr.bf16.mxu0 %v4567_v54  ;;  %2167 = vmatprep.subr.bf16.mxu1 %v4569_v55 }
 0x766   :  { %2127 = vmatpush1.bf16.msra.mxu0 %v4571_v2  ;;  %2168 = vmatpush1.bf16.msra.mxu1 %v4573_v12 }
 0x767   :  { %2128 = vmatprep.subr.bf16.mxu0 %v4579_v29  ;;  %2169 = vmatprep.subr.bf16.mxu1 %v4581_v22 }
 0x76a   :  { %2129 = vmatpush1.bf16.msra.mxu0 %v4583_v9  ;;  %2170 = vmatpush1.bf16.msra.mxu1 %v4585_v23 }
 0x76b   :  { %2130 = vmatprep.subr.bf16.mxu0 %v4587_v11  ;;  %2171 = vmatprep.subr.bf16.mxu1 %v4591_v15 }
 0x76e   :  { %2131 = vmatpush1.bf16.msra.mxu0 %v4595_v19  ;;  %2172 = vmatpush1.bf16.msra.mxu1 %v4597_v62 }
 0x76f   :  { %2232 = vmatprep.subr.bf16.mxu0 %v4507_v6  ;;  %2273 = vmatprep.subr.bf16.mxu1 %v4509_v8 }
 0x7f0   :  { %v1438_v21 = vpop.f32.mrf.mxu0  ;;  %v1479_v5 = vpop.f32.mrf.mxu1 }
 0x7f1   :  { %v1486_v57 = vadd.f32 %v1438_v21, %v5146_v39  ;;  %v1488_v56 = vadd.f32 %v1479_v5, %v5147_v14 }
 0x7f2   :  { %v1440_v59 = vpop.f32.mrf.mxu0  ;;  %v1481_v36 = vpop.f32.mrf.mxu1 }
 0x7f3   :  { %v3134_v60 = vmul.f32 -1.442695, %v1486_v57  ;;  %v1487_v38 = vadd.f32 %v1440_v59, %v4138_v7  ;;  %v1489_v10 = vadd.f32 %v1481_v36, %v4141_v61 }
 0x7f4   :  { %v1442_v37 = vpop.f32.mrf.mxu0  ;;  %v1483_v58 = vpop.f32.mrf.mxu1 }
 0x7f5   :  { %3510 = vpow2.f32 %v3134_v60  ;;  %v3135_v41 = vmul.f32 -1.442695, %v1487_v38  ;;  %v3136_v0 = vmul.f32 -1.442695, %v1489_v10 }
 0x7f6   :  { %v1443_v28 = vpop.f32.mrf.mxu0  ;;  %v1484_v16 = vpop.f32.mrf.mxu1 }
 0x7f7   :  { %3512 = vpow2.f32 %v3135_v41 }
 0x7f8   :  { %3514 = vtanh.f32 %v1488_v56 }
 0x7f9   :  { %3516 = vpow2.f32 %v3136_v0 }
 0x802   :  { %v3511_v3 = vpop.eup %3510 }
 0x803   :  { %v1493_v32 = vadd.f32 1.0, %v3511_v3 }
 0x804   :  { %v3513_v24 = vpop.eup %3512 }
 0x805   :  { %3518 = vrcp.f32 %v1493_v32  ;;  %v1499_v25 = vadd.f32 1.0, %v3513_v24  ;;  %v3515_v7 = vpop.eup %3514 }
 0x806   :  { %v3517_v26 = vpop.eup %3516 }
 0x807   :  { %3520 = vrcp.f32 %v1499_v25  ;;  %v1506_v33 = vadd.f32 1.0, %v3517_v26 }
 0x809   :  { %3522 = vrcp.f32 %v1506_v33  ;;  %v1560_v33 = vld [vmem:[%s5098_s6] sm:$0xf] }
 0x812   :  { %v3519_v27 = vpop.eup %3518 }
 0x813   :  { %v1510_v30 = vmul.f32 %v3519_v27, %v3515_v7 }
 0x814   :  { %v3521_v31 = vpop.eup %3520 }
 0x815   :  { %v1509_v34 = vmul.f32 %v3521_v31, %v4486_v40  ;;  %v1776_v40 = vpop.f32.mrf.mxu0 }
 0x816   :  { %v3523_v21 = vpop.eup %3522 }
 0x817   :  { %v1511_v61 = vadd.f32 %v1510_v30, %v1509_v34  ;;  %v1778_v59 = vpop.f32.mrf.mxu0 }
 0x819   :  { %3524 = vtanh.f32 %v1511_v61  ;;  %v4649_v60 = vpop.f32.mrf.mxu0 }
 0x81b   :  { %v4653_v37 = vpop.f32.mrf.mxu0 }
 0x81d   :  { %v4657_v41 = vpop.f32.mrf.mxu0 }
 0x81f   :  { %v4661_v16 = vpop.f32.mrf.mxu0 }
 0x821   :  { %v4665_v14 = vpop.f32.mrf.mxu0 }
 0x822   :  { %5149 = vst [vmem:[#allocation13_spill] sm:$0xff] %v4665_v14 }
 0x823   :  { %v4669_v0 = vpop.f32.mrf.mxu0 }
 0x824   :  { %5151 = vst [vmem:[#allocation16_spill] sm:$0xff] %v4669_v0 }
 0x825   :  { %v4673_v32 = vpop.f32.mrf.mxu0 }
 0x826   :  { %v3525_v5 = vpop.eup %3524  ;;  %5153 = vst [vmem:[#allocation17_spill] sm:$0xff] %v4673_v32 }
 0x827   :  { %v1513_v39 = vmul.f32 %v3525_v5, %v3523_v21  ;;  %v4677_v25 = vpop.f32.mrf.mxu0 }
 0x828   :  { %5155 = vst [vmem:[#allocation20_spill] sm:$0xff] %v4677_v25 }
 0x829   :  { %v1527_v57 = vpack.c.bf16 %v1513_v39, %v4489_v63  ;;  %v1849_v63 = vpop.f32.mrf.mxu1  ;;  %v4681_v26 = vpop.f32.mrf.mxu0  ;;  %v5165_v39 = vld [vmem:[#allocation11_spill] sm:$0xff] }
 0x82a   :  { %5157 = vst [vmem:[#allocation21_spill] sm:$0xff] %v4681_v26  ;;  %v5172_v14 = vsub.s32 3, %v5165_v39 }
 0x82b   :  { %1805 = vmatmul.mubr.bf16.gmra.mxu0 %v1527_v57  ;;  %1878 = vmatmul.mubr.bf16.gmra.mxu1 %v1527_v57  ;;  %v1851_v36 = vpop.f32.mrf.mxu1  ;;  %v4685_v30 = vpop.f32.mrf.mxu0  ;;  %v5166_v57 = vsub.s32 0, %v5165_v39 }
 0x82c   :  { %2148 = vmatprep.mubr.bf16.mxu0 %v5128_v13  ;;  %2189 = vmatprep.mubr.bf16.mxu1 %v5128_v13  ;;  %5159 = vst [vmem:[#allocation24_spill] sm:$0xff] %v4685_v30 }
 0x82d   :  { %v4651_v38 = vpop.f32.mrf.mxu1  ;;  %v4702_v26 = vrot.slane %v1560_v33, %v5166_v57 }
 0x82f   :  { %v4655_v58 = vpop.f32.mrf.mxu1 }
 0x831   :  { %v4659_v28 = vpop.f32.mrf.mxu1 }
 0x832   :  { %5148 = vst [vmem:[#allocation12_spill] sm:$0xff] %v4659_v28 }
 0x833   :  { %2149 = vmatmul.mubr.bf16.vlgmr.msra.gmra.mxu0 %v5128_v13  ;;  %2190 = vmatmul.mubr.bf16.vlgmr.msra.gmra.mxu1 %v5128_v13  ;;  %v4663_v10 = vpop.f32.mrf.mxu1 }
 0x834   :  { %2233 = vmatpush1.bf16.msra.mxu0 %v4511_v17  ;;  %2274 = vmatpush1.bf16.msra.mxu1 %v4513_v50 }
 0x835   :  { %2234 = vmatprep.subr.bf16.mxu0 %v4519_v18  ;;  %2275 = vmatprep.subr.bf16.mxu1 %v4521_v42  ;;  %v4667_v56 = vpop.f32.mrf.mxu1 }
 0x836   :  { %2264 = vmatprep.mubr.bf16.mxu0 %v5128_v13  ;;  %2305 = vmatprep.mubr.bf16.mxu1 %v5128_v13  ;;  %5150 = vst [vmem:[#allocation15_spill] sm:$0xff] %v4667_v56 }
 0x837   :  { %v4671_v3 = vpop.f32.mrf.mxu1 }
 0x838   :  { %2235 = vmatpush1.bf16.msra.mxu0 %v4523_v35  ;;  %2276 = vmatpush1.bf16.msra.mxu1 %v4525_v20  ;;  %5152 = vst [vmem:[#allocation14_spill] sm:$0xff] %v4671_v3 }
 0x839   :  { %2236 = vmatprep.subr.bf16.mxu0 %v4531_v4  ;;  %2277 = vmatprep.subr.bf16.mxu1 %v4533_v51  ;;  %v4675_v24 = vpop.f32.mrf.mxu1 }
 0x83a   :  { %5154 = vst [vmem:[#allocation19_spill] sm:$0xff] %v4675_v24 }
 0x83b   :  { %v4679_v7 = vpop.f32.mrf.mxu1 }
 0x83c   :  { %2237 = vmatpush1.bf16.msra.mxu0 %v4535_v43  ;;  %2278 = vmatpush1.bf16.msra.mxu1 %v4537_v1  ;;  %5156 = vst [vmem:[#allocation18_spill] sm:$0xff] %v4679_v7 }
 0x83d   :  { %2238 = vmatprep.subr.bf16.mxu0 %v4543_v44  ;;  %2279 = vmatprep.subr.bf16.mxu1 %v4545_v45  ;;  %v4683_v27 = vpop.f32.mrf.mxu1 }
 0x83e   :  { %5158 = vst [vmem:[#allocation23_spill] sm:$0xff] %v4683_v27 }
 0x83f   :  { %v4687_v31 = vpop.f32.mrf.mxu1 }
 0x840   :  { %2239 = vmatpush1.bf16.msra.mxu0 %v4547_v46  ;;  %2280 = vmatpush1.bf16.msra.mxu1 %v4549_v47  ;;  %5160 = vst [vmem:[#allocation22_spill] sm:$0xff] %v4687_v31  ;;  %v5169_v31 = vsub.s32 1, %v5165_v39 }
 0x841   :  { %2240 = vmatprep.subr.bf16.mxu0 %v4555_v48  ;;  %2281 = vmatprep.subr.bf16.mxu1 %v4557_v49 }
 0x842   :  { %v4710_v24 = vrot.slane %v1560_v33, %v5169_v31 }
 0x844   :  { %2241 = vmatpush1.bf16.msra.mxu0 %v4559_v52  ;;  %2282 = vmatpush1.bf16.msra.mxu1 %v4561_v53  ;;  %v1779_v25 = vadd.f32 %v1778_v59, %v4710_v24  ;;  %v5173_v59 = vsub.s32 2, %v5165_v39 }
 0x845   :  { %2242 = vmatprep.subr.bf16.mxu0 %v4567_v54  ;;  %2283 = vmatprep.subr.bf16.mxu1 %v4569_v55 }
 0x848   :  { %2243 = vmatpush1.bf16.msra.mxu0 %v4571_v2  ;;  %2284 = vmatpush1.bf16.msra.mxu1 %v4573_v12 }
 0x849   :  { %2244 = vmatprep.subr.bf16.mxu0 %v4579_v29  ;;  %2285 = vmatprep.subr.bf16.mxu1 %v4581_v22 }
 0x84c   :  { %2245 = vmatpush1.bf16.msra.mxu0 %v4583_v9  ;;  %2286 = vmatpush1.bf16.msra.mxu1 %v4585_v23 }
 0x84d   :  { %2246 = vmatprep.subr.bf16.mxu0 %v4587_v11  ;;  %2287 = vmatprep.subr.bf16.mxu1 %v4591_v15 }
 0x850   :  { %2247 = vmatpush1.bf16.msra.mxu0 %v4595_v19  ;;  %2288 = vmatpush1.bf16.msra.mxu1 %v4597_v62 }
 0x851   :  { %2349 = vmatprep.subr.bf16.mxu0 %v4507_v6  ;;  %2390 = vmatprep.subr.bf16.mxu1 %v4509_v8 }
 0x8eb   :  { %v4692_v34 = vpop.f32.mrf.mxu0  ;;  %v4694_v61 = vpop.f32.mrf.mxu1 }
 0x8ec   :  { %5161 = vst [vmem:[#allocation25_spill] sm:$0xff] %v4692_v34  ;;  %5162 = vst [vmem:[#allocation27_spill] sm:$0xff] %v4694_v61  ;;  %v1777_v61 = vadd.f32 %v1776_v40, %v4702_v26 }
 0x8ed   :  { %v4696_v21 = vpop.f32.mrf.mxu0  ;;  %v4698_v5 = vpop.f32.mrf.mxu1 }
 0x8ee   :  { %5163 = vst [vmem:[#allocation28_spill] sm:$0xff] %v4696_v21  ;;  %5164 = vst [vmem:[#allocation26_spill] sm:$0xff] %v4698_v5 }
 0x8ef   :  { %v4704_v27 = vpop.f32.mrf.mxu0  ;;  %v4706_v30 = vpop.f32.mrf.mxu1 }
 0x8f0   :  { %5167 = vst [vmem:[#allocation29_spill] sm:$0xff] %v4704_v27  ;;  %5168 = vst [vmem:[#allocation30_spill] sm:$0xff] %v4706_v30 }
 0x8f1   :  { %v4712_v7 = vpop.f32.mrf.mxu0  ;;  %v4714_v34 = vpop.f32.mrf.mxu1 }
 0x8f2   :  { %5170 = vst [vmem:[#allocation11_spill] sm:$0xff] %v4712_v7  ;;  %5171 = vst [vmem:[#allocation31_spill] sm:$0xff] %v4714_v34  ;;  %v4720_v7 = vrot.slane %v1560_v33, %v5172_v14 }
 0x8f3   :  { %v2150_v21 = vpop.f32.mrf.mxu0  ;;  %v2191_v5 = vpop.f32.mrf.mxu1 }
 0x8f4   :  { %v2198_v57 = vadd.f32 %v2150_v21, %v1777_v61  ;;  %v1852_v40 = vadd.f32 %v1851_v36, %v4720_v7  ;;  %v4725_v61 = vrot.slane %v1560_v33, %v5173_v59 }
 0x8f5   :  { %v2152_v32 = vpop.f32.mrf.mxu0  ;;  %v2193_v56 = vpop.f32.mrf.mxu1 }
 0x8f6   :  { %v3201_v27 = vmul.f32 -1.442695, %v2198_v57  ;;  %v2199_v3 = vadd.f32 %v2152_v32, %v1779_v25  ;;  %v2201_v21 = vadd.f32 %v2193_v56, %v1852_v40  ;;  %v1850_v32 = vadd.f32 %v1849_v63, %v4725_v61 }
 0x8f7   :  { %v2154_v30 = vpop.f32.mrf.mxu0  ;;  %v2195_v0 = vpop.f32.mrf.mxu1 }
 0x8f8   :  { %3526 = vpow2.f32 %v3201_v27  ;;  %v3202_v31 = vmul.f32 -1.442695, %v2199_v3  ;;  %v3203_v25 = vmul.f32 -1.442695, %v2201_v21  ;;  %v2200_v27 = vadd.f32 %v2191_v5, %v1850_v32 }
 0x8f9   :  { %v2155_v34 = vpop.f32.mrf.mxu0  ;;  %v2196_v28 = vpop.f32.mrf.mxu1  ;;  %v1781_v21 = vadd.f32 %v4649_v60, %v4702_v26  ;;  %v1856_v60 = vadd.f32 %v4655_v58, %v4720_v7 }
 0x8fa   :  { %3528 = vpow2.f32 %v3202_v31 }
 0x8fb   :  { %3530 = vpow2.f32 %v3203_v25 }
 0x905   :  { %v3527_v0 = vpop.eup %3526 }
 0x906   :  { %v2205_v3 = vadd.f32 1.0, %v3527_v0  ;;  %v1783_v0 = vadd.f32 %v4653_v37, %v4710_v24 }
 0x907   :  { %v3529_v30 = vpop.eup %3528 }
 0x908   :  { %3532 = vrcp.f32 %v2205_v3  ;;  %v2211_v14 = vadd.f32 1.0, %v3529_v30  ;;  %v3531_v28 = vpop.eup %3530 }
 0x909   :  { %3534 = vtanh.f32 %v2200_v27  ;;  %v2218_v39 = vadd.f32 1.0, %v3531_v28 }
 0x90a   :  { %3536 = vrcp.f32 %v2211_v14 }
 0x90b   :  { %3538 = vrcp.f32 %v2218_v39 }
 0x915   :  { %v3533_v34 = vpop.eup %3532 }
 0x916   :  { %v3535_v36 = vpop.eup %3534 }
 0x917   :  { %v3537_v57 = vpop.eup %3536  ;;  %v2222_v31 = vmul.f32 %v3535_v36, %v3533_v34 }
 0x918   :  { %v2221_v33 = vmul.f32 0.0, %v3537_v57  ;;  %v3539_v63 = vpop.eup %3538 }
 0x91a   :  { %v4728_v56 = vadd.f32 %v2222_v31, %v2221_v33 }
 0x91c   :  { %3540 = vtanh.f32 %v4728_v56 }
 0x929   :  { %v3541_v5 = vpop.eup %3540 }
 0x92a   :  { %v2225_v40 = vmul.f32 %v3541_v5, %v3539_v63  ;;  %v1854_v63 = vadd.f32 %v4651_v38, %v4725_v61 }
 0x92c   :  { %2226 = vst [vmem:[%s5099_s7] sm:$0xff] %v2225_v40  ;;  %v2231_v59 = vpack.c.bf16 %v2225_v40, %v2225_v40 }
 0x92e   :  { %2265 = vmatmul.mubr.bf16.vlgmr.msra.gmra.mxu0 %v2231_v59  ;;  %2306 = vmatmul.mubr.bf16.vlgmr.msra.gmra.mxu1 %v2231_v59 }
 0x92f   :  { %2350 = vmatpush1.bf16.msra.mxu0 %v4511_v17  ;;  %2391 = vmatpush1.bf16.msra.mxu1 %v4513_v50 }
 0x930   :  { %2351 = vmatprep.subr.bf16.mxu0 %v4519_v18  ;;  %2392 = vmatprep.subr.bf16.mxu1 %v4521_v42 }
 0x931   :  { %2381 = vmatprep.mubr.bf16.mxu0 %v5128_v13  ;;  %2422 = vmatprep.mubr.bf16.mxu1 %v5128_v13 }
 0x933   :  { %2352 = vmatpush1.bf16.msra.mxu0 %v4523_v35  ;;  %2393 = vmatpush1.bf16.msra.mxu1 %v4525_v20 }
 0x934   :  { %2353 = vmatprep.subr.bf16.mxu0 %v4531_v4  ;;  %2394 = vmatprep.subr.bf16.mxu1 %v4533_v51 }
 0x937   :  { %2354 = vmatpush1.bf16.msra.mxu0 %v4535_v43  ;;  %2395 = vmatpush1.bf16.msra.mxu1 %v4537_v1 }
 0x938   :  { %2355 = vmatprep.subr.bf16.mxu0 %v4543_v44  ;;  %2396 = vmatprep.subr.bf16.mxu1 %v4545_v45 }
 0x93b   :  { %2356 = vmatpush1.bf16.msra.mxu0 %v4547_v46  ;;  %2397 = vmatpush1.bf16.msra.mxu1 %v4549_v47 }
 0x93c   :  { %2357 = vmatprep.subr.bf16.mxu0 %v4555_v48  ;;  %2398 = vmatprep.subr.bf16.mxu1 %v4557_v49 }
 0x93f   :  { %2358 = vmatpush1.bf16.msra.mxu0 %v4559_v52  ;;  %2399 = vmatpush1.bf16.msra.mxu1 %v4561_v53 }
 0x940   :  { %2359 = vmatprep.subr.bf16.mxu0 %v4567_v54  ;;  %2400 = vmatprep.subr.bf16.mxu1 %v4569_v55 }
 0x943   :  { %2360 = vmatpush1.bf16.msra.mxu0 %v4571_v2  ;;  %2401 = vmatpush1.bf16.msra.mxu1 %v4573_v12 }
 0x944   :  { %2361 = vmatprep.subr.bf16.mxu0 %v4579_v29  ;;  %2402 = vmatprep.subr.bf16.mxu1 %v4581_v22 }
 0x947   :  { %2362 = vmatpush1.bf16.msra.mxu0 %v4583_v9  ;;  %2403 = vmatpush1.bf16.msra.mxu1 %v4585_v23 }
 0x948   :  { %2363 = vmatprep.subr.bf16.mxu0 %v4587_v11  ;;  %2404 = vmatprep.subr.bf16.mxu1 %v4591_v15 }
 0x94b   :  { %2364 = vmatpush1.bf16.msra.mxu0 %v4595_v19  ;;  %2405 = vmatpush1.bf16.msra.mxu1 %v4597_v62 }
 0x94c   :  { %2466 = vmatprep.subr.bf16.mxu0 %v4507_v6  ;;  %2507 = vmatprep.subr.bf16.mxu1 %v4509_v8 }
 0x9ee   :  { %v2266_v32 = vpop.f32.mrf.mxu0  ;;  %v2307_v25 = vpop.f32.mrf.mxu1 }
 0x9ef   :  { %v2314_v27 = vadd.f32 %v2266_v32, %v1781_v21  ;;  %v2316_v37 = vadd.f32 %v2307_v25, %v1854_v63 }
 0x9f0   :  { %v2268_v3 = vpop.f32.mrf.mxu0  ;;  %v2309_v30 = vpop.f32.mrf.mxu1 }
 0x9f1   :  { %v3204_v14 = vmul.f32 -1.442695, %v2314_v27  ;;  %v2315_v28 = vadd.f32 %v2268_v3, %v1783_v0  ;;  %v2317_v31 = vadd.f32 %v2309_v30, %v1856_v60  ;;  %v1789_v60 = vadd.f32 %v4661_v16, %v4710_v24 }
 0x9f2   :  { %v2270_v34 = vpop.f32.mrf.mxu0  ;;  %v2311_v36 = vpop.f32.mrf.mxu1 }
 0x9f3   :  { %3542 = vpow2.f32 %v3204_v14  ;;  %v3205_v57 = vmul.f32 -1.442695, %v2315_v28  ;;  %v3206_v5 = vmul.f32 -1.442695, %v2317_v31 }
 0x9f4   :  { %v2271_v39 = vpop.f32.mrf.mxu0  ;;  %v2312_v33 = vpop.f32.mrf.mxu1 }
 0x9f5   :  { %3544 = vpow2.f32 %v3205_v57 }
 0x9f6   :  { %3546 = vtanh.f32 %v2316_v37 }
 0x9f7   :  { %3548 = vpow2.f32 %v3206_v5 }
 0xa00   :  { %v3543_v40 = vpop.eup %3542 }
 0xa01   :  { %v2321_v59 = vadd.f32 1.0, %v3543_v40 }
 0xa02   :  { %v3545_v21 = vpop.eup %3544 }
 0xa03   :  { %3550 = vrcp.f32 %v2321_v59  ;;  %v2327_v32 = vadd.f32 1.0, %v3545_v21  ;;  %v3547_v0 = vpop.eup %3546 }
 0xa04   :  { %v3549_v27 = vpop.eup %3548 }
 0xa05   :  { %3552 = vrcp.f32 %v2327_v32  ;;  %v2334_v58 = vadd.f32 1.0, %v3549_v27 }
 0xa07   :  { %3554 = vrcp.f32 %v2334_v58 }
 0xa10   :  { %v3551_v3 = vpop.eup %3550 }
 0xa11   :  { %v2338_v14 = vmul.f32 %v3551_v3, %v3547_v0 }
 0xa12   :  { %v3553_v28 = vpop.eup %3552 }
 0xa13   :  { %v2337_v30 = vmul.f32 %v3553_v28, %v4728_v56  ;;  %v1787_v56 = vadd.f32 %v4657_v41, %v4702_v26  ;;  %v1862_v41 = vadd.f32 %v4663_v10, %v4720_v7 }
 0xa14   :  { %v3555_v38 = vpop.eup %3554 }
 0xa15   :  { %v4777_v34 = vadd.f32 %v2338_v14, %v2337_v30  ;;  %v5174_v14 = vld [vmem:[#allocation12_spill] sm:$0xff] }
 0xa16   :  { %v1860_v28 = vadd.f32 %v5174_v14, %v4725_v61 }
 0xa17   :  { %3556 = vtanh.f32 %v4777_v34 }
 0xa24   :  { %v3557_v25 = vpop.eup %3556 }
 0xa25   :  { %v2341_v36 = vmul.f32 %v3557_v25, %v3555_v38 }
 0xa27   :  { %3207 = vst [vmem:[%s5099_s7 + $0x8] sm:$0xff] %v2341_v36  ;;  %v2348_v57 = vpack.c.bf16 %v2341_v36, %v2341_v36 }
 0xa29   :  { %2382 = vmatmul.mubr.bf16.vlgmr.msra.gmra.mxu0 %v2348_v57  ;;  %2423 = vmatmul.mubr.bf16.vlgmr.msra.gmra.mxu1 %v2348_v57 }
 0xa2a   :  { %2467 = vmatpush1.bf16.msra.mxu0 %v4511_v17  ;;  %2508 = vmatpush1.bf16.msra.mxu1 %v4513_v50 }
 0xa2b   :  { %2468 = vmatprep.subr.bf16.mxu0 %v4519_v18  ;;  %2509 = vmatprep.subr.bf16.mxu1 %v4521_v42 }
 0xa2c   :  { %2498 = vmatprep.mubr.bf16.mxu0 %v5128_v13  ;;  %2539 = vmatprep.mubr.bf16.mxu1 %v5128_v13 }
 0xa2e   :  { %2469 = vmatpush1.bf16.msra.mxu0 %v4523_v35  ;;  %2510 = vmatpush1.bf16.msra.mxu1 %v4525_v20 }
 0xa2f   :  { %2470 = vmatprep.subr.bf16.mxu0 %v4531_v4  ;;  %2511 = vmatprep.subr.bf16.mxu1 %v4533_v51 }
 0xa32   :  { %2471 = vmatpush1.bf16.msra.mxu0 %v4535_v43  ;;  %2512 = vmatpush1.bf16.msra.mxu1 %v4537_v1 }
 0xa33   :  { %2472 = vmatprep.subr.bf16.mxu0 %v4543_v44  ;;  %2513 = vmatprep.subr.bf16.mxu1 %v4545_v45 }
 0xa36   :  { %2473 = vmatpush1.bf16.msra.mxu0 %v4547_v46  ;;  %2514 = vmatpush1.bf16.msra.mxu1 %v4549_v47 }
 0xa37   :  { %2474 = vmatprep.subr.bf16.mxu0 %v4555_v48  ;;  %2515 = vmatprep.subr.bf16.mxu1 %v4557_v49 }
 0xa3a   :  { %2475 = vmatpush1.bf16.msra.mxu0 %v4559_v52  ;;  %2516 = vmatpush1.bf16.msra.mxu1 %v4561_v53 }
 0xa3b   :  { %2476 = vmatprep.subr.bf16.mxu0 %v4567_v54  ;;  %2517 = vmatprep.subr.bf16.mxu1 %v4569_v55 }
 0xa3e   :  { %2477 = vmatpush1.bf16.msra.mxu0 %v4571_v2  ;;  %2518 = vmatpush1.bf16.msra.mxu1 %v4573_v12 }
 0xa3f   :  { %2478 = vmatprep.subr.bf16.mxu0 %v4579_v29  ;;  %2519 = vmatprep.subr.bf16.mxu1 %v4581_v22 }
 0xa42   :  { %2479 = vmatpush1.bf16.msra.mxu0 %v4583_v9  ;;  %2520 = vmatpush1.bf16.msra.mxu1 %v4585_v23 }
 0xa43   :  { %2480 = vmatprep.subr.bf16.mxu0 %v4587_v11  ;;  %2521 = vmatprep.subr.bf16.mxu1 %v4591_v15 }
 0xa46   :  { %2481 = vmatpush1.bf16.msra.mxu0 %v4595_v19  ;;  %2522 = vmatpush1.bf16.msra.mxu1 %v4597_v62 }
 0xa47   :  { %2583 = vmatprep.subr.bf16.mxu0 %v4507_v6  ;;  %2624 = vmatprep.subr.bf16.mxu1 %v4509_v8 }
 0xae9   :  { %v2383_v39 = vpop.f32.mrf.mxu0  ;;  %v2424_v33 = vpop.f32.mrf.mxu1 }
 0xaea   :  { %v2431_v31 = vadd.f32 %v2383_v39, %v1787_v56  ;;  %v2433_v16 = vadd.f32 %v2424_v33, %v1860_v28 }
 0xaeb   :  { %v2385_v63 = vpop.f32.mrf.mxu0  ;;  %v2426_v37 = vpop.f32.mrf.mxu1 }
 0xaec   :  { %v3208_v5 = vmul.f32 -1.442695, %v2431_v31  ;;  %v2432_v40 = vadd.f32 %v2385_v63, %v1789_v60  ;;  %v2434_v3 = vadd.f32 %v2426_v37, %v1862_v41 }
 0xaed   :  { %v2387_v59 = vpop.f32.mrf.mxu0  ;;  %v2428_v21 = vpop.f32.mrf.mxu1 }
 0xaee   :  { %3558 = vpow2.f32 %v3208_v5  ;;  %v3209_v32 = vmul.f32 -1.442695, %v2432_v40  ;;  %v3210_v58 = vmul.f32 -1.442695, %v2434_v3 }
 0xaef   :  { %v2388_v0 = vpop.f32.mrf.mxu0  ;;  %v2429_v27 = vpop.f32.mrf.mxu1 }
 0xaf0   :  { %3560 = vpow2.f32 %v3209_v32  ;;  %v5176_v27 = vld [vmem:[#allocation16_spill] sm:$0xff] }
 0xaf1   :  { %3562 = vtanh.f32 %v2433_v16  ;;  %v1793_v41 = vadd.f32 %v5176_v27, %v4710_v24 }
 0xaf2   :  { %3564 = vpow2.f32 %v3210_v58 }
 0xafb   :  { %v3559_v30 = vpop.eup %3558 }
 0xafc   :  { %v2438_v38 = vadd.f32 1.0, %v3559_v30 }
 0xafd   :  { %v3561_v25 = vpop.eup %3560 }
 0xafe   :  { %3566 = vrcp.f32 %v2438_v38  ;;  %v2444_v36 = vadd.f32 1.0, %v3561_v25  ;;  %v3563_v57 = vpop.eup %3562 }
 0xaff   :  { %v3565_v56 = vpop.eup %3564 }
 0xb00   :  { %3568 = vrcp.f32 %v2444_v36  ;;  %v2451_v10 = vadd.f32 1.0, %v3565_v56  ;;  %v5177_v56 = vld [vmem:[#allocation14_spill] sm:$0xff] }
 0xb02   :  { %3570 = vrcp.f32 %v2451_v10 }
 0xb0b   :  { %v3567_v39 = vpop.eup %3566 }
 0xb0c   :  { %v2455_v60 = vmul.f32 %v3567_v39, %v3563_v57  ;;  %v1866_v39 = vadd.f32 %v5177_v56, %v4720_v7 }
 0xb0d   :  { %v3569_v31 = vpop.eup %3568 }
 0xb0e   :  { %v2454_v63 = vmul.f32 %v3569_v31, %v4777_v34  ;;  %v5175_v34 = vld [vmem:[#allocation13_spill] sm:$0xff]  ;;  %v5178_v31 = vld [vmem:[#allocation15_spill] sm:$0xff] }
 0xb0f   :  { %v3571_v33 = vpop.eup %3570  ;;  %v1791_v21 = vadd.f32 %v5175_v34, %v4702_v26  ;;  %v1864_v10 = vadd.f32 %v5178_v31, %v4725_v61  ;;  %v4930_v31 = vld [vmem:[#allocation8 + $0xe0] ss:$16 sps:$4 sm:$0xff]  }
 0xb10   :  { %v4826_v37 = vadd.f32 %v2455_v60, %v2454_v63 }
 0xb12   :  { %3572 = vtanh.f32 %v4826_v37 }
 0xb1f   :  { %v3573_v5 = vpop.eup %3572 }
 0xb20   :  { %v2458_v40 = vmul.f32 %v3573_v5, %v3571_v33 }
 0xb22   :  { %3211 = vst [vmem:[%s5099_s7 + $0x10] sm:$0xff] %v2458_v40  ;;  %v2465_v59 = vpack.c.bf16 %v2458_v40, %v2458_v40 }
 0xb24   :  { %2499 = vmatmul.mubr.bf16.vlgmr.msra.gmra.mxu0 %v2465_v59  ;;  %2540 = vmatmul.mubr.bf16.vlgmr.msra.gmra.mxu1 %v2465_v59 }
 0xb25   :  { %2584 = vmatpush1.bf16.msra.mxu0 %v4511_v17  ;;  %2625 = vmatpush1.bf16.msra.mxu1 %v4513_v50 }
 0xb26   :  { %2585 = vmatprep.subr.bf16.mxu0 %v4519_v18  ;;  %2626 = vmatprep.subr.bf16.mxu1 %v4521_v42 }
 0xb27   :  { %2615 = vmatprep.mubr.bf16.mxu0 %v5128_v13  ;;  %2656 = vmatprep.mubr.bf16.mxu1 %v5128_v13 }
 0xb29   :  { %2586 = vmatpush1.bf16.msra.mxu0 %v4523_v35  ;;  %2627 = vmatpush1.bf16.msra.mxu1 %v4525_v20 }
 0xb2a   :  { %2587 = vmatprep.subr.bf16.mxu0 %v4531_v4  ;;  %2628 = vmatprep.subr.bf16.mxu1 %v4533_v51 }
 0xb2d   :  { %2588 = vmatpush1.bf16.msra.mxu0 %v4535_v43  ;;  %2629 = vmatpush1.bf16.msra.mxu1 %v4537_v1 }
 0xb2e   :  { %2589 = vmatprep.subr.bf16.mxu0 %v4543_v44  ;;  %2630 = vmatprep.subr.bf16.mxu1 %v4545_v45 }
 0xb31   :  { %2590 = vmatpush1.bf16.msra.mxu0 %v4547_v46  ;;  %2631 = vmatpush1.bf16.msra.mxu1 %v4549_v47 }
 0xb32   :  { %2591 = vmatprep.subr.bf16.mxu0 %v4555_v48  ;;  %2632 = vmatprep.subr.bf16.mxu1 %v4557_v49 }
 0xb35   :  { %2592 = vmatpush1.bf16.msra.mxu0 %v4559_v52  ;;  %2633 = vmatpush1.bf16.msra.mxu1 %v4561_v53 }
 0xb36   :  { %2593 = vmatprep.subr.bf16.mxu0 %v4567_v54  ;;  %2634 = vmatprep.subr.bf16.mxu1 %v4569_v55 }
 0xb39   :  { %2594 = vmatpush1.bf16.msra.mxu0 %v4571_v2  ;;  %2635 = vmatpush1.bf16.msra.mxu1 %v4573_v12 }
 0xb3a   :  { %2595 = vmatprep.subr.bf16.mxu0 %v4579_v29  ;;  %2636 = vmatprep.subr.bf16.mxu1 %v4581_v22 }
 0xb3d   :  { %2596 = vmatpush1.bf16.msra.mxu0 %v4583_v9  ;;  %2637 = vmatpush1.bf16.msra.mxu1 %v4585_v23 }
 0xb3e   :  { %2597 = vmatprep.subr.bf16.mxu0 %v4587_v11  ;;  %2638 = vmatprep.subr.bf16.mxu1 %v4591_v15 }
 0xb41   :  { %2598 = vmatpush1.bf16.msra.mxu0 %v4595_v19  ;;  %2639 = vmatpush1.bf16.msra.mxu1 %v4597_v62 }
 0xb42   :  { %2700 = vmatprep.subr.bf16.mxu0 %v4507_v6  ;;  %2741 = vmatprep.subr.bf16.mxu1 %v4509_v8 }
 0xbe4   :  { %v2500_v32 = vpop.f32.mrf.mxu0  ;;  %v2541_v0 = vpop.f32.mrf.mxu1 }
 0xbe5   :  { %v2548_v3 = vadd.f32 %v2500_v32, %v1791_v21  ;;  %v2550_v63 = vadd.f32 %v2541_v0, %v1864_v10  ;;  %v4933_v10 = vld [vmem:[#allocation8 + $0xe8] ss:$16 sps:$4 sm:$0xff]  }
 0xbe6   :  { %v2502_v14 = vpop.f32.mrf.mxu0  ;;  %v2543_v28 = vpop.f32.mrf.mxu1 }
 0xbe7   :  { %v3212_v16 = vmul.f32 -1.442695, %v2548_v3  ;;  %v2549_v58 = vadd.f32 %v2502_v14, %v1793_v41  ;;  %v2551_v60 = vadd.f32 %v2543_v28, %v1866_v39 }
 0xbe8   :  { %v2504_v30 = vpop.f32.mrf.mxu0  ;;  %v2545_v38 = vpop.f32.mrf.mxu1 }
 0xbe9   :  { %3574 = vpow2.f32 %v3212_v16  ;;  %v3213_v25 = vmul.f32 -1.442695, %v2549_v58  ;;  %v3214_v33 = vmul.f32 -1.442695, %v2551_v60 }
 0xbea   :  { %v2505_v36 = vpop.f32.mrf.mxu0  ;;  %v2546_v57 = vpop.f32.mrf.mxu1 }
 0xbeb   :  { %3576 = vpow2.f32 %v3213_v25 }
 0xbec   :  { %3578 = vtanh.f32 %v2550_v63  ;;  %v4936_v63 = vld [vmem:[#allocation8 + $0xc4] ss:$16 sps:$4 sm:$0xff]  }
 0xbed   :  { %3580 = vpow2.f32 %v3214_v33  ;;  %v4939_v33 = vld [vmem:[#allocation8 + $0xcc] ss:$16 sps:$4 sm:$0xff]  }
 0xbf6   :  { %v3575_v5 = vpop.eup %3574 }
 0xbf7   :  { %v2555_v40 = vadd.f32 1.0, %v3575_v5  ;;  %v4944_v5 = vld [vmem:[#allocation8 + $0xc0] ss:$16 sps:$4 sm:$0xff]  }
 0xbf8   :  { %v3577_v59 = vpop.eup %3576 }
 0xbf9   :  { %3582 = vrcp.f32 %v2555_v40  ;;  %v2561_v34 = vadd.f32 1.0, %v3577_v59  ;;  %v3579_v21 = vpop.eup %3578  ;;  %v4947_v40 = vld [vmem:[#allocation8 + $0xc8] ss:$16 sps:$4 sm:$0xff]   ;;  %v4950_v59 = vld [vmem:[#allocation8 + $0xa4] ss:$16 sps:$4 sm:$0xff]  }
 0xbfa   :  { %v3581_v32 = vpop.eup %3580 }
 0xbfb   :  { %3584 = vrcp.f32 %v2561_v34  ;;  %v2568_v14 = vadd.f32 1.0, %v3581_v32  ;;  %v4953_v34 = vld [vmem:[#allocation8 + $0xac] ss:$16 sps:$4 sm:$0xff]   ;;  %v4959_v32 = vld [vmem:[#allocation8 + $0xa8] ss:$16 sps:$4 sm:$0xff]  }
 0xbfd   :  { %3586 = vrcp.f32 %v2568_v14  ;;  %v4971_v14 = vld [vmem:[#allocation8 + $0x88] ss:$16 sps:$4 sm:$0xff]  }
 0xc06   :  { %v3583_v27 = vpop.eup %3582 }
 0xc07   :  { %v2572_v41 = vmul.f32 %v3583_v27, %v3579_v21  ;;  %v4956_v21 = vld [vmem:[#allocation8 + $0xa0] ss:$16 sps:$4 sm:$0xff]   ;;  %v4962_v27 = vld [vmem:[#allocation8 + $0x84] ss:$16 sps:$4 sm:$0xff]  }
 0xc08   :  { %v3585_v3 = vpop.eup %3584 }
 0xc09   :  { %v2571_v28 = vmul.f32 %v3585_v3, %v4826_v37  ;;  %v4968_v3 = vld [vmem:[#allocation8 + $0x80] ss:$16 sps:$4 sm:$0xff]  }
 0xc0a   :  { %v3587_v0 = vpop.eup %3586 }
 0xc0b   :  { %v4875_v16 = vadd.f32 %v2572_v41, %v2571_v28  ;;  %v4965_v41 = vld [vmem:[#allocation8 + $0x8c] ss:$16 sps:$4 sm:$0xff]   ;;  %v4974_v28 = vld [vmem:[#allocation8 + $0x64] ss:$16 sps:$4 sm:$0xff]  }
 0xc0d   :  { %3588 = vtanh.f32 %v4875_v16 }
 0xc1a   :  { %v3589_v58 = vpop.eup %3588 }
 0xc1b   :  { %v2575_v30 = vmul.f32 %v3589_v58, %v3587_v0  ;;  %v4980_v0 = vld [vmem:[#allocation8 + $0x60] ss:$16 sps:$4 sm:$0xff]   ;;  %v4983_v58 = vld [vmem:[#allocation8 + $0x68] ss:$16 sps:$4 sm:$0xff]  }
 0xc1d   :  { %3215 = vst [vmem:[%s5099_s7 + $0x18] sm:$0xff] %v2575_v30  ;;  %v2582_v38 = vpack.c.bf16 %v2575_v30, %v2575_v30  ;;  %v4986_v30 = vld [vmem:[#allocation8 + $0x44] ss:$16 sps:$4 sm:$0xff]  }
 0xc1f   :  { %2616 = vmatmul.mubr.bf16.vlgmr.msra.gmra.mxu0 %v2582_v38  ;;  %2657 = vmatmul.mubr.bf16.vlgmr.msra.gmra.mxu1 %v2582_v38  ;;  %v4989_v38 = vld [vmem:[#allocation8 + $0x4c] ss:$16 sps:$4 sm:$0xff]  }
 0xc20   :  { %2701 = vmatpush1.bf16.msra.mxu0 %v4511_v17  ;;  %2742 = vmatpush1.bf16.msra.mxu1 %v4513_v50  ;;  %v5179_v17 = vld [vmem:[#allocation17_spill] sm:$0xff] }
 0xc21   :  { %2702 = vmatprep.subr.bf16.mxu0 %v4519_v18  ;;  %2743 = vmatprep.subr.bf16.mxu1 %v4521_v42  ;;  %v1797_v50 = vadd.f32 %v5179_v17, %v4702_v26  ;;  %v4992_v17 = vld [vmem:[#allocation8 + $0x40] ss:$16 sps:$4 sm:$0xff]  }
 0xc22   :  { %2732 = vmatprep.mubr.bf16.mxu0 %v5128_v13  ;;  %2773 = vmatprep.mubr.bf16.mxu1 %v5128_v13 }
 0xc24   :  { %2703 = vmatpush1.bf16.msra.mxu0 %v4523_v35  ;;  %2744 = vmatpush1.bf16.msra.mxu1 %v4525_v20  ;;  %v5180_v35 = vld [vmem:[#allocation20_spill] sm:$0xff] }
 0xc25   :  { %2704 = vmatprep.subr.bf16.mxu0 %v4531_v4  ;;  %2745 = vmatprep.subr.bf16.mxu1 %v4533_v51  ;;  %v1799_v20 = vadd.f32 %v5180_v35, %v4710_v24  ;;  %v5004_v35 = vld [vmem:[#allocation8 + $0x20] ss:$16 sps:$4 sm:$0xff]  }
 0xc28   :  { %2705 = vmatpush1.bf16.msra.mxu0 %v4535_v43  ;;  %2746 = vmatpush1.bf16.msra.mxu1 %v4537_v1 }
 0xc29   :  { %2706 = vmatprep.subr.bf16.mxu0 %v4543_v44  ;;  %2747 = vmatprep.subr.bf16.mxu1 %v4545_v45 }
 0xc2c   :  { %2707 = vmatpush1.bf16.msra.mxu0 %v4547_v46  ;;  %2748 = vmatpush1.bf16.msra.mxu1 %v4549_v47 }
 0xc2d   :  { %2708 = vmatprep.subr.bf16.mxu0 %v4555_v48  ;;  %2749 = vmatprep.subr.bf16.mxu1 %v4557_v49 }
 0xc30   :  { %2709 = vmatpush1.bf16.msra.mxu0 %v4559_v52  ;;  %2750 = vmatpush1.bf16.msra.mxu1 %v4561_v53  ;;  %v5182_v53 = vld [vmem:[#allocation19_spill] sm:$0xff] }
 0xc31   :  { %2710 = vmatprep.subr.bf16.mxu0 %v4567_v54  ;;  %2751 = vmatprep.subr.bf16.mxu1 %v4569_v55  ;;  %v1870_v54 = vadd.f32 %v5182_v53, %v4725_v61 }
 0xc34   :  { %2711 = vmatpush1.bf16.msra.mxu0 %v4571_v2  ;;  %2752 = vmatpush1.bf16.msra.mxu1 %v4573_v12 }
 0xc35   :  { %2712 = vmatprep.subr.bf16.mxu0 %v4579_v29  ;;  %2753 = vmatprep.subr.bf16.mxu1 %v4581_v22 }
 0xc38   :  { %2713 = vmatpush1.bf16.msra.mxu0 %v4583_v9  ;;  %2754 = vmatpush1.bf16.msra.mxu1 %v4585_v23 }
 0xc39   :  { %2714 = vmatprep.subr.bf16.mxu0 %v4587_v11  ;;  %2755 = vmatprep.subr.bf16.mxu1 %v4591_v15 }
 0xc3c   :  { %2715 = vmatpush1.bf16.msra.mxu0 %v4595_v19  ;;  %2756 = vmatpush1.bf16.msra.mxu1 %v4597_v62 }
 0xc3d   :  { %2817 = vmatprep.subr.bf16.mxu0 %v4507_v6  ;;  %2858 = vmatprep.subr.bf16.mxu1 %v4509_v8  ;;  %v5181_v8 = vld [vmem:[#allocation18_spill] sm:$0xff] }
 0xc3e   :  { %v1872_v49 = vadd.f32 %v5181_v8, %v4720_v7  ;;  %v5184_v8 = vld [vmem:[#allocation24_spill] sm:$0xff] }
 0xcdf   :  { %v2617_v18 = vpop.f32.mrf.mxu0  ;;  %v2658_v42 = vpop.f32.mrf.mxu1 }
 0xce0   :  { %v2665_v4 = vadd.f32 %v2617_v18, %v1797_v50  ;;  %v2667_v55 = vadd.f32 %v2658_v42, %v1870_v54  ;;  %v4995_v50 = vld [vmem:[#allocation8 + $0x48] ss:$16 sps:$4 sm:$0xff]   ;;  %v4998_v18 = vld [vmem:[#allocation8 + $0x24] ss:$16 sps:$4 sm:$0xff]   ;;  %v5001_v42 = vld [vmem:[#allocation8 + $0x2c] ss:$16 sps:$4 sm:$0xff]  }
 0xce1   :  { %v2619_v51 = vpop.f32.mrf.mxu0  ;;  %v2660_v43 = vpop.f32.mrf.mxu1 }
 0xce2   :  { %v3216_v1 = vmul.f32 -1.442695, %v2665_v4  ;;  %v2666_v44 = vadd.f32 %v2619_v51, %v1799_v20  ;;  %v2668_v52 = vadd.f32 %v2660_v43, %v1872_v49  ;;  %v5007_v20 = vld [vmem:[#allocation8 + $0x28] ss:$16 sps:$4 sm:$0xff]   ;;  %v5010_v4 = vld [vmem:[#allocation8 + $0x4] ss:$16 sps:$4 sm:$0xff]   ;;  %v1803_v49 = vadd.f32 %v5184_v8, %v4710_v24 }
 0xce3   :  { %v2621_v45 = vpop.f32.mrf.mxu0  ;;  %v2662_v46 = vpop.f32.mrf.mxu1  ;;  %v5013_v51 = vld [vmem:[#allocation8 + $0xc] ss:$16 sps:$4 sm:$0xff]   ;;  %v5016_v43 = vld [vmem:[#allocation8] ss:$16 sps:$4 sm:$0xff]  }
 0xce4   :  { %3590 = vpow2.f32 %v3216_v1  ;;  %v3217_v47 = vmul.f32 -1.442695, %v2666_v44  ;;  %v3218_v2 = vmul.f32 -1.442695, %v2668_v52  ;;  %v5019_v1 = vld [vmem:[#allocation8 + $0x8] ss:$16 sps:$4 sm:$0xff]  }
 0xce5   :  { %v2622_v6 = vpop.f32.mrf.mxu0  ;;  %v2663_v48 = vpop.f32.mrf.mxu1  ;;  %v3716_v44 = vld [vmem:[#allocation8 + $0xe4] ss:$16 sps:$4 sm:$0xff]   ;;  %v3717_v45 = vld [vmem:[#allocation8 + $0xec] ss:$16 sps:$4 sm:$0xff]  }
 0xce6   :  { %3592 = vpow2.f32 %v3217_v47  ;;  %v5183_v46 = vld [vmem:[#allocation21_spill] sm:$0xff] }
 0xce7   :  { %3594 = vtanh.f32 %v2667_v55  ;;  %v1801_v47 = vadd.f32 %v5183_v46, %v4702_v26 }
 0xce8   :  { %3596 = vpow2.f32 %v3218_v2 }
 0xcf1   :  { %v3591_v12 = vpop.eup %3590 }
 0xcf2   :  { %v2672_v29 = vadd.f32 1.0, %v3591_v12 }
 0xcf3   :  { %v3593_v22 = vpop.eup %3592 }
 0xcf4   :  { %3598 = vrcp.f32 %v2672_v29  ;;  %v2678_v9 = vadd.f32 1.0, %v3593_v22  ;;  %v3595_v23 = vpop.eup %3594 }
 0xcf5   :  { %v3597_v11 = vpop.eup %3596 }
 0xcf6   :  { %3600 = vrcp.f32 %v2678_v9  ;;  %v2685_v37 = vadd.f32 1.0, %v3597_v11  ;;  %v5185_v11 = vld [vmem:[#allocation22_spill] sm:$0xff] }
 0xcf8   :  { %3602 = vrcp.f32 %v2685_v37 }
 0xd01   :  { %v3599_v15 = vpop.eup %3598 }
 0xd02   :  { %v2689_v19 = vmul.f32 %v3599_v15, %v3595_v23  ;;  %v1876_v15 = vadd.f32 %v5185_v11, %v4720_v7 }
 0xd03   :  { %v3601_v62 = vpop.eup %3600 }
 0xd04   :  { %v2688_v25 = vmul.f32 %v3601_v62, %v4875_v16  ;;  %v4977_v16 = vld [vmem:[#allocation8 + $0x6c] ss:$16 sps:$4 sm:$0xff]   ;;  %v5186_v62 = vld [vmem:[#allocation23_spill] sm:$0xff] }
 0xd05   :  { %v3603_v57 = vpop.eup %3602  ;;  %v1874_v37 = vadd.f32 %v5186_v62, %v4725_v61 }
 0xd06   :  { %v4924_v36 = vadd.f32 %v2689_v19, %v2688_v25 }
 0xd08   :  { %3604 = vtanh.f32 %v4924_v36 }
 0xd15   :  { %v3605_v56 = vpop.eup %3604 }
 0xd16   :  { %v2692_v39 = vmul.f32 %v3605_v56, %v3603_v57 }
 0xd18   :  { %3219 = vst [vmem:[%s5099_s7 + $0x20] sm:$0xff] %v2692_v39  ;;  %v2699_v60 = vpack.c.bf16 %v2692_v39, %v2692_v39 }
 0xd1a   :  { %2733 = vmatmul.mubr.bf16.vlgmr.msra.gmra.mxu0 %v2699_v60  ;;  %2774 = vmatmul.mubr.bf16.vlgmr.msra.gmra.mxu1 %v2699_v60 }
 0xd1b   :  { %2818 = vmatpush1.bf16.msra.mxu0 %v4930_v31  ;;  %2859 = vmatpush1.bf16.msra.mxu1 %v4933_v10 }
 0xd1c   :  { %2819 = vmatprep.subr.bf16.mxu0 %v4936_v63  ;;  %2860 = vmatprep.subr.bf16.mxu1 %v4939_v33 }
 0xd1d   :  { %2849 = vmatprep.mubr.bf16.mxu0 %v5128_v13  ;;  %2890 = vmatprep.mubr.bf16.mxu1 %v5128_v13 }
 0xd1f   :  { %2820 = vmatpush1.bf16.msra.mxu0 %v4944_v5  ;;  %2861 = vmatpush1.bf16.msra.mxu1 %v4947_v40 }
 0xd20   :  { %2821 = vmatprep.subr.bf16.mxu0 %v4950_v59  ;;  %2862 = vmatprep.subr.bf16.mxu1 %v4953_v34 }
 0xd23   :  { %2822 = vmatpush1.bf16.msra.mxu0 %v4956_v21  ;;  %2863 = vmatpush1.bf16.msra.mxu1 %v4959_v32 }
 0xd24   :  { %2823 = vmatprep.subr.bf16.mxu0 %v4962_v27  ;;  %2864 = vmatprep.subr.bf16.mxu1 %v4965_v41 }
 0xd27   :  { %2824 = vmatpush1.bf16.msra.mxu0 %v4968_v3  ;;  %2865 = vmatpush1.bf16.msra.mxu1 %v4971_v14 }
 0xd28   :  { %2825 = vmatprep.subr.bf16.mxu0 %v4974_v28  ;;  %2866 = vmatprep.subr.bf16.mxu1 %v4977_v16 }
 0xd2b   :  { %2826 = vmatpush1.bf16.msra.mxu0 %v4980_v0  ;;  %2867 = vmatpush1.bf16.msra.mxu1 %v4983_v58 }
 0xd2c   :  { %2827 = vmatprep.subr.bf16.mxu0 %v4986_v30  ;;  %2868 = vmatprep.subr.bf16.mxu1 %v4989_v38 }
 0xd2f   :  { %2828 = vmatpush1.bf16.msra.mxu0 %v4992_v17  ;;  %2869 = vmatpush1.bf16.msra.mxu1 %v4995_v50 }
 0xd30   :  { %2829 = vmatprep.subr.bf16.mxu0 %v4998_v18  ;;  %2870 = vmatprep.subr.bf16.mxu1 %v5001_v42 }
 0xd33   :  { %2830 = vmatpush1.bf16.msra.mxu0 %v5004_v35  ;;  %2871 = vmatpush1.bf16.msra.mxu1 %v5007_v20 }
 0xd34   :  { %2831 = vmatprep.subr.bf16.mxu0 %v5010_v4  ;;  %2872 = vmatprep.subr.bf16.mxu1 %v5013_v51 }
 0xd37   :  { %2832 = vmatpush1.bf16.msra.mxu0 %v5016_v43  ;;  %2873 = vmatpush1.bf16.msra.mxu1 %v5019_v1 }
 0xd38   :  { %2934 = vmatprep.subr.bf16.mxu0 %v3716_v44  ;;  %2975 = vmatprep.subr.bf16.mxu1 %v3717_v45 }
 0xdda   :  { %v2734_v6 = vpop.f32.mrf.mxu0  ;;  %v2775_v48 = vpop.f32.mrf.mxu1 }
 0xddb   :  { %v2782_v52 = vadd.f32 %v2734_v6, %v1801_v47  ;;  %v2784_v25 = vadd.f32 %v2775_v48, %v1874_v37 }
 0xddc   :  { %v2736_v53 = vpop.f32.mrf.mxu0  ;;  %v2777_v54 = vpop.f32.mrf.mxu1 }
 0xddd   :  { %v3220_v55 = vmul.f32 -1.442695, %v2782_v52  ;;  %v2783_v2 = vadd.f32 %v2736_v53, %v1803_v49  ;;  %v2785_v19 = vadd.f32 %v2777_v54, %v1876_v15 }
 0xdde   :  { %v2738_v12 = vpop.f32.mrf.mxu0  ;;  %v2779_v29 = vpop.f32.mrf.mxu1 }
 0xddf   :  { %3606 = vpow2.f32 %v3220_v55  ;;  %v3221_v22 = vmul.f32 -1.442695, %v2783_v2  ;;  %v3222_v57 = vmul.f32 -1.442695, %v2785_v19  ;;  %v5191_v19 = vld [vmem:[#allocation29_spill] sm:$0xff] }
 0xde0   :  { %v2739_v9 = vpop.f32.mrf.mxu0  ;;  %v2780_v23 = vpop.f32.mrf.mxu1  ;;  %v1811_v62 = vadd.f32 %v5191_v19, %v4702_v26 }
 0xde1   :  { %3608 = vpow2.f32 %v3221_v22 }
 0xde2   :  { %3610 = vtanh.f32 %v2784_v25 }
 0xde3   :  { %3612 = vpow2.f32 %v3222_v57  ;;  %v5192_v57 = vld [vmem:[#allocation11_spill] sm:$0xff] }
 0xdec   :  { %v3607_v56 = vpop.eup %3606 }
 0xded   :  { %v2789_v39 = vadd.f32 1.0, %v3607_v56  ;;  %v1813_v56 = vadd.f32 %v5192_v57, %v4710_v24 }
 0xdee   :  { %v3609_v60 = vpop.eup %3608 }
 0xdef   :  { %3614 = vrcp.f32 %v2789_v39  ;;  %v2795_v44 = vadd.f32 1.0, %v3609_v60  ;;  %v3611_v45 = vpop.eup %3610 }
 0xdf0   :  { %v3613_v46 = vpop.eup %3612 }
 0xdf1   :  { %3616 = vrcp.f32 %v2795_v44  ;;  %v2802_v49 = vadd.f32 1.0, %v3613_v46 }
 0xdf3   :  { %3618 = vrcp.f32 %v2802_v49 }
 0xdfc   :  { %v3615_v47 = vpop.eup %3614 }
 0xdfd   :  { %v2806_v6 = vmul.f32 %v3615_v47, %v3611_v45 }
 0xdfe   :  { %v3617_v8 = vpop.eup %3616 }
 0xdff   :  { %v2805_v52 = vmul.f32 %v3617_v8, %v4924_v36 }
 0xe00   :  { %v3619_v48 = vpop.eup %3618 }
 0xe01   :  { %v5031_v53 = vadd.f32 %v2806_v6, %v2805_v52 }
 0xe03   :  { %3620 = vtanh.f32 %v5031_v53 }
 0xe10   :  { %v3621_v54 = vpop.eup %3620 }
 0xe11   :  { %v2809_v55 = vmul.f32 %v3621_v54, %v3619_v48  ;;  %v5194_v54 = vld [vmem:[#allocation30_spill] sm:$0xff] }
 0xe13   :  { %3223 = vst [vmem:[%s5099_s7 + $0x28] sm:$0xff] %v2809_v55  ;;  %v2816_v2 = vpack.c.bf16 %v2809_v55, %v2809_v55  ;;  %v1884_v55 = vadd.f32 %v5194_v54, %v4725_v61 }
 0xe15   :  { %2850 = vmatmul.mubr.bf16.vlgmr.msra.gmra.mxu0 %v2816_v2  ;;  %2891 = vmatmul.mubr.bf16.vlgmr.msra.gmra.mxu1 %v2816_v2 }
 0xe16   :  { %2935 = vmatpush1.bf16.msra.mxu0 %v4930_v31  ;;  %2976 = vmatpush1.bf16.msra.mxu1 %v4933_v10 }
 0xe17   :  { %2936 = vmatprep.subr.bf16.mxu0 %v4936_v63  ;;  %2977 = vmatprep.subr.bf16.mxu1 %v4939_v33  ;;  %v5188_v63 = vld [vmem:[#allocation28_spill] sm:$0xff] }
 0xe18   :  { %2966 = vmatprep.mubr.bf16.mxu0 %v5128_v13  ;;  %3007 = vmatprep.mubr.bf16.mxu1 %v5128_v13  ;;  %v5187_v13 = vld [vmem:[#allocation25_spill] sm:$0xff]  ;;  %v1809_v33 = vadd.f32 %v5188_v63, %v4710_v24 }
 0xe19   :  { %v1807_v36 = vadd.f32 %v5187_v13, %v4702_v26 }
 0xe1a   :  { %2937 = vmatpush1.bf16.msra.mxu0 %v4944_v5  ;;  %2978 = vmatpush1.bf16.msra.mxu1 %v4947_v40 }
 0xe1b   :  { %2938 = vmatprep.subr.bf16.mxu0 %v4950_v59  ;;  %2979 = vmatprep.subr.bf16.mxu1 %v4953_v34 }
 0xe1e   :  { %2939 = vmatpush1.bf16.msra.mxu0 %v4956_v21  ;;  %2980 = vmatpush1.bf16.msra.mxu1 %v4959_v32 }
 0xe1f   :  { %2940 = vmatprep.subr.bf16.mxu0 %v4962_v27  ;;  %2981 = vmatprep.subr.bf16.mxu1 %v4965_v41 }
 0xe22   :  { %2941 = vmatpush1.bf16.msra.mxu0 %v4968_v3  ;;  %2982 = vmatpush1.bf16.msra.mxu1 %v4971_v14 }
 0xe23   :  { %2942 = vmatprep.subr.bf16.mxu0 %v4974_v28  ;;  %2983 = vmatprep.subr.bf16.mxu1 %v4977_v16  ;;  %v5189_v28 = vld [vmem:[#allocation26_spill] sm:$0xff] }
 0xe24   :  { %v1882_v16 = vadd.f32 %v5189_v28, %v4720_v7 }
 0xe26   :  { %2943 = vmatpush1.bf16.msra.mxu0 %v4980_v0  ;;  %2984 = vmatpush1.bf16.msra.mxu1 %v4983_v58  ;;  %v5190_v58 = vld [vmem:[#allocation27_spill] sm:$0xff] }
 0xe27   :  { %2944 = vmatprep.subr.bf16.mxu0 %v4986_v30  ;;  %2985 = vmatprep.subr.bf16.mxu1 %v4989_v38  ;;  %v1880_v30 = vadd.f32 %v5190_v58, %v4725_v61 }
 0xe2a   :  { %2945 = vmatpush1.bf16.msra.mxu0 %v4992_v17  ;;  %2986 = vmatpush1.bf16.msra.mxu1 %v4995_v50 }
 0xe2b   :  { %2946 = vmatprep.subr.bf16.mxu0 %v4998_v18  ;;  %2987 = vmatprep.subr.bf16.mxu1 %v5001_v42 }
 0xe2e   :  { %2947 = vmatpush1.bf16.msra.mxu0 %v5004_v35  ;;  %2988 = vmatpush1.bf16.msra.mxu1 %v5007_v20 }
 0xe2f   :  { %2948 = vmatprep.subr.bf16.mxu0 %v5010_v4  ;;  %2989 = vmatprep.subr.bf16.mxu1 %v5013_v51 }
 0xe32   :  { %2949 = vmatpush1.bf16.msra.mxu0 %v5016_v43  ;;  %2990 = vmatpush1.bf16.msra.mxu1 %v5019_v1 }
 0xed5   :  { %v2851_v31 = vpop.f32.mrf.mxu0  ;;  %v2892_v10 = vpop.f32.mrf.mxu1 }
 0xed6   :  { %v2899_v5 = vadd.f32 %v2851_v31, %v1807_v36  ;;  %v2901_v38 = vadd.f32 %v2892_v10, %v1880_v30 }
 0xed7   :  { %v2853_v40 = vpop.f32.mrf.mxu0  ;;  %v2894_v59 = vpop.f32.mrf.mxu1 }
 0xed8   :  { %v3224_v34 = vmul.f32 -1.442695, %v2899_v5  ;;  %v2900_v21 = vadd.f32 %v2853_v40, %v1809_v33  ;;  %v2902_v0 = vadd.f32 %v2894_v59, %v1882_v16 }
 0xed9   :  { %v2855_v32 = vpop.f32.mrf.mxu0  ;;  %v2896_v27 = vpop.f32.mrf.mxu1 }
 0xeda   :  { %3622 = vpow2.f32 %v3224_v34  ;;  %v3225_v41 = vmul.f32 -1.442695, %v2900_v21  ;;  %v3226_v17 = vmul.f32 -1.442695, %v2902_v0 }
 0xedb   :  { %v2856_v3 = vpop.f32.mrf.mxu0  ;;  %v2897_v14 = vpop.f32.mrf.mxu1 }
 0xedc   :  { %3624 = vpow2.f32 %v3225_v41 }
 0xedd   :  { %3626 = vtanh.f32 %v2901_v38 }
 0xede   :  { %3628 = vpow2.f32 %v3226_v17 }
 0xee7   :  { %v3623_v50 = vpop.eup %3622 }
 0xee8   :  { %v2906_v18 = vadd.f32 1.0, %v3623_v50 }
 0xee9   :  { %v3625_v42 = vpop.eup %3624 }
 0xeea   :  { %3630 = vrcp.f32 %v2906_v18  ;;  %v2912_v35 = vadd.f32 1.0, %v3625_v42  ;;  %v3627_v20 = vpop.eup %3626 }
 0xeeb   :  { %v3629_v4 = vpop.eup %3628 }
 0xeec   :  { %3632 = vrcp.f32 %v2912_v35  ;;  %v2919_v12 = vadd.f32 1.0, %v3629_v4 }
 0xeee   :  { %3634 = vrcp.f32 %v2919_v12 }
 0xef7   :  { %v3631_v51 = vpop.eup %3630 }
 0xef8   :  { %v2923_v43 = vmul.f32 %v3631_v51, %v3627_v20 }
 0xef9   :  { %v3633_v1 = vpop.eup %3632 }
 0xefa   :  { %v2922_v29 = vmul.f32 %v3633_v1, %v5031_v53  ;;  %v5193_v53 = vld [vmem:[#allocation31_spill] sm:$0xff] }
 0xefb   :  { %v3635_v9 = vpop.eup %3634  ;;  %v1886_v26 = vadd.f32 %v5193_v53, %v4720_v7 }
 0xefc   :  { %v2924_v22 = vadd.f32 %v2923_v43, %v2922_v29 }
 0xefe   :  { %3636 = vtanh.f32 %v2924_v22 }
 0xf0b   :  { %v3637_v23 = vpop.eup %3636 }
 0xf0c   :  { %v2926_v11 = vmul.f32 %v3637_v23, %v3635_v9 }
 0xf0e   :  { %3227 = vst [vmem:[%s5099_s7 + $0x30] sm:$0xff] %v2926_v11  ;;  %v2933_v15 = vpack.c.bf16 %v2926_v11, %v2926_v11 }
 0xf10   :  { %2967 = vmatmul.mubr.bf16.vlgmr.msra.gmra.mxu0 %v2933_v15  ;;  %3008 = vmatmul.mubr.bf16.vlgmr.msra.gmra.mxu1 %v2933_v15 }
 0xfd0   :  { %v2968_v37 = vpop.f32.mrf.mxu0  ;;  %v3009_v25 = vpop.f32.mrf.mxu1 }
 0xfd1   :  { %v3016_v39 = vadd.f32 %v2968_v37, %v1811_v62  ;;  %v3018_v24 = vadd.f32 %v3009_v25, %v1884_v55 }
 0xfd2   :  { %v2970_v60 = vpop.f32.mrf.mxu0  ;;  %v3011_v44 = vpop.f32.mrf.mxu1 }
 0xfd3   :  { %v3228_v45 = vmul.f32 -1.442695, %v3016_v39  ;;  %v3017_v46 = vadd.f32 %v2970_v60, %v1813_v56  ;;  %v3019_v48 = vadd.f32 %v3011_v44, %v1886_v26 }
 0xfd4   :  { %v2972_v47 = vpop.f32.mrf.mxu0  ;;  %v3013_v6 = vpop.f32.mrf.mxu1 }
 0xfd5   :  { %3638 = vpow2.f32 %v3228_v45  ;;  %v3229_v8 = vmul.f32 -1.442695, %v3017_v46  ;;  %v3230_v2 = vmul.f32 -1.442695, %v3019_v48 }
 0xfd6   :  { %v2973_v49 = vpop.f32.mrf.mxu0  ;;  %v3014_v52 = vpop.f32.mrf.mxu1 }
 0xfd7   :  { %3640 = vpow2.f32 %v3229_v8 }
 0xfd8   :  { %3642 = vtanh.f32 %v3018_v24 }
 0xfd9   :  { %3644 = vpow2.f32 %v3230_v2 }
 0xfe2   :  { %v3639_v13 = vpop.eup %3638 }
 0xfe3   :  { %v3023_v36 = vadd.f32 1.0, %v3639_v13 }
 0xfe4   :  { %v3641_v31 = vpop.eup %3640 }
 0xfe5   :  { %3646 = vrcp.f32 %v3023_v36  ;;  %v3029_v10 = vadd.f32 1.0, %v3641_v31  ;;  %v3643_v63 = vpop.eup %3642 }
 0xfe6   :  { %v3645_v33 = vpop.eup %3644 }
 0xfe7   :  { %3648 = vrcp.f32 %v3029_v10  ;;  %v3036_v7 = vadd.f32 1.0, %v3645_v33 }
 0xfe9   :  { %3650 = vrcp.f32 %v3036_v7 }
 0xff2   :  { %v3647_v5 = vpop.eup %3646 }
 0xff3   :  { %v3040_v40 = vmul.f32 %v3647_v5, %v3643_v63 }
 0xff4   :  { %v3649_v59 = vpop.eup %3648 }
 0xff5   :  { %v3039_v34 = vmul.f32 %v3649_v59, %v2924_v22 }
 0xff6   :  { %v3651_v61 = vpop.eup %3650 }
 0xff7   :  { %v3041_v21 = vadd.f32 %v3040_v40, %v3039_v34 }
 0xff9   :  { %3652 = vtanh.f32 %v3041_v21 }
0x1006   :  { %v3653_v32 = vpop.eup %3652 }
0x1007   :  { %v3043_v27 = vmul.f32 %v3653_v32, %v3651_v61 }
0x1009   :  { %3231 = vst [vmem:[%s5099_s7 + $0x38] sm:$0xff] %v3043_v27 }
0x100a   :  { %3050 = vsyncpa [#allocation5], 1 }
0x100b   :  { %3051 = vsyncpa [#allocation7], 1 }

// kernel: _lambda_.4
= control target key start
LH: loop header
LB: loop body
LE: loop exit
PB: predicated region body
PF: predicated region fallthrough
CT: control target
= control target key end

     0   :  { %18 = vsyncpa [#allocation3], 0  ;;  %s8420_s0 = inlined_call_operand.vmem [shape: f32[64,128], index: 0, kind: input, shape index: {}]   ;;  %s8421_s1 = inlined_call_operand.hbm [shape: bf16[128,384], index: 1, kind: input, shape index: {}]   ;;  %s8422_s2 = inlined_call_operand.vmem [shape: f32[1,384], index: 2, kind: input, shape index: {}]   ;;  %s8423_s3 = inlined_call_operand.hbm [shape: bf16[128,128], index: 3, kind: input, shape index: {}]   ;;  %s8424_s4 = inlined_call_operand.vmem [shape: f32[1,128], index: 4, kind: input, shape index: {}]   ;;  %s8425_s5 = inlined_call_operand.hbm [shape: bf16[128,2048], index: 5, kind: input, shape index: {}]   ;;  %s8426_s6 = inlined_call_operand.vmem [shape: f32[1,2048], index: 6, kind: input, shape index: {}]   ;;  %s8427_s7 = inlined_call_operand.vmem [shape: bf16[2048,128], index: 7, kind: input, shape index: {}]   ;;  %s8428_s8 = inlined_call_operand.vmem [shape: f32[1,128], index: 8, kind: input, shape index: {}]   ;;  %s8429_s9 = inlined_call_operand.vmem [shape: f32[1,128], index: 9, kind: input, shape index: {}, may-alias: {9,11}]   ;;  %s8430_s10 = inlined_call_operand.vmem [shape: f32[1,128], index: 10, kind: input, shape index: {}, may-alias: {10,12}]   ;;  %s8431_s11 = inlined_call_operand.vmem [shape: f32[1,128], index: 11, kind: input, shape index: {}, may-alias: {9,11}]   ;;  %s8432_s12 = inlined_call_operand.vmem [shape: f32[1,128], index: 12, kind: input, shape index: {}, may-alias: {10,12}]   ;;  %s8433_s13 = inlined_call_operand.vmem [shape: f32[64,128], index: 13, kind: output, shape index: {}]  }
   0x1   :  { %19 = vsyncpa [#allocation5], 0  ;;  %s7306_s25 = smov 0  }
   0x2 LB: > { %s7222_s26 = smov [#allocation4]   ;;  %s5917_s28 = sadd.s32 4294967295, %s7220_s25   ;;  %s7220_s25 = sphi %s7306_s25, %s25_s25  }
   0x3   : > { %s362_s27 = sshll.u32 %s7222_s26, 4  ;;  %p5919_p0 = scmp.ge.s32.totalorder %s7220_s25, 1  ;;  %s363_s27 = int_to_ptr.vmem [resolvable:$true] %s362_s27 }
   0x4   : > { %p334_p1 = scmp.lt.s32.totalorder %s7220_s25, 3  ;;  %p7316_p2 = scmp.eq.s32.totalorder %s5917_s28, 0 }
   0x5   : > { %s7223_s14 = smov [#allocation2]   ;;  %s7224_s17 = smov [#allocation6]  }
   0x6   : > { %p7320_p3 = pnand %p5919_p0, %p334_p1  ;;  %s346_s15 = sshll.u32 %s7223_s14, 4  ;;  %s7326_s15 = int_to_ptr.vmem [resolvable:$true] %s346_s15 }
   0x7   : > { %s7334_s18 = sshll.u32 %s7224_s17, 4  ;;  %s7139_s19 = scalar_lea.vmem %s363_s27, 1024  ;;  %s379_s18 = int_to_ptr.vmem [resolvable:$true] %s7334_s18 }
   0x8   : > { %p6838_p4 = pneg %p7320_p3  ;;  %p7140_p7 = scmp.ne.s32.totalorder %s363_s27, %s7139_s19 }
   0x9   : > { %p7147_p10 = scmp.lt.s32.totalorder %s363_s27, %s363_s27  ;;  %p7148_p11 = scmp.lt.s32.totalorder %s7139_s19, %s7139_s19 }
   0xa   : > { %p7330_p5 = pnand %p7316_p2, %p6838_p4 }
   0xb   : > { %p7149_p12 = por %p7148_p11, %p7147_p10 }
   0xc   : > { %p7130_p6 = pneg %p7330_p5 }
   0xe   : > { %p7142_p8 = pnand %p7140_p7, %p7130_p6 }
  0x10   : > { %p7143_p9 = pneg %p7142_p8 }
  0x12   : > { %p7150_p13 = pnand %p7149_p12, %p7143_p9 }
  0x14   : > { %7153 = shalt.err (!%p7150_p13)
}
  0x15   : > { %s7225_s20 = smov 64   ;;  %s7226_s21 = smov 4  }
  0x16   : > { %6844 = dma.hbm_to_vmem [thread:$0]  (!%p7330_p5), %s8423_s3, 1024, %s363_s27, [#allocation5], %s7225_s20, %s7225_s20, %s7226_s21  }
  0x17   : > { %s7165_s24 = scalar_lea.vmem %s7326_s15, 3072  ;;  %p7173_p7 = scmp.lt.s32.totalorder %s7326_s15, %s7326_s15 }
  0x18   : > { %p7166_p0 = scmp.ne.s32.totalorder %s7326_s15, %s7165_s24  ;;  %p7174_p8 = scmp.lt.s32.totalorder %s7165_s24, %s7165_s24 }
  0x1a   : > { %p7168_p1 = pnand %p7166_p0, %p7130_p6  ;;  %p7175_p9 = por %p7174_p8, %p7173_p7 }
  0x1c   : > { %p7169_p4 = pneg %p7168_p1 }
  0x1e   : > { %p7176_p10 = pnand %p7175_p9, %p7169_p4 }
  0x20   : > { %7179 = shalt.err (!%p7176_p10)
}
  0x21   : > { %s7227_s26 = smov 192   ;;  %s7228_s14 = smov 12  }
  0x22   : > { %6841 = dma.hbm_to_vmem [thread:$0]  (!%p7330_p5), %s8421_s1, 3072, %s7326_s15, [#allocation3], %s7227_s26, %s7227_s26, %s7228_s14  }
  0x23   : > { %s7191_s19 = scalar_lea.vmem %s379_s18, 16384  ;;  %p7199_p0 = scmp.lt.s32.totalorder %s379_s18, %s379_s18 }
  0x24   : > { %p7192_p11 = scmp.ne.s32.totalorder %s379_s18, %s7191_s19  ;;  %p7200_p1 = scmp.lt.s32.totalorder %s7191_s19, %s7191_s19 }
  0x26   : > { %p7194_p12 = pnand %p7192_p11, %p7130_p6  ;;  %p7201_p4 = por %p7200_p1, %p7199_p0 }
  0x28   : > { %p7195_p13 = pneg %p7194_p12 }
  0x2a   : > { %p7202_p7 = pnand %p7201_p4, %p7195_p13 }
  0x2c   : > { %7205 = shalt.err (!%p7202_p7)
}
  0x2d   : > { %s7229_s21 = smov 1024   ;;  %424 = sbr.rel (%p7320_p3) target bundleno = 4508 (0x119c), region = 72 }
  0x2e   : > { %6847 = dma.hbm_to_vmem [thread:$0]  (!%p7330_p5), %s8425_s5, 16384, %s379_s18, [#allocation5], %s7229_s21, %s7229_s21, %s7225_s20  }
  0x32   : > { %7211 = dma.done.wait (%p7316_p2), [#allocation3], 3072  }
  0x33   : > { %7213 = vsyncadd (%p7316_p2), [#allocation3], 4294964224 }
  0x34   : > { %7215 = dma.done.wait (%p7316_p2), [#allocation5], 17408  }
  0x35   : > { %7217 = vsyncadd (%p7316_p2), [#allocation5], 4294949888  ;;  %s5928_s15 = sshll.u32 %s5917_s28, 2  ;;  %v7230_v0 = vmov 0   ;;  %v6876_v1 = vld [vmem:[#allocation2 + $0xac] ss:$12 sps:$4 sm:$0xff]   ;;  %v529_v32 = vlaneseq }
  0x36   : > { %704 = vmatprep.mubr.bf16.mxu0 %v7230_v0  ;;  %p477_p5 = scmp.lt.s32.totalorder %s5928_s15, 7  ;;  %v6878_v2 = vld [vmem:[#allocation2 + $0xa8] ss:$12 sps:$4 sm:$0xff]   ;;  %672 = vmatprep.subr.bf16.mxu0 %v6876_v1  ;;  %v6881_v4 = vld [vmem:[#allocation2 + $0x90] ss:$12 sps:$4 sm:$0xff]   ;;  %v7231_v31 = vmov 0.0  }
  0x37   : > { %v6879_v3 = vld [vmem:[#allocation2 + $0x94] ss:$12 sps:$4 sm:$0xff]   ;;  %673 = vmatpush1.bf16.msra.mxu0 %v6878_v2  ;;  %v6882_v5 = vld [vmem:[#allocation2 + $0x7c] ss:$12 sps:$4 sm:$0xff]   ;;  %v6884_v6 = vld [vmem:[#allocation2 + $0x78] ss:$12 sps:$4 sm:$0xff]  }
  0x38   : > { %s8441_s15 = smov (!%p477_p5, %s5928_s15), 7  ;;  %674 = vmatprep.subr.bf16.mxu0 %v6879_v3  ;;  %v6885_v7 = vld [vmem:[#allocation2 + $0x64] ss:$12 sps:$4 sm:$0xff]   ;;  %v6887_v9 = vld [vmem:[#allocation2 + $0x60] ss:$12 sps:$4 sm:$0xff]   ;;  %vm7232_vm0 = vmmov 0  }
  0x39   : > { %s5929_s29 = sshll.u32 %s8441_s15, 3  ;;  %v6888_v10 = vld [vmem:[#allocation2 + $0x4c] ss:$12 sps:$4 sm:$0xff]   ;;  %v6900_v13 = vld [vmem:[#allocation2 + $0xb0] ss:$12 sps:$4 sm:$0xff]   ;;  %v7406_v33 = vshrl.u32 %v529_v32, 7 }
  0x3a   : > { %s7392_s16 = scalar_lea.vmem %s8420_s0, %s5929_s29  ;;  %v6901_v14 = vld [vmem:[#allocation2 + $0x98] ss:$12 sps:$4 sm:$0xff]   ;;  %v6890_v15 = vld [vmem:[#allocation2 + $0x48] ss:$12 sps:$4 sm:$0xff]   ;;  %6582 = vmatprep.subr.bf16.mxu1 %v6900_v13  ;;  %v6902_v17 = vld [vmem:[#allocation2 + $0x80] ss:$12 sps:$4 sm:$0xff]  }
  0x3b   : > { %675 = vmatpush1.bf16.msra.mxu0 %v6881_v4  ;;  %v489_v8 = vld [vmem:[%s7392_s16] sm:$0xff]  ;;  %v490_v11 = vld [vmem:[%s7392_s16 + $0x8] sm:$0xff]  ;;  %6583 = vmatpush3.bf16.msra.mxu1 %v6900_v13  ;;  %v6893_v18 = vld [vmem:[#allocation2 + $0x30] ss:$12 sps:$4 sm:$0xff]   ;;  %v7409_v34 = vsub.s32 1, %v7406_v33  ;;  %v7416_v38 = vsub.s32 0, %v7406_v33 }
  0x3c   : > { %676 = vmatprep.subr.bf16.mxu0 %v6882_v5  ;;  %v493_v12 = vpack.c.bf16 %v490_v11, %v489_v8  ;;  %v6891_v16 = vld [vmem:[#allocation2 + $0x34] ss:$12 sps:$4 sm:$0xff]   ;;  %6584 = vmatprep.subr.bf16.mxu1 %v6901_v14  ;;  %v6894_v19 = vld [vmem:[#allocation2 + $0x1c] ss:$12 sps:$4 sm:$0xff]   ;;  %v6896_v21 = vld [vmem:[#allocation2 + $0x18] ss:$12 sps:$4 sm:$0xff]  }
  0x3d   : > { %v6903_v20 = vld [vmem:[#allocation2 + $0x68] ss:$12 sps:$4 sm:$0xff]   ;;  %v6897_v22 = vld [vmem:[#allocation2 + $0x4] ss:$12 sps:$4 sm:$0xff]   ;;  %v6899_v24 = vld [vmem:[#allocation2] ss:$12 sps:$4 sm:$0xff]  }
  0x3e   : > { %6598 = vmatprep.mubr.bf16.mxu1 %v493_v12  ;;  %v6904_v23 = vld [vmem:[#allocation2 + $0x50] ss:$12 sps:$4 sm:$0xff]   ;;  %v6905_v25 = vld [vmem:[#allocation2 + $0x38] ss:$12 sps:$4 sm:$0xff]   ;;  %v6906_v26 = vld [vmem:[#allocation2 + $0x20] ss:$12 sps:$4 sm:$0xff]  }
  0x3f   : > { %677 = vmatpush1.bf16.msra.mxu0 %v6884_v6  ;;  %6585 = vmatpush3.bf16.msra.mxu1 %v6901_v14  ;;  %v491_v27 = vld [vmem:[%s7392_s16 + $0x10] sm:$0xff]  ;;  %v492_v28 = vld [vmem:[%s7392_s16 + $0x18] sm:$0xff]  ;;  %v527_v35 = vld [vmem:[%s8422_s2] sm:$0x7]  ;;  %vm797_vm1 = vcmask 261120   ;;  %v7464_v4 = vsub.s32 2, %v7406_v33 }
  0x40   : > { %678 = vmatprep.subr.bf16.mxu0 %v6885_v7  ;;  %6586 = vmatprep.subr.bf16.mxu1 %v6902_v17  ;;  %v494_v29 = vpack.c.bf16 %v492_v28, %v491_v27  ;;  %v6907_v30 = vld [vmem:[#allocation2 + $0x8] ss:$12 sps:$4 sm:$0xff]   ;;  %v536_v36 = vrot.slane %v527_v35, %v7409_v34  ;;  %v532_v42 = vrot.slane %v527_v35, %v7416_v38  ;;  %vm1042_vm2 = vcmask 1043456   ;;  %s7233_s24 = smov 96   ;;  %s7234_s26 = smov 64  }
  0x41   : > { %v540_v5 = vrot.slane %v527_v35, %v7464_v4  ;;  %vm990_vm4 = vcmask 64512   ;;  %s7235_s17 = smov 32  }
  0x43   : > { %679 = vmatpush1.bf16.msra.mxu0 %v6887_v9  ;;  %6587 = vmatpush3.bf16.msra.mxu1 %v6902_v17 }
  0x44   : > { %680 = vmatprep.subr.bf16.mxu0 %v6888_v10  ;;  %6588 = vmatprep.subr.bf16.mxu1 %v6903_v20 }
  0x47   : > { %681 = vmatpush1.bf16.msra.mxu0 %v6890_v15  ;;  %6589 = vmatpush3.bf16.msra.mxu1 %v6903_v20 }
  0x48   : > { %682 = vmatprep.subr.bf16.mxu0 %v6891_v16  ;;  %6590 = vmatprep.subr.bf16.mxu1 %v6904_v23 }
  0x4b   : > { %683 = vmatpush1.bf16.msra.mxu0 %v6893_v18  ;;  %6591 = vmatpush3.bf16.msra.mxu1 %v6904_v23  ;;  %v7482_v18 = vand.u32 127, %v529_v32 }
  0x4c   : > { %684 = vmatprep.subr.bf16.mxu0 %v6894_v19  ;;  %6592 = vmatprep.subr.bf16.mxu1 %v6905_v25 }
  0x4d   : > { %vm776_vm3 = vcmp.lt.s32.totalorder %v7482_v18, 2 }
  0x4f   : > { %685 = vmatpush1.bf16.msra.mxu0 %v6896_v21  ;;  %6593 = vmatpush3.bf16.msra.mxu1 %v6905_v25 }
  0x50   : > { %686 = vmatprep.subr.bf16.mxu0 %v6897_v22  ;;  %6594 = vmatprep.subr.bf16.mxu1 %v6906_v26 }
  0x53   : > { %687 = vmatpush1.bf16.msra.mxu0 %v6899_v24  ;;  %6595 = vmatpush3.bf16.msra.mxu1 %v6906_v26 }
  0x54   : > { %6596 = vmatprep.subr.bf16.mxu1 %v6907_v30  ;;  %6608 = vmatprep.subr.bf16.mxu0 %v7231_v31 }
  0x56   : > { %705 = vmatmul.mubr.bf16.vlgmr.msra.gmra.mxu0 %v493_v12 }
  0x57   : > { %714 = vmatprep.mubr.bf16.mxu0 %v7230_v0  ;;  %6597 = vmatpush3.bf16.msra.mxu1 %v6907_v30 }
  0x58   : > { %6602 = vmatprep.subr.bf16.mxu1 %v7231_v31 }
  0x5a   : > { %6599 = vmatmul.mubr.bf16.vlgmr.msra.gmra.mxu1 %v494_v29 }
  0x5b   : > { %6604 = vmatprep.mubr.msk.bf16.mxu1 %vm7232_vm0, %v7231_v31 }
  0x5e   : > { %715 = vmatmul.mubr.bf16.gmra.mxu0 %v494_v29 }
  0x5f   : > { %6610 = vmatprep.mubr.msk.bf16.mxu0 %vm7232_vm0, %v7231_v31 }
 0x116   : > { %v706_v37 = vpop.f32.mrf.mxu0 }
 0x117   : > { %v707_v48 = vadd.f32 %v706_v37, %v532_v42 }
 0x118   : > { %v708_v39 = vpop.f32.mrf.mxu0 }
 0x119   : > { %v709_v40 = vadd.f32 %v708_v39, %v536_v36  ;;  %v7428_v54 = vpack.c.bf16 %v707_v48, %v707_v48 }
 0x11a   : > { %v710_v41 = vpop.f32.mrf.mxu0  ;;  %v6600_v6 = vpop.f32.mrf.mxu1 }
 0x11b   : > { %v7419_v43 = vpack.c.bf16 %v709_v40, %v709_v40  ;;  %v711_v55 = vadd.f32 %v710_v41, %v532_v42  ;;  %v7467_v7 = vadd.f32 %v6600_v6, %v540_v5 }
 0x11c   : > { %v712_v44 = vpop.f32.mrf.mxu0  ;;  %v759_v8 = vpop.f32.mrf.mxu1 }
 0x11d   : > { %v713_v45 = vadd.f32 %v712_v44, %v536_v36  ;;  %v802_v46 = vsel %vm797_vm1, %v7419_v43, 0  ;;  %v7439_v60 = vpack.c.bf16 %v711_v55, %v711_v55  ;;  %v760_v9 = vadd.f32 %v759_v8, %v540_v5 }
 0x11e   : > { %v716_v47 = vpop.f32.mrf.mxu0  ;;  %6603 = vmatpush3.bf16.xpose.msra.mxu1 %v802_v46  ;;  %v6601_v10 = vpop.f32.mrf.mxu1 }
 0x11f   : > { %v7423_v49 = vpack.c.bf16 %v713_v45, %v713_v45  ;;  %6614 = vmatprep.subr.bf16.mxu1 %v7231_v31  ;;  %v717_v61 = vadd.f32 %v716_v47, %v532_v42  ;;  %v7469_v11 = vadd.f32 %v6601_v10, %v540_v5  ;;  %v7471_v13 = vpack.c.bf16 %v760_v9, %v760_v9 }
 0x120   : > { %v718_v50 = vpop.f32.mrf.mxu0  ;;  %v762_v12 = vpop.f32.mrf.mxu1 }
 0x121   : > { %v719_v51 = vadd.f32 %v718_v50, %v536_v36  ;;  %v848_v52 = vsel %vm797_vm1, %v7423_v49, 0  ;;  %v7450_v1 = vpack.c.bf16 %v717_v61, %v717_v61  ;;  %v763_v14 = vadd.f32 %v762_v12, %v540_v5 }
 0x122   : > { %v720_v53 = vpop.f32.mrf.mxu0  ;;  %6609 = vmatpush3.bf16.xpose.msra.mxu0 %v848_v52  ;;  %v1044_v16 = vsel %vm1042_vm2, %v7471_v13, 0 }
 0x123   : > { %v7430_v56 = vpack.c.bf16 %v719_v51, %v719_v51  ;;  %6620 = vmatprep.subr.bf16.mxu0 %v7231_v31  ;;  %v721_v2 = vadd.f32 %v720_v53, %v532_v42  ;;  %v7473_v15 = vpack.c.bf16 %v763_v14, %v763_v14 }
 0x124   : > { %v722_v57 = vpop.f32.mrf.mxu0 }
 0x125   : > { %v723_v58 = vadd.f32 %v722_v57, %v536_v36  ;;  %6605 = vmatmul.mubr.msk.bf16.vlgmr.msra.gmra.mxu1 %vm797_vm1, %v7428_v54  ;;  %v894_v59 = vsel %vm797_vm1, %v7430_v56, 0  ;;  %v7457_v3 = vpack.c.bf16 %v721_v2, %v721_v2  ;;  %v1090_v17 = vsel %vm1042_vm2, %v7473_v15, 0 }
 0x126   : > { %6615 = vmatpush3.bf16.xpose.msra.mxu1 %v894_v59  ;;  %6616 = vmatprep.mubr.msk.bf16.mxu1 %vm7232_vm0, %v7231_v31 }
 0x127   : > { %v7441_v62 = vpack.c.bf16 %v723_v58, %v723_v58  ;;  %6626 = vmatprep.subr.bf16.mxu1 %v7231_v31 }
 0x129   : > { %6611 = vmatmul.mubr.msk.bf16.vlgmr.msra.gmra.mxu0 %vm797_vm1, %v7439_v60  ;;  %v940_v63 = vsel %vm797_vm1, %v7441_v62, 0 }
 0x12a   : > { %6621 = vmatpush3.bf16.xpose.msra.mxu0 %v940_v63  ;;  %6622 = vmatprep.mubr.msk.bf16.mxu0 %vm7232_vm0, %v7231_v31 }
 0x12b   : > { %6632 = vmatprep.subr.bf16.mxu0 %v7231_v31 }
 0x12d   : > { %6617 = vmatmul.mubr.msk.bf16.vlgmr.msra.gmra.mxu1 %vm797_vm1, %v7450_v1 }
 0x12e   : > { %6628 = vmatprep.mubr.msk.bf16.mxu1 %vm7232_vm0, %v7231_v31  ;;  %6627 = vmatpush3.bf16.msra.mxu1 %v1044_v16 }
 0x12f   : > { %6638 = vmatprep.subr.bf16.mxu1 %v7231_v31 }
 0x131   : > { %6623 = vmatmul.mubr.msk.bf16.vlgmr.msra.gmra.mxu0 %vm797_vm1, %v7457_v3 }
 0x132   : > { %6634 = vmatprep.mubr.msk.bf16.mxu0 %vm7232_vm0, %v7231_v31  ;;  %6633 = vmatpush3.bf16.msra.mxu0 %v1090_v17 }
 0x133   : > { %6644 = vmatprep.subr.bf16.mxu0 %v7231_v31 }
 0x1e5   : > { %v838_v19 = vpop.f32.mrf.mxu1 }
 0x1e6   : > { %v982_v20 = vmul.f32 0.17677669, %v838_v19 }
 0x1e7   : > { %v6606_v21 = vpop.f32.mrf.mxu1 }
 0x1e8   : > { %v986_v22 = vsel %vm776_vm3, %v982_v20, -1e+30 }
 0x1e9   : > { %v841_v23 = vpop.f32.mrf.mxu1  ;;  %v884_v24 = vpop.f32.mrf.mxu0  ;;  %v991_v25 = vsel %vm990_vm4, %v986_v22, -inf }
 0x1ea   : > { %v983_v26 = vmul.f32 0.17677669, %v884_v24  ;;  %992 = vmax.xlane.f32.xlu0 %v991_v25 }
 0x1eb   : > { %v6607_v27 = vpop.f32.mrf.mxu1  ;;  %v6612_v28 = vpop.f32.mrf.mxu0 }
 0x1ec   : > { %v987_v29 = vsel %vm776_vm3, %v983_v26, -1e+30  ;;  %v7519_v27 = vpack.c.bf16 %v7467_v7, %v7467_v7 }
 0x1ed   : > { %v887_v30 = vpop.f32.mrf.mxu0  ;;  %v930_v32 = vpop.f32.mrf.mxu1  ;;  %v994_v35 = vsel %vm990_vm4, %v987_v29, -inf }
 0x1ee   : > { %v984_v36 = vmul.f32 0.17677669, %v930_v32  ;;  %995 = vmax.xlane.f32.xlu0 %v994_v35  ;;  %v7523_v32 = vpack.c.bf16 %v7469_v11, %v7469_v11  ;;  %v1136_v35 = vsel %vm1042_vm2, %v7519_v27, 0 }
 0x1ef   : > { %v6613_v37 = vpop.f32.mrf.mxu0  ;;  %v6618_v39 = vpop.f32.mrf.mxu1 }
 0x1f0   : > { %v988_v40 = vsel %vm776_vm3, %v984_v36, -1e+30  ;;  %v1182_v39 = vsel %vm1042_vm2, %v7523_v32, 0 }
 0x1f1   : > { %v933_v41 = vpop.f32.mrf.mxu1  ;;  %v976_v42 = vpop.f32.mrf.mxu0  ;;  %v997_v44 = vsel %vm990_vm4, %v988_v40, -inf }
 0x1f2   : > { %v985_v45 = vmul.f32 0.17677669, %v976_v42  ;;  %998 = vmax.xlane.f32.xlu1 %v997_v44 }
 0x1f3   : > { %v6619_v46 = vpop.f32.mrf.mxu1  ;;  %v6624_v47 = vpop.f32.mrf.mxu0 }
 0x1f4   : > { %v989_v48 = vsel %vm776_vm3, %v985_v45, -1e+30 }
 0x1f5   : > { %v979_v50 = vpop.f32.mrf.mxu0  ;;  %v1000_v51 = vsel %vm990_vm4, %v989_v48, -inf }
 0x1f6   : > { %1001 = vmax.xlane.f32.xlu1 %v1000_v51 }
 0x1f7   : > { %v6625_v52 = vpop.f32.mrf.mxu0 }
 0x273   : > { %v993_v53 = vpop.xlane.xlu0 %992 }
 0x274   : > { %v1003_v55 = vsub.f32 %v986_v22, %v993_v53  ;;  %v6908_v53 = vld [vmem:[#allocation4 + $0x8] sm:$0xff]  }
 0x276   : > { %v1007_v57 = vmul.f32 1.442695, %v1003_v55  ;;  %v6909_v55 = vld [vmem:[#allocation4] sm:$0xff]  }
 0x277   : > { %v996_v58 = vpop.xlane.xlu0 %995 }
 0x278   : > { %7044 = vpow2.f32 %v1007_v57  ;;  %v1004_v59 = vsub.f32 %v987_v29, %v996_v58 }
 0x27a   : > { %v1009_v61 = vmul.f32 1.442695, %v1004_v59 }
 0x27b   : > { %v999_v63 = vpop.xlane.xlu1 %998 }
 0x27c   : > { %7046 = vpow2.f32 %v1009_v61  ;;  %v1005_v2 = vsub.f32 %v988_v40, %v999_v63 }
 0x27e   : > { %v1011_v5 = vmul.f32 1.442695, %v1005_v2 }
 0x27f   : > { %v1002_v6 = vpop.xlane.xlu1 %1001 }
 0x280   : > { %7048 = vpow2.f32 %v1011_v5  ;;  %v1006_v8 = vsub.f32 %v989_v48, %v1002_v6 }
 0x282   : > { %v1013_v9 = vmul.f32 1.442695, %v1006_v8 }
 0x284   : > { %7050 = vpow2.f32 %v1013_v9 }
 0x285   : > { %v7045_v10 = vpop.eup %7044 }
 0x286   : > { %v1015_v12 = vsel %vm990_vm4, %v7045_v10, 0.0 }
 0x287   : > { %1016 = vadd.xlane.f32.xlu0 %v1015_v12 }
 0x289   : > { %v7047_v14 = vpop.eup %7046 }
 0x28a   : > { %v1018_v16 = vsel %vm990_vm4, %v7047_v14, 0.0 }
 0x28b   : > { %1019 = vadd.xlane.f32.xlu1 %v1018_v16 }
 0x28d   : > { %v7049_v17 = vpop.eup %7048 }
 0x28e   : > { %v1021_v19 = vsel %vm990_vm4, %v7049_v17, 0.0 }
 0x28f   : > { %1022 = vadd.xlane.f32.xlu0 %v1021_v19 }
 0x291   : > { %v7051_v20 = vpop.eup %7050 }
 0x292   : > { %v1024_v21 = vsel %vm990_vm4, %v7051_v20, 0.0 }
 0x293   : > { %1025 = vadd.xlane.f32.xlu1 %v1024_v21 }
 0x2a4   : > { %1357 = vrot.lane.b32.xlu1 %v7423_v49, %s7233_s24 }
 0x2a5   : > { %1305 = vrot.lane.b32.xlu0 %v7419_v43, %s7233_s24 }
 0x2a8   : > { %1302 = vrot.lane.b32.xlu1 %v7428_v54, %s7233_s24 }
 0x2a9   : > { %1409 = vrot.lane.b32.xlu0 %v7430_v56, %s7233_s24 }
 0x2ac   : > { %1354 = vrot.lane.b32.xlu1 %v7439_v60, %s7233_s24 }
 0x2ad   : > { %1406 = vrot.lane.b32.xlu0 %v7450_v1, %s7233_s24 }
 0x2b0   : > { %1461 = vrot.lane.b32.xlu1 %v7441_v62, %s7233_s24 }
 0x2b4   : > { %1458 = vrot.lane.b32.xlu1 %v7457_v3, %s7233_s24 }
 0x310   : > { %v1017_v22 = vpop.xlane.xlu0 %1016 }
 0x311   : > { %7052 = vrcp.f32 %v1017_v22 }
 0x314   : > { %v1020_v23 = vpop.xlane.xlu1 %1019 }
 0x315   : > { %7054 = vrcp.f32 %v1020_v23 }
 0x318   : > { %v1023_v24 = vpop.xlane.xlu0 %1022 }
 0x319   : > { %7056 = vrcp.f32 %v1023_v24 }
 0x31c   : > { %v1026_v25 = vpop.xlane.xlu1 %1025  ;;  %v1306_v44 = vpop.permute.xlu0 %1305 }
 0x31d   : > { %7058 = vrcp.f32 %v1026_v25  ;;  %v1311_v46 = vsel %vm797_vm1, %v1306_v44, 0 }
 0x31e   : > { %v7053_v26 = vpop.eup %7052 }
 0x31f   : > { %v1028_v28 = vmul.f32 %v7053_v26, %v7045_v10 }
 0x320   : > { %v1358_v47 = vpop.permute.xlu1 %1357  ;;  %v1410_v48 = vpop.permute.xlu0 %1409 }
 0x321   : > { %v1035_v29 = vpack.c.bf16 %v1028_v28, %v1028_v28  ;;  %v1415_v51 = vsel %vm797_vm1, %v1410_v48, 0  ;;  %v1363_v21 = vsel %vm797_vm1, %v1358_v47, 0 }
 0x322   : > { %v7055_v30 = vpop.eup %7054 }
 0x323   : > { %6629 = vmatmul.mubr.msk.bf16.vlgmr.msra.gmra.mxu1 %vm990_vm4, %v1035_v29  ;;  %v1030_v36 = vmul.f32 %v7055_v30, %v7047_v14 }
 0x324   : > { %6639 = vmatpush3.bf16.msra.mxu1 %v1136_v35  ;;  %6640 = vmatprep.mubr.msk.bf16.mxu1 %vm7232_vm0, %v7231_v31  ;;  %v1303_v50 = vpop.permute.xlu1 %1302  ;;  %v1407_v52 = vpop.permute.xlu0 %1406 }
 0x325   : > { %v1036_v37 = vpack.c.bf16 %v1030_v36, %v1030_v36  ;;  %6650 = vmatprep.subr.bf16.mxu1 %v6908_v53 }
 0x326   : > { %v7057_v7 = vpop.eup %7056 }
 0x327   : > { %6635 = vmatmul.mubr.msk.bf16.vlgmr.msra.gmra.mxu0 %vm990_vm4, %v1036_v37  ;;  %v1032_v40 = vmul.f32 %v7057_v7, %v7049_v17 }
 0x328   : > { %6645 = vmatpush3.bf16.msra.mxu0 %v1182_v39  ;;  %6646 = vmatprep.mubr.msk.bf16.mxu0 %vm7232_vm0, %v7231_v31  ;;  %v1355_v16 = vpop.permute.xlu1 %1354 }
 0x329   : > { %v1037_v11 = vpack.c.bf16 %v1032_v40, %v1032_v40  ;;  %6658 = vmatprep.subr.bf16.mxu0 %v7231_v31 }
 0x32a   : > { %v7059_v41 = vpop.eup %7058 }
 0x32b   : > { %6641 = vmatmul.mubr.msk.bf16.vlgmr.msra.gmra.mxu1 %vm990_vm4, %v1037_v11  ;;  %v1034_v42 = vmul.f32 %v7059_v41, %v7051_v20 }
 0x32c   : > { %6651 = vmatpush3.bf16.msra.mxu1 %v6908_v53  ;;  %v1462_v24 = vpop.permute.xlu1 %1461 }
 0x32d   : > { %v1038_v45 = vpack.c.bf16 %v1034_v42, %v1034_v42  ;;  %6652 = vmatprep.subr.bf16.mxu1 %v6909_v55  ;;  %v1467_v29 = vsel %vm797_vm1, %v1462_v24, 0 }
 0x32f   : > { %6647 = vmatmul.mubr.msk.bf16.vlgmr.msra.gmra.mxu0 %vm990_vm4, %v1038_v45 }
 0x330   : > { %6659 = vmatpush3.bf16.xpose.msra.mxu0 %v1311_v46  ;;  %6660 = vmatprep.mubr.msk.bf16.mxu0 %vm7232_vm0, %v7231_v31  ;;  %v1459_v40 = vpop.permute.xlu1 %1458 }
 0x331   : > { %6670 = vmatprep.subr.bf16.mxu0 %v7231_v31  ;;  %6653 = vmatpush3.bf16.msra.mxu1 %v6909_v55 }
 0x332   : > { %6664 = vmatprep.subr.bf16.mxu1 %v7231_v31 }
 0x337   : > { %6661 = vmatmul.mubr.msk.bf16.vlgmr.msra.gmra.mxu0 %vm797_vm1, %v1303_v50 }
 0x338   : > { %6671 = vmatpush3.bf16.xpose.msra.mxu0 %v1415_v51  ;;  %6672 = vmatprep.mubr.msk.bf16.mxu0 %vm7232_vm0, %v7231_v31 }
 0x339   : > { %6682 = vmatprep.subr.bf16.mxu0 %v7231_v31 }
 0x33f   : > { %6673 = vmatmul.mubr.msk.bf16.vlgmr.msra.gmra.mxu0 %vm797_vm1, %v1407_v52 }
 0x340   : > { %6684 = vmatprep.mubr.msk.bf16.mxu0 %vm7232_vm0, %v7231_v31 }
 0x3e3   : > { %v1080_v57 = vpop.f32.mrf.mxu1 }
 0x3e5   : > { %v6630_v58 = vpop.f32.mrf.mxu1 }
 0x3e7   : > { %v1083_v59 = vpop.f32.mrf.mxu1  ;;  %v1126_v61 = vpop.f32.mrf.mxu0 }
 0x3e8   : > { %v1224_v63 = vpack.c.bf16 %v1126_v61, %v1080_v57 }
 0x3e9   : > { %v6631_v2 = vpop.f32.mrf.mxu1  ;;  %v6636_v5 = vpop.f32.mrf.mxu0 }
 0x3ea   : > { %6654 = vmatprep.mubr.msk.bf16.mxu1 %vm797_vm1, %v1224_v63 }
 0x3eb   : > { %v1129_v6 = vpop.f32.mrf.mxu0  ;;  %v1172_v8 = vpop.f32.mrf.mxu1 }
 0x3ed   : > { %v6637_v9 = vpop.f32.mrf.mxu0  ;;  %v6642_v10 = vpop.f32.mrf.mxu1 }
 0x3ef   : > { %v1175_v12 = vpop.f32.mrf.mxu1  ;;  %v1218_v14 = vpop.f32.mrf.mxu0 }
 0x3f0   : > { %v1225_v17 = vpack.c.bf16 %v1218_v14, %v1172_v8 }
 0x3f1   : > { %v6643_v19 = vpop.f32.mrf.mxu1  ;;  %v6648_v20 = vpop.f32.mrf.mxu0 }
 0x3f2   : > { %6655 = vmatmul.mubr.msk.bf16.vlgmr.msra.gmra.mxu1 %vm797_vm1, %v1225_v17 }
 0x3f3   : > { %6665 = vmatpush3.bf16.xpose.msra.mxu1 %v1363_v21  ;;  %v1221_v22 = vpop.f32.mrf.mxu0  ;;  %6666 = vmatprep.mubr.msk.bf16.mxu1 %vm7232_vm0, %v7231_v31 }
 0x3f4   : > { %6676 = vmatprep.subr.bf16.mxu1 %v7231_v31 }
 0x3f5   : > { %v6649_v23 = vpop.f32.mrf.mxu0 }
 0x3f7   : > { %v1347_v25 = vpop.f32.mrf.mxu0 }
 0x3f8   : > { %v1509_v26 = vmul.f32 0.17677669, %v1347_v25 }
 0x3f9   : > { %v6662_v28 = vpop.f32.mrf.mxu0 }
 0x3fa   : > { %6667 = vmatmul.mubr.msk.bf16.vlgmr.msra.gmra.mxu1 %vm797_vm1, %v1355_v16  ;;  %v1513_v30 = vsel %vm776_vm3, %v1509_v26, -1e+30 }
 0x3fb   : > { %6677 = vmatpush3.bf16.xpose.msra.mxu1 %v1467_v29  ;;  %v1350_v35 = vpop.f32.mrf.mxu0  ;;  %v1517_v36 = vsel %vm990_vm4, %v1513_v30, -inf  ;;  %6678 = vmatprep.mubr.msk.bf16.mxu1 %vm7232_vm0, %v7231_v31 }
 0x3fc   : > { %1518 = vmax.xlane.f32.xlu0 %v1517_v36  ;;  %6688 = vmatprep.subr.bf16.mxu1 %v7231_v31 }
 0x3fd   : > { %v6663_v37 = vpop.f32.mrf.mxu0 }
 0x3ff   : > { %v1451_v7 = vpop.f32.mrf.mxu0 }
 0x400   : > { %v1511_v39 = vmul.f32 0.17677669, %v1451_v7 }
 0x401   : > { %v6674_v11 = vpop.f32.mrf.mxu0 }
 0x402   : > { %6679 = vmatmul.mubr.msk.bf16.vlgmr.msra.gmra.mxu1 %vm797_vm1, %v1459_v40  ;;  %v1515_v41 = vsel %vm776_vm3, %v1511_v39, -1e+30 }
 0x403   : > { %v1454_v42 = vpop.f32.mrf.mxu0  ;;  %v1523_v44 = vsel %vm990_vm4, %v1515_v41, -inf  ;;  %6690 = vmatprep.mubr.msk.bf16.mxu1 %vm7232_vm0, %v7231_v31 }
 0x404   : > { %1524 = vmax.xlane.f32.xlu0 %v1523_v44 }
 0x405   : > { %v6675_v45 = vpop.f32.mrf.mxu0 }
 0x485   : > { %v1519_v46 = vpop.xlane.xlu0 %1518 }
 0x486   : > { %v1529_v47 = vsub.f32 %v1513_v30, %v1519_v46 }
 0x488   : > { %v1533_v52 = vmul.f32 1.442695, %v1529_v47 }
 0x48a   : > { %7060 = vpow2.f32 %v1533_v52 }
 0x48d   : > { %v1525_v50 = vpop.xlane.xlu0 %1524 }
 0x48e   : > { %v1531_v53 = vsub.f32 %v1515_v41, %v1525_v50 }
 0x490   : > { %v1537_v58 = vmul.f32 1.442695, %v1531_v53 }
 0x492   : > { %7062 = vpow2.f32 %v1537_v58 }
 0x497   : > { %v7061_v19 = vpop.eup %7060 }
 0x498   : > { %v1541_v21 = vsel %vm990_vm4, %v7061_v19, 0.0 }
 0x49f   : > { %v7063_v22 = vpop.eup %7062 }
 0x4a0   : > { %v1547_v23 = vsel %vm990_vm4, %v7063_v22, 0.0 }
 0x4b2   : > { %v7571_v48 = vpop.f32.mrf.mxu1 }
 0x4b4   : > { %v7573_v51 = vpop.f32.mrf.mxu1 }
 0x4b6   : > { %v7575_v55 = vpop.f32.mrf.mxu1 }
 0x4b8   : > { %v7577_v57 = vpop.f32.mrf.mxu1 }
 0x4ba   : > { %v1399_v59 = vpop.f32.mrf.mxu1 }
 0x4bb   : > { %v1510_v61 = vmul.f32 0.17677669, %v1399_v59 }
 0x4bc   : > { %v6668_v63 = vpop.f32.mrf.mxu1 }
 0x4bd   : > { %v1514_v2 = vsel %vm776_vm3, %v1510_v61, -1e+30 }
 0x4be   : > { %v1402_v5 = vpop.f32.mrf.mxu1  ;;  %v1520_v6 = vsel %vm990_vm4, %v1514_v2, -inf }
 0x4bf   : > { %1521 = vmax.xlane.f32.xlu1 %v1520_v6 }
 0x4c0   : > { %v6669_v8 = vpop.f32.mrf.mxu1 }
 0x4c2   : > { %v1503_v9 = vpop.f32.mrf.mxu1 }
 0x4c3   : > { %v1512_v10 = vmul.f32 0.17677669, %v1503_v9 }
 0x4c4   : > { %v6680_v12 = vpop.f32.mrf.mxu1 }
 0x4c5   : > { %v1516_v14 = vsel %vm776_vm3, %v1512_v10, -1e+30 }
 0x4c6   : > { %v1506_v16 = vpop.f32.mrf.mxu1  ;;  %v1526_v17 = vsel %vm990_vm4, %v1516_v14, -inf }
 0x4c7   : > { %1527 = vmax.xlane.f32.xlu0 %v1526_v17 }
 0x4c8   : > { %v6681_v20 = vpop.f32.mrf.mxu1 }
 0x4cb   : > { %1542 = vadd.xlane.f32.xlu0 %v1541_v21 }
 0x4cf   : > { %1548 = vadd.xlane.f32.xlu0 %v1547_v23 }
 0x4d0   : > { %1615 = vrot.lane.b32.xlu1 %v7473_v15, %s7233_s24 }
 0x4d4   : > { %1664 = vrot.lane.b32.xlu1 %v7519_v27, %s7233_s24 }
 0x4e5   : > { %1566 = vrot.lane.b32.xlu0 %v7471_v13, %s7233_s24 }
 0x4e9   : > { %1840 = vrot.lane.b32.xlu0 %v7419_v43, %s7234_s26 }
 0x4ed   : > { %1838 = vrot.lane.b32.xlu0 %v7428_v54, %s7234_s26 }
 0x4f1   : > { %1940 = vrot.lane.b32.xlu0 %v7430_v56, %s7234_s26 }
 0x4f5   : > { %1938 = vrot.lane.b32.xlu0 %v7450_v1, %s7234_s26 }
 0x548   : > { %v1522_v24 = vpop.xlane.xlu1 %1521 }
 0x549   : > { %v1530_v25 = vsub.f32 %v1514_v2, %v1522_v24 }
 0x54b   : > { %v1535_v26 = vmul.f32 1.442695, %v1530_v25 }
 0x54c   : > { %v1616_v28 = vpop.permute.xlu1 %1615 }
 0x54d   : > { %7064 = vpow2.f32 %v1535_v26  ;;  %v1621_v29 = vsel %vm1042_vm2, %v1616_v28, 0 }
 0x54e   : > { %6689 = vmatpush3.bf16.msra.mxu1 %v1621_v29 }
 0x54f   : > { %6700 = vmatprep.subr.bf16.mxu1 %v7231_v31 }
 0x550   : > { %v1528_v30 = vpop.xlane.xlu0 %1527  ;;  %v1665_v47 = vpop.permute.xlu1 %1664 }
 0x551   : > { %v1532_v35 = vsub.f32 %v1516_v14, %v1528_v30  ;;  %v1670_v53 = vsel %vm1042_vm2, %v1665_v47, 0 }
 0x553   : > { %v1539_v36 = vmul.f32 1.442695, %v1532_v35 }
 0x554   : > { %v1543_v37 = vpop.xlane.xlu0 %1542 }
 0x555   : > { %7066 = vpow2.f32 %v1539_v36  ;;  %v6910_v36 = vld [vmem:[#allocation4 + $0x18] sm:$0xff]  }
 0x556   : > { %7068 = vrcp.f32 %v1543_v37  ;;  %v6911_v37 = vld [vmem:[#allocation4 + $0x10] sm:$0xff]  }
 0x558   : > { %v1549_v7 = vpop.xlane.xlu0 %1548 }
 0x559   : > { %7070 = vrcp.f32 %v1549_v7 }
 0x55a   : > { %v7065_v39 = vpop.eup %7064 }
 0x55b   : > { %v1544_v40 = vsel %vm990_vm4, %v7065_v39, 0.0 }
 0x55c   : > { %1545 = vadd.xlane.f32.xlu1 %v1544_v40  ;;  %v1567_v11 = vpop.permute.xlu0 %1566 }
 0x55d   : > { %v1572_v41 = vsel %vm1042_vm2, %v1567_v11, 0 }
 0x55e   : > { %6683 = vmatpush3.bf16.msra.mxu0 %v1572_v41 }
 0x55f   : > { %6694 = vmatprep.subr.bf16.mxu0 %v7231_v31 }
 0x560   : > { %v1841_v10 = vpop.permute.xlu0 %1840 }
 0x562   : > { %v7067_v42 = vpop.eup %7066 }
 0x563   : > { %v7069_v44 = vpop.eup %7068  ;;  %v1550_v45 = vsel %vm990_vm4, %v7067_v42, 0.0 }
 0x564   : > { %1551 = vadd.xlane.f32.xlu1 %v1550_v45  ;;  %v1554_v46 = vmul.f32 %v7069_v44, %v7061_v19  ;;  %v1839_v17 = vpop.permute.xlu0 %1838  ;;  %v1846_v19 = vsel %vm797_vm1, %v1841_v10, 0 }
 0x566   : > { %v1561_v50 = vpack.c.bf16 %v1554_v46, %v1554_v46  ;;  %v7071_v52 = vpop.eup %7070 }
 0x567   : > { %v1558_v58 = vmul.f32 %v7071_v52, %v7063_v22 }
 0x568   : > { %6685 = vmatmul.mubr.msk.bf16.vlgmr.msra.gmra.mxu0 %vm990_vm4, %v1561_v50  ;;  %v1941_v20 = vpop.permute.xlu0 %1940 }
 0x569   : > { %6695 = vmatpush3.bf16.msra.mxu0 %v1670_v53  ;;  %6696 = vmatprep.mubr.msk.bf16.mxu0 %vm7232_vm0, %v7231_v31  ;;  %v1563_v59 = vpack.c.bf16 %v1558_v58, %v1558_v58  ;;  %v1946_v21 = vsel %vm797_vm1, %v1941_v20, 0 }
 0x56a   : > { %6706 = vmatprep.subr.bf16.mxu0 %v6910_v36 }
 0x56c   : > { %v1939_v22 = vpop.permute.xlu0 %1938 }
 0x570   : > { %6697 = vmatmul.mubr.msk.bf16.vlgmr.msra.gmra.mxu0 %vm990_vm4, %v1563_v59 }
 0x571   : > { %6707 = vmatpush3.bf16.msra.mxu0 %v6910_v36 }
 0x572   : > { %6708 = vmatprep.subr.bf16.mxu0 %v6911_v37 }
 0x575   : > { %1713 = vrot.lane.b32.xlu1 %v7523_v32, %s7233_s24  ;;  %6709 = vmatpush3.bf16.msra.mxu0 %v6911_v37 }
 0x576   : > { %6720 = vmatprep.subr.bf16.mxu0 %v7231_v31 }
 0x579   : > { %1890 = vrot.lane.b32.xlu1 %v7423_v49, %s7234_s26 }
 0x57d   : > { %1888 = vrot.lane.b32.xlu1 %v7439_v60, %s7234_s26 }
 0x581   : > { %1990 = vrot.lane.b32.xlu1 %v7441_v62, %s7234_s26 }
 0x585   : > { %1988 = vrot.lane.b32.xlu1 %v7457_v3, %s7234_s26 }
 0x5e5   : > { %v1546_v61 = vpop.xlane.xlu1 %1545 }
 0x5e6   : > { %7072 = vrcp.f32 %v1546_v61 }
 0x5ed   : > { %v1552_v63 = vpop.xlane.xlu1 %1551 }
 0x5ee   : > { %7074 = vrcp.f32 %v1552_v63 }
 0x5f1   : > { %v1714_v6 = vpop.permute.xlu1 %1713 }
 0x5f2   : > { %v1719_v9 = vsel %vm1042_vm2, %v1714_v6, 0 }
 0x5f3   : > { %v7073_v2 = vpop.eup %7072 }
 0x5f4   : > { %v1556_v5 = vmul.f32 %v7073_v2, %v7065_v39 }
 0x5f5   : > { %v1891_v11 = vpop.permute.xlu1 %1890 }
 0x5f6   : > { %v1562_v8 = vpack.c.bf16 %v1556_v5, %v1556_v5  ;;  %v1896_v50 = vsel %vm797_vm1, %v1891_v11, 0 }
 0x5f8   : > { %6691 = vmatmul.mubr.msk.bf16.vlgmr.msra.gmra.mxu1 %vm990_vm4, %v1562_v8 }
 0x5f9   : > { %6701 = vmatpush3.bf16.msra.mxu1 %v1719_v9  ;;  %6702 = vmatprep.mubr.msk.bf16.mxu1 %vm7232_vm0, %v7231_v31  ;;  %v1889_v46 = vpop.permute.xlu1 %1888 }
 0x5fa   : > { %6714 = vmatprep.subr.bf16.mxu1 %v7231_v31 }
 0x5fb   : > { %v7075_v12 = vpop.eup %7074 }
 0x5fc   : > { %v1560_v14 = vmul.f32 %v7075_v12, %v7067_v42 }
 0x5fd   : > { %v1991_v58 = vpop.permute.xlu1 %1990 }
 0x5fe   : > { %v1564_v16 = vpack.c.bf16 %v1560_v14, %v1560_v14  ;;  %v1996_v2 = vsel %vm797_vm1, %v1991_v58, 0 }
 0x600   : > { %6703 = vmatmul.mubr.msk.bf16.vlgmr.msra.gmra.mxu1 %vm990_vm4, %v1564_v16 }
 0x601   : > { %6715 = vmatpush3.bf16.xpose.msra.mxu1 %v1846_v19  ;;  %6716 = vmatprep.mubr.msk.bf16.mxu1 %vm7232_vm0, %v7231_v31  ;;  %v1989_v14 = vpop.permute.xlu1 %1988 }
 0x602   : > { %6726 = vmatprep.subr.bf16.mxu1 %v7231_v31 }
 0x608   : > { %6717 = vmatmul.mubr.msk.bf16.vlgmr.msra.gmra.mxu1 %vm797_vm1, %v1839_v17 }
 0x609   : > { %6727 = vmatpush3.bf16.xpose.msra.mxu1 %v1946_v21  ;;  %6728 = vmatprep.mubr.msk.bf16.mxu1 %vm7232_vm0, %v7231_v31 }
 0x60a   : > { %6738 = vmatprep.subr.bf16.mxu1 %v7231_v31 }
 0x610   : > { %6729 = vmatmul.mubr.msk.bf16.vlgmr.msra.gmra.mxu1 %vm797_vm1, %v1939_v22  ;;  %v7664_v22 = vld [vmem:[%s8424_s4] ss:$0 sm:$0xff] }
 0x611   : > { %6740 = vmatprep.mubr.msk.bf16.mxu1 %vm7232_vm0, %v7231_v31  ;;  %v1300_v36 = vadd.f32 %v7575_v55, %v7664_v22 }
 0x628   : > { %v1608_v23 = vpop.f32.mrf.mxu0 }
 0x62a   : > { %v6686_v24 = vpop.f32.mrf.mxu0 }
 0x62b   : > { %v1299_v24 = vadd.f32 %v7571_v48, %v7664_v22 }
 0x62c   : > { %v1611_v25 = vpop.f32.mrf.mxu0 }
 0x62e   : > { %v6687_v26 = vpop.f32.mrf.mxu0 }
 0x630   : > { %v1706_v28 = vpop.f32.mrf.mxu0 }
 0x632   : > { %v6698_v29 = vpop.f32.mrf.mxu0 }
 0x634   : > { %v1709_v30 = vpop.f32.mrf.mxu0 }
 0x636   : > { %v6699_v35 = vpop.f32.mrf.mxu0 }
 0x6b8   : > { %v1657_v7 = vpop.f32.mrf.mxu1 }
 0x6b9   : > { %v1761_v39 = vpack.c.bf16 %v1657_v7, %v1608_v23 }
 0x6ba   : > { %v6692_v40 = vpop.f32.mrf.mxu1 }
 0x6bb   : > { %6710 = vmatprep.mubr.msk.bf16.mxu0 %vm797_vm1, %v1761_v39 }
 0x6bc   : > { %v1660_v41 = vpop.f32.mrf.mxu1 }
 0x6be   : > { %v6693_v42 = vpop.f32.mrf.mxu1 }
 0x6c0   : > { %v1755_v44 = vpop.f32.mrf.mxu1 }
 0x6c1   : > { %v1762_v45 = vpack.c.bf16 %v1755_v44, %v1706_v28  ;;  %v1297_v28 = vadd.f32 %v7664_v22, %v7573_v51 }
 0x6c2   : > { %v6704_v47 = vpop.f32.mrf.mxu1 }
 0x6c3   : > { %6711 = vmatmul.mubr.msk.bf16.vlgmr.msra.gmra.mxu0 %vm797_vm1, %v1762_v45 }
 0x6c4   : > { %6721 = vmatpush3.bf16.xpose.msra.mxu0 %v1896_v50  ;;  %v1758_v52 = vpop.f32.mrf.mxu1  ;;  %6722 = vmatprep.mubr.msk.bf16.mxu0 %vm7232_vm0, %v7231_v31 }
 0x6c5   : > { %6732 = vmatprep.subr.bf16.mxu0 %v7231_v31 }
 0x6c6   : > { %v6705_v53 = vpop.f32.mrf.mxu1 }
 0x6c8   : > { %v1882_v59 = vpop.f32.mrf.mxu1 }
 0x6c9   : > { %v2038_v61 = vmul.f32 0.17677669, %v1882_v59 }
 0x6ca   : > { %v6718_v63 = vpop.f32.mrf.mxu1 }
 0x6cb   : > { %6723 = vmatmul.mubr.msk.bf16.vlgmr.msra.gmra.mxu0 %vm797_vm1, %v1889_v46  ;;  %v2042_v5 = vsel %vm776_vm3, %v2038_v61, -1e+30 }
 0x6cc   : > { %6733 = vmatpush3.bf16.xpose.msra.mxu0 %v1996_v2  ;;  %v1885_v6 = vpop.f32.mrf.mxu1  ;;  %v2046_v8 = vsel %vm990_vm4, %v2042_v5, -inf  ;;  %6734 = vmatprep.mubr.msk.bf16.mxu0 %vm7232_vm0, %v7231_v31 }
 0x6cd   : > { %2047 = vmax.xlane.f32.xlu0 %v2046_v8  ;;  %6744 = vmatprep.subr.bf16.mxu0 %v7231_v31 }
 0x6ce   : > { %v6719_v9 = vpop.f32.mrf.mxu1 }
 0x6d0   : > { %v1982_v10 = vpop.f32.mrf.mxu1 }
 0x6d1   : > { %v2040_v12 = vmul.f32 0.17677669, %v1982_v10 }
 0x6d2   : > { %v6730_v16 = vpop.f32.mrf.mxu1 }
 0x6d3   : > { %6735 = vmatmul.mubr.msk.bf16.vlgmr.msra.gmra.mxu0 %vm797_vm1, %v1989_v14  ;;  %v2044_v17 = vsel %vm776_vm3, %v2040_v12, -1e+30 }
 0x6d4   : > { %v1985_v19 = vpop.f32.mrf.mxu1  ;;  %v2052_v20 = vsel %vm990_vm4, %v2044_v17, -inf  ;;  %6746 = vmatprep.mubr.msk.bf16.mxu0 %vm7232_vm0, %v7231_v31 }
 0x6d5   : > { %2053 = vmax.xlane.f32.xlu0 %v2052_v20 }
 0x6d6   : > { %v6731_v21 = vpop.f32.mrf.mxu1 }
 0x756   : > { %v2048_v23 = vpop.xlane.xlu0 %2047 }
 0x757   : > { %v2058_v25 = vsub.f32 %v2042_v5, %v2048_v23 }
 0x759   : > { %v2062_v7 = vmul.f32 1.442695, %v2058_v25 }
 0x75b   : > { %7076 = vpow2.f32 %v2062_v7 }
 0x75e   : > { %v2054_v29 = vpop.xlane.xlu0 %2053 }
 0x75f   : > { %v2060_v39 = vsub.f32 %v2044_v17, %v2054_v29 }
 0x761   : > { %v2066_v41 = vmul.f32 1.442695, %v2060_v39 }
 0x763   : > { %7078 = vpow2.f32 %v2066_v41 }
 0x768   : > { %v7077_v63 = vpop.eup %7076 }
 0x769   : > { %v2070_v5 = vsel %vm990_vm4, %v7077_v63, 0.0 }
 0x770   : > { %v7079_v6 = vpop.eup %7078 }
 0x771   : > { %v2076_v8 = vsel %vm990_vm4, %v7079_v6, 0.0 }
 0x783   : > { %v6712_v26 = vpop.f32.mrf.mxu0 }
 0x784   : > { %v7670_v30 = vadd.f32 %v6712_v26, %v1299_v24 }
 0x785   : > { %v1819_v35 = vpop.f32.mrf.mxu0 }
 0x786   : > { %v7674_v37 = vadd.f32 %v1819_v35, %v1297_v28 }
 0x787   : > { %v6713_v40 = vpop.f32.mrf.mxu0 }
 0x788   : > { %v7676_v11 = vadd.f32 %v6713_v40, %v1300_v36 }
 0x789   : > { %v7678_v48 = vpop.f32.mrf.mxu0 }
 0x78b   : > { %v1932_v42 = vpop.f32.mrf.mxu0 }
 0x78c   : > { %v2039_v51 = vmul.f32 0.17677669, %v1932_v42 }
 0x78d   : > { %v6724_v44 = vpop.f32.mrf.mxu0 }
 0x78e   : > { %v2043_v45 = vsel %vm776_vm3, %v2039_v51, -1e+30 }
 0x78f   : > { %v1935_v46 = vpop.f32.mrf.mxu0  ;;  %v2049_v55 = vsel %vm990_vm4, %v2043_v45, -inf }
 0x790   : > { %2050 = vmax.xlane.f32.xlu1 %v2049_v55 }
 0x791   : > { %v6725_v47 = vpop.f32.mrf.mxu0 }
 0x793   : > { %v2032_v50 = vpop.f32.mrf.mxu0 }
 0x794   : > { %v2041_v52 = vmul.f32 0.17677669, %v2032_v50 }
 0x795   : > { %v6736_v53 = vpop.f32.mrf.mxu0 }
 0x796   : > { %v2045_v58 = vsel %vm776_vm3, %v2041_v52, -1e+30 }
 0x797   : > { %v2035_v59 = vpop.f32.mrf.mxu0  ;;  %v2055_v61 = vsel %vm990_vm4, %v2045_v58, -inf }
 0x798   : > { %2056 = vmax.xlane.f32.xlu0 %v2055_v61 }
 0x799   : > { %v6737_v2 = vpop.f32.mrf.mxu0 }
 0x79c   : > { %2071 = vadd.xlane.f32.xlu0 %v2070_v5 }
 0x7a0   : > { %2077 = vadd.xlane.f32.xlu0 %v2076_v8 }
 0x7a1   : > { %2142 = vrot.lane.b32.xlu1 %v7473_v15, %s7234_s26 }
 0x7a5   : > { %2190 = vrot.lane.b32.xlu1 %v7519_v27, %s7234_s26 }
 0x7b6   : > { %2094 = vrot.lane.b32.xlu0 %v7471_v13, %s7234_s26 }
 0x7ba   : > { %2365 = vrot.lane.b32.xlu0 %v7419_v43, %s7235_s17 }
 0x7be   : > { %2363 = vrot.lane.b32.xlu0 %v7428_v54, %s7235_s17 }
 0x7c2   : > { %2465 = vrot.lane.b32.xlu0 %v7430_v56, %s7235_s17 }
 0x7c6   : > { %2463 = vrot.lane.b32.xlu0 %v7450_v1, %s7235_s17 }
 0x819   : > { %v2051_v9 = vpop.xlane.xlu1 %2050 }
 0x81a   : > { %v2059_v10 = vsub.f32 %v2043_v45, %v2051_v9 }
 0x81c   : > { %v2064_v12 = vmul.f32 1.442695, %v2059_v10  ;;  %v6912_v10 = vld [vmem:[#allocation4 + $0x28] sm:$0xff]  }
 0x81d   : > { %v2143_v14 = vpop.permute.xlu1 %2142 }
 0x81e   : > { %7080 = vpow2.f32 %v2064_v12  ;;  %v2148_v16 = vsel %vm1042_vm2, %v2143_v14, 0  ;;  %v6913_v12 = vld [vmem:[#allocation4 + $0x20] sm:$0xff]  }
 0x81f   : > { %6745 = vmatpush3.bf16.msra.mxu0 %v2148_v16 }
 0x820   : > { %6756 = vmatprep.subr.bf16.mxu0 %v7231_v31 }
 0x821   : > { %v2057_v43 = vpop.xlane.xlu0 %2056  ;;  %v2191_v29 = vpop.permute.xlu1 %2190 }
 0x822   : > { %v2061_v17 = vsub.f32 %v2045_v58, %v2057_v43  ;;  %v2196_v7 = vsel %vm1042_vm2, %v2191_v29, 0 }
 0x824   : > { %v2068_v19 = vmul.f32 1.442695, %v2061_v17 }
 0x825   : > { %v2072_v54 = vpop.xlane.xlu0 %2071 }
 0x826   : > { %7082 = vpow2.f32 %v2068_v19 }
 0x827   : > { %7084 = vrcp.f32 %v2072_v54 }
 0x829   : > { %v2078_v56 = vpop.xlane.xlu0 %2077 }
 0x82a   : > { %7086 = vrcp.f32 %v2078_v56 }
 0x82b   : > { %v7081_v20 = vpop.eup %7080 }
 0x82c   : > { %v2073_v1 = vsel %vm990_vm4, %v7081_v20, 0.0 }
 0x82d   : > { %2074 = vadd.xlane.f32.xlu1 %v2073_v1  ;;  %v2095_v21 = vpop.permute.xlu0 %2094 }
 0x82e   : > { %v2100_v23 = vsel %vm1042_vm2, %v2095_v21, 0 }
 0x82f   : > { %6739 = vmatpush3.bf16.msra.mxu1 %v2100_v23 }
 0x830   : > { %6750 = vmatprep.subr.bf16.mxu1 %v7231_v31 }
 0x833   : > { %v7083_v24 = vpop.eup %7082 }
 0x834   : > { %v7085_v25 = vpop.eup %7084  ;;  %v2079_v26 = vsel %vm990_vm4, %v7083_v24, 0.0 }
 0x835   : > { %2080 = vadd.xlane.f32.xlu1 %v2079_v26  ;;  %v2083_v28 = vmul.f32 %v7085_v25, %v7077_v63 }
 0x837   : > { %v2090_v35 = vpack.c.bf16 %v2083_v28, %v2083_v28  ;;  %v7087_v36 = vpop.eup %7086 }
 0x838   : > { %v2087_v39 = vmul.f32 %v7087_v36, %v7079_v6 }
 0x839   : > { %6741 = vmatmul.mubr.msk.bf16.vlgmr.msra.gmra.mxu1 %vm990_vm4, %v2090_v35 }
 0x83a   : > { %6751 = vmatpush3.bf16.msra.mxu1 %v2196_v7  ;;  %6752 = vmatprep.mubr.msk.bf16.mxu1 %vm7232_vm0, %v7231_v31  ;;  %v2092_v40 = vpack.c.bf16 %v2087_v39, %v2087_v39 }
 0x83b   : > { %6762 = vmatprep.subr.bf16.mxu1 %v6912_v10 }
 0x841   : > { %6753 = vmatmul.mubr.msk.bf16.vlgmr.msra.gmra.mxu1 %vm990_vm4, %v2092_v40 }
 0x842   : > { %6763 = vmatpush3.bf16.msra.mxu1 %v6912_v10 }
 0x843   : > { %6764 = vmatprep.subr.bf16.mxu1 %v6913_v12 }
 0x846   : > { %2238 = vrot.lane.b32.xlu1 %v7523_v32, %s7234_s26  ;;  %6765 = vmatpush3.bf16.msra.mxu1 %v6913_v12 }
 0x847   : > { %6776 = vmatprep.subr.bf16.mxu1 %v7231_v31 }
 0x84a   : > { %2415 = vrot.lane.b32.xlu1 %v7423_v49, %s7235_s17  ;;  %v2366_v49 = vpop.permute.xlu0 %2365 }
 0x84b   : > { %v2371_v50 = vsel %vm797_vm1, %v2366_v49, 0 }
 0x84e   : > { %2413 = vrot.lane.b32.xlu1 %v7439_v60, %s7235_s17  ;;  %v2364_v47 = vpop.permute.xlu0 %2363 }
 0x852   : > { %2515 = vrot.lane.b32.xlu1 %v7441_v62, %s7235_s17  ;;  %v2466_v52 = vpop.permute.xlu0 %2465 }
 0x853   : > { %v2471_v53 = vsel %vm797_vm1, %v2466_v52, 0 }
 0x856   : > { %2513 = vrot.lane.b32.xlu1 %v7457_v3, %s7235_s17  ;;  %v2464_v58 = vpop.permute.xlu0 %2463 }
 0x8b6   : > { %v2075_v41 = vpop.xlane.xlu1 %2074 }
 0x8b7   : > { %7088 = vrcp.f32 %v2075_v41 }
 0x8be   : > { %v2081_v42 = vpop.xlane.xlu1 %2080 }
 0x8bf   : > { %7090 = vrcp.f32 %v2081_v42 }
 0x8c2   : > { %v2239_v45 = vpop.permute.xlu1 %2238 }
 0x8c3   : > { %v2244_v55 = vsel %vm1042_vm2, %v2239_v45, 0 }
 0x8c4   : > { %v7089_v51 = vpop.eup %7088 }
 0x8c5   : > { %v2085_v44 = vmul.f32 %v7089_v51, %v7081_v20 }
 0x8c6   : > { %v2416_v17 = vpop.permute.xlu1 %2415 }
 0x8c7   : > { %v2091_v46 = vpack.c.bf16 %v2085_v44, %v2085_v44  ;;  %v2421_v23 = vsel %vm797_vm1, %v2416_v17, 0 }
 0x8c9   : > { %6747 = vmatmul.mubr.msk.bf16.vlgmr.msra.gmra.mxu0 %vm990_vm4, %v2091_v46 }
 0x8ca   : > { %6757 = vmatpush3.bf16.msra.mxu0 %v2244_v55  ;;  %6758 = vmatprep.mubr.msk.bf16.mxu0 %vm7232_vm0, %v7231_v31  ;;  %v2414_v1 = vpop.permute.xlu1 %2413 }
 0x8cb   : > { %6770 = vmatprep.subr.bf16.mxu0 %v7231_v31 }
 0x8cc   : > { %v7091_v60 = vpop.eup %7090 }
 0x8cd   : > { %v2089_v62 = vmul.f32 %v7091_v60, %v7083_v24 }
 0x8ce   : > { %v2516_v26 = vpop.permute.xlu1 %2515 }
 0x8cf   : > { %v2093_v3 = vpack.c.bf16 %v2089_v62, %v2089_v62  ;;  %v2521_v36 = vsel %vm797_vm1, %v2516_v26, 0 }
 0x8d1   : > { %6759 = vmatmul.mubr.msk.bf16.vlgmr.msra.gmra.mxu0 %vm990_vm4, %v2093_v3 }
 0x8d2   : > { %6771 = vmatpush3.bf16.xpose.msra.mxu0 %v2371_v50  ;;  %6772 = vmatprep.mubr.msk.bf16.mxu0 %vm7232_vm0, %v7231_v31  ;;  %v2514_v44 = vpop.permute.xlu1 %2513 }
 0x8d3   : > { %6782 = vmatprep.subr.bf16.mxu0 %v7231_v31 }
 0x8d9   : > { %6773 = vmatmul.mubr.msk.bf16.vlgmr.msra.gmra.mxu0 %vm797_vm1, %v2364_v47 }
 0x8da   : > { %6783 = vmatpush3.bf16.xpose.msra.mxu0 %v2471_v53  ;;  %6784 = vmatprep.mubr.msk.bf16.mxu0 %vm7232_vm0, %v7231_v31 }
 0x8db   : > { %6794 = vmatprep.subr.bf16.mxu0 %v7231_v31 }
 0x8e1   : > { %6785 = vmatmul.mubr.msk.bf16.vlgmr.msra.gmra.mxu0 %vm797_vm1, %v2464_v58  ;;  %v1298_v58 = vadd.f32 %v7664_v22, %v7577_v57 }
 0x8e2   : > { %6796 = vmatprep.mubr.msk.bf16.mxu0 %vm7232_vm0, %v7231_v31 }
 0x8f9   : > { %v2136_v59 = vpop.f32.mrf.mxu1 }
 0x8fb   : > { %v6742_v61 = vpop.f32.mrf.mxu1 }
 0x8fd   : > { %v2139_v63 = vpop.f32.mrf.mxu1 }
 0x8ff   : > { %v6743_v2 = vpop.f32.mrf.mxu1 }
 0x901   : > { %v2232_v5 = vpop.f32.mrf.mxu1 }
 0x903   : > { %v6754_v6 = vpop.f32.mrf.mxu1 }
 0x905   : > { %v2235_v8 = vpop.f32.mrf.mxu1 }
 0x907   : > { %v6755_v9 = vpop.f32.mrf.mxu1 }
 0x989   : > { %v2184_v14 = vpop.f32.mrf.mxu0 }
 0x98a   : > { %v2286_v16 = vpack.c.bf16 %v2184_v14, %v2136_v59 }
 0x98b   : > { %v6748_v43 = vpop.f32.mrf.mxu0 }
 0x98c   : > { %6766 = vmatprep.mubr.msk.bf16.mxu1 %vm797_vm1, %v2286_v16 }
 0x98d   : > { %v2187_v19 = vpop.f32.mrf.mxu0 }
 0x98f   : > { %v6749_v54 = vpop.f32.mrf.mxu0 }
 0x991   : > { %v2280_v56 = vpop.f32.mrf.mxu0 }
 0x992   : > { %v2287_v20 = vpack.c.bf16 %v2280_v56, %v2232_v5  ;;  %v1835_v5 = vadd.f32 %v7678_v48, %v1298_v58 }
 0x993   : > { %v6760_v21 = vpop.f32.mrf.mxu0 }
 0x994   : > { %6767 = vmatmul.mubr.msk.bf16.vlgmr.msra.gmra.mxu1 %vm797_vm1, %v2287_v20 }
 0x995   : > { %6777 = vmatpush3.bf16.xpose.msra.mxu1 %v2421_v23  ;;  %v2283_v24 = vpop.f32.mrf.mxu0  ;;  %6778 = vmatprep.mubr.msk.bf16.mxu1 %vm7232_vm0, %v7231_v31 }
 0x996   : > { %6788 = vmatprep.subr.bf16.mxu1 %v7231_v31 }
 0x997   : > { %v6761_v25 = vpop.f32.mrf.mxu0 }
 0x999   : > { %v2407_v28 = vpop.f32.mrf.mxu0 }
 0x99a   : > { %v2563_v29 = vmul.f32 0.17677669, %v2407_v28 }
 0x99b   : > { %v6774_v35 = vpop.f32.mrf.mxu0 }
 0x99c   : > { %6779 = vmatmul.mubr.msk.bf16.vlgmr.msra.gmra.mxu1 %vm797_vm1, %v2414_v1  ;;  %v2567_v7 = vsel %vm776_vm3, %v2563_v29, -1e+30 }
 0x99d   : > { %6789 = vmatpush3.bf16.xpose.msra.mxu1 %v2521_v36  ;;  %v2410_v39 = vpop.f32.mrf.mxu0  ;;  %v2571_v40 = vsel %vm990_vm4, %v2567_v7, -inf  ;;  %6790 = vmatprep.mubr.msk.bf16.mxu1 %vm7232_vm0, %v7231_v31 }
 0x99e   : > { %2572 = vmax.xlane.f32.xlu0 %v2571_v40  ;;  %6800 = vmatprep.subr.bf16.mxu1 %v7231_v31 }
 0x99f   : > { %v6775_v41 = vpop.f32.mrf.mxu0 }
 0x9a1   : > { %v2507_v42 = vpop.f32.mrf.mxu0 }
 0x9a2   : > { %v2565_v51 = vmul.f32 0.17677669, %v2507_v42 }
 0x9a3   : > { %v6786_v45 = vpop.f32.mrf.mxu0 }
 0x9a4   : > { %6791 = vmatmul.mubr.msk.bf16.vlgmr.msra.gmra.mxu1 %vm797_vm1, %v2514_v44  ;;  %v2569_v46 = vsel %vm776_vm3, %v2565_v51, -1e+30 }
 0x9a5   : > { %v2510_v55 = vpop.f32.mrf.mxu0  ;;  %v2577_v49 = vsel %vm990_vm4, %v2569_v46, -inf  ;;  %6802 = vmatprep.mubr.msk.bf16.mxu1 %vm7232_vm0, %v7231_v31 }
 0x9a6   : > { %2578 = vmax.xlane.f32.xlu0 %v2577_v49 }
 0x9a7   : > { %v6787_v60 = vpop.f32.mrf.mxu0 }
 0xa27   : > { %v2573_v62 = vpop.xlane.xlu0 %2572 }
 0xa28   : > { %v2583_v3 = vsub.f32 %v2567_v7, %v2573_v62 }
 0xa2a   : > { %v2587_v61 = vmul.f32 1.442695, %v2583_v3 }
 0xa2c   : > { %7092 = vpow2.f32 %v2587_v61 }
 0xa2f   : > { %v2579_v50 = vpop.xlane.xlu0 %2578 }
 0xa30   : > { %v2585_v63 = vsub.f32 %v2569_v46, %v2579_v50 }
 0xa39   : > { %v7093_v56 = vpop.eup %7092 }
 0xa3a   : > { %v2595_v1 = vsel %vm990_vm4, %v7093_v56, 0.0 }
 0xa54   : > { %v6768_v47 = vpop.f32.mrf.mxu1 }
 0xa55   : > { %v7763_v52 = vadd.f32 %v6768_v47, %v7670_v30  ;;  %v2591_v30 = vmul.f32 1.442695, %v2585_v63 }
 0xa56   : > { %v2344_v53 = vpop.f32.mrf.mxu1 }
 0xa57   : > { %v7768_v59 = vadd.f32 %v2344_v53, %v7674_v37  ;;  %7094 = vpow2.f32 %v2591_v30 }
 0xa58   : > { %v6769_v2 = vpop.f32.mrf.mxu1 }
 0xa59   : > { %v7772_v6 = vadd.f32 %v6769_v2, %v7676_v11 }
 0xa5a   : > { %v2347_v8 = vpop.f32.mrf.mxu1 }
 0xa5b   : > { %v7774_v9 = vadd.f32 %v2347_v8, %v1835_v5 }
 0xa5c   : > { %v2457_v10 = vpop.f32.mrf.mxu1 }
 0xa5d   : > { %v2564_v12 = vmul.f32 0.17677669, %v2457_v10 }
 0xa5e   : > { %v6780_v14 = vpop.f32.mrf.mxu1 }
 0xa5f   : > { %v2568_v57 = vsel %vm776_vm3, %v2564_v12, -1e+30 }
 0xa60   : > { %v2460_v22 = vpop.f32.mrf.mxu1  ;;  %v2574_v37 = vsel %vm990_vm4, %v2568_v57, -inf }
 0xa61   : > { %2575 = vmax.xlane.f32.xlu1 %v2574_v37 }
 0xa62   : > { %v6781_v48 = vpop.f32.mrf.mxu1 }
 0xa63   : > { %v6914_v48 = vld [vmem:[#allocation4 + $0x38] sm:$0xff]  }
 0xa64   : > { %v2557_v16 = vpop.f32.mrf.mxu1  ;;  %v7095_v21 = vpop.eup %7094 }
 0xa65   : > { %v2566_v11 = vmul.f32 0.17677669, %v2557_v16  ;;  %v2601_v23 = vsel %vm990_vm4, %v7095_v21, 0.0  ;;  %v6915_v16 = vld [vmem:[#allocation4 + $0x30] sm:$0xff]  }
 0xa66   : > { %v6792_v43 = vpop.f32.mrf.mxu1 }
 0xa67   : > { %v2570_v17 = vsel %vm776_vm3, %v2566_v11, -1e+30 }
 0xa68   : > { %v2560_v19 = vpop.f32.mrf.mxu1  ;;  %v2580_v54 = vsel %vm990_vm4, %v2570_v17, -inf }
 0xa69   : > { %2581 = vmax.xlane.f32.xlu0 %v2580_v54 }
 0xa6a   : > { %v6793_v20 = vpop.f32.mrf.mxu1 }
 0xa6d   : > { %2596 = vadd.xlane.f32.xlu0 %v2595_v1 }
 0xa71   : > { %2602 = vadd.xlane.f32.xlu0 %v2601_v23 }
 0xa72   : > { %2667 = vrot.lane.b32.xlu1 %v7473_v15, %s7235_s17 }
 0xa76   : > { %2715 = vrot.lane.b32.xlu1 %v7519_v27, %s7235_s17 }
 0xa87   : > { %2619 = vrot.lane.b32.xlu0 %v7471_v13, %s7235_s17 }
 0xaea   : > { %v2576_v18 = vpop.xlane.xlu1 %2575 }
 0xaeb   : > { %v2584_v24 = vsub.f32 %v2568_v57, %v2576_v18 }
 0xaed   : > { %v2589_v25 = vmul.f32 1.442695, %v2584_v24 }
 0xaee   : > { %v2668_v26 = vpop.permute.xlu1 %2667 }
 0xaef   : > { %7096 = vpow2.f32 %v2589_v25  ;;  %v2673_v28 = vsel %vm1042_vm2, %v2668_v26, 0 }
 0xaf0   : > { %6801 = vmatpush3.bf16.msra.mxu1 %v2673_v28  ;;  %v7124_v28 = vld [vmem:[%s7392_s16] sm:$0xff] }
 0xaf1   : > { %6812 = vmatprep.subr.bf16.mxu1 %v7231_v31 }
 0xaf2   : > { %v2582_v29 = vpop.xlane.xlu0 %2581  ;;  %v2716_v45 = vpop.permute.xlu1 %2715 }
 0xaf3   : > { %v2586_v35 = vsub.f32 %v2570_v17, %v2582_v29  ;;  %v2721_v49 = vsel %vm1042_vm2, %v2716_v45, 0  ;;  %v3082_v45 = vld [vmem:[#allocation6 + $0x3c8] sm:$0xff] }
 0xaf5   : > { %v2593_v36 = vmul.f32 1.442695, %v2586_v35 }
 0xaf6   : > { %v2597_v15 = vpop.xlane.xlu0 %2596 }
 0xaf7   : > { %7098 = vpow2.f32 %v2593_v36 }
 0xaf8   : > { %7100 = vrcp.f32 %v2597_v15 }
 0xafa   : > { %v2603_v27 = vpop.xlane.xlu0 %2602 }
 0xafb   : > { %7102 = vrcp.f32 %v2603_v27  ;;  %v7125_v27 = vld [vmem:[%s7392_s16 + $0x10] sm:$0xff] }
 0xafc   : > { %v7097_v7 = vpop.eup %7096 }
 0xafd   : > { %v2598_v13 = vsel %vm990_vm4, %v7097_v7, 0.0 }
 0xafe   : > { %2599 = vadd.xlane.f32.xlu1 %v2598_v13  ;;  %v2620_v39 = vpop.permute.xlu0 %2619  ;;  %v7126_v13 = vld [vmem:[%s7392_s16 + $0x8] sm:$0xff] }
 0xaff   : > { %v2625_v40 = vsel %vm1042_vm2, %v2620_v39, 0 }
 0xb00   : > { %6795 = vmatpush3.bf16.msra.mxu0 %v2625_v40  ;;  %v7127_v40 = vld [vmem:[%s7392_s16 + $0x18] sm:$0xff]  ;;  %s486_s16 = scalar_lea.vmem %s8433_s13, %s5929_s29 }
 0xb01   : > { %6806 = vmatprep.subr.bf16.mxu0 %v7231_v31 }
 0xb04   : > { %v7099_v41 = vpop.eup %7098 }
 0xb05   : > { %v7101_v42 = vpop.eup %7100  ;;  %v2604_v51 = vsel %vm990_vm4, %v7099_v41, 0.0 }
 0xb06   : > { %2605 = vadd.xlane.f32.xlu1 %v2604_v51  ;;  %v2608_v44 = vmul.f32 %v7101_v42, %v7093_v56  ;;  %v3081_v42 = vld [vmem:[#allocation6 + $0x3c0] sm:$0xff] }
 0xb08   : > { %v2615_v46 = vpack.c.bf16 %v2608_v44, %v2608_v44  ;;  %v7103_v55 = vpop.eup %7102 }
 0xb09   : > { %v2612_v60 = vmul.f32 %v7103_v55, %v7095_v21 }
 0xb0a   : > { %6797 = vmatmul.mubr.msk.bf16.vlgmr.msra.gmra.mxu0 %vm990_vm4, %v2615_v46 }
 0xb0b   : > { %6807 = vmatpush3.bf16.msra.mxu0 %v2721_v49  ;;  %6808 = vmatprep.mubr.msk.bf16.mxu0 %vm7232_vm0, %v7231_v31  ;;  %v2617_v62 = vpack.c.bf16 %v2612_v60, %v2612_v60 }
 0xb0c   : > { %6818 = vmatprep.subr.bf16.mxu0 %v6914_v48 }
 0xb12   : > { %6809 = vmatmul.mubr.msk.bf16.vlgmr.msra.gmra.mxu0 %vm990_vm4, %v2617_v62 }
 0xb13   : > { %6819 = vmatpush3.bf16.msra.mxu0 %v6914_v48 }
 0xb14   : > { %6820 = vmatprep.subr.bf16.mxu0 %v6915_v16 }
 0xb17   : > { %2763 = vrot.lane.b32.xlu1 %v7523_v32, %s7235_s17  ;;  %6821 = vmatpush3.bf16.msra.mxu0 %v6915_v16  ;;  %v3041_v16 = vld [vmem:[#allocation6 + $0x280] sm:$0xff] }
 0xb87   : > { %v2600_v3 = vpop.xlane.xlu1 %2599 }
 0xb88   : > { %7104 = vrcp.f32 %v2600_v3 }
 0xb8f   : > { %v2606_v47 = vpop.xlane.xlu1 %2605 }
 0xb90   : > { %7106 = vrcp.f32 %v2606_v47 }
 0xb93   : > { %v2764_v58 = vpop.permute.xlu1 %2763 }
 0xb94   : > { %v2769_v63 = vsel %vm1042_vm2, %v2764_v58, 0 }
 0xb95   : > { %v7105_v50 = vpop.eup %7104 }
 0xb96   : > { %v2610_v53 = vmul.f32 %v7105_v50, %v7097_v7 }
 0xb98   : > { %v2616_v61 = vpack.c.bf16 %v2610_v53, %v2610_v53 }
 0xb9a   : > { %6803 = vmatmul.mubr.msk.bf16.vlgmr.msra.gmra.mxu1 %vm990_vm4, %v2616_v61 }
 0xb9b   : > { %6813 = vmatpush3.bf16.msra.mxu1 %v2769_v63  ;;  %6814 = vmatprep.mubr.msk.bf16.mxu1 %vm7232_vm0, %v7231_v31 }
 0xb9d   : > { %v7107_v2 = vpop.eup %7106 }
 0xb9e   : > { %v2614_v5 = vmul.f32 %v7107_v2, %v7099_v41 }
 0xba0   : > { %v2618_v8 = vpack.c.bf16 %v2614_v5, %v2614_v5 }
 0xba2   : > { %6815 = vmatmul.mubr.msk.bf16.vlgmr.msra.gmra.mxu1 %vm990_vm4, %v2618_v8 }
 0xba3   : > { %3845 = vmatprep.mubr.bf16.mxu1 %v7230_v0 }
 0xbca   : > { %v2661_v32 = vpop.f32.mrf.mxu0 }
 0xbcc   : > { %v6798_v30 = vpop.f32.mrf.mxu0 }
 0xbcd   : > { %v3057_v30 = vld [vmem:[#allocation6 + $0x300] sm:$0xff] }
 0xbce   : > { %v2664_v10 = vpop.f32.mrf.mxu0 }
 0xbcf   : > { %v3065_v10 = vld [vmem:[#allocation6 + $0x340] sm:$0xff] }
 0xbd0   : > { %v6799_v12 = vpop.f32.mrf.mxu0 }
 0xbd1   : > { %v3058_v12 = vld [vmem:[#allocation6 + $0x308] sm:$0xff] }
 0xbd2   : > { %v2757_v14 = vpop.f32.mrf.mxu0 }
 0xbd4   : > { %v6810_v57 = vpop.f32.mrf.mxu0 }
 0xbd5   : > { %v3066_v57 = vld [vmem:[#allocation6 + $0x348] sm:$0xff] }
 0xbd6   : > { %v2760_v22 = vpop.f32.mrf.mxu0  ;;  %v6106_v48 = vcombine.high %v3058_v12, %v3066_v57 }
 0xbd7   : > { %v6103_v22 = vcombine.low %v3057_v30, %v3065_v10 }
 0xbd8   : > { %v6811_v37 = vpop.f32.mrf.mxu0 }
 0xbd9   : > { %v6105_v37 = vcombine.low %v3058_v12, %v3066_v57  ;;  %v3083_v12 = vld [vmem:[#allocation6 + $0x3d0] sm:$0xff] }
 0xc5a   : > { %v2709_v31 = vpop.f32.mrf.mxu1 }
 0xc5b   : > { %v2811_v11 = vpack.c.bf16 %v2709_v31, %v2661_v32  ;;  %v3049_v31 = vld [vmem:[#allocation6 + $0x2c0] sm:$0xff] }
 0xc5c   : > { %v6804_v43 = vpop.f32.mrf.mxu1 }
 0xc5d   : > { %6822 = vmatprep.mubr.msk.bf16.mxu0 %vm797_vm1, %v2811_v11  ;;  %v3042_v11 = vld [vmem:[#allocation6 + $0x288] sm:$0xff]  ;;  %v6088_v43 = vcombine.high %v3041_v16, %v3049_v31 }
 0xc5e   : > { %v2712_v17 = vpop.f32.mrf.mxu1 }
 0xc5f   : > { %v3050_v17 = vld [vmem:[#allocation6 + $0x2c8] sm:$0xff] }
 0xc60   : > { %v6805_v19 = vpop.f32.mrf.mxu1 }
 0xc61   : > { %v6087_v19 = vcombine.low %v3041_v16, %v3049_v31 }
 0xc62   : > { %v2805_v54 = vpop.f32.mrf.mxu1 }
 0xc63   : > { %v2812_v56 = vpack.c.bf16 %v2805_v54, %v2757_v14  ;;  %v6104_v14 = vcombine.high %v3057_v30, %v3065_v10  ;;  %v6089_v54 = vcombine.low %v3042_v11, %v3050_v17  ;;  %v3075_v10 = vld [vmem:[#allocation6 + $0x390] sm:$0xff] }
 0xc64   : > { %v6816_v20 = vpop.f32.mrf.mxu1  ;;  %v6124_v57 = vcombine.high %v3075_v10, %v3083_v12 }
 0xc65   : > { %6823 = vmatmul.mubr.msk.bf16.vlgmr.msra.gmra.mxu0 %vm797_vm1, %v2812_v56  ;;  %v6090_v56 = vcombine.high %v3042_v11, %v3050_v17  ;;  %v3025_v20 = vld [vmem:[#allocation6 + $0x200] sm:$0xff] }
 0xc66   : > { %v2808_v1 = vpop.f32.mrf.mxu1  ;;  %3898 = vmatprep.mubr.bf16.mxu0 %v7230_v0 }
 0xc67   : > { %v3033_v1 = vld [vmem:[#allocation6 + $0x240] sm:$0xff] }
 0xc68   : > { %v6817_v21 = vpop.f32.mrf.mxu1 }
 0xc69   : > { %v3026_v21 = vld [vmem:[#allocation6 + $0x208] sm:$0xff] }
 0xd25   : > { %v6824_v23 = vpop.f32.mrf.mxu0 }
 0xd26   : > { %v2886_v26 = vadd.f32 %v6824_v23, %v7763_v52  ;;  %v3074_v52 = vld [vmem:[#allocation6 + $0x388] sm:$0xff]  ;;  %v6072_v23 = vcombine.high %v3025_v20, %v3033_v1 }
 0xd27   : > { %v2869_v18 = vpop.f32.mrf.mxu0  ;;  %v6121_v46 = vcombine.low %v3074_v52, %v3082_v45 }
 0xd28   : > { %v2884_v24 = vadd.f32 %v2869_v18, %v7768_v59  ;;  %v2890_v7 = vadd.f32 %v7125_v27, %v2886_v26  ;;  %v3073_v59 = vld [vmem:[#allocation6 + $0x380] sm:$0xff]  ;;  %v3034_v18 = vld [vmem:[#allocation6 + $0x248] sm:$0xff] }
 0xd29   : > { %v6825_v25 = vpop.f32.mrf.mxu0  ;;  %v6119_v51 = vcombine.low %v3073_v59, %v3081_v42  ;;  %v6120_v44 = vcombine.high %v3073_v59, %v3081_v42  ;;  %v6074_v26 = vcombine.high %v3026_v21, %v3034_v18  ;;  %v3002_v42 = vld [vmem:[#allocation6 + $0x148] sm:$0xff] }
 0xd2a   : > { %v2888_v29 = vadd.f32 %v7124_v28, %v2884_v24  ;;  %v2887_v15 = vadd.f32 %v6825_v25, %v7772_v6  ;;  %v6071_v24 = vcombine.low %v3025_v20, %v3033_v1  ;;  %v6073_v25 = vcombine.low %v3026_v21, %v3034_v18  ;;  %v3009_v28 = vld [vmem:[#allocation6 + $0x180] sm:$0xff] }
 0xd2b   : > { %v2872_v35 = vpop.f32.mrf.mxu0  ;;  %3813 = vmatprep.subr.bf16.mxu1 %v6120_v44 }
 0xd2c   : > { %v2885_v36 = vadd.f32 %v2872_v35, %v7774_v9  ;;  %2894 = vadd.xlane.f32.xlu0 %v2888_v29  ;;  %v2891_v41 = vadd.f32 %v7127_v40, %v2887_v15  ;;  %v6122_v9 = vcombine.high %v3074_v52, %v3082_v45  ;;  %3814 = vmatpush1.bf16.msra.mxu1 %v6119_v51  ;;  %v3010_v35 = vld [vmem:[#allocation6 + $0x188] sm:$0xff]  ;;  %v3001_v40 = vld [vmem:[#allocation6 + $0x140] sm:$0xff] }
 0xd2d   : > { %3815 = vmatprep.subr.bf16.mxu1 %v6104_v14  ;;  %v3018_v15 = vld [vmem:[#allocation6 + $0x1c8] sm:$0xff]  ;;  %v2977_v45 = vld [vmem:[#allocation6 + $0x80] sm:$0xff]  ;;  %v3076_v14 = vld [vmem:[#allocation6 + $0x398] sm:$0xff] }
 0xd2e   : > { %v2889_v39 = vadd.f32 %v7126_v13, %v2885_v36  ;;  %3866 = vmatprep.subr.bf16.mxu0 %v6122_v9  ;;  %v6058_v13 = vcombine.high %v3010_v35, %v3018_v15  ;;  %v2978_v9 = vld [vmem:[#allocation6 + $0x88] sm:$0xff] }
 0xd2f   : > { %3867 = vmatpush1.bf16.msra.mxu0 %v6121_v46  ;;  %v2985_v46 = vld [vmem:[#allocation6 + $0xc0] sm:$0xff] }
 0xd30   : > { %2898 = vadd.xlane.f32.xlu0 %v2890_v7  ;;  %2896 = vadd.xlane.f32.xlu1 %v2889_v39 }
 0xd31   : > { %3868 = vmatprep.subr.bf16.mxu0 %v6106_v48  ;;  %3816 = vmatpush1.bf16.msra.mxu1 %v6103_v22  ;;  %v3084_v22 = vld [vmem:[#allocation6 + $0x3d8] sm:$0xff] }
 0xd32   : > { %3817 = vmatprep.subr.bf16.mxu1 %v6088_v43  ;;  %v6125_v48 = vcombine.low %v3076_v14, %v3084_v22  ;;  %v6126_v16 = vcombine.high %v3076_v14, %v3084_v22  ;;  %v3019_v22 = vld [vmem:[#allocation6 + $0x1d0] sm:$0xff] }
 0xd33   : > { %3869 = vmatpush1.bf16.msra.mxu0 %v6105_v37  ;;  %v6123_v37 = vcombine.low %v3075_v10, %v3083_v12 }
 0xd34   : > { %2900 = vadd.xlane.f32.xlu0 %v2891_v41  ;;  %3870 = vmatprep.subr.bf16.mxu0 %v6090_v56 }
 0xd35   : > { %3818 = vmatpush1.bf16.msra.mxu1 %v6087_v19 }
 0xd36   : > { %3819 = vmatprep.subr.bf16.mxu1 %v6072_v23 }
 0xd37   : > { %3871 = vmatpush1.bf16.msra.mxu0 %v6089_v54 }
 0xd38   : > { %3872 = vmatprep.subr.bf16.mxu0 %v6074_v26  ;;  %v6005_v26 = vld [vmem:[%s8429_s9] ss:$0 sm:$0xff] }
 0xd39   : > { %3820 = vmatpush1.bf16.msra.mxu1 %v6071_v24 }
 0xd3b   : > { %3873 = vmatpush1.bf16.msra.mxu0 %v6073_v25 }
 0xd3c   : > { %3874 = vmatprep.subr.bf16.mxu0 %v6058_v13  ;;  %v3059_v13 = vld [vmem:[#allocation6 + $0x310] sm:$0xff] }
 0xdb5   : > { %v2895_v6 = vpop.xlane.xlu0 %2894 }
 0xdb6   : > { %v2903_v55 = vmul.f32 0.0078125, %v2895_v6  ;;  %v6024_v6 = vcombine.high %v2977_v45, %v2985_v46 }
 0xdb8   : > { %v7820_v49 = vsub.f32 %v2888_v29, %v2903_v55  ;;  %v3017_v29 = vld [vmem:[#allocation6 + $0x1c0] sm:$0xff]  ;;  %v2986_v55 = vld [vmem:[#allocation6 + $0xc8] sm:$0xff] }
 0xdb9   : > { %v2899_v60 = vpop.xlane.xlu0 %2898  ;;  %v2897_v62 = vpop.xlane.xlu1 %2896  ;;  %v6056_v36 = vcombine.high %v3009_v28, %v3017_v29  ;;  %v6055_v27 = vcombine.low %v3009_v28, %v3017_v29 }
 0xdba   : > { %v2905_v3 = vmul.f32 0.0078125, %v2899_v60  ;;  %v2904_v47 = vmul.f32 0.0078125, %v2897_v62  ;;  %v2911_v50 = vmul.f32 %v7820_v49, %v7820_v49  ;;  %v6023_v60 = vcombine.low %v2977_v45, %v2985_v46  ;;  %v3043_v46 = vld [vmem:[#allocation6 + $0x290] sm:$0xff] }
 0xdbb   : > { %3821 = vmatprep.subr.bf16.mxu1 %v6056_v36  ;;  %v6025_v62 = vcombine.low %v2978_v9, %v2986_v55 }
 0xdbc   : > { %v7824_v53 = vsub.f32 %v2890_v7, %v2905_v3  ;;  %v7826_v58 = vsub.f32 %v2889_v39, %v2904_v47  ;;  %2915 = vadd.xlane.f32.xlu0 %v2911_v50  ;;  %v6057_v7 = vcombine.low %v3010_v35, %v3018_v15  ;;  %3822 = vmatpush1.bf16.msra.mxu1 %v6055_v27  ;;  %v2993_v39 = vld [vmem:[#allocation6 + $0x100] sm:$0xff] }
 0xdbd   : > { %v2901_v61 = vpop.xlane.xlu0 %2900  ;;  %v6040_v59 = vcombine.high %v2993_v39, %v3001_v40  ;;  %v6039_v52 = vcombine.low %v2993_v39, %v3001_v40  ;;  %v6026_v3 = vcombine.high %v2978_v9, %v2986_v55  ;;  %v2961_v47 = vld [vmem:[#allocation6] sm:$0xff]  ;;  %v3067_v40 = vld [vmem:[#allocation6 + $0x350] sm:$0xff] }
 0xdbe   : > { %v2906_v63 = vmul.f32 0.0078125, %v2901_v61  ;;  %v2913_v2 = vmul.f32 %v7824_v53, %v7824_v53  ;;  %v2912_v5 = vmul.f32 %v7826_v58, %v7826_v58  ;;  %3875 = vmatpush1.bf16.msra.mxu0 %v6057_v7  ;;  %v2969_v50 = vld [vmem:[#allocation6 + $0x40] sm:$0xff]  ;;  %v2962_v61 = vld [vmem:[#allocation6 + $0x8] sm:$0xff]  ;;  %v3051_v9 = vld [vmem:[#allocation6 + $0x2d0] sm:$0xff] }
 0xdbf   : > { %3823 = vmatprep.subr.bf16.mxu1 %v6040_v59  ;;  %v6006_v15 = vld [vmem:[%s8430_s10] ss:$0 sm:$0xff] }
 0xdc0   : > { %v7832_v8 = vsub.f32 %v2891_v41, %v2906_v63  ;;  %2919 = vadd.xlane.f32.xlu0 %v2913_v2  ;;  %2917 = vadd.xlane.f32.xlu1 %v2912_v5  ;;  %v2994_v41 = vld [vmem:[#allocation6 + $0x108] sm:$0xff]  ;;  %v6008_v63 = vcombine.high %v2961_v47, %v2969_v50  ;;  %v6007_v5 = vcombine.low %v2961_v47, %v2969_v50  ;;  %v3027_v50 = vld [vmem:[#allocation6 + $0x210] sm:$0xff] }
 0xdc1   : > { %v6041_v51 = vcombine.low %v2994_v41, %v3002_v42  ;;  %v6042_v44 = vcombine.high %v2994_v41, %v3002_v42  ;;  %3824 = vmatpush1.bf16.msra.mxu1 %v6039_v52  ;;  %v2970_v2 = vld [vmem:[#allocation6 + $0x48] sm:$0xff]  ;;  %v3068_v41 = vld [vmem:[#allocation6 + $0x358] sm:$0xff] }
 0xdc2   : > { %v2914_v32 = vmul.f32 %v7832_v8, %v7832_v8  ;;  %3825 = vmatprep.subr.bf16.mxu1 %v6024_v6  ;;  %v6010_v30 = vcombine.high %v2962_v61, %v2970_v2  ;;  %v3044_v6 = vld [vmem:[#allocation6 + $0x298] sm:$0xff] }
 0xdc3   : > { %3876 = vmatprep.subr.bf16.mxu0 %v6042_v44  ;;  %v6108_v44 = vcombine.high %v3059_v13, %v3067_v40 }
 0xdc4   : > { %2921 = vadd.xlane.f32.xlu1 %v2914_v32  ;;  %3877 = vmatpush1.bf16.msra.mxu0 %v6041_v51  ;;  %v6009_v32 = vcombine.low %v2962_v61, %v2970_v2  ;;  %v3035_v61 = vld [vmem:[#allocation6 + $0x250] sm:$0xff]  ;;  %v3036_v2 = vld [vmem:[#allocation6 + $0x258] sm:$0xff] }
 0xdc5   : > { %3878 = vmatprep.subr.bf16.mxu0 %v6026_v3  ;;  %3826 = vmatpush1.bf16.msra.mxu1 %v6023_v60  ;;  %v6092_v3 = vcombine.high %v3043_v46, %v3051_v9  ;;  %v6076_v12 = vcombine.high %v3027_v50, %v3035_v61 }
 0xdc6   : > { %3827 = vmatprep.subr.bf16.mxu1 %v6008_v63  ;;  %v3028_v63 = vld [vmem:[#allocation6 + $0x218] sm:$0xff] }
 0xdc7   : > { %v6078_v14 = vcombine.high %v3028_v63, %v3036_v2 }
 0xdc8   : > { %3879 = vmatpush1.bf16.msra.mxu0 %v6025_v62 }
 0xdc9   : > { %3880 = vmatprep.subr.bf16.mxu0 %v6010_v30  ;;  %3828 = vmatpush1.bf16.msra.mxu1 %v6007_v5 }
 0xdca   : > { %3919 = vmatprep.subr.bf16.mxu1 %v6124_v57  ;;  %v3011_v57 = vld [vmem:[#allocation6 + $0x190] sm:$0xff] }
 0xdcc   : > { %3881 = vmatpush1.bf16.msra.mxu0 %v6009_v32  ;;  %v6091_v32 = vcombine.low %v3043_v46, %v3051_v9 }
 0xdcd   : > { %3972 = vmatprep.subr.bf16.mxu0 %v6126_v16  ;;  %v6075_v16 = vcombine.low %v3027_v50, %v3035_v61 }
 0xe45   : > { %v2916_v31 = vpop.xlane.xlu0 %2915 }
 0xe46   : > { %v2923_v11 = vmul.f32 0.0078125, %v2916_v31  ;;  %v6077_v31 = vcombine.low %v3028_v63, %v3036_v2  ;;  %v3045_v2 = vld [vmem:[#allocation6 + $0x2a0] sm:$0xff] }
 0xe48   : > { %v2927_v43 = vadd.f32 1e-05, %v2923_v11  ;;  %v6060_v11 = vcombine.high %v3011_v57, %v3019_v22 }
 0xe49   : > { %v2920_v17 = vpop.xlane.xlu0 %2919  ;;  %v2918_v19 = vpop.xlane.xlu1 %2917 }
 0xe4a   : > { %7108 = vrsqrt.f32 %v2927_v43  ;;  %v2925_v54 = vmul.f32 0.0078125, %v2920_v17  ;;  %v2924_v56 = vmul.f32 0.0078125, %v2918_v19  ;;  %v2995_v17 = vld [vmem:[#allocation6 + $0x110] sm:$0xff] }
 0xe4b   : > { %v3003_v19 = vld [vmem:[#allocation6 + $0x150] sm:$0xff] }
 0xe4c   : > { %v2928_v20 = vadd.f32 1e-05, %v2924_v56  ;;  %v2929_v1 = vadd.f32 1e-05, %v2925_v54  ;;  %v2996_v54 = vld [vmem:[#allocation6 + $0x118] sm:$0xff] }
 0xe4d   : > { %v2922_v21 = vpop.xlane.xlu1 %2921  ;;  %v3004_v56 = vld [vmem:[#allocation6 + $0x158] sm:$0xff] }
 0xe4e   : > { %v2926_v23 = vmul.f32 0.0078125, %v2922_v21  ;;  %7110 = vrsqrt.f32 %v2928_v20  ;;  %v6059_v20 = vcombine.low %v3011_v57, %v3019_v22  ;;  %v6044_v21 = vcombine.high %v2995_v17, %v3003_v19 }
 0xe4f   : > { %7112 = vrsqrt.f32 %v2929_v1 }
 0xe50   : > { %v2930_v18 = vadd.f32 1e-05, %v2926_v23  ;;  %v6046_v23 = vcombine.high %v2996_v54, %v3004_v56 }
 0xe52   : > { %7114 = vrsqrt.f32 %v2930_v18  ;;  %v2979_v18 = vld [vmem:[#allocation6 + $0x90] sm:$0xff] }
 0xe57   : > { %v7109_v24 = vpop.eup %7108 }
 0xe58   : > { %v2935_v25 = vmul.f32 %v7109_v24, %v7820_v49  ;;  %v3060_v49 = vld [vmem:[#allocation6 + $0x318] sm:$0xff]  ;;  %v2987_v24 = vld [vmem:[#allocation6 + $0xd0] sm:$0xff] }
 0xe59   : > { %v6110_v45 = vcombine.high %v3060_v49, %v3068_v41  ;;  %v6109_v60 = vcombine.low %v3060_v49, %v3068_v41 }
 0xe5a   : > { %v2945_v29 = vmul.f32 %v6005_v26, %v2935_v25  ;;  %v2980_v25 = vld [vmem:[#allocation6 + $0x98] sm:$0xff] }
 0xe5b   : > { %v7111_v28 = vpop.eup %7110 }
 0xe5c   : > { %v2936_v35 = vmul.f32 %v7111_v28, %v7826_v58  ;;  %v7113_v36 = vpop.eup %7112  ;;  %v7845_v59 = vadd.f32 %v6006_v15, %v2945_v29  ;;  %v6043_v28 = vcombine.low %v2995_v17, %v3003_v19  ;;  %v6045_v29 = vcombine.low %v2996_v54, %v3004_v56  ;;  %v3013_v56 = vld [vmem:[#allocation6 + $0x1a0] sm:$0xff] }
 0xe5d   : > { %v2937_v42 = vmul.f32 %v7113_v36, %v7824_v53  ;;  %v6107_v53 = vcombine.low %v3059_v13, %v3067_v40  ;;  %v2972_v13 = vld [vmem:[#allocation6 + $0x58] sm:$0xff] }
 0xe5e   : > { %v2946_v7 = vmul.f32 %v6005_v26, %v2936_v35  ;;  %v6028_v35 = vcombine.high %v2979_v18, %v2987_v24 }
 0xe5f   : > { %v7115_v27 = vpop.eup %7114  ;;  %v2947_v55 = vmul.f32 %v6005_v26, %v2937_v42  ;;  %v3077_v42 = vld [vmem:[#allocation6 + $0x3a0] sm:$0xff] }
 0xe60   : > { %v2938_v39 = vmul.f32 %v7115_v27, %v7832_v8  ;;  %v7848_v52 = vadd.f32 %v6006_v15, %v2946_v7  ;;  %v3052_v8 = vld [vmem:[#allocation6 + $0x2d8] sm:$0xff]  ;;  %v2971_v27 = vld [vmem:[#allocation6 + $0x50] sm:$0xff] }
 0xe61   : > { %v6094_v47 = vcombine.high %v3044_v6, %v3052_v8  ;;  %v7860_v5 = vadd.f32 %v6006_v15, %v2947_v55  ;;  %v6093_v30 = vcombine.low %v3044_v6, %v3052_v8  ;;  %v2964_v7 = vld [vmem:[#allocation6 + $0x18] sm:$0xff]  ;;  %v3061_v55 = vld [vmem:[#allocation6 + $0x320] sm:$0xff] }
 0xe62   : > { %v7852_v58 = vpack.c.bf16 %v7848_v52, %v7845_v59  ;;  %v2948_v51 = vmul.f32 %v6005_v26, %v2938_v39  ;;  %v2988_v26 = vld [vmem:[#allocation6 + $0xd8] sm:$0xff]  ;;  %v6027_v39 = vcombine.low %v2979_v18, %v2987_v24  ;;  %v6014_v41 = vcombine.high %v2964_v7, %v2972_v13 }
 0xe63   : > { %v6030_v36 = vcombine.high %v2980_v25, %v2988_v26  ;;  %v6029_v40 = vcombine.low %v2980_v25, %v2988_v26  ;;  %v6013_v9 = vcombine.low %v2964_v7, %v2972_v13  ;;  %v2997_v26 = vld [vmem:[#allocation6 + $0x120] sm:$0xff] }
 0xe64   : > { %3846 = vmatmul.mubr.bf16.vlgmr.msra.gmra.mxu1 %v7852_v58  ;;  %3899 = vmatmul.mubr.bf16.vlgmr.msra.gmra.mxu0 %v7852_v58  ;;  %v7856_v62 = vadd.f32 %v6006_v15, %v2948_v51  ;;  %v2963_v15 = vld [vmem:[#allocation6 + $0x10] sm:$0xff]  ;;  %v3085_v51 = vld [vmem:[#allocation6 + $0x3e0] sm:$0xff] }
 0xe65   : > { %3920 = vmatpush1.bf16.msra.mxu1 %v6123_v37  ;;  %3973 = vmatpush1.bf16.msra.mxu0 %v6125_v48  ;;  %v3012_v37 = vld [vmem:[#allocation6 + $0x198] sm:$0xff]  ;;  %v6012_v49 = vcombine.high %v2963_v15, %v2971_v27  ;;  %v6011_v46 = vcombine.low %v2963_v15, %v2971_v27  ;;  %v6128_v6 = vcombine.high %v3077_v42, %v3085_v51  ;;  %v2981_v13 = vld [vmem:[#allocation6 + $0xa0] sm:$0xff] }
 0xe66   : > { %8438 = vst [vmem:[#allocation9_spill] sm:$0xff] %v7856_v62  ;;  %3921 = vmatprep.subr.bf16.mxu1 %v6108_v44  ;;  %3974 = vmatprep.subr.bf16.mxu0 %v6110_v45  ;;  %v7864_v10 = vpack.c.bf16 %v7856_v62, %v7860_v5  ;;  %v3020_v48 = vld [vmem:[#allocation6 + $0x1d8] sm:$0xff]  ;;  %v3078_v44 = vld [vmem:[#allocation6 + $0x3a8] sm:$0xff] }
 0xe67   : > { %3855 = vmatprep.mubr.bf16.mxu1 %v7230_v0  ;;  %3908 = vmatprep.mubr.bf16.mxu0 %v7230_v0  ;;  %v6062_v43 = vcombine.high %v3012_v37, %v3020_v48  ;;  %v6061_v1 = vcombine.low %v3012_v37, %v3020_v48  ;;  %v3086_v45 = vld [vmem:[#allocation6 + $0x3e8] sm:$0xff]  ;;  %v3029_v48 = vld [vmem:[#allocation6 + $0x220] sm:$0xff] }
 0xe68   : > { %v6130_v8 = vcombine.high %v3078_v44, %v3086_v45  ;;  %v6129_v50 = vcombine.low %v3078_v44, %v3086_v45  ;;  %v2965_v45 = vld [vmem:[#allocation6 + $0x20] sm:$0xff] }
 0xe69   : > { %3922 = vmatpush1.bf16.msra.mxu1 %v6107_v53  ;;  %3975 = vmatpush1.bf16.msra.mxu0 %v6109_v60  ;;  %v3069_v53 = vld [vmem:[#allocation6 + $0x360] sm:$0xff]  ;;  %v3062_v60 = vld [vmem:[#allocation6 + $0x328] sm:$0xff] }
 0xe6a   : > { %3923 = vmatprep.subr.bf16.mxu1 %v6092_v3  ;;  %3976 = vmatprep.subr.bf16.mxu0 %v6094_v47  ;;  %v3070_v3 = vld [vmem:[#allocation6 + $0x368] sm:$0xff]  ;;  %v6127_v47 = vcombine.low %v3077_v42, %v3085_v51  ;;  %v6112_v61 = vcombine.high %v3061_v55, %v3069_v53 }
 0xe6b   : > { %v6114_v63 = vcombine.high %v3062_v60, %v3070_v3  ;;  %v6113_v57 = vcombine.low %v3062_v60, %v3070_v3  ;;  %v3079_v3 = vld [vmem:[#allocation6 + $0x3b0] sm:$0xff] }
 0xe6c   : > { %3856 = vmatmul.mubr.bf16.gmra.mxu1 %v7864_v10  ;;  %3909 = vmatmul.mubr.bf16.gmra.mxu0 %v7864_v10 }
 0xe6d   : > { %3924 = vmatpush1.bf16.msra.mxu1 %v6091_v32  ;;  %3977 = vmatpush1.bf16.msra.mxu0 %v6093_v30  ;;  %v3053_v32 = vld [vmem:[#allocation6 + $0x2e0] sm:$0xff]  ;;  %v3046_v30 = vld [vmem:[#allocation6 + $0x2a8] sm:$0xff] }
 0xe6e   : > { %3925 = vmatprep.subr.bf16.mxu1 %v6076_v12  ;;  %3978 = vmatprep.subr.bf16.mxu0 %v6078_v14  ;;  %v3054_v12 = vld [vmem:[#allocation6 + $0x2e8] sm:$0xff]  ;;  %v6111_v14 = vcombine.low %v3061_v55, %v3069_v53  ;;  %v6096_v22 = vcombine.high %v3045_v2, %v3053_v32 }
 0xe6f   : > { %3951 = vmatprep.mubr.bf16.mxu1 %v7230_v0  ;;  %4004 = vmatprep.mubr.bf16.mxu0 %v7230_v0  ;;  %v6098_v37 = vcombine.high %v3046_v30, %v3054_v12  ;;  %v6097_v17 = vcombine.low %v3046_v30, %v3054_v12  ;;  %v3063_v12 = vld [vmem:[#allocation6 + $0x330] sm:$0xff] }
 0xe71   : > { %3926 = vmatpush1.bf16.msra.mxu1 %v6075_v16  ;;  %3979 = vmatpush1.bf16.msra.mxu0 %v6077_v31  ;;  %v3037_v16 = vld [vmem:[#allocation6 + $0x260] sm:$0xff]  ;;  %v3030_v31 = vld [vmem:[#allocation6 + $0x228] sm:$0xff] }
 0xe72   : > { %3927 = vmatprep.subr.bf16.mxu1 %v6060_v11  ;;  %3980 = vmatprep.subr.bf16.mxu0 %v6062_v43  ;;  %v3038_v11 = vld [vmem:[#allocation6 + $0x268] sm:$0xff]  ;;  %v6095_v43 = vcombine.low %v3045_v2, %v3053_v32  ;;  %v6080_v19 = vcombine.high %v3029_v48, %v3037_v16 }
 0xe73   : > { %v6082_v54 = vcombine.high %v3030_v31, %v3038_v11  ;;  %v6081_v18 = vcombine.low %v3030_v31, %v3038_v11  ;;  %v3047_v11 = vld [vmem:[#allocation6 + $0x2b0] sm:$0xff] }
 0xe75   : > { %3928 = vmatpush1.bf16.msra.mxu1 %v6059_v20  ;;  %3981 = vmatpush1.bf16.msra.mxu0 %v6061_v1  ;;  %v3021_v20 = vld [vmem:[#allocation6 + $0x1e0] sm:$0xff]  ;;  %v3014_v1 = vld [vmem:[#allocation6 + $0x1a8] sm:$0xff] }
 0xe76   : > { %3929 = vmatprep.subr.bf16.mxu1 %v6044_v21  ;;  %3982 = vmatprep.subr.bf16.mxu0 %v6046_v23  ;;  %v3022_v21 = vld [vmem:[#allocation6 + $0x1e8] sm:$0xff]  ;;  %v6079_v23 = vcombine.low %v3029_v48, %v3037_v16  ;;  %v6064_v24 = vcombine.high %v3013_v56, %v3021_v20 }
 0xe77   : > { %v6066_v25 = vcombine.high %v3014_v1, %v3022_v21  ;;  %v6065_v15 = vcombine.low %v3014_v1, %v3022_v21  ;;  %v3031_v21 = vld [vmem:[#allocation6 + $0x230] sm:$0xff] }
 0xe79   : > { %3930 = vmatpush1.bf16.msra.mxu1 %v6043_v28  ;;  %3983 = vmatpush1.bf16.msra.mxu0 %v6045_v29  ;;  %v3005_v28 = vld [vmem:[#allocation6 + $0x160] sm:$0xff]  ;;  %v2998_v29 = vld [vmem:[#allocation6 + $0x128] sm:$0xff] }
 0xe7a   : > { %3931 = vmatprep.subr.bf16.mxu1 %v6028_v35  ;;  %3984 = vmatprep.subr.bf16.mxu0 %v6030_v36  ;;  %v3006_v35 = vld [vmem:[#allocation6 + $0x168] sm:$0xff]  ;;  %v6063_v36 = vcombine.low %v3013_v56, %v3021_v20  ;;  %v6048_v27 = vcombine.high %v2997_v26, %v3005_v28 }
 0xe7b   : > { %v6050_v7 = vcombine.high %v2998_v29, %v3006_v35  ;;  %v6049_v42 = vcombine.low %v2998_v29, %v3006_v35  ;;  %v3015_v35 = vld [vmem:[#allocation6 + $0x1b0] sm:$0xff] }
 0xe7d   : > { %3932 = vmatpush1.bf16.msra.mxu1 %v6027_v39  ;;  %3985 = vmatpush1.bf16.msra.mxu0 %v6029_v40  ;;  %v2989_v39 = vld [vmem:[#allocation6 + $0xe0] sm:$0xff]  ;;  %v2982_v40 = vld [vmem:[#allocation6 + $0xa8] sm:$0xff] }
 0xe7e   : > { %3933 = vmatprep.subr.bf16.mxu1 %v6012_v49  ;;  %3986 = vmatprep.subr.bf16.mxu0 %v6014_v41  ;;  %v2990_v49 = vld [vmem:[#allocation6 + $0xe8] sm:$0xff]  ;;  %v6047_v41 = vcombine.low %v2997_v26, %v3005_v28  ;;  %v6032_v51 = vcombine.high %v2981_v13, %v2989_v39 }
 0xe7f   : > { %v6034_v44 = vcombine.high %v2982_v40, %v2990_v49  ;;  %v6033_v55 = vcombine.low %v2982_v40, %v2990_v49  ;;  %v2999_v49 = vld [vmem:[#allocation6 + $0x130] sm:$0xff] }
 0xe81   : > { %3934 = vmatpush1.bf16.msra.mxu1 %v6011_v46  ;;  %3987 = vmatpush1.bf16.msra.mxu0 %v6013_v9  ;;  %v2973_v46 = vld [vmem:[#allocation6 + $0x60] sm:$0xff]  ;;  %v2966_v9 = vld [vmem:[#allocation6 + $0x28] sm:$0xff] }
 0xe82   : > { %4025 = vmatprep.subr.bf16.mxu1 %v6128_v6  ;;  %4078 = vmatprep.subr.bf16.mxu0 %v6130_v8  ;;  %v2974_v6 = vld [vmem:[#allocation6 + $0x68] sm:$0xff]  ;;  %v6031_v8 = vcombine.low %v2981_v13, %v2989_v39  ;;  %v6016_v53 = vcombine.high %v2965_v45, %v2973_v46 }
 0xe83   : > { %v6018_v60 = vcombine.high %v2966_v9, %v2974_v6  ;;  %v6017_v2 = vcombine.low %v2966_v9, %v2974_v6  ;;  %v2983_v6 = vld [vmem:[#allocation6 + $0xb0] sm:$0xff] }
 0xe84   : > { %3952 = vmatmul.mubr.bf16.vlgmr.msra.gmra.mxu1 %v7852_v58  ;;  %4005 = vmatmul.mubr.bf16.vlgmr.msra.gmra.mxu0 %v7852_v58 }
 0xe85   : > { %4026 = vmatpush1.bf16.msra.mxu1 %v6127_v47  ;;  %4079 = vmatpush1.bf16.msra.mxu0 %v6129_v50  ;;  %v3087_v47 = vld [vmem:[#allocation6 + $0x3f0] sm:$0xff]  ;;  %v3080_v50 = vld [vmem:[#allocation6 + $0x3b8] sm:$0xff] }
 0xe86   : > { %4027 = vmatprep.subr.bf16.mxu1 %v6112_v61  ;;  %4080 = vmatprep.subr.bf16.mxu0 %v6114_v63  ;;  %v3088_v61 = vld [vmem:[#allocation6 + $0x3f8] sm:$0xff]  ;;  %v6015_v63 = vcombine.low %v2965_v45, %v2973_v46  ;;  %v6132_v32 = vcombine.high %v3079_v3, %v3087_v47 }
 0xe87   : > { %3961 = vmatprep.mubr.bf16.mxu1 %v7230_v0  ;;  %4014 = vmatprep.mubr.bf16.mxu0 %v7230_v0  ;;  %v6134_v30 = vcombine.high %v3080_v50, %v3088_v61  ;;  %v6133_v48 = vcombine.low %v3080_v50, %v3088_v61  ;;  %v2967_v61 = vld [vmem:[#allocation6 + $0x30] sm:$0xff] }
 0xe89   : > { %4028 = vmatpush1.bf16.msra.mxu1 %v6111_v14  ;;  %4081 = vmatpush1.bf16.msra.mxu0 %v6113_v57  ;;  %v3071_v14 = vld [vmem:[#allocation6 + $0x370] sm:$0xff]  ;;  %v3064_v57 = vld [vmem:[#allocation6 + $0x338] sm:$0xff] }
 0xe8a   : > { %4029 = vmatprep.subr.bf16.mxu1 %v6096_v22  ;;  %4082 = vmatprep.subr.bf16.mxu0 %v6098_v37  ;;  %v3072_v22 = vld [vmem:[#allocation6 + $0x378] sm:$0xff]  ;;  %v6131_v37 = vcombine.low %v3079_v3, %v3087_v47  ;;  %v6116_v16 = vcombine.high %v3063_v12, %v3071_v14 }
 0xe8b   : > { %v6118_v31 = vcombine.high %v3064_v57, %v3072_v22  ;;  %v6117_v56 = vcombine.low %v3064_v57, %v3072_v22 }
 0xe8c   : > { %3962 = vmatmul.mubr.bf16.gmra.mxu1 %v7864_v10  ;;  %4015 = vmatmul.mubr.bf16.gmra.mxu0 %v7864_v10 }
 0xe8d   : > { %4030 = vmatpush1.bf16.msra.mxu1 %v6095_v43  ;;  %4083 = vmatpush1.bf16.msra.mxu0 %v6097_v17  ;;  %v3055_v43 = vld [vmem:[#allocation6 + $0x2f0] sm:$0xff]  ;;  %v3048_v17 = vld [vmem:[#allocation6 + $0x2b8] sm:$0xff] }
 0xe8e   : > { %4031 = vmatprep.subr.bf16.mxu1 %v6080_v19  ;;  %4084 = vmatprep.subr.bf16.mxu0 %v6082_v54  ;;  %v3056_v19 = vld [vmem:[#allocation6 + $0x2f8] sm:$0xff]  ;;  %v6115_v54 = vcombine.low %v3063_v12, %v3071_v14  ;;  %v6100_v20 = vcombine.high %v3047_v11, %v3055_v43 }
 0xe8f   : > { %4057 = vmatprep.mubr.bf16.mxu1 %v7230_v0  ;;  %4110 = vmatprep.mubr.bf16.mxu0 %v7230_v0  ;;  %v6102_v1 = vcombine.high %v3048_v17, %v3056_v19  ;;  %v6101_v26 = vcombine.low %v3048_v17, %v3056_v19  ;;  %v6921_v17 = vld [vmem:[%s8427_s7 + $0xf0] sm:$0xff]  }
 0xe90   : > { %v6922_v19 = vld [vmem:[%s8427_s7 + $0x30] sm:$0xff]  }
 0xe91   : > { %4032 = vmatpush1.bf16.msra.mxu1 %v6079_v23  ;;  %4085 = vmatpush1.bf16.msra.mxu0 %v6081_v18  ;;  %v3039_v23 = vld [vmem:[#allocation6 + $0x270] sm:$0xff]  ;;  %v3032_v18 = vld [vmem:[#allocation6 + $0x238] sm:$0xff] }
 0xe92   : > { %4033 = vmatprep.subr.bf16.mxu1 %v6064_v24  ;;  %4086 = vmatprep.subr.bf16.mxu0 %v6066_v25  ;;  %v3040_v24 = vld [vmem:[#allocation6 + $0x278] sm:$0xff]  ;;  %v6099_v25 = vcombine.low %v3047_v11, %v3055_v43  ;;  %v6084_v28 = vcombine.high %v3031_v21, %v3039_v23  ;;  %v6920_v43 = vld [vmem:[%s8427_s7 + $0x70] sm:$0xff]  }
 0xe93   : > { %v6086_v29 = vcombine.high %v3032_v18, %v3040_v24  ;;  %v6085_v13 = vcombine.low %v3032_v18, %v3040_v24  ;;  %v6919_v11 = vld [vmem:[%s8427_s7 + $0xb8] sm:$0xff]   ;;  %v6931_v18 = vld [vmem:[%s8427_s7 + $0xa0] sm:$0xff]  }
 0xe94   : > { %v6932_v24 = vld [vmem:[%s8427_s7 + $0x58] sm:$0xff]  }
 0xe95   : > { %4034 = vmatpush1.bf16.msra.mxu1 %v6063_v36  ;;  %4087 = vmatpush1.bf16.msra.mxu0 %v6065_v15  ;;  %v3023_v36 = vld [vmem:[#allocation6 + $0x1f0] sm:$0xff]  ;;  %v3016_v15 = vld [vmem:[#allocation6 + $0x1b8] sm:$0xff] }
 0xe96   : > { %4035 = vmatprep.subr.bf16.mxu1 %v6048_v27  ;;  %4088 = vmatprep.subr.bf16.mxu0 %v6050_v7  ;;  %v3024_v27 = vld [vmem:[#allocation6 + $0x1f8] sm:$0xff]  ;;  %v6083_v7 = vcombine.low %v3031_v21, %v3039_v23  ;;  %v6068_v39 = vcombine.high %v3015_v35, %v3023_v36  ;;  %v6929_v21 = vld [vmem:[%s8427_s7 + $0xe0] sm:$0xff]  }
 0xe97   : > { %v6070_v40 = vcombine.high %v3016_v15, %v3024_v27  ;;  %v6069_v45 = vcombine.low %v3016_v15, %v3024_v27  ;;  %v6930_v23 = vld [vmem:[%s8427_s7 + $0x20] sm:$0xff]   ;;  %v6940_v15 = vld [vmem:[%s8427_s7 + $0x48] sm:$0xff]  }
 0xe98   : > { %v6941_v27 = vld [vmem:[%s8427_s7 + $0xc8] sm:$0xff]  }
 0xe99   : > { %4036 = vmatpush1.bf16.msra.mxu1 %v6047_v41  ;;  %4089 = vmatpush1.bf16.msra.mxu0 %v6049_v42  ;;  %v3007_v41 = vld [vmem:[#allocation6 + $0x170] sm:$0xff]  ;;  %v3000_v42 = vld [vmem:[#allocation6 + $0x138] sm:$0xff] }
 0xe9a   : > { %4037 = vmatprep.subr.bf16.mxu1 %v6032_v51  ;;  %4090 = vmatprep.subr.bf16.mxu0 %v6034_v44  ;;  %v3008_v51 = vld [vmem:[#allocation6 + $0x178] sm:$0xff]  ;;  %v6067_v44 = vcombine.low %v3015_v35, %v3023_v36  ;;  %v6052_v46 = vcombine.high %v2999_v49, %v3007_v41  ;;  %v6938_v35 = vld [vmem:[%s8427_s7 + $0x10] sm:$0xff]  }
 0xe9b   : > { %v6054_v9 = vcombine.high %v3000_v42, %v3008_v51  ;;  %v6053_v3 = vcombine.low %v3000_v42, %v3008_v51  ;;  %v6939_v36 = vld [vmem:[%s8427_s7 + $0x90] sm:$0xff]   ;;  %v6948_v42 = vld [vmem:[%s8427_s7 + $0x178] sm:$0xff]  }
 0xe9c   : > { %v6949_v51 = vld [vmem:[%s8427_s7 + $0x1f8] sm:$0xff]  }
 0xe9d   : > { %4038 = vmatpush1.bf16.msra.mxu1 %v6031_v8  ;;  %4091 = vmatpush1.bf16.msra.mxu0 %v6033_v55  ;;  %v2991_v8 = vld [vmem:[#allocation6 + $0xf0] sm:$0xff]  ;;  %v2984_v55 = vld [vmem:[#allocation6 + $0xb8] sm:$0xff] }
 0xe9e   : > { %4039 = vmatprep.subr.bf16.mxu1 %v6016_v53  ;;  %4092 = vmatprep.subr.bf16.mxu0 %v6018_v60  ;;  %v2992_v53 = vld [vmem:[#allocation6 + $0xf8] sm:$0xff]  ;;  %v6051_v60 = vcombine.low %v2999_v49, %v3007_v41  ;;  %v6036_v47 = vcombine.high %v2983_v6, %v2991_v8  ;;  %v6946_v49 = vld [vmem:[%s8427_s7] sm:$0xff]  }
 0xe9f   : > { %v6038_v50 = vcombine.high %v2984_v55, %v2992_v53  ;;  %v6037_v12 = vcombine.low %v2984_v55, %v2992_v53  ;;  %v6947_v41 = vld [vmem:[%s8427_s7 + $0x80] sm:$0xff]  }
 0xea1   : > { %4040 = vmatpush1.bf16.msra.mxu1 %v6015_v63  ;;  %4093 = vmatpush1.bf16.msra.mxu0 %v6017_v2  ;;  %v2975_v63 = vld [vmem:[#allocation6 + $0x70] sm:$0xff]  ;;  %v2968_v2 = vld [vmem:[#allocation6 + $0x38] sm:$0xff] }
 0xea2   : > { %4131 = vmatprep.subr.bf16.mxu1 %v6132_v32  ;;  %4184 = vmatprep.subr.bf16.mxu0 %v6134_v30  ;;  %v2976_v32 = vld [vmem:[#allocation6 + $0x78] sm:$0xff]  ;;  %v6035_v30 = vcombine.low %v2983_v6, %v2991_v8  ;;  %v6020_v14 = vcombine.high %v2967_v61, %v2975_v63  ;;  %v6019_v22 = vcombine.low %v2967_v61, %v2975_v63 }
 0xea3   : > { %v6022_v57 = vcombine.high %v2968_v2, %v2976_v32 }
 0xea4   : > { %4058 = vmatmul.mubr.bf16.vlgmr.msra.gmra.mxu1 %v7852_v58  ;;  %4111 = vmatmul.mubr.bf16.vlgmr.msra.gmra.mxu0 %v7852_v58 }
 0xea5   : > { %4132 = vmatpush1.bf16.msra.mxu1 %v6131_v37  ;;  %4185 = vmatpush1.bf16.msra.mxu0 %v6133_v48  ;;  %v6021_v37 = vcombine.low %v2968_v2, %v2976_v32  ;;  %v6916_v48 = vld [vmem:[%s8427_s7 + $0x78] sm:$0xff]  }
 0xea6   : > { %4133 = vmatprep.subr.bf16.mxu1 %v6116_v16  ;;  %4186 = vmatprep.subr.bf16.mxu0 %v6118_v31  ;;  %v6917_v16 = vld [vmem:[%s8427_s7 + $0xf8] sm:$0xff]  }
 0xea7   : > { %4067 = vmatprep.mubr.bf16.mxu1 %v7230_v0  ;;  %4120 = vmatprep.mubr.bf16.mxu0 %v7230_v0  ;;  %v6918_v31 = vld [vmem:[%s8427_s7 + $0x38] sm:$0xff]  }
 0xea9   : > { %4134 = vmatpush1.bf16.msra.mxu1 %v6115_v54  ;;  %4187 = vmatpush1.bf16.msra.mxu0 %v6117_v56  ;;  %v6923_v54 = vld [vmem:[%s8427_s7 + $0xb0] sm:$0xff]   ;;  %v6926_v56 = vld [vmem:[%s8427_s7 + $0x28] sm:$0xff]  }
 0xeaa   : > { %4135 = vmatprep.subr.bf16.mxu1 %v6100_v20  ;;  %4188 = vmatprep.subr.bf16.mxu0 %v6102_v1  ;;  %v6927_v20 = vld [vmem:[%s8427_s7 + $0xa8] sm:$0xff]   ;;  %v6928_v1 = vld [vmem:[%s8427_s7 + $0x60] sm:$0xff]  }
 0xeac   : > { %4068 = vmatmul.mubr.bf16.gmra.mxu1 %v7864_v10  ;;  %4121 = vmatmul.mubr.bf16.gmra.mxu0 %v7864_v10 }
 0xead   : > { %4136 = vmatpush1.bf16.msra.mxu1 %v6099_v25  ;;  %4189 = vmatpush1.bf16.msra.mxu0 %v6101_v26  ;;  %v6934_v25 = vld [vmem:[%s8427_s7 + $0x18] sm:$0xff]  }
 0xeae   : > { %4137 = vmatprep.subr.bf16.mxu1 %v6084_v28  ;;  %4190 = vmatprep.subr.bf16.mxu0 %v6086_v29  ;;  %v6935_v26 = vld [vmem:[%s8427_s7 + $0x98] sm:$0xff]   ;;  %v6936_v28 = vld [vmem:[%s8427_s7 + $0x50] sm:$0xff]  }
 0xeaf   : > { %4163 = vmatprep.mubr.bf16.mxu1 %v7230_v0  ;;  %4216 = vmatprep.mubr.bf16.mxu0 %v7230_v0  ;;  %v6937_v29 = vld [vmem:[%s8427_s7 + $0xd0] sm:$0xff]  }
 0xeb1   : > { %4138 = vmatpush1.bf16.msra.mxu1 %v6083_v7  ;;  %4191 = vmatpush1.bf16.msra.mxu0 %v6085_v13  ;;  %v6942_v7 = vld [vmem:[%s8427_s7 + $0x8] sm:$0xff]  }
 0xeb2   : > { %4139 = vmatprep.subr.bf16.mxu1 %v6068_v39  ;;  %4192 = vmatprep.subr.bf16.mxu0 %v6070_v40  ;;  %v6943_v13 = vld [vmem:[%s8427_s7 + $0x88] sm:$0xff]   ;;  %v6944_v39 = vld [vmem:[%s8427_s7 + $0x40] sm:$0xff]  }
 0xeb3   : > { %v6945_v40 = vld [vmem:[%s8427_s7 + $0xc0] sm:$0xff]  }
 0xeb5   : > { %4140 = vmatpush1.bf16.msra.mxu1 %v6067_v44  ;;  %4193 = vmatpush1.bf16.msra.mxu0 %v6069_v45  ;;  %v3107_v44 = vsub.s32 3, %v7406_v33  ;;  %v7998_v45 = vld [vmem:[%s8426_s6] sm:$0xff] }
 0xeb6   : > { %4141 = vmatprep.subr.bf16.mxu1 %v6052_v46  ;;  %4194 = vmatprep.subr.bf16.mxu0 %v6054_v9  ;;  %v3100_v6 = vrot.slane %v7998_v45, %v7409_v34  ;;  %v3096_v55 = vrot.slane %v7998_v45, %v7416_v38  ;;  %v3104_v53 = vrot.slane %v7998_v45, %v7464_v4 }
 0xeb7   : > { %v3108_v8 = vrot.slane %v7998_v45, %v3107_v44 }
 0xeb9   : > { %4142 = vmatpush1.bf16.msra.mxu1 %v6051_v60  ;;  %4195 = vmatpush1.bf16.msra.mxu0 %v6053_v3 }
 0xeba   : > { %4143 = vmatprep.subr.bf16.mxu1 %v6036_v47  ;;  %4196 = vmatprep.subr.bf16.mxu0 %v6038_v50 }
 0xebd   : > { %4144 = vmatpush1.bf16.msra.mxu1 %v6035_v30  ;;  %4197 = vmatpush1.bf16.msra.mxu0 %v6037_v12 }
 0xebe   : > { %4145 = vmatprep.subr.bf16.mxu1 %v6020_v14  ;;  %4198 = vmatprep.subr.bf16.mxu0 %v6022_v57 }
 0xec1   : > { %4146 = vmatpush1.bf16.msra.mxu1 %v6019_v22  ;;  %4199 = vmatpush1.bf16.msra.mxu0 %v6021_v37 }
 0xec2   : > { %6358 = vmatprep.subr.bf16.mxu1 %v6916_v48  ;;  %6386 = vmatprep.subr.bf16.mxu0 %v6917_v16 }
 0xec4   : > { %4164 = vmatmul.mubr.bf16.vlgmr.msra.gmra.mxu1 %v7852_v58  ;;  %4217 = vmatmul.mubr.bf16.vlgmr.msra.gmra.mxu0 %v7852_v58  ;;  %v6924_v58 = vld [vmem:[%s8427_s7 + $0x68] sm:$0xff]  }
 0xec5   : > { %4173 = vmatprep.mubr.bf16.mxu1 %v7230_v0  ;;  %4226 = vmatprep.mubr.bf16.mxu0 %v7230_v0  ;;  %v6925_v0 = vld [vmem:[%s8427_s7 + $0xe8] sm:$0xff]  }
 0xec6   : > { %6359 = vmatpush3.bf16.msra.mxu1 %v6918_v31  ;;  %6387 = vmatpush3.bf16.msra.mxu0 %v6919_v11 }
 0xec7   : > { %6360 = vmatprep.subr.bf16.mxu1 %v6920_v43  ;;  %6388 = vmatprep.subr.bf16.mxu0 %v6921_v17 }
 0xeca   : > { %6361 = vmatpush3.bf16.msra.mxu1 %v6922_v19  ;;  %6389 = vmatpush3.bf16.msra.mxu0 %v6923_v54 }
 0xecb   : > { %6362 = vmatprep.subr.bf16.mxu1 %v6924_v58  ;;  %6390 = vmatprep.subr.bf16.mxu0 %v6925_v0 }
 0xecc   : > { %4174 = vmatmul.mubr.bf16.gmra.mxu1 %v7864_v10  ;;  %4227 = vmatmul.mubr.bf16.gmra.mxu0 %v7864_v10  ;;  %v6933_v10 = vld [vmem:[%s8427_s7 + $0xd8] sm:$0xff]  }
 0xece   : > { %6363 = vmatpush3.bf16.msra.mxu1 %v6926_v56  ;;  %6391 = vmatpush3.bf16.msra.mxu0 %v6927_v20 }
 0xecf   : > { %6364 = vmatprep.subr.bf16.mxu1 %v6928_v1  ;;  %6392 = vmatprep.subr.bf16.mxu0 %v6929_v21 }
 0xed2   : > { %6365 = vmatpush3.bf16.msra.mxu1 %v6930_v23  ;;  %6393 = vmatpush3.bf16.msra.mxu0 %v6931_v18  ;;  %v6950_v23 = vld [vmem:[%s8427_s7 + $0x138] sm:$0xff]  }
 0xed3   : > { %6366 = vmatprep.subr.bf16.mxu1 %v6932_v24  ;;  %6394 = vmatprep.subr.bf16.mxu0 %v6933_v10  ;;  %v6951_v18 = vld [vmem:[%s8427_s7 + $0x1b8] sm:$0xff]  }
 0xed6   : > { %6367 = vmatpush3.bf16.msra.mxu1 %v6934_v25  ;;  %6395 = vmatpush3.bf16.msra.mxu0 %v6935_v26 }
 0xed7   : > { %6368 = vmatprep.subr.bf16.mxu1 %v6936_v28  ;;  %6396 = vmatprep.subr.bf16.mxu0 %v6937_v29  ;;  %v6952_v29 = vld [vmem:[%s8427_s7 + $0x170] sm:$0xff]  }
 0xeda   : > { %6369 = vmatpush3.bf16.msra.mxu1 %v6938_v35  ;;  %6397 = vmatpush3.bf16.msra.mxu0 %v6939_v36  ;;  %v6953_v35 = vld [vmem:[%s8427_s7 + $0x1f0] sm:$0xff]  }
 0xedb   : > { %6370 = vmatprep.subr.bf16.mxu1 %v6940_v15  ;;  %6398 = vmatprep.subr.bf16.mxu0 %v6941_v27 }
 0xede   : > { %6371 = vmatpush3.bf16.msra.mxu1 %v6942_v7  ;;  %6399 = vmatpush3.bf16.msra.mxu0 %v6943_v13 }
 0xedf   : > { %6372 = vmatprep.subr.bf16.mxu1 %v6944_v39  ;;  %6400 = vmatprep.subr.bf16.mxu0 %v6945_v40 }
 0xee2   : > { %6373 = vmatpush3.bf16.msra.mxu1 %v6946_v49  ;;  %6401 = vmatpush3.bf16.msra.mxu0 %v6947_v41 }
 0xee3   : > { %6414 = vmatprep.subr.bf16.mxu1 %v6948_v42  ;;  %6442 = vmatprep.subr.bf16.mxu0 %v6949_v51  ;;  %v6954_v42 = vld [vmem:[%s8427_s7 + $0x130] sm:$0xff]  }
 0xee4   : > { %v6955_v51 = vld [vmem:[%s8427_s7 + $0x1b0] sm:$0xff]  }
 0xf24   : > { %v3847_v46 = vpop.f32.mrf.mxu1  ;;  %v3900_v9 = vpop.f32.mrf.mxu0 }
 0xf25   : > { %v3848_v30 = vadd.f32 %v3847_v46, %v3096_v55  ;;  %v3901_v12 = vadd.f32 %v3900_v9, %v3104_v53 }
 0xf26   : > { %v3849_v60 = vpop.f32.mrf.mxu1  ;;  %v3902_v3 = vpop.f32.mrf.mxu0 }
 0xf27   : > { %v3850_v61 = vadd.f32 %v3849_v60, %v3100_v6  ;;  %v3903_v63 = vadd.f32 %v3902_v3, %v3108_v8  ;;  %v4237_v58 = vmax.f32 %v3848_v30, 0.0  ;;  %v4239_v0 = vmax.f32 %v3901_v12, 0.0 }
 0xf28   : > { %v3851_v47 = vpop.f32.mrf.mxu1  ;;  %v3904_v50 = vpop.f32.mrf.mxu0 }
 0xf29   : > { %v3852_v2 = vadd.f32 %v3851_v47, %v3096_v55  ;;  %v3905_v32 = vadd.f32 %v3904_v50, %v3104_v53  ;;  %v4238_v43 = vmax.f32 %v3850_v61, 0.0  ;;  %v4240_v17 = vmax.f32 %v3903_v63, 0.0 }
 0xf2a   : > { %v3853_v14 = vpop.f32.mrf.mxu1  ;;  %v3906_v57 = vpop.f32.mrf.mxu0 }
 0xf2b   : > { %v3854_v22 = vadd.f32 %v3853_v14, %v3100_v6  ;;  %v3907_v37 = vadd.f32 %v3906_v57, %v3108_v8  ;;  %v4253_v48 = vmax.f32 %v3852_v2, 0.0  ;;  %v4255_v16 = vmax.f32 %v3905_v32, 0.0  ;;  %v6958_v2 = vld [vmem:[%s8427_s7 + $0x128] sm:$0xff]   ;;  %v6960_v14 = vld [vmem:[%s8427_s7 + $0x160] sm:$0xff]  }
 0xf2c   : > { %v3857_v31 = vpop.f32.mrf.mxu1  ;;  %v3910_v11 = vpop.f32.mrf.mxu0  ;;  %v6959_v32 = vld [vmem:[%s8427_s7 + $0x1a8] sm:$0xff]   ;;  %v6961_v57 = vld [vmem:[%s8427_s7 + $0x1e0] sm:$0xff]  }
 0xf2d   : > { %v4254_v19 = vmax.f32 %v3854_v22, 0.0  ;;  %v4256_v54 = vmax.f32 %v3907_v37, 0.0  ;;  %v4301_v24 = vpack.c.bf16 %v4253_v48, %v4237_v58  ;;  %v4303_v10 = vpack.c.bf16 %v4255_v16, %v4239_v0  ;;  %v6962_v22 = vld [vmem:[%s8427_s7 + $0x120] sm:$0xff]   ;;  %v6964_v48 = vld [vmem:[%s8427_s7 + $0x158] sm:$0xff]  }
 0xf2e   : > { %v3859_v56 = vpop.f32.mrf.mxu1  ;;  %v3912_v20 = vpop.f32.mrf.mxu0  ;;  %v3858_v7 = vadd.f32 %v3857_v31, %v3096_v55  ;;  %v3911_v13 = vadd.f32 %v3910_v11, %v3104_v53  ;;  %v6963_v37 = vld [vmem:[%s8427_s7 + $0x1a0] sm:$0xff]   ;;  %v6965_v16 = vld [vmem:[%s8427_s7 + $0x1d8] sm:$0xff]   ;;  %v3111_v58 = vsub.s32 4, %v7406_v33  ;;  %v3119_v0 = vsub.s32 6, %v7406_v33 }
 0xf2f   : > { %v4302_v1 = vpack.c.bf16 %v4254_v19, %v4238_v43  ;;  %v4304_v21 = vpack.c.bf16 %v4256_v54, %v4240_v17  ;;  %v3860_v25 = vadd.f32 %v3859_v56, %v3100_v6  ;;  %v3913_v36 = vadd.f32 %v3912_v20, %v3108_v8  ;;  %v6966_v31 = vld [vmem:[%s8427_s7 + $0x118] sm:$0xff]   ;;  %v6968_v43 = vld [vmem:[%s8427_s7 + $0x150] sm:$0xff]  }
 0xf30   : > { %v3861_v26 = vpop.f32.mrf.mxu1  ;;  %v3914_v28 = vpop.f32.mrf.mxu0  ;;  %v4269_v47 = vmax.f32 %v3858_v7, 0.0  ;;  %v4271_v50 = vmax.f32 %v3911_v13, 0.0  ;;  %v6967_v11 = vld [vmem:[%s8427_s7 + $0x198] sm:$0xff]   ;;  %v6969_v17 = vld [vmem:[%s8427_s7 + $0x1d0] sm:$0xff]   ;;  %v3115_v19 = vsub.s32 5, %v7406_v33  ;;  %v3123_v54 = vsub.s32 7, %v7406_v33 }
 0xf31   : > { %v3862_v15 = vadd.f32 %v3861_v26, %v3096_v55  ;;  %v3915_v27 = vadd.f32 %v3914_v28, %v3104_v53  ;;  %5396 = vmatprep.mubr.bf16.mxu1 %v4302_v1  ;;  %5445 = vmatprep.mubr.bf16.mxu0 %v4304_v21  ;;  %v6956_v55 = vld [vmem:[%s8427_s7 + $0x168] sm:$0xff]   ;;  %v4272_v53 = vmax.f32 %v3913_v36, 0.0  ;;  %v6970_v56 = vld [vmem:[%s8427_s7 + $0x110] sm:$0xff]   ;;  %v8103_v26 = vrot.slane %v7998_v45, %v3119_v0  ;;  %v6977_v7 = vld [vmem:[%s8427_s7 + $0x1c0] sm:$0xff]  }
 0xf32   : > { %v3863_v39 = vpop.f32.mrf.mxu1  ;;  %v3916_v40 = vpop.f32.mrf.mxu0  ;;  %5397 = vmatmul.mubr.bf16.vlgmr.msra.gmra.mxu1 %v4301_v24  ;;  %5446 = vmatmul.mubr.bf16.vlgmr.msra.gmra.mxu0 %v4303_v10  ;;  %v6971_v20 = vld [vmem:[%s8427_s7 + $0x190] sm:$0xff]   ;;  %v8088_v24 = vrot.slane %v7998_v45, %v3115_v19  ;;  %v8093_v10 = vrot.slane %v7998_v45, %v3123_v54  ;;  %v6975_v36 = vld [vmem:[%s8427_s7 + $0x188] sm:$0xff]   ;;  %v7040_v33 = vld [vmem:[%s8427_s7 + $0x340] sm:$0xff]  }
 0xf33   : > { %v3864_v49 = vadd.f32 %v3863_v39, %v3100_v6  ;;  %v3917_v41 = vadd.f32 %v3916_v40, %v3108_v8  ;;  %6415 = vmatpush3.bf16.msra.mxu1 %v6950_v23  ;;  %6443 = vmatpush3.bf16.msra.mxu0 %v6951_v18  ;;  %v4285_v46 = vmax.f32 %v3862_v15, 0.0  ;;  %v4287_v9 = vmax.f32 %v3915_v27, 0.0  ;;  %v6957_v6 = vld [vmem:[%s8427_s7 + $0x1e8] sm:$0xff]  }
 0xf34   : > { %6416 = vmatprep.subr.bf16.mxu1 %v6952_v29  ;;  %6444 = vmatprep.subr.bf16.mxu0 %v6953_v35  ;;  %v4270_v8 = vmax.f32 %v3860_v25, 0.0  ;;  %v6972_v23 = vld [vmem:[%s8427_s7 + $0x148] sm:$0xff]   ;;  %v8098_v25 = vrot.slane %v7998_v45, %v3111_v58  ;;  %v6976_v45 = vld [vmem:[%s8427_s7 + $0x140] sm:$0xff]  }
 0xf35   : > { %v4286_v60 = vmax.f32 %v3864_v49, 0.0  ;;  %v4288_v3 = vmax.f32 %v3917_v41, 0.0  ;;  %v4317_v30 = vpack.c.bf16 %v4285_v46, %v4269_v47  ;;  %v4319_v12 = vpack.c.bf16 %v4287_v9, %v4271_v50  ;;  %v6973_v18 = vld [vmem:[%s8427_s7 + $0x1c8] sm:$0xff]   ;;  %v6979_v47 = vld [vmem:[%s8427_s7 + $0x180] sm:$0xff]   ;;  %v6980_v50 = vld [vmem:[%s8427_s7 + $0x278] sm:$0xff]  }
 0xf36   : > { %v6974_v35 = vld [vmem:[%s8427_s7 + $0x108] sm:$0xff]  }
 0xf37   : > { %v4318_v61 = vpack.c.bf16 %v4286_v60, %v4270_v8  ;;  %v4320_v63 = vpack.c.bf16 %v4288_v3, %v4272_v53  ;;  %6417 = vmatpush3.bf16.msra.mxu1 %v6954_v42  ;;  %6445 = vmatpush3.bf16.msra.mxu0 %v6955_v51 }
 0xf38   : > { %6418 = vmatprep.subr.bf16.mxu1 %v6956_v55  ;;  %6446 = vmatprep.subr.bf16.mxu0 %v6957_v6  ;;  %v6978_v6 = vld [vmem:[%s8427_s7 + $0x100] sm:$0xff]  }
 0xf39   : > { %5404 = vmatprep.mubr.bf16.mxu1 %v4318_v61  ;;  %5453 = vmatprep.mubr.bf16.mxu0 %v4320_v63 }
 0xf3a   : > { %5405 = vmatmul.mubr.bf16.gmra.mxu1 %v4317_v30  ;;  %5454 = vmatmul.mubr.bf16.gmra.mxu0 %v4319_v12 }
 0xf3b   : > { %6419 = vmatpush3.bf16.msra.mxu1 %v6958_v2  ;;  %6447 = vmatpush3.bf16.msra.mxu0 %v6959_v32 }
 0xf3c   : > { %6420 = vmatprep.subr.bf16.mxu1 %v6960_v14  ;;  %6448 = vmatprep.subr.bf16.mxu0 %v6961_v57 }
 0xf3f   : > { %6421 = vmatpush3.bf16.msra.mxu1 %v6962_v22  ;;  %6449 = vmatpush3.bf16.msra.mxu0 %v6963_v37  ;;  %v6981_v22 = vld [vmem:[%s8427_s7 + $0x2f8] sm:$0xff]  }
 0xf40   : > { %6422 = vmatprep.subr.bf16.mxu1 %v6964_v48  ;;  %6450 = vmatprep.subr.bf16.mxu0 %v6965_v16  ;;  %v6982_v16 = vld [vmem:[%s8427_s7 + $0x238] sm:$0xff]  }
 0xf43   : > { %6423 = vmatpush3.bf16.msra.mxu1 %v6966_v31  ;;  %6451 = vmatpush3.bf16.msra.mxu0 %v6967_v11 }
 0xf44   : > { %v3953_v1 = vpop.f32.mrf.mxu1  ;;  %v4006_v21 = vpop.f32.mrf.mxu0  ;;  %6424 = vmatprep.subr.bf16.mxu1 %v6968_v43  ;;  %6452 = vmatprep.subr.bf16.mxu0 %v6969_v17 }
 0xf45   : > { %v3954_v41 = vadd.f32 %v3953_v1, %v8098_v25  ;;  %v4007_v42 = vadd.f32 %v4006_v21, %v8103_v26  ;;  %v6984_v1 = vld [vmem:[%s8427_s7 + $0x270] sm:$0xff]  }
 0xf46   : > { %v3955_v28 = vpop.f32.mrf.mxu1  ;;  %v4008_v29 = vpop.f32.mrf.mxu0 }
 0xf47   : > { %6425 = vmatpush3.bf16.msra.mxu1 %v6970_v56  ;;  %6453 = vmatpush3.bf16.msra.mxu0 %v6971_v20  ;;  %v3956_v13 = vadd.f32 %v3955_v28, %v8088_v24  ;;  %v4009_v39 = vadd.f32 %v4008_v29, %v8093_v10  ;;  %v4241_v30 = vmax.f32 %v3954_v41, 0.0  ;;  %v4243_v12 = vmax.f32 %v4007_v42, 0.0  ;;  %v6983_v20 = vld [vmem:[%s8427_s7 + $0x2b8] sm:$0xff]   ;;  %v6985_v28 = vld [vmem:[%s8427_s7 + $0x2f0] sm:$0xff]   ;;  %v6989_v42 = vld [vmem:[%s8427_s7 + $0x2e8] sm:$0xff]  }
 0xf48   : > { %v3957_v15 = vpop.f32.mrf.mxu1  ;;  %v4010_v27 = vpop.f32.mrf.mxu0  ;;  %6426 = vmatprep.subr.bf16.mxu1 %v6972_v23  ;;  %6454 = vmatprep.subr.bf16.mxu0 %v6973_v18 }
 0xf49   : > { %v3958_v40 = vadd.f32 %v3957_v15, %v8098_v25  ;;  %v4011_v49 = vadd.f32 %v4010_v27, %v8103_v26  ;;  %v4242_v61 = vmax.f32 %v3956_v13, 0.0  ;;  %v4244_v63 = vmax.f32 %v4009_v39, 0.0 }
 0xf4a   : > { %v3959_v51 = vpop.f32.mrf.mxu1  ;;  %v4012_v46 = vpop.f32.mrf.mxu0 }
 0xf4b   : > { %v3960_v9 = vadd.f32 %v3959_v51, %v8088_v24  ;;  %v4013_v55 = vadd.f32 %v4012_v46, %v8093_v10  ;;  %6427 = vmatpush3.bf16.msra.mxu1 %v6974_v35  ;;  %6455 = vmatpush3.bf16.msra.mxu0 %v6975_v36  ;;  %v4257_v8 = vmax.f32 %v3958_v40, 0.0  ;;  %v4259_v53 = vmax.f32 %v4011_v49, 0.0 }
 0xf4c   : > { %v3963_v60 = vpop.f32.mrf.mxu1  ;;  %v4016_v3 = vpop.f32.mrf.mxu0  ;;  %6428 = vmatprep.subr.bf16.mxu1 %v6976_v45  ;;  %6456 = vmatprep.subr.bf16.mxu0 %v6977_v7  ;;  %v6986_v7 = vld [vmem:[%s8427_s7 + $0x230] sm:$0xff]  }
 0xf4d   : > { %v4258_v2 = vmax.f32 %v3960_v9, 0.0  ;;  %v4260_v32 = vmax.f32 %v4013_v55, 0.0  ;;  %v4305_v31 = vpack.c.bf16 %v4257_v8, %v4241_v30  ;;  %v4307_v11 = vpack.c.bf16 %v4259_v53, %v4243_v12  ;;  %v6990_v55 = vld [vmem:[%s8427_s7 + $0x228] sm:$0xff]   ;;  %v6992_v53 = vld [vmem:[%s8427_s7 + $0x260] sm:$0xff]   ;;  %v7000_v30 = vld [vmem:[%s8427_s7 + $0x250] sm:$0xff]  }
 0xf4e   : > { %v3965_v14 = vpop.f32.mrf.mxu1  ;;  %v4018_v57 = vpop.f32.mrf.mxu0  ;;  %v3964_v29 = vadd.f32 %v3963_v60, %v8098_v25  ;;  %v4017_v15 = vadd.f32 %v4016_v3, %v8103_v26  ;;  %v6991_v8 = vld [vmem:[%s8427_s7 + $0x2a8] sm:$0xff]   ;;  %v6993_v3 = vld [vmem:[%s8427_s7 + $0x2e0] sm:$0xff]   ;;  %v7001_v12 = vld [vmem:[%s8427_s7 + $0x2d0] sm:$0xff]  }
 0xf4f   : > { %v4306_v37 = vpack.c.bf16 %v4258_v2, %v4242_v61  ;;  %v4308_v48 = vpack.c.bf16 %v4260_v32, %v4244_v63  ;;  %6429 = vmatpush3.bf16.msra.mxu1 %v6978_v6  ;;  %v3966_v43 = vadd.f32 %v3965_v14, %v8088_v24  ;;  %6457 = vmatpush3.bf16.msra.mxu0 %v6979_v47  ;;  %v6994_v47 = vld [vmem:[%s8427_s7 + $0x220] sm:$0xff]   ;;  %v6996_v61 = vld [vmem:[%s8427_s7 + $0x258] sm:$0xff]   ;;  %v8208_v14 = vld [vmem:[%s8426_s6 + $0x8] sm:$0xff] }
 0xf50   : > { %v3967_v17 = vpop.f32.mrf.mxu1  ;;  %v4020_v56 = vpop.f32.mrf.mxu0  ;;  %6470 = vmatprep.subr.bf16.mxu1 %v6980_v50  ;;  %v4019_v21 = vadd.f32 %v4018_v57, %v8093_v10  ;;  %6498 = vmatprep.subr.bf16.mxu0 %v6981_v22  ;;  %v4273_v41 = vmax.f32 %v3964_v29, 0.0  ;;  %v4275_v51 = vmax.f32 %v4017_v15, 0.0  ;;  %v6995_v50 = vld [vmem:[%s8427_s7 + $0x2a0] sm:$0xff]   ;;  %v6997_v63 = vld [vmem:[%s8427_s7 + $0x2d8] sm:$0xff]   ;;  %v7002_v57 = vld [vmem:[%s8427_s7 + $0x210] sm:$0xff]  }
 0xf51   : > { %v3968_v23 = vadd.f32 %v3967_v17, %v8098_v25  ;;  %v4021_v18 = vadd.f32 %v4020_v56, %v8103_v26  ;;  %5494 = vmatprep.mubr.bf16.mxu1 %v4306_v37  ;;  %5543 = vmatprep.mubr.bf16.mxu0 %v4308_v48  ;;  %v4274_v13 = vmax.f32 %v3966_v43, 0.0  ;;  %v6987_v25 = vld [vmem:[%s8427_s7 + $0x2b0] sm:$0xff]   ;;  %v6998_v2 = vld [vmem:[%s8427_s7 + $0x218] sm:$0xff]   ;;  %v7005_v43 = vld [vmem:[%s8427_s7 + $0x2c8] sm:$0xff]   ;;  %v8233_v17 = vrot.slane %v8208_v14, %v7416_v38 }
 0xf52   : > { %v3969_v35 = vpop.f32.mrf.mxu1  ;;  %v4022_v36 = vpop.f32.mrf.mxu0  ;;  %5495 = vmatmul.mubr.bf16.vlgmr.msra.gmra.mxu1 %v4305_v31  ;;  %5544 = vmatmul.mubr.bf16.vlgmr.msra.gmra.mxu0 %v4307_v11  ;;  %v4276_v26 = vmax.f32 %v4019_v21, 0.0  ;;  %v6999_v32 = vld [vmem:[%s8427_s7 + $0x298] sm:$0xff]   ;;  %v7003_v48 = vld [vmem:[%s8427_s7 + $0x290] sm:$0xff]   ;;  %v8221_v31 = vrot.slane %v8208_v14, %v7409_v34  ;;  %v8226_v11 = vrot.slane %v8208_v14, %v3107_v44  ;;  %v8237_v56 = vrot.slane %v8208_v14, %v7464_v4  ;;  %v7006_v44 = vld [vmem:[%s8427_s7 + $0x208] sm:$0xff]  }
 0xf53   : > { %v3970_v27 = vadd.f32 %v3969_v35, %v8088_v24  ;;  %v4023_v45 = vadd.f32 %v4022_v36, %v8093_v10  ;;  %6471 = vmatpush3.bf16.msra.mxu1 %v6982_v16  ;;  %v4289_v39 = vmax.f32 %v3968_v23, 0.0  ;;  %6499 = vmatpush3.bf16.msra.mxu0 %v6983_v20  ;;  %v6988_v24 = vld [vmem:[%s8427_s7 + $0x268] sm:$0xff]   ;;  %v4291_v10 = vmax.f32 %v4021_v18, 0.0  ;;  %v7008_v4 = vld [vmem:[%s8427_s7 + $0x240] sm:$0xff]  }
 0xf54   : > { %6472 = vmatprep.subr.bf16.mxu1 %v6984_v1  ;;  %6500 = vmatprep.subr.bf16.mxu0 %v6985_v28  ;;  %v7004_v16 = vld [vmem:[%s8427_s7 + $0x248] sm:$0xff]   ;;  %v7009_v35 = vld [vmem:[%s8427_s7 + $0x2c0] sm:$0xff]  }
 0xf55   : > { %v4290_v40 = vmax.f32 %v3970_v27, 0.0  ;;  %v4292_v49 = vmax.f32 %v4023_v45, 0.0  ;;  %v4321_v6 = vpack.c.bf16 %v4289_v39, %v4273_v41  ;;  %v4323_v60 = vpack.c.bf16 %v4291_v10, %v4275_v51  ;;  %v7007_v38 = vld [vmem:[%s8427_s7 + $0x288] sm:$0xff]   ;;  %v7010_v39 = vld [vmem:[%s8427_s7 + $0x200] sm:$0xff]  }
 0xf57   : > { %v4322_v46 = vpack.c.bf16 %v4290_v40, %v4274_v13  ;;  %v4324_v9 = vpack.c.bf16 %v4292_v49, %v4276_v26  ;;  %6473 = vmatpush3.bf16.msra.mxu1 %v6986_v7  ;;  %6501 = vmatpush3.bf16.msra.mxu0 %v6987_v25  ;;  %v7011_v40 = vld [vmem:[%s8427_s7 + $0x280] sm:$0xff]   ;;  %v7012_v49 = vld [vmem:[%s8427_s7 + $0x378] sm:$0xff]  }
 0xf58   : > { %6474 = vmatprep.subr.bf16.mxu1 %v6988_v24  ;;  %6502 = vmatprep.subr.bf16.mxu0 %v6989_v42 }
 0xf59   : > { %5502 = vmatprep.mubr.bf16.mxu1 %v4322_v46  ;;  %5551 = vmatprep.mubr.bf16.mxu0 %v4324_v9 }
 0xf5a   : > { %5503 = vmatmul.mubr.bf16.gmra.mxu1 %v4321_v6  ;;  %5552 = vmatmul.mubr.bf16.gmra.mxu0 %v4323_v60 }
 0xf5b   : > { %6475 = vmatpush3.bf16.msra.mxu1 %v6990_v55  ;;  %6503 = vmatpush3.bf16.msra.mxu0 %v6991_v8 }
 0xf5c   : > { %6476 = vmatprep.subr.bf16.mxu1 %v6992_v53  ;;  %6504 = vmatprep.subr.bf16.mxu0 %v6993_v3  ;;  %v7013_v53 = vld [vmem:[%s8427_s7 + $0x3f8] sm:$0xff]  }
 0xf5f   : > { %6477 = vmatpush3.bf16.msra.mxu1 %v6994_v47  ;;  %6505 = vmatpush3.bf16.msra.mxu0 %v6995_v50  ;;  %v7014_v47 = vld [vmem:[%s8427_s7 + $0x338] sm:$0xff]  }
 0xf60   : > { %6478 = vmatprep.subr.bf16.mxu1 %v6996_v61  ;;  %6506 = vmatprep.subr.bf16.mxu0 %v6997_v63 }
 0xf63   : > { %6479 = vmatpush3.bf16.msra.mxu1 %v6998_v2  ;;  %6507 = vmatpush3.bf16.msra.mxu0 %v6999_v32 }
 0xf64   : > { %v4059_v22 = vpop.f32.mrf.mxu1  ;;  %v4112_v37 = vpop.f32.mrf.mxu0  ;;  %6480 = vmatprep.subr.bf16.mxu1 %v7000_v30  ;;  %6508 = vmatprep.subr.bf16.mxu0 %v7001_v12  ;;  %v7015_v30 = vld [vmem:[%s8427_s7 + $0x3b8] sm:$0xff]   ;;  %v7016_v12 = vld [vmem:[%s8427_s7 + $0x370] sm:$0xff]  }
 0xf65   : > { %v4060_v36 = vadd.f32 %v4059_v22, %v8233_v17  ;;  %v4113_v15 = vadd.f32 %v4112_v37, %v8237_v56 }
 0xf66   : > { %v4061_v34 = vpop.f32.mrf.mxu1  ;;  %v4114_v20 = vpop.f32.mrf.mxu0 }
 0xf67   : > { %6481 = vmatpush3.bf16.msra.mxu1 %v7002_v57  ;;  %6509 = vmatpush3.bf16.msra.mxu0 %v7003_v48  ;;  %v4062_v23 = vadd.f32 %v4061_v34, %v8221_v31  ;;  %v4115_v18 = vadd.f32 %v4114_v20, %v8226_v11  ;;  %v4245_v9 = vmax.f32 %v4060_v36, 0.0  ;;  %v4247_v55 = vmax.f32 %v4113_v15, 0.0  ;;  %v7017_v48 = vld [vmem:[%s8427_s7 + $0x3f0] sm:$0xff]  }
 0xf68   : > { %v4063_v1 = vpop.f32.mrf.mxu1  ;;  %v4116_v21 = vpop.f32.mrf.mxu0  ;;  %6482 = vmatprep.subr.bf16.mxu1 %v7004_v16  ;;  %6510 = vmatprep.subr.bf16.mxu0 %v7005_v43 }
 0xf69   : > { %v4064_v28 = vadd.f32 %v4063_v1, %v8233_v17  ;;  %v4117_v29 = vadd.f32 %v4116_v21, %v8237_v56  ;;  %v4246_v41 = vmax.f32 %v4062_v23, 0.0  ;;  %v4248_v42 = vmax.f32 %v4115_v18, 0.0  ;;  %v7018_v21 = vld [vmem:[%s8427_s7 + $0x330] sm:$0xff]  }
 0xf6a   : > { %v4065_v27 = vpop.f32.mrf.mxu1  ;;  %v4118_v45 = vpop.f32.mrf.mxu0 }
 0xf6b   : > { %v4066_v7 = vadd.f32 %v4065_v27, %v8221_v31  ;;  %v4119_v13 = vadd.f32 %v4118_v45, %v8226_v11  ;;  %6483 = vmatpush3.bf16.msra.mxu1 %v7006_v44  ;;  %v4261_v25 = vmax.f32 %v4064_v28, 0.0  ;;  %v4263_v24 = vmax.f32 %v4117_v29, 0.0  ;;  %6511 = vmatpush3.bf16.msra.mxu0 %v7007_v38  ;;  %v7021_v29 = vld [vmem:[%s8427_s7 + $0x3e8] sm:$0xff]  }
 0xf6c   : > { %v4069_v26 = vpop.f32.mrf.mxu1  ;;  %v4122_v10 = vpop.f32.mrf.mxu0  ;;  %6484 = vmatprep.subr.bf16.mxu1 %v7008_v4  ;;  %6512 = vmatprep.subr.bf16.mxu0 %v7009_v35  ;;  %v7022_v27 = vld [vmem:[%s8427_s7 + $0x328] sm:$0xff]  }
 0xf6d   : > { %v4262_v51 = vmax.f32 %v4066_v7, 0.0  ;;  %v4264_v46 = vmax.f32 %v4119_v13, 0.0  ;;  %v4309_v50 = vpack.c.bf16 %v4261_v25, %v4245_v9  ;;  %v4311_v61 = vpack.c.bf16 %v4263_v24, %v4247_v55  ;;  %v7023_v7 = vld [vmem:[%s8427_s7 + $0x3a8] sm:$0xff]   ;;  %v7024_v13 = vld [vmem:[%s8427_s7 + $0x360] sm:$0xff]  }
 0xf6e   : > { %v4071_v6 = vpop.f32.mrf.mxu1  ;;  %v4124_v8 = vpop.f32.mrf.mxu0  ;;  %v4070_v16 = vadd.f32 %v4069_v26, %v8233_v17  ;;  %v4123_v20 = vadd.f32 %v4122_v10, %v8237_v56  ;;  %v7025_v25 = vld [vmem:[%s8427_s7 + $0x3e0] sm:$0xff]   ;;  %v7028_v10 = vld [vmem:[%s8427_s7 + $0x358] sm:$0xff]  }
 0xf6f   : > { %v4310_v60 = vpack.c.bf16 %v4262_v51, %v4246_v41  ;;  %v4312_v3 = vpack.c.bf16 %v4264_v46, %v4248_v42  ;;  %6485 = vmatpush3.bf16.msra.mxu1 %v7010_v39  ;;  %v4072_v63 = vadd.f32 %v4071_v6, %v8221_v31  ;;  %6513 = vmatpush3.bf16.msra.mxu0 %v7011_v40  ;;  %v7026_v24 = vld [vmem:[%s8427_s7 + $0x320] sm:$0xff]   ;;  %v7029_v40 = vld [vmem:[%s8427_s7 + $0x3d8] sm:$0xff]   ;;  %v7032_v42 = vld [vmem:[%s8427_s7 + $0x350] sm:$0xff]  }
 0xf70   : > { %v4073_v2 = vpop.f32.mrf.mxu1  ;;  %v4126_v32 = vpop.f32.mrf.mxu0  ;;  %6526 = vmatprep.subr.bf16.mxu1 %v7012_v49  ;;  %v4125_v57 = vadd.f32 %v4124_v8, %v8226_v11  ;;  %6554 = vmatprep.subr.bf16.mxu0 %v7013_v53  ;;  %v4277_v28 = vmax.f32 %v4070_v16, 0.0  ;;  %v4279_v35 = vmax.f32 %v4123_v20, 0.0  ;;  %v7027_v26 = vld [vmem:[%s8427_s7 + $0x3a0] sm:$0xff]   ;;  %v7030_v49 = vld [vmem:[%s8427_s7 + $0x318] sm:$0xff]   ;;  %v7033_v51 = vld [vmem:[%s8427_s7 + $0x3d0] sm:$0xff]   ;;  %v8351_v53 = vrot.slane %v8208_v14, %v3115_v19 }
 0xf71   : > { %v4074_v22 = vadd.f32 %v4073_v2, %v8233_v17  ;;  %v4127_v37 = vadd.f32 %v4126_v32, %v8237_v56  ;;  %5592 = vmatprep.mubr.bf16.mxu1 %v4310_v60  ;;  %5641 = vmatprep.mubr.bf16.mxu0 %v4312_v3  ;;  %v4278_v38 = vmax.f32 %v4072_v63, 0.0  ;;  %v7019_v17 = vld [vmem:[%s8427_s7 + $0x3b0] sm:$0xff]   ;;  %v7031_v41 = vld [vmem:[%s8427_s7 + $0x398] sm:$0xff]   ;;  %v7036_v8 = vld [vmem:[%s8427_s7 + $0x348] sm:$0xff]   ;;  %v8356_v60 = vrot.slane %v8208_v14, %v3123_v54 }
 0xf72   : > { %v4075_v43 = vpop.f32.mrf.mxu1  ;;  %v4128_v34 = vpop.f32.mrf.mxu0  ;;  %5593 = vmatmul.mubr.bf16.vlgmr.msra.gmra.mxu1 %v4309_v50  ;;  %5642 = vmatmul.mubr.bf16.vlgmr.msra.gmra.mxu0 %v4311_v61  ;;  %v4280_v56 = vmax.f32 %v4125_v57, 0.0  ;;  %v7034_v46 = vld [vmem:[%s8427_s7 + $0x310] sm:$0xff]   ;;  %v7037_v3 = vld [vmem:[%s8427_s7 + $0x3c8] sm:$0xff]   ;;  %v3152_v50 = vrot.slane %v8208_v14, %v3119_v0 }
 0xf73   : > { %v4076_v44 = vadd.f32 %v4075_v43, %v8221_v31  ;;  %v4129_v1 = vadd.f32 %v4128_v34, %v8226_v11  ;;  %6527 = vmatpush3.bf16.msra.mxu1 %v7014_v47  ;;  %v4293_v4 = vmax.f32 %v4074_v22, 0.0  ;;  %6555 = vmatpush3.bf16.msra.mxu0 %v7015_v30  ;;  %v7020_v31 = vld [vmem:[%s8427_s7 + $0x368] sm:$0xff]   ;;  %v4295_v11 = vmax.f32 %v4127_v37, 0.0  ;;  %v7035_v6 = vld [vmem:[%s8427_s7 + $0x390] sm:$0xff]   ;;  %v7042_v34 = vld [vmem:[%s8427_s7 + $0x300] sm:$0xff]  }
 0xf74   : > { %6528 = vmatprep.subr.bf16.mxu1 %v7016_v12  ;;  %6556 = vmatprep.subr.bf16.mxu0 %v7017_v48  ;;  %v3144_v47 = vrot.slane %v8208_v14, %v3111_v58  ;;  %v7038_v54 = vld [vmem:[%s8427_s7 + $0x308] sm:$0xff]   ;;  %v7041_v12 = vld [vmem:[%s8427_s7 + $0x3c0] sm:$0xff]  }
 0xf75   : > { %v4294_v23 = vmax.f32 %v4076_v44, 0.0  ;;  %v4296_v18 = vmax.f32 %v4129_v1, 0.0  ;;  %v4325_v45 = vpack.c.bf16 %v4293_v4, %v4277_v28  ;;  %v4327_v39 = vpack.c.bf16 %v4295_v11, %v4279_v35  ;;  %v7039_v32 = vld [vmem:[%s8427_s7 + $0x388] sm:$0xff]  }
 0xf77   : > { %v4326_v36 = vpack.c.bf16 %v4294_v23, %v4278_v38  ;;  %v4328_v15 = vpack.c.bf16 %v4296_v18, %v4280_v56  ;;  %6529 = vmatpush3.bf16.msra.mxu1 %v7018_v21  ;;  %6557 = vmatpush3.bf16.msra.mxu0 %v7019_v17  ;;  %v7043_v38 = vld [vmem:[%s8427_s7 + $0x380] sm:$0xff]  }
 0xf78   : > { %6530 = vmatprep.subr.bf16.mxu1 %v7020_v31  ;;  %6558 = vmatprep.subr.bf16.mxu0 %v7021_v29 }
 0xf79   : > { %5600 = vmatprep.mubr.bf16.mxu1 %v4326_v36  ;;  %5649 = vmatprep.mubr.bf16.mxu0 %v4328_v15 }
 0xf7a   : > { %5601 = vmatmul.mubr.bf16.gmra.mxu1 %v4325_v45  ;;  %5650 = vmatmul.mubr.bf16.gmra.mxu0 %v4327_v39 }
 0xf7b   : > { %6531 = vmatpush3.bf16.msra.mxu1 %v7022_v27  ;;  %6559 = vmatpush3.bf16.msra.mxu0 %v7023_v7 }
 0xf7c   : > { %6532 = vmatprep.subr.bf16.mxu1 %v7024_v13  ;;  %6560 = vmatprep.subr.bf16.mxu0 %v7025_v25 }
 0xf7f   : > { %6533 = vmatpush3.bf16.msra.mxu1 %v7026_v24  ;;  %6561 = vmatpush3.bf16.msra.mxu0 %v7027_v26 }
 0xf80   : > { %6534 = vmatprep.subr.bf16.mxu1 %v7028_v10  ;;  %6562 = vmatprep.subr.bf16.mxu0 %v7029_v40 }
 0xf83   : > { %6535 = vmatpush3.bf16.msra.mxu1 %v7030_v49  ;;  %6563 = vmatpush3.bf16.msra.mxu0 %v7031_v41 }
 0xf84   : > { %v4165_v9 = vpop.f32.mrf.mxu1  ;;  %v4218_v55 = vpop.f32.mrf.mxu0  ;;  %6536 = vmatprep.subr.bf16.mxu1 %v7032_v42  ;;  %6564 = vmatprep.subr.bf16.mxu0 %v7033_v51 }
 0xf85   : > { %v4166_v57 = vadd.f32 %v4165_v9, %v3144_v47  ;;  %v4219_v22 = vadd.f32 %v4218_v55, %v3152_v50 }
 0xf86   : > { %v4167_v19 = vpop.f32.mrf.mxu1  ;;  %v4220_v61 = vpop.f32.mrf.mxu0 }
 0xf87   : > { %6537 = vmatpush3.bf16.msra.mxu1 %v7034_v46  ;;  %6565 = vmatpush3.bf16.msra.mxu0 %v7035_v6  ;;  %v4168_v58 = vadd.f32 %v4167_v19, %v8351_v53  ;;  %v4221_v0 = vadd.f32 %v4220_v61, %v8356_v60  ;;  %v4249_v11 = vmax.f32 %v4166_v57, 0.0  ;;  %v4251_v23 = vmax.f32 %v4219_v22, 0.0 }
 0xf88   : > { %v4169_v63 = vpop.f32.mrf.mxu1  ;;  %v4222_v2 = vpop.f32.mrf.mxu0  ;;  %6538 = vmatprep.subr.bf16.mxu1 %v7036_v8  ;;  %6566 = vmatprep.subr.bf16.mxu0 %v7037_v3 }
 0xf89   : > { %v4170_v14 = vadd.f32 %v4169_v63, %v3144_v47  ;;  %v4223_v30 = vadd.f32 %v4222_v2, %v3152_v50  ;;  %v4250_v4 = vmax.f32 %v4168_v58, 0.0  ;;  %v4252_v17 = vmax.f32 %v4221_v0, 0.0 }
 0xf8a   : > { %v4171_v37 = vpop.f32.mrf.mxu1  ;;  %v4224_v48 = vpop.f32.mrf.mxu0 }
 0xf8b   : > { %v4172_v16 = vadd.f32 %v4171_v37, %v8351_v53  ;;  %v4225_v43 = vadd.f32 %v4224_v48, %v8356_v60  ;;  %6539 = vmatpush3.bf16.msra.mxu1 %v7038_v54  ;;  %v4265_v20 = vmax.f32 %v4170_v14, 0.0  ;;  %v4267_v44 = vmax.f32 %v4223_v30, 0.0  ;;  %6567 = vmatpush3.bf16.msra.mxu0 %v7039_v32 }
 0xf8c   : > { %v4175_v1 = vpop.f32.mrf.mxu1  ;;  %v4228_v21 = vpop.f32.mrf.mxu0  ;;  %6540 = vmatprep.subr.bf16.mxu1 %v7040_v33  ;;  %6568 = vmatprep.subr.bf16.mxu0 %v7041_v12 }
 0xf8d   : > { %v4266_v31 = vmax.f32 %v4172_v16, 0.0  ;;  %v4268_v56 = vmax.f32 %v4225_v43, 0.0  ;;  %v4313_v36 = vpack.c.bf16 %v4265_v20, %v4249_v11  ;;  %v4315_v15 = vpack.c.bf16 %v4267_v44, %v4251_v23 }
 0xf8e   : > { %v4177_v18 = vpop.f32.mrf.mxu1  ;;  %v4230_v28 = vpop.f32.mrf.mxu0  ;;  %v4176_v24 = vadd.f32 %v4175_v1, %v3144_v47  ;;  %v4229_v40 = vadd.f32 %v4228_v21, %v3152_v50 }
 0xf8f   : > { %v4314_v29 = vpack.c.bf16 %v4266_v31, %v4250_v4  ;;  %v4316_v35 = vpack.c.bf16 %v4268_v56, %v4252_v17  ;;  %6541 = vmatpush3.bf16.msra.mxu1 %v7042_v34  ;;  %v4178_v27 = vadd.f32 %v4177_v18, %v8351_v53  ;;  %6569 = vmatpush3.bf16.msra.mxu0 %v7043_v38 }
 0xf90   : > { %v4179_v45 = vpop.f32.mrf.mxu1  ;;  %v4232_v7 = vpop.f32.mrf.mxu0  ;;  %v4231_v13 = vadd.f32 %v4230_v28, %v8356_v60  ;;  %v4281_v8 = vmax.f32 %v4176_v24, 0.0  ;;  %v4283_v3 = vmax.f32 %v4229_v40, 0.0 }
 0xf91   : > { %v4180_v39 = vadd.f32 %v4179_v45, %v3144_v47  ;;  %v4233_v25 = vadd.f32 %v4232_v7, %v3152_v50  ;;  %5690 = vmatprep.mubr.bf16.mxu1 %v4314_v29  ;;  %5739 = vmatprep.mubr.bf16.mxu0 %v4316_v35  ;;  %v4282_v42 = vmax.f32 %v4178_v27, 0.0 }
 0xf92   : > { %v4181_v26 = vpop.f32.mrf.mxu1  ;;  %v4234_v10 = vpop.f32.mrf.mxu0  ;;  %5691 = vmatmul.mubr.bf16.vlgmr.msra.gmra.mxu1 %v4313_v36  ;;  %5740 = vmatmul.mubr.bf16.vlgmr.msra.gmra.mxu0 %v4315_v15  ;;  %v4284_v46 = vmax.f32 %v4231_v13, 0.0 }
 0xf93   : > { %v4182_v49 = vadd.f32 %v4181_v26, %v8351_v53  ;;  %v4235_v41 = vadd.f32 %v4234_v10, %v8356_v60  ;;  %v4297_v51 = vmax.f32 %v4180_v39, 0.0  ;;  %v4299_v9 = vmax.f32 %v4233_v25, 0.0  ;;  %v6135_v25 = vld [vmem:[%s8428_s8] ss:$0 sm:$0xff] }
 0xf95   : > { %v4298_v55 = vmax.f32 %v4182_v49, 0.0  ;;  %v4300_v6 = vmax.f32 %v4235_v41, 0.0  ;;  %v4329_v47 = vpack.c.bf16 %v4297_v51, %v4281_v8  ;;  %v4331_v54 = vpack.c.bf16 %v4299_v9, %v4283_v3 }
 0xf97   : > { %v4330_v19 = vpack.c.bf16 %v4298_v55, %v4282_v42  ;;  %v4332_v61 = vpack.c.bf16 %v4300_v6, %v4284_v46 }
 0xf99   : > { %5698 = vmatprep.mubr.bf16.mxu1 %v4330_v19  ;;  %5747 = vmatprep.mubr.bf16.mxu0 %v4332_v61 }
 0xf9a   : > { %5699 = vmatmul.mubr.bf16.gmra.mxu1 %v4329_v47  ;;  %5748 = vmatmul.mubr.bf16.gmra.mxu0 %v4331_v54 }
 0xff2   : > { %v6374_v53 = vpop.f32.mrf.mxu1  ;;  %v6402_v50 = vpop.f32.mrf.mxu0 }
 0xff4   : > { %v6375_v60 = vpop.f32.mrf.mxu1  ;;  %v6403_v63 = vpop.f32.mrf.mxu0 }
 0xff5   : > { %v6376_v13 = vadd.f32 %v6375_v60, %v6374_v53  ;;  %v6404_v49 = vadd.f32 %v6403_v63, %v6402_v50 }
 0xff6   : > { %v6377_v2 = vpop.f32.mrf.mxu1  ;;  %v6405_v32 = vpop.f32.mrf.mxu0 }
 0xff7   : > { %v5399_v10 = vadd.f32 %v6376_v13, %v6135_v25 }
 0xff8   : > { %v6378_v33 = vpop.f32.mrf.mxu1  ;;  %v6406_v58 = vpop.f32.mrf.mxu0 }
 0xff9   : > { %v6379_v24 = vadd.f32 %v6378_v33, %v6377_v2  ;;  %v5448_v46 = vadd.f32 %v6404_v49, %v5399_v10  ;;  %v6407_v6 = vadd.f32 %v6406_v58, %v6405_v32 }
 0xffa   : > { %v6380_v0 = vpop.f32.mrf.mxu1  ;;  %v6408_v14 = vpop.f32.mrf.mxu0 }
 0xffb   : > { %v5402_v42 = vadd.f32 %v6379_v24, %v6135_v25 }
 0xffc   : > { %v6381_v30 = vpop.f32.mrf.mxu1  ;;  %v6409_v12 = vpop.f32.mrf.mxu0 }
 0xffd   : > { %v6382_v9 = vadd.f32 %v6381_v30, %v6380_v0  ;;  %v5451_v19 = vadd.f32 %v6407_v6, %v5402_v42  ;;  %v6410_v13 = vadd.f32 %v6409_v12, %v6408_v14 }
 0xffe   : > { %v6383_v57 = vpop.f32.mrf.mxu1  ;;  %v6411_v22 = vpop.f32.mrf.mxu0 }
 0xfff   : > { %v5407_v54 = vadd.f32 %v6382_v9, %v6135_v25 }
0x1000   : > { %v6384_v37 = vpop.f32.mrf.mxu1  ;;  %v6412_v48 = vpop.f32.mrf.mxu0 }
0x1001   : > { %v6385_v61 = vadd.f32 %v6384_v37, %v6383_v57  ;;  %v5456_v0 = vadd.f32 %v6410_v13, %v5407_v54  ;;  %v6413_v58 = vadd.f32 %v6412_v48, %v6411_v22 }
0x1003   : > { %v5410_v63 = vadd.f32 %v6385_v61, %v6135_v25 }
0x1012   : > { %v6430_v16 = vpop.f32.mrf.mxu1  ;;  %v6458_v43 = vpop.f32.mrf.mxu0 }
0x1014   : > { %v6431_v34 = vpop.f32.mrf.mxu1  ;;  %v6459_v20 = vpop.f32.mrf.mxu0 }
0x1015   : > { %v6432_v41 = vadd.f32 %v6431_v34, %v6430_v16  ;;  %v6460_v53 = vadd.f32 %v6459_v20, %v6458_v43  ;;  %v5459_v20 = vadd.f32 %v6413_v58, %v5410_v63 }
0x1016   : > { %v6433_v44 = vpop.f32.mrf.mxu1  ;;  %v6461_v1 = vpop.f32.mrf.mxu0 }
0x1017   : > { %v5497_v3 = vadd.f32 %v6432_v41, %v5448_v46 }
0x1018   : > { %v6434_v21 = vpop.f32.mrf.mxu1  ;;  %v6462_v38 = vpop.f32.mrf.mxu0 }
0x1019   : > { %v6435_v8 = vadd.f32 %v6434_v21, %v6433_v44  ;;  %v5546_v62 = vadd.f32 %v6460_v53, %v5497_v3  ;;  %v6463_v16 = vadd.f32 %v6462_v38, %v6461_v1 }
0x101a   : > { %v6436_v4 = vpop.f32.mrf.mxu1  ;;  %v6464_v17 = vpop.f32.mrf.mxu0 }
0x101b   : > { %v5500_v33 = vadd.f32 %v6435_v8, %v5451_v19 }
0x101c   : > { %v6437_v31 = vpop.f32.mrf.mxu1  ;;  %v6465_v56 = vpop.f32.mrf.mxu0 }
0x101d   : > { %v6438_v50 = vadd.f32 %v6437_v31, %v6436_v4  ;;  %v5549_v44 = vadd.f32 %v6463_v16, %v5500_v33  ;;  %v6466_v14 = vadd.f32 %v6465_v56, %v6464_v17 }
0x101e   : > { %v6439_v11 = vpop.f32.mrf.mxu1  ;;  %v8393_v23 = vpop.f32.mrf.mxu0 }
0x101f   : > { %v5505_v37 = vadd.f32 %v6438_v50, %v5456_v0  ;;  %v8439_v0 = vld [vmem:[#allocation9_spill] sm:$0xff] }
0x1020   : > { %v6440_v18 = vpop.f32.mrf.mxu1  ;;  %v8395_v28 = vpop.f32.mrf.mxu0 }
0x1021   : > { %v6441_v21 = vadd.f32 %v6440_v18, %v6439_v11  ;;  %v6469_v11 = vadd.f32 %v8395_v28, %v8393_v23 }
0x1023   : > { %v5508_v38 = vadd.f32 %v6441_v21, %v5459_v20 }
0x1032   : > { %v6486_v29 = vpop.f32.mrf.mxu1  ;;  %v6514_v35 = vpop.f32.mrf.mxu0 }
0x1034   : > { %v6487_v36 = vpop.f32.mrf.mxu1  ;;  %v6515_v15 = vpop.f32.mrf.mxu0 }
0x1035   : > { %v6488_v60 = vadd.f32 %v6487_v36, %v6486_v29  ;;  %v6516_v10 = vadd.f32 %v6515_v15, %v6514_v35 }
0x1036   : > { %v6489_v27 = vpop.f32.mrf.mxu1  ;;  %v6517_v45 = vpop.f32.mrf.mxu0 }
0x1037   : > { %v5595_v30 = vadd.f32 %v6488_v60, %v5546_v62  ;;  %v5554_v62 = vadd.f32 %v6466_v14, %v5505_v37 }
0x1038   : > { %v6490_v7 = vpop.f32.mrf.mxu1  ;;  %v6518_v39 = vpop.f32.mrf.mxu0 }
0x1039   : > { %v6491_v34 = vadd.f32 %v6490_v7, %v6489_v27  ;;  %v5644_v12 = vadd.f32 %v6516_v10, %v5595_v30  ;;  %v6519_v27 = vadd.f32 %v6518_v39, %v6517_v45 }
0x103a   : > { %v6492_v26 = vpop.f32.mrf.mxu1  ;;  %v6520_v40 = vpop.f32.mrf.mxu0 }
0x103b   : > { %v5598_v29 = vadd.f32 %v6491_v34, %v5549_v44 }
0x103c   : > { %v6493_v51 = vpop.f32.mrf.mxu1  ;;  %v6521_v55 = vpop.f32.mrf.mxu0 }
0x103d   : > { %v6494_v4 = vadd.f32 %v6493_v51, %v6492_v26  ;;  %v5647_v18 = vadd.f32 %v6519_v27, %v5598_v29  ;;  %v5557_v26 = vadd.f32 %v6469_v11, %v5508_v38  ;;  %v6522_v51 = vadd.f32 %v6521_v55, %v6520_v40 }
0x103e   : > { %v6495_v47 = vpop.f32.mrf.mxu1  ;;  %v6523_v2 = vpop.f32.mrf.mxu0 }
0x103f   : > { %v5603_v15 = vadd.f32 %v6494_v4, %v5554_v62 }
0x1040   : > { %v6496_v24 = vpop.f32.mrf.mxu1  ;;  %v6524_v32 = vpop.f32.mrf.mxu0 }
0x1041   : > { %v6497_v49 = vadd.f32 %v6496_v24, %v6495_v47  ;;  %v5652_v8 = vadd.f32 %v6522_v51, %v5603_v15  ;;  %v6525_v47 = vadd.f32 %v6524_v32, %v6523_v2  ;;  %v6264_v15 = vld [vmem:[%s8431_s11] ss:$0 sm:$0xff] }
0x1043   : > { %v5606_v3 = vadd.f32 %v6497_v49, %v5557_v26 }
0x1045   : > { %v5655_v55 = vadd.f32 %v6525_v47, %v5606_v3 }
0x1052   : > { %v6542_v57 = vpop.f32.mrf.mxu1  ;;  %v6570_v43 = vpop.f32.mrf.mxu0 }
0x1054   : > { %v6543_v36 = vpop.f32.mrf.mxu1  ;;  %v6571_v1 = vpop.f32.mrf.mxu0 }
0x1055   : > { %v6544_v31 = vadd.f32 %v6543_v36, %v6542_v57  ;;  %v6572_v22 = vadd.f32 %v6571_v1, %v6570_v43 }
0x1056   : > { %v6545_v7 = vpop.f32.mrf.mxu1  ;;  %v6573_v48 = vpop.f32.mrf.mxu0 }
0x1057   : > { %v5693_v25 = vadd.f32 %v6544_v31, %v5644_v12 }
0x1058   : > { %v6546_v35 = vpop.f32.mrf.mxu1  ;;  %v6574_v56 = vpop.f32.mrf.mxu0 }
0x1059   : > { %v5742_v41 = vadd.f32 %v6572_v22, %v5693_v25  ;;  %v6547_v17 = vadd.f32 %v6546_v35, %v6545_v7  ;;  %v6575_v45 = vadd.f32 %v6574_v56, %v6573_v48 }
0x105a   : > { %v6548_v42 = vpop.f32.mrf.mxu1  ;;  %v6576_v39 = vpop.f32.mrf.mxu0 }
0x105b   : > { %v5696_v46 = vadd.f32 %v6547_v17, %v5647_v18  ;;  %v5756_v9 = vadd.f32 %v5742_v41, %v7845_v59  ;;  %v6265_v41 = vld [vmem:[%s8432_s12] ss:$0 sm:$0xff] }
0x105c   : > { %v6549_v6 = vpop.f32.mrf.mxu1  ;;  %v6577_v28 = vpop.f32.mrf.mxu0 }
0x105d   : > { %v5745_v19 = vadd.f32 %v6575_v45, %v5696_v46  ;;  %v6550_v23 = vadd.f32 %v6549_v6, %v6548_v42  ;;  %5762 = vadd.xlane.f32.xlu0 %v5756_v9  ;;  %v6578_v53 = vadd.f32 %v6577_v28, %v6576_v39 }
0x105e   : > { %v6551_v61 = vpop.f32.mrf.mxu1  ;;  %v6579_v60 = vpop.f32.mrf.mxu0 }
0x105f   : > { %v5701_v54 = vadd.f32 %v6550_v23, %v5652_v8  ;;  %v5757_v33 = vadd.f32 %v5745_v19, %v7848_v52 }
0x1060   : > { %v6552_v40 = vpop.f32.mrf.mxu1  ;;  %v6580_v63 = vpop.f32.mrf.mxu0 }
0x1061   : > { %v5750_v13 = vadd.f32 %v6578_v53, %v5701_v54  ;;  %v6553_v50 = vadd.f32 %v6552_v40, %v6551_v61  ;;  %5764 = vadd.xlane.f32.xlu1 %v5757_v33  ;;  %v6581_v16 = vadd.f32 %v6580_v63, %v6579_v60 }
0x1063   : > { %v5704_v59 = vadd.f32 %v6553_v50, %v5655_v55  ;;  %v5758_v34 = vadd.f32 %v5750_v13, %v7860_v5 }
0x1065   : > { %v5753_v24 = vadd.f32 %v6581_v16, %v5704_v59  ;;  %5766 = vadd.xlane.f32.xlu0 %v5758_v34 }
0x1067   : > { %v5759_v30 = vadd.f32 %v5753_v24, %v8439_v0 }
0x1069   : > { %5768 = vadd.xlane.f32.xlu1 %v5759_v30 }
0x10e6   : > { %v5763_v2 = vpop.xlane.xlu0 %5762 }
0x10e7   : > { %v5770_v32 = vmul.f32 0.0078125, %v5763_v2 }
0x10e9   : > { %v5774_v58 = vsub.f32 %v5756_v9, %v5770_v32 }
0x10ea   : > { %v5765_v44 = vpop.xlane.xlu1 %5764 }
0x10eb   : > { %v5771_v52 = vmul.f32 0.0078125, %v5765_v44  ;;  %v5778_v21 = vmul.f32 %v5774_v58, %v5774_v58 }
0x10ed   : > { %v5775_v57 = vsub.f32 %v5757_v33, %v5771_v52  ;;  %5782 = vadd.xlane.f32.xlu0 %v5778_v21 }
0x10ee   : > { %v5767_v37 = vpop.xlane.xlu0 %5766 }
0x10ef   : > { %v5772_v10 = vmul.f32 0.0078125, %v5767_v37  ;;  %v5779_v43 = vmul.f32 %v5775_v57, %v5775_v57 }
0x10f1   : > { %v5776_v20 = vsub.f32 %v5758_v34, %v5772_v10  ;;  %5784 = vadd.xlane.f32.xlu1 %v5779_v43 }
0x10f2   : > { %v5769_v29 = vpop.xlane.xlu1 %5768 }
0x10f3   : > { %v5773_v5 = vmul.f32 0.0078125, %v5769_v29  ;;  %v5780_v36 = vmul.f32 %v5776_v20, %v5776_v20 }
0x10f5   : > { %v5777_v14 = vsub.f32 %v5759_v30, %v5773_v5  ;;  %5786 = vadd.xlane.f32.xlu0 %v5780_v36 }
0x10f7   : > { %v5781_v12 = vmul.f32 %v5777_v14, %v5777_v14 }
0x10f9   : > { %5788 = vadd.xlane.f32.xlu1 %v5781_v12 }
0x1176   : > { %v5783_v4 = vpop.xlane.xlu0 %5782 }
0x1177   : > { %v5790_v31 = vmul.f32 0.0078125, %v5783_v4 }
0x1179   : > { %v5794_v1 = vadd.f32 1e-05, %v5790_v31 }
0x117a   : > { %v5785_v38 = vpop.xlane.xlu1 %5784 }
0x117b   : > { %7116 = vrsqrt.f32 %v5794_v1  ;;  %v5791_v27 = vmul.f32 0.0078125, %v5785_v38 }
0x117d   : > { %v5795_v7 = vadd.f32 1e-05, %v5791_v27 }
0x117e   : > { %v5787_v62 = vpop.xlane.xlu0 %5786 }
0x117f   : > { %7118 = vrsqrt.f32 %v5795_v7  ;;  %v5792_v25 = vmul.f32 0.0078125, %v5787_v62 }
0x1181   : > { %v5796_v22 = vadd.f32 1e-05, %v5792_v25 }
0x1182   : > { %v5789_v48 = vpop.xlane.xlu1 %5788 }
0x1183   : > { %7120 = vrsqrt.f32 %v5796_v22  ;;  %v5793_v11 = vmul.f32 0.0078125, %v5789_v48 }
0x1185   : > { %v5797_v18 = vadd.f32 1e-05, %v5793_v11 }
0x1187   : > { %7122 = vrsqrt.f32 %v5797_v18 }
0x1188   : > { %v7117_v35 = vpop.eup %7116 }
0x1189   : > { %v5802_v49 = vmul.f32 %v7117_v35, %v5774_v58 }
0x118b   : > { %v5812_v17 = vmul.f32 %v6264_v15, %v5802_v49 }
0x118c   : > { %v7119_v56 = vpop.eup %7118 }
0x118d   : > { %v5822_v26 = vadd.f32 %v6265_v41, %v5812_v17  ;;  %v5803_v42 = vmul.f32 %v7119_v56, %v5775_v57 }
0x118f   : > { %5826 = vst [vmem:[%s486_s16] sm:$0xff] %v5822_v26  ;;  %v5813_v51 = vmul.f32 %v6264_v15, %v5803_v42 }
0x1190   : > { %v7121_v46 = vpop.eup %7120 }
0x1191   : > { %v5823_v45 = vadd.f32 %v6265_v41, %v5813_v51  ;;  %v5804_v39 = vmul.f32 %v7121_v46, %v5776_v20 }
0x1193   : > { %5827 = vst [vmem:[%s486_s16 + $0x8] sm:$0xff] %v5823_v45  ;;  %v5814_v9 = vmul.f32 %v6264_v15, %v5804_v39 }
0x1194   : > { %v7123_v6 = vpop.eup %7122 }
0x1195   : > { %v5824_v8 = vadd.f32 %v6265_v41, %v5814_v9  ;;  %v5805_v3 = vmul.f32 %v7123_v6, %v5777_v14 }
0x1197   : > { %5828 = vst [vmem:[%s486_s16 + $0x10] sm:$0xff] %v5824_v8  ;;  %v5815_v19 = vmul.f32 %v6264_v15, %v5805_v3 }
0x1199   : > { %v5825_v23 = vadd.f32 %v6265_v41, %v5815_v19 }
0x119b   : > { %5829 = vst [vmem:[%s486_s16 + $0x18] sm:$0xff] %v5825_v23 }
0x119c PF: > { %s25_s25 = sadd.s32 1, %s7220_s25  }
0x119d   : > { %p22_p2 = scmp.ge.s32.totalorder %s25_s25, 4  }
0x119f   :  { %24 = sbr.rel (!%p22_p2) target bundleno = 2 (0x2), region = 115 }
0x11a4   :  { %5852 = vsyncpa [#allocation3], 1 }
0x11a5   :  { %5854 = vsyncpa [#allocation3 + $0x1], 1 }
0x11a6   :  { %5855 = vsyncpa [#allocation5], 1 }

// kernel: _lambda_.5
= control target key start
LH: loop header
LB: loop body
LE: loop exit
PB: predicated region body
PF: predicated region fallthrough
CT: control target
= control target key end

     0   :  { %s7095_s25 = smov 0   ;;  %s8620_s0 = inlined_call_operand.vmem [shape: f32[64,128], index: 0, kind: input, shape index: {}]   ;;  %s8621_s1 = inlined_call_operand.vmem [shape: bf16[128,384], index: 1, kind: input, shape index: {}]   ;;  %s8622_s2 = inlined_call_operand.vmem [shape: f32[1,384], index: 2, kind: input, shape index: {}]   ;;  %s8623_s3 = inlined_call_operand.vmem [shape: bf16[128,128], index: 3, kind: input, shape index: {}]   ;;  %s8624_s4 = inlined_call_operand.vmem [shape: f32[1,128], index: 4, kind: input, shape index: {}]   ;;  %s8625_s5 = inlined_call_operand.vmem [shape: bf16[128,2048], index: 5, kind: input, shape index: {}]   ;;  %s8626_s6 = inlined_call_operand.vmem [shape: f32[1,2048], index: 6, kind: input, shape index: {}]   ;;  %s8627_s7 = inlined_call_operand.vmem [shape: bf16[2048,128], index: 7, kind: input, shape index: {}]   ;;  %s8628_s8 = inlined_call_operand.vmem [shape: f32[1,128], index: 8, kind: input, shape index: {}]   ;;  %s8629_s9 = inlined_call_operand.vmem [shape: f32[1,128], index: 9, kind: input, shape index: {}, may-alias: {9,11}]   ;;  %s8630_s10 = inlined_call_operand.vmem [shape: f32[1,128], index: 10, kind: input, shape index: {}, may-alias: {10,12}]   ;;  %s8631_s11 = inlined_call_operand.vmem [shape: f32[1,128], index: 11, kind: input, shape index: {}, may-alias: {9,11}]   ;;  %s8632_s12 = inlined_call_operand.vmem [shape: f32[1,128], index: 12, kind: input, shape index: {}, may-alias: {10,12}]   ;;  %s8633_s13 = inlined_call_operand.vmem [shape: f32[64,128], index: 13, kind: output, shape index: {}]  }
   0x1 LB: > { %s5842_s26 = sadd.s32 4294967295, %s7017_s25   ;;  %p5846_p0 = scmp.ge.s32.totalorder %s7017_s25, 1  ;;  %s7017_s25 = sphi %s7095_s25, %s23_s25  }
   0x2   : > { %p388_p1 = scmp.lt.s32.totalorder %s7017_s25, 3 }
   0x4   : > { %p389_p2 = pnand %p5846_p0, %p388_p1 }
   0x6   : > { %392 = sbr.rel (%p389_p2) target bundleno = 4466 (0x1172), region = 72 }
   0xb   : > { %v6759_v0 = vld [vmem:[%s8621_s1 + $0xac] ss:$12 sps:$4 sm:$0xff]   ;;  %s5847_s29 = sshll.u32 %s5842_s26, 2  ;;  %v6761_v1 = vld [vmem:[%s8621_s1 + $0xa8] ss:$12 sps:$4 sm:$0xff]   ;;  %v7019_v2 = vmov 0   ;;  %v485_v32 = vlaneseq }
   0xc   : > { %660 = vmatprep.mubr.bf16.mxu0 %v7019_v2  ;;  %p433_p3 = scmp.lt.s32.totalorder %s5847_s29, 7  ;;  %628 = vmatprep.subr.bf16.mxu0 %v6759_v0  ;;  %v6762_v3 = vld [vmem:[%s8621_s1 + $0x94] ss:$12 sps:$4 sm:$0xff]   ;;  %v6764_v4 = vld [vmem:[%s8621_s1 + $0x90] ss:$12 sps:$4 sm:$0xff]   ;;  %v7020_v31 = vmov 0.0  }
   0xd   : > { %629 = vmatpush1.bf16.msra.mxu0 %v6761_v1  ;;  %v6765_v5 = vld [vmem:[%s8621_s1 + $0x7c] ss:$12 sps:$4 sm:$0xff]   ;;  %v6767_v6 = vld [vmem:[%s8621_s1 + $0x78] ss:$12 sps:$4 sm:$0xff]   ;;  %v6770_v9 = vld [vmem:[%s8621_s1 + $0x60] ss:$12 sps:$4 sm:$0xff]  }
   0xe   : > { %s8638_s29 = smov (!%p433_p3, %s5847_s29), 7  ;;  %630 = vmatprep.subr.bf16.mxu0 %v6762_v3  ;;  %v6768_v7 = vld [vmem:[%s8621_s1 + $0x64] ss:$12 sps:$4 sm:$0xff]   ;;  %v6771_v10 = vld [vmem:[%s8621_s1 + $0x4c] ss:$12 sps:$4 sm:$0xff]   ;;  %vm7021_vm0 = vmmov 0  }
   0xf   : > { %s5848_s21 = sshll.u32 %s8638_s29, 3  ;;  %v6783_v13 = vld [vmem:[%s8621_s1 + $0xb0] ss:$12 sps:$4 sm:$0xff]   ;;  %v6784_v14 = vld [vmem:[%s8621_s1 + $0x98] ss:$12 sps:$4 sm:$0xff]   ;;  %v7198_v33 = vshrl.u32 %v485_v32, 7 }
  0x10   : > { %s7130_s27 = scalar_lea.vmem %s8620_s0, %s5848_s21  ;;  %v6773_v15 = vld [vmem:[%s8621_s1 + $0x48] ss:$12 sps:$4 sm:$0xff]   ;;  %6501 = vmatprep.subr.bf16.mxu1 %v6783_v13  ;;  %v6785_v17 = vld [vmem:[%s8621_s1 + $0x80] ss:$12 sps:$4 sm:$0xff]   ;;  %v6776_v18 = vld [vmem:[%s8621_s1 + $0x30] ss:$12 sps:$4 sm:$0xff]   ;;  %s442_s15 = scalar_lea.vmem %s8633_s13, %s5848_s21 }
  0x11   : > { %631 = vmatpush1.bf16.msra.mxu0 %v6764_v4  ;;  %v445_v8 = vld [vmem:[%s7130_s27] sm:$0xff]  ;;  %v446_v11 = vld [vmem:[%s7130_s27 + $0x8] sm:$0xff]  ;;  %6502 = vmatpush3.bf16.msra.mxu1 %v6783_v13  ;;  %v6787_v23 = vld [vmem:[%s8621_s1 + $0x50] ss:$12 sps:$4 sm:$0xff]   ;;  %v7201_v34 = vsub.s32 1, %v7198_v33  ;;  %v7208_v38 = vsub.s32 0, %v7198_v33 }
  0x12   : > { %632 = vmatprep.subr.bf16.mxu0 %v6765_v5  ;;  %v449_v12 = vpack.c.bf16 %v446_v11, %v445_v8  ;;  %v6774_v16 = vld [vmem:[%s8621_s1 + $0x34] ss:$12 sps:$4 sm:$0xff]   ;;  %6503 = vmatprep.subr.bf16.mxu1 %v6784_v14  ;;  %v6777_v19 = vld [vmem:[%s8621_s1 + $0x1c] ss:$12 sps:$4 sm:$0xff]   ;;  %v6779_v21 = vld [vmem:[%s8621_s1 + $0x18] ss:$12 sps:$4 sm:$0xff]  }
  0x13   : > { %v6786_v20 = vld [vmem:[%s8621_s1 + $0x68] ss:$12 sps:$4 sm:$0xff]   ;;  %v6780_v22 = vld [vmem:[%s8621_s1 + $0x4] ss:$12 sps:$4 sm:$0xff]   ;;  %v6782_v24 = vld [vmem:[%s8621_s1] ss:$12 sps:$4 sm:$0xff]  }
  0x14   : > { %6517 = vmatprep.mubr.bf16.mxu1 %v449_v12  ;;  %v6788_v25 = vld [vmem:[%s8621_s1 + $0x38] ss:$12 sps:$4 sm:$0xff]   ;;  %v6789_v26 = vld [vmem:[%s8621_s1 + $0x20] ss:$12 sps:$4 sm:$0xff]   ;;  %v447_v27 = vld [vmem:[%s7130_s27 + $0x10] sm:$0xff]  ;;  %vm753_vm1 = vcmask 261120  }
  0x15   : > { %633 = vmatpush1.bf16.msra.mxu0 %v6767_v6  ;;  %6504 = vmatpush3.bf16.msra.mxu1 %v6784_v14  ;;  %v448_v28 = vld [vmem:[%s7130_s27 + $0x18] sm:$0xff]  ;;  %v6790_v30 = vld [vmem:[%s8621_s1 + $0x8] ss:$12 sps:$4 sm:$0xff]   ;;  %v483_v35 = vld [vmem:[%s8622_s2] sm:$0x7]  ;;  %v7256_v4 = vsub.s32 2, %v7198_v33 }
  0x16   : > { %634 = vmatprep.subr.bf16.mxu0 %v6768_v7  ;;  %6505 = vmatprep.subr.bf16.mxu1 %v6785_v17  ;;  %v450_v29 = vpack.c.bf16 %v448_v28, %v447_v27  ;;  %v492_v36 = vrot.slane %v483_v35, %v7201_v34  ;;  %v488_v42 = vrot.slane %v483_v35, %v7208_v38  ;;  %vm998_vm2 = vcmask 1043456   ;;  %s7022_s26 = smov 96   ;;  %s7023_s16 = smov 64  }
  0x17   : > { %v496_v5 = vrot.slane %v483_v35, %v7256_v4  ;;  %vm946_vm4 = vcmask 64512   ;;  %s7024_s24 = smov 32  }
  0x19   : > { %635 = vmatpush1.bf16.msra.mxu0 %v6770_v9  ;;  %6506 = vmatpush3.bf16.msra.mxu1 %v6785_v17 }
  0x1a   : > { %636 = vmatprep.subr.bf16.mxu0 %v6771_v10  ;;  %6507 = vmatprep.subr.bf16.mxu1 %v6786_v20 }
  0x1d   : > { %637 = vmatpush1.bf16.msra.mxu0 %v6773_v15  ;;  %6508 = vmatpush3.bf16.msra.mxu1 %v6786_v20 }
  0x1e   : > { %638 = vmatprep.subr.bf16.mxu0 %v6774_v16  ;;  %6509 = vmatprep.subr.bf16.mxu1 %v6787_v23 }
  0x21   : > { %639 = vmatpush1.bf16.msra.mxu0 %v6776_v18  ;;  %6510 = vmatpush3.bf16.msra.mxu1 %v6787_v23  ;;  %v7274_v18 = vand.u32 127, %v485_v32 }
  0x22   : > { %640 = vmatprep.subr.bf16.mxu0 %v6777_v19  ;;  %6511 = vmatprep.subr.bf16.mxu1 %v6788_v25 }
  0x23   : > { %vm732_vm3 = vcmp.lt.s32.totalorder %v7274_v18, 2 }
  0x25   : > { %641 = vmatpush1.bf16.msra.mxu0 %v6779_v21  ;;  %6512 = vmatpush3.bf16.msra.mxu1 %v6788_v25 }
  0x26   : > { %642 = vmatprep.subr.bf16.mxu0 %v6780_v22  ;;  %6513 = vmatprep.subr.bf16.mxu1 %v6789_v26 }
  0x29   : > { %643 = vmatpush1.bf16.msra.mxu0 %v6782_v24  ;;  %6514 = vmatpush3.bf16.msra.mxu1 %v6789_v26 }
  0x2a   : > { %6515 = vmatprep.subr.bf16.mxu1 %v6790_v30  ;;  %6527 = vmatprep.subr.bf16.mxu0 %v7020_v31 }
  0x2c   : > { %661 = vmatmul.mubr.bf16.vlgmr.msra.gmra.mxu0 %v449_v12 }
  0x2d   : > { %670 = vmatprep.mubr.bf16.mxu0 %v7019_v2  ;;  %6516 = vmatpush3.bf16.msra.mxu1 %v6790_v30 }
  0x2e   : > { %6521 = vmatprep.subr.bf16.mxu1 %v7020_v31 }
  0x30   : > { %6518 = vmatmul.mubr.bf16.vlgmr.msra.gmra.mxu1 %v450_v29 }
  0x31   : > { %6523 = vmatprep.mubr.msk.bf16.mxu1 %vm7021_vm0, %v7020_v31 }
  0x34   : > { %671 = vmatmul.mubr.bf16.gmra.mxu0 %v450_v29 }
  0x35   : > { %6529 = vmatprep.mubr.msk.bf16.mxu0 %vm7021_vm0, %v7020_v31 }
  0xec   : > { %v662_v37 = vpop.f32.mrf.mxu0 }
  0xed   : > { %v663_v48 = vadd.f32 %v662_v37, %v488_v42 }
  0xee   : > { %v664_v39 = vpop.f32.mrf.mxu0 }
  0xef   : > { %v665_v40 = vadd.f32 %v664_v39, %v492_v36  ;;  %v7220_v54 = vpack.c.bf16 %v663_v48, %v663_v48 }
  0xf0   : > { %v666_v41 = vpop.f32.mrf.mxu0  ;;  %v6519_v6 = vpop.f32.mrf.mxu1 }
  0xf1   : > { %v7211_v43 = vpack.c.bf16 %v665_v40, %v665_v40  ;;  %v667_v55 = vadd.f32 %v666_v41, %v488_v42  ;;  %v7259_v7 = vadd.f32 %v6519_v6, %v496_v5 }
  0xf2   : > { %v668_v44 = vpop.f32.mrf.mxu0  ;;  %v715_v8 = vpop.f32.mrf.mxu1 }
  0xf3   : > { %v669_v45 = vadd.f32 %v668_v44, %v492_v36  ;;  %v758_v46 = vsel %vm753_vm1, %v7211_v43, 0  ;;  %v7231_v60 = vpack.c.bf16 %v667_v55, %v667_v55  ;;  %v716_v9 = vadd.f32 %v715_v8, %v496_v5 }
  0xf4   : > { %v672_v47 = vpop.f32.mrf.mxu0  ;;  %6522 = vmatpush3.bf16.xpose.msra.mxu1 %v758_v46  ;;  %v6520_v10 = vpop.f32.mrf.mxu1 }
  0xf5   : > { %v7215_v49 = vpack.c.bf16 %v669_v45, %v669_v45  ;;  %6533 = vmatprep.subr.bf16.mxu1 %v7020_v31  ;;  %v673_v61 = vadd.f32 %v672_v47, %v488_v42  ;;  %v7261_v11 = vadd.f32 %v6520_v10, %v496_v5  ;;  %v7263_v13 = vpack.c.bf16 %v716_v9, %v716_v9 }
  0xf6   : > { %v674_v50 = vpop.f32.mrf.mxu0  ;;  %v718_v12 = vpop.f32.mrf.mxu1 }
  0xf7   : > { %v675_v51 = vadd.f32 %v674_v50, %v492_v36  ;;  %v804_v52 = vsel %vm753_vm1, %v7215_v49, 0  ;;  %v7242_v0 = vpack.c.bf16 %v673_v61, %v673_v61  ;;  %v719_v14 = vadd.f32 %v718_v12, %v496_v5 }
  0xf8   : > { %v676_v53 = vpop.f32.mrf.mxu0  ;;  %6528 = vmatpush3.bf16.xpose.msra.mxu0 %v804_v52  ;;  %v1000_v16 = vsel %vm998_vm2, %v7263_v13, 0 }
  0xf9   : > { %v7222_v56 = vpack.c.bf16 %v675_v51, %v675_v51  ;;  %6539 = vmatprep.subr.bf16.mxu0 %v7020_v31  ;;  %v677_v1 = vadd.f32 %v676_v53, %v488_v42  ;;  %v7265_v15 = vpack.c.bf16 %v719_v14, %v719_v14 }
  0xfa   : > { %v678_v57 = vpop.f32.mrf.mxu0 }
  0xfb   : > { %v679_v58 = vadd.f32 %v678_v57, %v492_v36  ;;  %6524 = vmatmul.mubr.msk.bf16.vlgmr.msra.gmra.mxu1 %vm753_vm1, %v7220_v54  ;;  %v850_v59 = vsel %vm753_vm1, %v7222_v56, 0  ;;  %v7249_v3 = vpack.c.bf16 %v677_v1, %v677_v1  ;;  %v1046_v17 = vsel %vm998_vm2, %v7265_v15, 0 }
  0xfc   : > { %6534 = vmatpush3.bf16.xpose.msra.mxu1 %v850_v59  ;;  %6535 = vmatprep.mubr.msk.bf16.mxu1 %vm7021_vm0, %v7020_v31 }
  0xfd   : > { %v7233_v62 = vpack.c.bf16 %v679_v58, %v679_v58  ;;  %6545 = vmatprep.subr.bf16.mxu1 %v7020_v31 }
  0xff   : > { %6530 = vmatmul.mubr.msk.bf16.vlgmr.msra.gmra.mxu0 %vm753_vm1, %v7231_v60  ;;  %v896_v63 = vsel %vm753_vm1, %v7233_v62, 0 }
 0x100   : > { %6540 = vmatpush3.bf16.xpose.msra.mxu0 %v896_v63  ;;  %6541 = vmatprep.mubr.msk.bf16.mxu0 %vm7021_vm0, %v7020_v31 }
 0x101   : > { %6551 = vmatprep.subr.bf16.mxu0 %v7020_v31 }
 0x103   : > { %6536 = vmatmul.mubr.msk.bf16.vlgmr.msra.gmra.mxu1 %vm753_vm1, %v7242_v0 }
 0x104   : > { %6547 = vmatprep.mubr.msk.bf16.mxu1 %vm7021_vm0, %v7020_v31  ;;  %6546 = vmatpush3.bf16.msra.mxu1 %v1000_v16 }
 0x105   : > { %6557 = vmatprep.subr.bf16.mxu1 %v7020_v31 }
 0x107   : > { %6542 = vmatmul.mubr.msk.bf16.vlgmr.msra.gmra.mxu0 %vm753_vm1, %v7249_v3 }
 0x108   : > { %6553 = vmatprep.mubr.msk.bf16.mxu0 %vm7021_vm0, %v7020_v31  ;;  %6552 = vmatpush3.bf16.msra.mxu0 %v1046_v17 }
 0x109   : > { %6563 = vmatprep.subr.bf16.mxu0 %v7020_v31 }
 0x1bb   : > { %v794_v19 = vpop.f32.mrf.mxu1 }
 0x1bc   : > { %v938_v20 = vmul.f32 0.17677669, %v794_v19 }
 0x1bd   : > { %v6525_v21 = vpop.f32.mrf.mxu1 }
 0x1be   : > { %v942_v22 = vsel %vm732_vm3, %v938_v20, -1e+30 }
 0x1bf   : > { %v797_v23 = vpop.f32.mrf.mxu1  ;;  %v840_v24 = vpop.f32.mrf.mxu0  ;;  %v947_v25 = vsel %vm946_vm4, %v942_v22, -inf }
 0x1c0   : > { %v939_v26 = vmul.f32 0.17677669, %v840_v24  ;;  %948 = vmax.xlane.f32.xlu0 %v947_v25 }
 0x1c1   : > { %v6526_v27 = vpop.f32.mrf.mxu1  ;;  %v6531_v28 = vpop.f32.mrf.mxu0 }
 0x1c2   : > { %v943_v29 = vsel %vm732_vm3, %v939_v26, -1e+30  ;;  %v7311_v27 = vpack.c.bf16 %v7259_v7, %v7259_v7 }
 0x1c3   : > { %v843_v30 = vpop.f32.mrf.mxu0  ;;  %v886_v32 = vpop.f32.mrf.mxu1  ;;  %v950_v35 = vsel %vm946_vm4, %v943_v29, -inf }
 0x1c4   : > { %v940_v36 = vmul.f32 0.17677669, %v886_v32  ;;  %951 = vmax.xlane.f32.xlu0 %v950_v35  ;;  %v7315_v32 = vpack.c.bf16 %v7261_v11, %v7261_v11  ;;  %v1092_v35 = vsel %vm998_vm2, %v7311_v27, 0 }
 0x1c5   : > { %v6532_v37 = vpop.f32.mrf.mxu0  ;;  %v6537_v39 = vpop.f32.mrf.mxu1 }
 0x1c6   : > { %v944_v40 = vsel %vm732_vm3, %v940_v36, -1e+30  ;;  %v1138_v39 = vsel %vm998_vm2, %v7315_v32, 0 }
 0x1c7   : > { %v889_v41 = vpop.f32.mrf.mxu1  ;;  %v932_v42 = vpop.f32.mrf.mxu0  ;;  %v953_v44 = vsel %vm946_vm4, %v944_v40, -inf }
 0x1c8   : > { %v941_v45 = vmul.f32 0.17677669, %v932_v42  ;;  %954 = vmax.xlane.f32.xlu1 %v953_v44 }
 0x1c9   : > { %v6538_v46 = vpop.f32.mrf.mxu1  ;;  %v6543_v47 = vpop.f32.mrf.mxu0 }
 0x1ca   : > { %v945_v48 = vsel %vm732_vm3, %v941_v45, -1e+30 }
 0x1cb   : > { %v935_v50 = vpop.f32.mrf.mxu0  ;;  %v956_v51 = vsel %vm946_vm4, %v945_v48, -inf }
 0x1cc   : > { %957 = vmax.xlane.f32.xlu1 %v956_v51 }
 0x1cd   : > { %v6544_v52 = vpop.f32.mrf.mxu0 }
 0x249   : > { %v949_v53 = vpop.xlane.xlu0 %948 }
 0x24a   : > { %v959_v55 = vsub.f32 %v942_v22, %v949_v53  ;;  %v6791_v53 = vld [vmem:[%s8623_s3 + $0x8] sm:$0xff]  }
 0x24c   : > { %v963_v57 = vmul.f32 1.442695, %v959_v55  ;;  %v6792_v55 = vld [vmem:[%s8623_s3] sm:$0xff]  }
 0x24d   : > { %v952_v58 = vpop.xlane.xlu0 %951 }
 0x24e   : > { %6927 = vpow2.f32 %v963_v57  ;;  %v960_v59 = vsub.f32 %v943_v29, %v952_v58 }
 0x250   : > { %v965_v61 = vmul.f32 1.442695, %v960_v59 }
 0x251   : > { %v955_v63 = vpop.xlane.xlu1 %954 }
 0x252   : > { %6929 = vpow2.f32 %v965_v61  ;;  %v961_v1 = vsub.f32 %v944_v40, %v955_v63 }
 0x254   : > { %v967_v5 = vmul.f32 1.442695, %v961_v1 }
 0x255   : > { %v958_v6 = vpop.xlane.xlu1 %957 }
 0x256   : > { %6931 = vpow2.f32 %v967_v5  ;;  %v962_v8 = vsub.f32 %v945_v48, %v958_v6 }
 0x258   : > { %v969_v9 = vmul.f32 1.442695, %v962_v8 }
 0x25a   : > { %6933 = vpow2.f32 %v969_v9 }
 0x25b   : > { %v6928_v10 = vpop.eup %6927 }
 0x25c   : > { %v971_v12 = vsel %vm946_vm4, %v6928_v10, 0.0 }
 0x25d   : > { %972 = vadd.xlane.f32.xlu0 %v971_v12 }
 0x25f   : > { %v6930_v14 = vpop.eup %6929 }
 0x260   : > { %v974_v16 = vsel %vm946_vm4, %v6930_v14, 0.0 }
 0x261   : > { %975 = vadd.xlane.f32.xlu1 %v974_v16 }
 0x263   : > { %v6932_v17 = vpop.eup %6931 }
 0x264   : > { %v977_v19 = vsel %vm946_vm4, %v6932_v17, 0.0 }
 0x265   : > { %978 = vadd.xlane.f32.xlu0 %v977_v19 }
 0x267   : > { %v6934_v20 = vpop.eup %6933 }
 0x268   : > { %v980_v21 = vsel %vm946_vm4, %v6934_v20, 0.0 }
 0x269   : > { %981 = vadd.xlane.f32.xlu1 %v980_v21 }
 0x27a   : > { %1313 = vrot.lane.b32.xlu1 %v7215_v49, %s7022_s26 }
 0x27b   : > { %1261 = vrot.lane.b32.xlu0 %v7211_v43, %s7022_s26 }
 0x27e   : > { %1258 = vrot.lane.b32.xlu1 %v7220_v54, %s7022_s26 }
 0x27f   : > { %1365 = vrot.lane.b32.xlu0 %v7222_v56, %s7022_s26 }
 0x282   : > { %1310 = vrot.lane.b32.xlu1 %v7231_v60, %s7022_s26 }
 0x283   : > { %1362 = vrot.lane.b32.xlu0 %v7242_v0, %s7022_s26 }
 0x286   : > { %1417 = vrot.lane.b32.xlu1 %v7233_v62, %s7022_s26 }
 0x28a   : > { %1414 = vrot.lane.b32.xlu1 %v7249_v3, %s7022_s26 }
 0x2e6   : > { %v973_v22 = vpop.xlane.xlu0 %972 }
 0x2e7   : > { %6935 = vrcp.f32 %v973_v22 }
 0x2ea   : > { %v976_v23 = vpop.xlane.xlu1 %975 }
 0x2eb   : > { %6937 = vrcp.f32 %v976_v23 }
 0x2ee   : > { %v979_v24 = vpop.xlane.xlu0 %978 }
 0x2ef   : > { %6939 = vrcp.f32 %v979_v24 }
 0x2f2   : > { %v982_v25 = vpop.xlane.xlu1 %981  ;;  %v1262_v44 = vpop.permute.xlu0 %1261 }
 0x2f3   : > { %6941 = vrcp.f32 %v982_v25  ;;  %v1267_v46 = vsel %vm753_vm1, %v1262_v44, 0 }
 0x2f4   : > { %v6936_v26 = vpop.eup %6935 }
 0x2f5   : > { %v984_v28 = vmul.f32 %v6936_v26, %v6928_v10 }
 0x2f6   : > { %v1314_v47 = vpop.permute.xlu1 %1313  ;;  %v1366_v48 = vpop.permute.xlu0 %1365 }
 0x2f7   : > { %v991_v29 = vpack.c.bf16 %v984_v28, %v984_v28  ;;  %v1371_v51 = vsel %vm753_vm1, %v1366_v48, 0  ;;  %v1319_v21 = vsel %vm753_vm1, %v1314_v47, 0 }
 0x2f8   : > { %v6938_v30 = vpop.eup %6937 }
 0x2f9   : > { %6548 = vmatmul.mubr.msk.bf16.vlgmr.msra.gmra.mxu1 %vm946_vm4, %v991_v29  ;;  %v986_v36 = vmul.f32 %v6938_v30, %v6930_v14 }
 0x2fa   : > { %6558 = vmatpush3.bf16.msra.mxu1 %v1092_v35  ;;  %6559 = vmatprep.mubr.msk.bf16.mxu1 %vm7021_vm0, %v7020_v31  ;;  %v1259_v50 = vpop.permute.xlu1 %1258  ;;  %v1363_v52 = vpop.permute.xlu0 %1362 }
 0x2fb   : > { %v992_v37 = vpack.c.bf16 %v986_v36, %v986_v36  ;;  %6569 = vmatprep.subr.bf16.mxu1 %v6791_v53 }
 0x2fc   : > { %v6940_v7 = vpop.eup %6939 }
 0x2fd   : > { %6554 = vmatmul.mubr.msk.bf16.vlgmr.msra.gmra.mxu0 %vm946_vm4, %v992_v37  ;;  %v988_v40 = vmul.f32 %v6940_v7, %v6932_v17 }
 0x2fe   : > { %6564 = vmatpush3.bf16.msra.mxu0 %v1138_v39  ;;  %6565 = vmatprep.mubr.msk.bf16.mxu0 %vm7021_vm0, %v7020_v31  ;;  %v1311_v16 = vpop.permute.xlu1 %1310 }
 0x2ff   : > { %v993_v11 = vpack.c.bf16 %v988_v40, %v988_v40  ;;  %6577 = vmatprep.subr.bf16.mxu0 %v7020_v31 }
 0x300   : > { %v6942_v41 = vpop.eup %6941 }
 0x301   : > { %6560 = vmatmul.mubr.msk.bf16.vlgmr.msra.gmra.mxu1 %vm946_vm4, %v993_v11  ;;  %v990_v42 = vmul.f32 %v6942_v41, %v6934_v20 }
 0x302   : > { %6570 = vmatpush3.bf16.msra.mxu1 %v6791_v53  ;;  %v1418_v24 = vpop.permute.xlu1 %1417 }
 0x303   : > { %v994_v45 = vpack.c.bf16 %v990_v42, %v990_v42  ;;  %6571 = vmatprep.subr.bf16.mxu1 %v6792_v55  ;;  %v1423_v29 = vsel %vm753_vm1, %v1418_v24, 0 }
 0x305   : > { %6566 = vmatmul.mubr.msk.bf16.vlgmr.msra.gmra.mxu0 %vm946_vm4, %v994_v45 }
 0x306   : > { %6578 = vmatpush3.bf16.xpose.msra.mxu0 %v1267_v46  ;;  %6579 = vmatprep.mubr.msk.bf16.mxu0 %vm7021_vm0, %v7020_v31  ;;  %v1415_v40 = vpop.permute.xlu1 %1414 }
 0x307   : > { %6589 = vmatprep.subr.bf16.mxu0 %v7020_v31  ;;  %6572 = vmatpush3.bf16.msra.mxu1 %v6792_v55 }
 0x308   : > { %6583 = vmatprep.subr.bf16.mxu1 %v7020_v31 }
 0x30d   : > { %6580 = vmatmul.mubr.msk.bf16.vlgmr.msra.gmra.mxu0 %vm753_vm1, %v1259_v50 }
 0x30e   : > { %6590 = vmatpush3.bf16.xpose.msra.mxu0 %v1371_v51  ;;  %6591 = vmatprep.mubr.msk.bf16.mxu0 %vm7021_vm0, %v7020_v31 }
 0x30f   : > { %6601 = vmatprep.subr.bf16.mxu0 %v7020_v31 }
 0x315   : > { %6592 = vmatmul.mubr.msk.bf16.vlgmr.msra.gmra.mxu0 %vm753_vm1, %v1363_v52 }
 0x316   : > { %6603 = vmatprep.mubr.msk.bf16.mxu0 %vm7021_vm0, %v7020_v31 }
 0x3b9   : > { %v1036_v57 = vpop.f32.mrf.mxu1 }
 0x3bb   : > { %v6549_v58 = vpop.f32.mrf.mxu1 }
 0x3bd   : > { %v1039_v59 = vpop.f32.mrf.mxu1  ;;  %v1082_v61 = vpop.f32.mrf.mxu0 }
 0x3be   : > { %v1180_v63 = vpack.c.bf16 %v1082_v61, %v1036_v57 }
 0x3bf   : > { %v6550_v1 = vpop.f32.mrf.mxu1  ;;  %v6555_v5 = vpop.f32.mrf.mxu0 }
 0x3c0   : > { %6573 = vmatprep.mubr.msk.bf16.mxu1 %vm753_vm1, %v1180_v63 }
 0x3c1   : > { %v1085_v6 = vpop.f32.mrf.mxu0  ;;  %v1128_v8 = vpop.f32.mrf.mxu1 }
 0x3c3   : > { %v6556_v9 = vpop.f32.mrf.mxu0  ;;  %v6561_v10 = vpop.f32.mrf.mxu1 }
 0x3c5   : > { %v1131_v12 = vpop.f32.mrf.mxu1  ;;  %v1174_v14 = vpop.f32.mrf.mxu0 }
 0x3c6   : > { %v1181_v17 = vpack.c.bf16 %v1174_v14, %v1128_v8 }
 0x3c7   : > { %v6562_v19 = vpop.f32.mrf.mxu1  ;;  %v6567_v20 = vpop.f32.mrf.mxu0 }
 0x3c8   : > { %6574 = vmatmul.mubr.msk.bf16.vlgmr.msra.gmra.mxu1 %vm753_vm1, %v1181_v17 }
 0x3c9   : > { %6584 = vmatpush3.bf16.xpose.msra.mxu1 %v1319_v21  ;;  %v1177_v22 = vpop.f32.mrf.mxu0  ;;  %6585 = vmatprep.mubr.msk.bf16.mxu1 %vm7021_vm0, %v7020_v31 }
 0x3ca   : > { %6595 = vmatprep.subr.bf16.mxu1 %v7020_v31 }
 0x3cb   : > { %v6568_v23 = vpop.f32.mrf.mxu0 }
 0x3cd   : > { %v1303_v25 = vpop.f32.mrf.mxu0 }
 0x3ce   : > { %v1465_v26 = vmul.f32 0.17677669, %v1303_v25 }
 0x3cf   : > { %v6581_v28 = vpop.f32.mrf.mxu0 }
 0x3d0   : > { %6586 = vmatmul.mubr.msk.bf16.vlgmr.msra.gmra.mxu1 %vm753_vm1, %v1311_v16  ;;  %v1469_v30 = vsel %vm732_vm3, %v1465_v26, -1e+30 }
 0x3d1   : > { %6596 = vmatpush3.bf16.xpose.msra.mxu1 %v1423_v29  ;;  %v1306_v35 = vpop.f32.mrf.mxu0  ;;  %v1473_v36 = vsel %vm946_vm4, %v1469_v30, -inf  ;;  %6597 = vmatprep.mubr.msk.bf16.mxu1 %vm7021_vm0, %v7020_v31 }
 0x3d2   : > { %1474 = vmax.xlane.f32.xlu0 %v1473_v36  ;;  %6607 = vmatprep.subr.bf16.mxu1 %v7020_v31 }
 0x3d3   : > { %v6582_v37 = vpop.f32.mrf.mxu0 }
 0x3d5   : > { %v1407_v7 = vpop.f32.mrf.mxu0 }
 0x3d6   : > { %v1467_v39 = vmul.f32 0.17677669, %v1407_v7 }
 0x3d7   : > { %v6593_v11 = vpop.f32.mrf.mxu0 }
 0x3d8   : > { %6598 = vmatmul.mubr.msk.bf16.vlgmr.msra.gmra.mxu1 %vm753_vm1, %v1415_v40  ;;  %v1471_v41 = vsel %vm732_vm3, %v1467_v39, -1e+30 }
 0x3d9   : > { %v1410_v42 = vpop.f32.mrf.mxu0  ;;  %v1479_v44 = vsel %vm946_vm4, %v1471_v41, -inf  ;;  %6609 = vmatprep.mubr.msk.bf16.mxu1 %vm7021_vm0, %v7020_v31 }
 0x3da   : > { %1480 = vmax.xlane.f32.xlu0 %v1479_v44 }
 0x3db   : > { %v6594_v45 = vpop.f32.mrf.mxu0 }
 0x45b   : > { %v1475_v46 = vpop.xlane.xlu0 %1474 }
 0x45c   : > { %v1485_v47 = vsub.f32 %v1469_v30, %v1475_v46 }
 0x45e   : > { %v1489_v52 = vmul.f32 1.442695, %v1485_v47 }
 0x460   : > { %6943 = vpow2.f32 %v1489_v52 }
 0x463   : > { %v1481_v50 = vpop.xlane.xlu0 %1480 }
 0x464   : > { %v1487_v53 = vsub.f32 %v1471_v41, %v1481_v50 }
 0x466   : > { %v1493_v58 = vmul.f32 1.442695, %v1487_v53 }
 0x468   : > { %6945 = vpow2.f32 %v1493_v58 }
 0x46d   : > { %v6944_v19 = vpop.eup %6943 }
 0x46e   : > { %v1497_v21 = vsel %vm946_vm4, %v6944_v19, 0.0 }
 0x475   : > { %v6946_v22 = vpop.eup %6945 }
 0x476   : > { %v1503_v23 = vsel %vm946_vm4, %v6946_v22, 0.0 }
 0x488   : > { %v7369_v48 = vpop.f32.mrf.mxu1 }
 0x48a   : > { %v7371_v51 = vpop.f32.mrf.mxu1 }
 0x48c   : > { %v7373_v55 = vpop.f32.mrf.mxu1 }
 0x48e   : > { %v7375_v57 = vpop.f32.mrf.mxu1 }
 0x490   : > { %v1355_v59 = vpop.f32.mrf.mxu1 }
 0x491   : > { %v1466_v61 = vmul.f32 0.17677669, %v1355_v59 }
 0x492   : > { %v6587_v63 = vpop.f32.mrf.mxu1 }
 0x493   : > { %v1470_v1 = vsel %vm732_vm3, %v1466_v61, -1e+30 }
 0x494   : > { %v1358_v5 = vpop.f32.mrf.mxu1  ;;  %v1476_v6 = vsel %vm946_vm4, %v1470_v1, -inf }
 0x495   : > { %1477 = vmax.xlane.f32.xlu1 %v1476_v6 }
 0x496   : > { %v6588_v8 = vpop.f32.mrf.mxu1 }
 0x498   : > { %v1459_v9 = vpop.f32.mrf.mxu1 }
 0x499   : > { %v1468_v10 = vmul.f32 0.17677669, %v1459_v9 }
 0x49a   : > { %v6599_v12 = vpop.f32.mrf.mxu1 }
 0x49b   : > { %v1472_v14 = vsel %vm732_vm3, %v1468_v10, -1e+30 }
 0x49c   : > { %v1462_v16 = vpop.f32.mrf.mxu1  ;;  %v1482_v17 = vsel %vm946_vm4, %v1472_v14, -inf }
 0x49d   : > { %1483 = vmax.xlane.f32.xlu0 %v1482_v17 }
 0x49e   : > { %v6600_v20 = vpop.f32.mrf.mxu1 }
 0x4a1   : > { %1498 = vadd.xlane.f32.xlu0 %v1497_v21 }
 0x4a5   : > { %1504 = vadd.xlane.f32.xlu0 %v1503_v23 }
 0x4a6   : > { %1571 = vrot.lane.b32.xlu1 %v7265_v15, %s7022_s26 }
 0x4aa   : > { %1620 = vrot.lane.b32.xlu1 %v7311_v27, %s7022_s26 }
 0x4bb   : > { %1522 = vrot.lane.b32.xlu0 %v7263_v13, %s7022_s26 }
 0x4bf   : > { %1796 = vrot.lane.b32.xlu0 %v7211_v43, %s7023_s16 }
 0x4c3   : > { %1794 = vrot.lane.b32.xlu0 %v7220_v54, %s7023_s16 }
 0x4c7   : > { %1896 = vrot.lane.b32.xlu0 %v7222_v56, %s7023_s16 }
 0x4cb   : > { %1894 = vrot.lane.b32.xlu0 %v7242_v0, %s7023_s16 }
 0x51e   : > { %v1478_v24 = vpop.xlane.xlu1 %1477 }
 0x51f   : > { %v1486_v25 = vsub.f32 %v1470_v1, %v1478_v24 }
 0x521   : > { %v1491_v26 = vmul.f32 1.442695, %v1486_v25 }
 0x522   : > { %v1572_v28 = vpop.permute.xlu1 %1571 }
 0x523   : > { %6947 = vpow2.f32 %v1491_v26  ;;  %v1577_v29 = vsel %vm998_vm2, %v1572_v28, 0 }
 0x524   : > { %6608 = vmatpush3.bf16.msra.mxu1 %v1577_v29 }
 0x525   : > { %6619 = vmatprep.subr.bf16.mxu1 %v7020_v31 }
 0x526   : > { %v1484_v30 = vpop.xlane.xlu0 %1483  ;;  %v1621_v47 = vpop.permute.xlu1 %1620 }
 0x527   : > { %v1488_v35 = vsub.f32 %v1472_v14, %v1484_v30  ;;  %v1626_v53 = vsel %vm998_vm2, %v1621_v47, 0 }
 0x529   : > { %v1495_v36 = vmul.f32 1.442695, %v1488_v35 }
 0x52a   : > { %v1499_v37 = vpop.xlane.xlu0 %1498 }
 0x52b   : > { %6949 = vpow2.f32 %v1495_v36  ;;  %v6793_v36 = vld [vmem:[%s8623_s3 + $0x18] sm:$0xff]  }
 0x52c   : > { %6951 = vrcp.f32 %v1499_v37  ;;  %v6794_v37 = vld [vmem:[%s8623_s3 + $0x10] sm:$0xff]  }
 0x52e   : > { %v1505_v7 = vpop.xlane.xlu0 %1504 }
 0x52f   : > { %6953 = vrcp.f32 %v1505_v7 }
 0x530   : > { %v6948_v39 = vpop.eup %6947 }
 0x531   : > { %v1500_v40 = vsel %vm946_vm4, %v6948_v39, 0.0 }
 0x532   : > { %1501 = vadd.xlane.f32.xlu1 %v1500_v40  ;;  %v1523_v11 = vpop.permute.xlu0 %1522 }
 0x533   : > { %v1528_v41 = vsel %vm998_vm2, %v1523_v11, 0 }
 0x534   : > { %6602 = vmatpush3.bf16.msra.mxu0 %v1528_v41 }
 0x535   : > { %6613 = vmatprep.subr.bf16.mxu0 %v7020_v31 }
 0x536   : > { %v1797_v10 = vpop.permute.xlu0 %1796 }
 0x538   : > { %v6950_v42 = vpop.eup %6949 }
 0x539   : > { %v6952_v44 = vpop.eup %6951  ;;  %v1506_v45 = vsel %vm946_vm4, %v6950_v42, 0.0 }
 0x53a   : > { %1507 = vadd.xlane.f32.xlu1 %v1506_v45  ;;  %v1510_v46 = vmul.f32 %v6952_v44, %v6944_v19  ;;  %v1795_v17 = vpop.permute.xlu0 %1794  ;;  %v1802_v19 = vsel %vm753_vm1, %v1797_v10, 0 }
 0x53c   : > { %v1517_v50 = vpack.c.bf16 %v1510_v46, %v1510_v46  ;;  %v6954_v52 = vpop.eup %6953 }
 0x53d   : > { %v1514_v58 = vmul.f32 %v6954_v52, %v6946_v22 }
 0x53e   : > { %6604 = vmatmul.mubr.msk.bf16.vlgmr.msra.gmra.mxu0 %vm946_vm4, %v1517_v50  ;;  %v1897_v20 = vpop.permute.xlu0 %1896 }
 0x53f   : > { %6614 = vmatpush3.bf16.msra.mxu0 %v1626_v53  ;;  %6615 = vmatprep.mubr.msk.bf16.mxu0 %vm7021_vm0, %v7020_v31  ;;  %v1519_v59 = vpack.c.bf16 %v1514_v58, %v1514_v58  ;;  %v1902_v21 = vsel %vm753_vm1, %v1897_v20, 0 }
 0x540   : > { %6625 = vmatprep.subr.bf16.mxu0 %v6793_v36 }
 0x542   : > { %v1895_v22 = vpop.permute.xlu0 %1894 }
 0x546   : > { %6616 = vmatmul.mubr.msk.bf16.vlgmr.msra.gmra.mxu0 %vm946_vm4, %v1519_v59 }
 0x547   : > { %6626 = vmatpush3.bf16.msra.mxu0 %v6793_v36 }
 0x548   : > { %6627 = vmatprep.subr.bf16.mxu0 %v6794_v37 }
 0x54b   : > { %1669 = vrot.lane.b32.xlu1 %v7315_v32, %s7022_s26  ;;  %6628 = vmatpush3.bf16.msra.mxu0 %v6794_v37 }
 0x54c   : > { %6639 = vmatprep.subr.bf16.mxu0 %v7020_v31 }
 0x54f   : > { %1846 = vrot.lane.b32.xlu1 %v7215_v49, %s7023_s16 }
 0x553   : > { %1844 = vrot.lane.b32.xlu1 %v7231_v60, %s7023_s16 }
 0x557   : > { %1946 = vrot.lane.b32.xlu1 %v7233_v62, %s7023_s16 }
 0x55b   : > { %1944 = vrot.lane.b32.xlu1 %v7249_v3, %s7023_s16 }
 0x5bb   : > { %v1502_v61 = vpop.xlane.xlu1 %1501 }
 0x5bc   : > { %6955 = vrcp.f32 %v1502_v61 }
 0x5c3   : > { %v1508_v63 = vpop.xlane.xlu1 %1507 }
 0x5c4   : > { %6957 = vrcp.f32 %v1508_v63 }
 0x5c7   : > { %v1670_v6 = vpop.permute.xlu1 %1669 }
 0x5c8   : > { %v1675_v9 = vsel %vm998_vm2, %v1670_v6, 0 }
 0x5c9   : > { %v6956_v1 = vpop.eup %6955 }
 0x5ca   : > { %v1512_v5 = vmul.f32 %v6956_v1, %v6948_v39 }
 0x5cb   : > { %v1847_v11 = vpop.permute.xlu1 %1846 }
 0x5cc   : > { %v1518_v8 = vpack.c.bf16 %v1512_v5, %v1512_v5  ;;  %v1852_v50 = vsel %vm753_vm1, %v1847_v11, 0 }
 0x5ce   : > { %6610 = vmatmul.mubr.msk.bf16.vlgmr.msra.gmra.mxu1 %vm946_vm4, %v1518_v8 }
 0x5cf   : > { %6620 = vmatpush3.bf16.msra.mxu1 %v1675_v9  ;;  %6621 = vmatprep.mubr.msk.bf16.mxu1 %vm7021_vm0, %v7020_v31  ;;  %v1845_v46 = vpop.permute.xlu1 %1844 }
 0x5d0   : > { %6633 = vmatprep.subr.bf16.mxu1 %v7020_v31 }
 0x5d1   : > { %v6958_v12 = vpop.eup %6957 }
 0x5d2   : > { %v1516_v14 = vmul.f32 %v6958_v12, %v6950_v42 }
 0x5d3   : > { %v1947_v58 = vpop.permute.xlu1 %1946 }
 0x5d4   : > { %v1520_v16 = vpack.c.bf16 %v1516_v14, %v1516_v14  ;;  %v1952_v1 = vsel %vm753_vm1, %v1947_v58, 0 }
 0x5d6   : > { %6622 = vmatmul.mubr.msk.bf16.vlgmr.msra.gmra.mxu1 %vm946_vm4, %v1520_v16 }
 0x5d7   : > { %6634 = vmatpush3.bf16.xpose.msra.mxu1 %v1802_v19  ;;  %6635 = vmatprep.mubr.msk.bf16.mxu1 %vm7021_vm0, %v7020_v31  ;;  %v1945_v14 = vpop.permute.xlu1 %1944 }
 0x5d8   : > { %6645 = vmatprep.subr.bf16.mxu1 %v7020_v31 }
 0x5de   : > { %6636 = vmatmul.mubr.msk.bf16.vlgmr.msra.gmra.mxu1 %vm753_vm1, %v1795_v17 }
 0x5df   : > { %6646 = vmatpush3.bf16.xpose.msra.mxu1 %v1902_v21  ;;  %6647 = vmatprep.mubr.msk.bf16.mxu1 %vm7021_vm0, %v7020_v31 }
 0x5e0   : > { %6657 = vmatprep.subr.bf16.mxu1 %v7020_v31 }
 0x5e6   : > { %6648 = vmatmul.mubr.msk.bf16.vlgmr.msra.gmra.mxu1 %vm753_vm1, %v1895_v22  ;;  %v7468_v22 = vld [vmem:[%s8624_s4] ss:$0 sm:$0xff] }
 0x5e7   : > { %6659 = vmatprep.mubr.msk.bf16.mxu1 %vm7021_vm0, %v7020_v31  ;;  %v1256_v36 = vadd.f32 %v7373_v55, %v7468_v22 }
 0x5fe   : > { %v1564_v23 = vpop.f32.mrf.mxu0 }
 0x600   : > { %v6605_v24 = vpop.f32.mrf.mxu0 }
 0x601   : > { %v1255_v24 = vadd.f32 %v7369_v48, %v7468_v22 }
 0x602   : > { %v1567_v25 = vpop.f32.mrf.mxu0 }
 0x604   : > { %v6606_v26 = vpop.f32.mrf.mxu0 }
 0x606   : > { %v1662_v28 = vpop.f32.mrf.mxu0 }
 0x608   : > { %v6617_v29 = vpop.f32.mrf.mxu0 }
 0x60a   : > { %v1665_v30 = vpop.f32.mrf.mxu0 }
 0x60c   : > { %v6618_v35 = vpop.f32.mrf.mxu0 }
 0x68e   : > { %v1613_v7 = vpop.f32.mrf.mxu1 }
 0x68f   : > { %v1717_v39 = vpack.c.bf16 %v1613_v7, %v1564_v23 }
 0x690   : > { %v6611_v40 = vpop.f32.mrf.mxu1 }
 0x691   : > { %6629 = vmatprep.mubr.msk.bf16.mxu0 %vm753_vm1, %v1717_v39 }
 0x692   : > { %v1616_v41 = vpop.f32.mrf.mxu1 }
 0x694   : > { %v6612_v42 = vpop.f32.mrf.mxu1 }
 0x696   : > { %v1711_v44 = vpop.f32.mrf.mxu1 }
 0x697   : > { %v1718_v45 = vpack.c.bf16 %v1711_v44, %v1662_v28  ;;  %v1253_v28 = vadd.f32 %v7468_v22, %v7371_v51 }
 0x698   : > { %v6623_v47 = vpop.f32.mrf.mxu1 }
 0x699   : > { %6630 = vmatmul.mubr.msk.bf16.vlgmr.msra.gmra.mxu0 %vm753_vm1, %v1718_v45 }
 0x69a   : > { %6640 = vmatpush3.bf16.xpose.msra.mxu0 %v1852_v50  ;;  %v1714_v52 = vpop.f32.mrf.mxu1  ;;  %6641 = vmatprep.mubr.msk.bf16.mxu0 %vm7021_vm0, %v7020_v31 }
 0x69b   : > { %6651 = vmatprep.subr.bf16.mxu0 %v7020_v31 }
 0x69c   : > { %v6624_v53 = vpop.f32.mrf.mxu1 }
 0x69e   : > { %v1838_v59 = vpop.f32.mrf.mxu1 }
 0x69f   : > { %v1994_v61 = vmul.f32 0.17677669, %v1838_v59 }
 0x6a0   : > { %v6637_v63 = vpop.f32.mrf.mxu1 }
 0x6a1   : > { %6642 = vmatmul.mubr.msk.bf16.vlgmr.msra.gmra.mxu0 %vm753_vm1, %v1845_v46  ;;  %v1998_v5 = vsel %vm732_vm3, %v1994_v61, -1e+30 }
 0x6a2   : > { %6652 = vmatpush3.bf16.xpose.msra.mxu0 %v1952_v1  ;;  %v1841_v6 = vpop.f32.mrf.mxu1  ;;  %v2002_v8 = vsel %vm946_vm4, %v1998_v5, -inf  ;;  %6653 = vmatprep.mubr.msk.bf16.mxu0 %vm7021_vm0, %v7020_v31 }
 0x6a3   : > { %2003 = vmax.xlane.f32.xlu0 %v2002_v8  ;;  %6663 = vmatprep.subr.bf16.mxu0 %v7020_v31 }
 0x6a4   : > { %v6638_v9 = vpop.f32.mrf.mxu1 }
 0x6a6   : > { %v1938_v10 = vpop.f32.mrf.mxu1 }
 0x6a7   : > { %v1996_v12 = vmul.f32 0.17677669, %v1938_v10 }
 0x6a8   : > { %v6649_v16 = vpop.f32.mrf.mxu1 }
 0x6a9   : > { %6654 = vmatmul.mubr.msk.bf16.vlgmr.msra.gmra.mxu0 %vm753_vm1, %v1945_v14  ;;  %v2000_v17 = vsel %vm732_vm3, %v1996_v12, -1e+30 }
 0x6aa   : > { %v1941_v19 = vpop.f32.mrf.mxu1  ;;  %v2008_v20 = vsel %vm946_vm4, %v2000_v17, -inf  ;;  %6665 = vmatprep.mubr.msk.bf16.mxu0 %vm7021_vm0, %v7020_v31 }
 0x6ab   : > { %2009 = vmax.xlane.f32.xlu0 %v2008_v20 }
 0x6ac   : > { %v6650_v21 = vpop.f32.mrf.mxu1 }
 0x72c   : > { %v2004_v23 = vpop.xlane.xlu0 %2003 }
 0x72d   : > { %v2014_v25 = vsub.f32 %v1998_v5, %v2004_v23 }
 0x72f   : > { %v2018_v7 = vmul.f32 1.442695, %v2014_v25 }
 0x731   : > { %6959 = vpow2.f32 %v2018_v7 }
 0x734   : > { %v2010_v29 = vpop.xlane.xlu0 %2009 }
 0x735   : > { %v2016_v39 = vsub.f32 %v2000_v17, %v2010_v29 }
 0x737   : > { %v2022_v41 = vmul.f32 1.442695, %v2016_v39 }
 0x739   : > { %6961 = vpow2.f32 %v2022_v41 }
 0x73e   : > { %v6960_v63 = vpop.eup %6959 }
 0x73f   : > { %v2026_v5 = vsel %vm946_vm4, %v6960_v63, 0.0 }
 0x746   : > { %v6962_v6 = vpop.eup %6961 }
 0x747   : > { %v2032_v8 = vsel %vm946_vm4, %v6962_v6, 0.0 }
 0x759   : > { %v6631_v26 = vpop.f32.mrf.mxu0 }
 0x75a   : > { %v7474_v30 = vadd.f32 %v6631_v26, %v1255_v24 }
 0x75b   : > { %v1775_v35 = vpop.f32.mrf.mxu0 }
 0x75c   : > { %v7478_v37 = vadd.f32 %v1775_v35, %v1253_v28 }
 0x75d   : > { %v6632_v40 = vpop.f32.mrf.mxu0 }
 0x75e   : > { %v7480_v11 = vadd.f32 %v6632_v40, %v1256_v36 }
 0x75f   : > { %v7482_v48 = vpop.f32.mrf.mxu0 }
 0x761   : > { %v1888_v42 = vpop.f32.mrf.mxu0 }
 0x762   : > { %v1995_v51 = vmul.f32 0.17677669, %v1888_v42 }
 0x763   : > { %v6643_v44 = vpop.f32.mrf.mxu0 }
 0x764   : > { %v1999_v45 = vsel %vm732_vm3, %v1995_v51, -1e+30 }
 0x765   : > { %v1891_v46 = vpop.f32.mrf.mxu0  ;;  %v2005_v55 = vsel %vm946_vm4, %v1999_v45, -inf }
 0x766   : > { %2006 = vmax.xlane.f32.xlu1 %v2005_v55 }
 0x767   : > { %v6644_v47 = vpop.f32.mrf.mxu0 }
 0x769   : > { %v1988_v50 = vpop.f32.mrf.mxu0 }
 0x76a   : > { %v1997_v52 = vmul.f32 0.17677669, %v1988_v50 }
 0x76b   : > { %v6655_v53 = vpop.f32.mrf.mxu0 }
 0x76c   : > { %v2001_v58 = vsel %vm732_vm3, %v1997_v52, -1e+30 }
 0x76d   : > { %v1991_v59 = vpop.f32.mrf.mxu0  ;;  %v2011_v61 = vsel %vm946_vm4, %v2001_v58, -inf }
 0x76e   : > { %2012 = vmax.xlane.f32.xlu0 %v2011_v61 }
 0x76f   : > { %v6656_v1 = vpop.f32.mrf.mxu0 }
 0x772   : > { %2027 = vadd.xlane.f32.xlu0 %v2026_v5 }
 0x776   : > { %2033 = vadd.xlane.f32.xlu0 %v2032_v8 }
 0x777   : > { %2098 = vrot.lane.b32.xlu1 %v7265_v15, %s7023_s16 }
 0x77b   : > { %2146 = vrot.lane.b32.xlu1 %v7311_v27, %s7023_s16 }
 0x78c   : > { %2050 = vrot.lane.b32.xlu0 %v7263_v13, %s7023_s16 }
 0x790   : > { %2321 = vrot.lane.b32.xlu0 %v7211_v43, %s7024_s24 }
 0x794   : > { %2319 = vrot.lane.b32.xlu0 %v7220_v54, %s7024_s24 }
 0x798   : > { %2421 = vrot.lane.b32.xlu0 %v7222_v56, %s7024_s24 }
 0x79c   : > { %2419 = vrot.lane.b32.xlu0 %v7242_v0, %s7024_s24 }
 0x7ef   : > { %v2007_v9 = vpop.xlane.xlu1 %2006 }
 0x7f0   : > { %v2015_v10 = vsub.f32 %v1999_v45, %v2007_v9 }
 0x7f2   : > { %v2020_v12 = vmul.f32 1.442695, %v2015_v10  ;;  %v6795_v10 = vld [vmem:[%s8623_s3 + $0x28] sm:$0xff]  }
 0x7f3   : > { %v2099_v14 = vpop.permute.xlu1 %2098 }
 0x7f4   : > { %6963 = vpow2.f32 %v2020_v12  ;;  %v2104_v16 = vsel %vm998_vm2, %v2099_v14, 0  ;;  %v6796_v12 = vld [vmem:[%s8623_s3 + $0x20] sm:$0xff]  }
 0x7f5   : > { %6664 = vmatpush3.bf16.msra.mxu0 %v2104_v16 }
 0x7f6   : > { %6675 = vmatprep.subr.bf16.mxu0 %v7020_v31 }
 0x7f7   : > { %v2013_v43 = vpop.xlane.xlu0 %2012  ;;  %v2147_v29 = vpop.permute.xlu1 %2146 }
 0x7f8   : > { %v2017_v17 = vsub.f32 %v2001_v58, %v2013_v43  ;;  %v2152_v7 = vsel %vm998_vm2, %v2147_v29, 0 }
 0x7fa   : > { %v2024_v19 = vmul.f32 1.442695, %v2017_v17 }
 0x7fb   : > { %v2028_v54 = vpop.xlane.xlu0 %2027 }
 0x7fc   : > { %6965 = vpow2.f32 %v2024_v19 }
 0x7fd   : > { %6967 = vrcp.f32 %v2028_v54 }
 0x7ff   : > { %v2034_v56 = vpop.xlane.xlu0 %2033 }
 0x800   : > { %6969 = vrcp.f32 %v2034_v56 }
 0x801   : > { %v6964_v20 = vpop.eup %6963 }
 0x802   : > { %v2029_v0 = vsel %vm946_vm4, %v6964_v20, 0.0 }
 0x803   : > { %2030 = vadd.xlane.f32.xlu1 %v2029_v0  ;;  %v2051_v21 = vpop.permute.xlu0 %2050 }
 0x804   : > { %v2056_v23 = vsel %vm998_vm2, %v2051_v21, 0 }
 0x805   : > { %6658 = vmatpush3.bf16.msra.mxu1 %v2056_v23 }
 0x806   : > { %6669 = vmatprep.subr.bf16.mxu1 %v7020_v31 }
 0x809   : > { %v6966_v24 = vpop.eup %6965 }
 0x80a   : > { %v6968_v25 = vpop.eup %6967  ;;  %v2035_v26 = vsel %vm946_vm4, %v6966_v24, 0.0 }
 0x80b   : > { %2036 = vadd.xlane.f32.xlu1 %v2035_v26  ;;  %v2039_v28 = vmul.f32 %v6968_v25, %v6960_v63 }
 0x80d   : > { %v2046_v35 = vpack.c.bf16 %v2039_v28, %v2039_v28  ;;  %v6970_v36 = vpop.eup %6969 }
 0x80e   : > { %v2043_v39 = vmul.f32 %v6970_v36, %v6962_v6 }
 0x80f   : > { %6660 = vmatmul.mubr.msk.bf16.vlgmr.msra.gmra.mxu1 %vm946_vm4, %v2046_v35 }
 0x810   : > { %6670 = vmatpush3.bf16.msra.mxu1 %v2152_v7  ;;  %6671 = vmatprep.mubr.msk.bf16.mxu1 %vm7021_vm0, %v7020_v31  ;;  %v2048_v40 = vpack.c.bf16 %v2043_v39, %v2043_v39 }
 0x811   : > { %6681 = vmatprep.subr.bf16.mxu1 %v6795_v10 }
 0x817   : > { %6672 = vmatmul.mubr.msk.bf16.vlgmr.msra.gmra.mxu1 %vm946_vm4, %v2048_v40 }
 0x818   : > { %6682 = vmatpush3.bf16.msra.mxu1 %v6795_v10 }
 0x819   : > { %6683 = vmatprep.subr.bf16.mxu1 %v6796_v12 }
 0x81c   : > { %2194 = vrot.lane.b32.xlu1 %v7315_v32, %s7023_s16  ;;  %6684 = vmatpush3.bf16.msra.mxu1 %v6796_v12 }
 0x81d   : > { %6695 = vmatprep.subr.bf16.mxu1 %v7020_v31 }
 0x820   : > { %2371 = vrot.lane.b32.xlu1 %v7215_v49, %s7024_s24  ;;  %v2322_v49 = vpop.permute.xlu0 %2321 }
 0x821   : > { %v2327_v50 = vsel %vm753_vm1, %v2322_v49, 0 }
 0x824   : > { %2369 = vrot.lane.b32.xlu1 %v7231_v60, %s7024_s24  ;;  %v2320_v47 = vpop.permute.xlu0 %2319 }
 0x828   : > { %2471 = vrot.lane.b32.xlu1 %v7233_v62, %s7024_s24  ;;  %v2422_v52 = vpop.permute.xlu0 %2421 }
 0x829   : > { %v2427_v53 = vsel %vm753_vm1, %v2422_v52, 0 }
 0x82c   : > { %2469 = vrot.lane.b32.xlu1 %v7249_v3, %s7024_s24  ;;  %v2420_v58 = vpop.permute.xlu0 %2419 }
 0x88c   : > { %v2031_v41 = vpop.xlane.xlu1 %2030 }
 0x88d   : > { %6971 = vrcp.f32 %v2031_v41 }
 0x894   : > { %v2037_v42 = vpop.xlane.xlu1 %2036 }
 0x895   : > { %6973 = vrcp.f32 %v2037_v42 }
 0x898   : > { %v2195_v45 = vpop.permute.xlu1 %2194 }
 0x899   : > { %v2200_v55 = vsel %vm998_vm2, %v2195_v45, 0 }
 0x89a   : > { %v6972_v51 = vpop.eup %6971 }
 0x89b   : > { %v2041_v44 = vmul.f32 %v6972_v51, %v6964_v20 }
 0x89c   : > { %v2372_v17 = vpop.permute.xlu1 %2371 }
 0x89d   : > { %v2047_v46 = vpack.c.bf16 %v2041_v44, %v2041_v44  ;;  %v2377_v23 = vsel %vm753_vm1, %v2372_v17, 0 }
 0x89f   : > { %6666 = vmatmul.mubr.msk.bf16.vlgmr.msra.gmra.mxu0 %vm946_vm4, %v2047_v46 }
 0x8a0   : > { %6676 = vmatpush3.bf16.msra.mxu0 %v2200_v55  ;;  %6677 = vmatprep.mubr.msk.bf16.mxu0 %vm7021_vm0, %v7020_v31  ;;  %v2370_v0 = vpop.permute.xlu1 %2369 }
 0x8a1   : > { %6689 = vmatprep.subr.bf16.mxu0 %v7020_v31 }
 0x8a2   : > { %v6974_v60 = vpop.eup %6973 }
 0x8a3   : > { %v2045_v62 = vmul.f32 %v6974_v60, %v6966_v24 }
 0x8a4   : > { %v2472_v26 = vpop.permute.xlu1 %2471 }
 0x8a5   : > { %v2049_v3 = vpack.c.bf16 %v2045_v62, %v2045_v62  ;;  %v2477_v36 = vsel %vm753_vm1, %v2472_v26, 0 }
 0x8a7   : > { %6678 = vmatmul.mubr.msk.bf16.vlgmr.msra.gmra.mxu0 %vm946_vm4, %v2049_v3 }
 0x8a8   : > { %6690 = vmatpush3.bf16.xpose.msra.mxu0 %v2327_v50  ;;  %6691 = vmatprep.mubr.msk.bf16.mxu0 %vm7021_vm0, %v7020_v31  ;;  %v2470_v44 = vpop.permute.xlu1 %2469 }
 0x8a9   : > { %6701 = vmatprep.subr.bf16.mxu0 %v7020_v31 }
 0x8af   : > { %6692 = vmatmul.mubr.msk.bf16.vlgmr.msra.gmra.mxu0 %vm753_vm1, %v2320_v47 }
 0x8b0   : > { %6702 = vmatpush3.bf16.xpose.msra.mxu0 %v2427_v53  ;;  %6703 = vmatprep.mubr.msk.bf16.mxu0 %vm7021_vm0, %v7020_v31 }
 0x8b1   : > { %6713 = vmatprep.subr.bf16.mxu0 %v7020_v31 }
 0x8b7   : > { %6704 = vmatmul.mubr.msk.bf16.vlgmr.msra.gmra.mxu0 %vm753_vm1, %v2420_v58  ;;  %v1254_v58 = vadd.f32 %v7468_v22, %v7375_v57 }
 0x8b8   : > { %6715 = vmatprep.mubr.msk.bf16.mxu0 %vm7021_vm0, %v7020_v31 }
 0x8cf   : > { %v2092_v59 = vpop.f32.mrf.mxu1 }
 0x8d1   : > { %v6661_v61 = vpop.f32.mrf.mxu1 }
 0x8d3   : > { %v2095_v63 = vpop.f32.mrf.mxu1 }
 0x8d5   : > { %v6662_v1 = vpop.f32.mrf.mxu1 }
 0x8d7   : > { %v2188_v5 = vpop.f32.mrf.mxu1 }
 0x8d9   : > { %v6673_v6 = vpop.f32.mrf.mxu1 }
 0x8db   : > { %v2191_v8 = vpop.f32.mrf.mxu1 }
 0x8dd   : > { %v6674_v9 = vpop.f32.mrf.mxu1 }
 0x95f   : > { %v2140_v14 = vpop.f32.mrf.mxu0 }
 0x960   : > { %v2242_v16 = vpack.c.bf16 %v2140_v14, %v2092_v59 }
 0x961   : > { %v6667_v43 = vpop.f32.mrf.mxu0 }
 0x962   : > { %6685 = vmatprep.mubr.msk.bf16.mxu1 %vm753_vm1, %v2242_v16 }
 0x963   : > { %v2143_v19 = vpop.f32.mrf.mxu0 }
 0x965   : > { %v6668_v54 = vpop.f32.mrf.mxu0 }
 0x967   : > { %v2236_v56 = vpop.f32.mrf.mxu0 }
 0x968   : > { %v2243_v20 = vpack.c.bf16 %v2236_v56, %v2188_v5  ;;  %v1791_v5 = vadd.f32 %v7482_v48, %v1254_v58 }
 0x969   : > { %v6679_v21 = vpop.f32.mrf.mxu0 }
 0x96a   : > { %6686 = vmatmul.mubr.msk.bf16.vlgmr.msra.gmra.mxu1 %vm753_vm1, %v2243_v20 }
 0x96b   : > { %6696 = vmatpush3.bf16.xpose.msra.mxu1 %v2377_v23  ;;  %v2239_v24 = vpop.f32.mrf.mxu0  ;;  %6697 = vmatprep.mubr.msk.bf16.mxu1 %vm7021_vm0, %v7020_v31 }
 0x96c   : > { %6707 = vmatprep.subr.bf16.mxu1 %v7020_v31 }
 0x96d   : > { %v6680_v25 = vpop.f32.mrf.mxu0 }
 0x96f   : > { %v2363_v28 = vpop.f32.mrf.mxu0 }
 0x970   : > { %v2519_v29 = vmul.f32 0.17677669, %v2363_v28 }
 0x971   : > { %v6693_v35 = vpop.f32.mrf.mxu0 }
 0x972   : > { %6698 = vmatmul.mubr.msk.bf16.vlgmr.msra.gmra.mxu1 %vm753_vm1, %v2370_v0  ;;  %v2523_v7 = vsel %vm732_vm3, %v2519_v29, -1e+30 }
 0x973   : > { %6708 = vmatpush3.bf16.xpose.msra.mxu1 %v2477_v36  ;;  %v2366_v39 = vpop.f32.mrf.mxu0  ;;  %v2527_v40 = vsel %vm946_vm4, %v2523_v7, -inf  ;;  %6709 = vmatprep.mubr.msk.bf16.mxu1 %vm7021_vm0, %v7020_v31 }
 0x974   : > { %2528 = vmax.xlane.f32.xlu0 %v2527_v40  ;;  %6719 = vmatprep.subr.bf16.mxu1 %v7020_v31 }
 0x975   : > { %v6694_v41 = vpop.f32.mrf.mxu0 }
 0x977   : > { %v2463_v42 = vpop.f32.mrf.mxu0 }
 0x978   : > { %v2521_v51 = vmul.f32 0.17677669, %v2463_v42 }
 0x979   : > { %v6705_v45 = vpop.f32.mrf.mxu0 }
 0x97a   : > { %6710 = vmatmul.mubr.msk.bf16.vlgmr.msra.gmra.mxu1 %vm753_vm1, %v2470_v44  ;;  %v2525_v46 = vsel %vm732_vm3, %v2521_v51, -1e+30 }
 0x97b   : > { %v2466_v55 = vpop.f32.mrf.mxu0  ;;  %v2533_v49 = vsel %vm946_vm4, %v2525_v46, -inf  ;;  %6721 = vmatprep.mubr.msk.bf16.mxu1 %vm7021_vm0, %v7020_v31 }
 0x97c   : > { %2534 = vmax.xlane.f32.xlu0 %v2533_v49 }
 0x97d   : > { %v6706_v60 = vpop.f32.mrf.mxu0 }
 0x9fd   : > { %v2529_v62 = vpop.xlane.xlu0 %2528 }
 0x9fe   : > { %v2539_v3 = vsub.f32 %v2523_v7, %v2529_v62 }
 0xa00   : > { %v2543_v61 = vmul.f32 1.442695, %v2539_v3 }
 0xa02   : > { %6975 = vpow2.f32 %v2543_v61 }
 0xa05   : > { %v2535_v50 = vpop.xlane.xlu0 %2534 }
 0xa06   : > { %v2541_v63 = vsub.f32 %v2525_v46, %v2535_v50 }
 0xa0f   : > { %v6976_v56 = vpop.eup %6975 }
 0xa10   : > { %v2551_v0 = vsel %vm946_vm4, %v6976_v56, 0.0 }
 0xa2a   : > { %v6687_v47 = vpop.f32.mrf.mxu1 }
 0xa2b   : > { %v7573_v52 = vadd.f32 %v6687_v47, %v7474_v30  ;;  %v2547_v30 = vmul.f32 1.442695, %v2541_v63 }
 0xa2c   : > { %v2300_v53 = vpop.f32.mrf.mxu1 }
 0xa2d   : > { %v7578_v59 = vadd.f32 %v2300_v53, %v7478_v37  ;;  %6977 = vpow2.f32 %v2547_v30 }
 0xa2e   : > { %v6688_v1 = vpop.f32.mrf.mxu1 }
 0xa2f   : > { %v7582_v6 = vadd.f32 %v6688_v1, %v7480_v11 }
 0xa30   : > { %v2303_v8 = vpop.f32.mrf.mxu1 }
 0xa31   : > { %v7584_v9 = vadd.f32 %v2303_v8, %v1791_v5 }
 0xa32   : > { %v2413_v10 = vpop.f32.mrf.mxu1 }
 0xa33   : > { %v2520_v12 = vmul.f32 0.17677669, %v2413_v10 }
 0xa34   : > { %v6699_v14 = vpop.f32.mrf.mxu1 }
 0xa35   : > { %v2524_v57 = vsel %vm732_vm3, %v2520_v12, -1e+30 }
 0xa36   : > { %v2416_v22 = vpop.f32.mrf.mxu1  ;;  %v2530_v37 = vsel %vm946_vm4, %v2524_v57, -inf }
 0xa37   : > { %2531 = vmax.xlane.f32.xlu1 %v2530_v37 }
 0xa38   : > { %v6700_v48 = vpop.f32.mrf.mxu1 }
 0xa39   : > { %v6797_v48 = vld [vmem:[%s8623_s3 + $0x38] sm:$0xff]  }
 0xa3a   : > { %v2513_v16 = vpop.f32.mrf.mxu1  ;;  %v6978_v21 = vpop.eup %6977 }
 0xa3b   : > { %v2522_v11 = vmul.f32 0.17677669, %v2513_v16  ;;  %v2557_v23 = vsel %vm946_vm4, %v6978_v21, 0.0 }
 0xa3c   : > { %v6711_v43 = vpop.f32.mrf.mxu1 }
 0xa3d   : > { %v2526_v17 = vsel %vm732_vm3, %v2522_v11, -1e+30 }
 0xa3e   : > { %v2516_v19 = vpop.f32.mrf.mxu1  ;;  %v2536_v54 = vsel %vm946_vm4, %v2526_v17, -inf }
 0xa3f   : > { %2537 = vmax.xlane.f32.xlu0 %v2536_v54 }
 0xa40   : > { %v6712_v20 = vpop.f32.mrf.mxu1 }
 0xa43   : > { %2552 = vadd.xlane.f32.xlu0 %v2551_v0 }
 0xa47   : > { %2558 = vadd.xlane.f32.xlu0 %v2557_v23 }
 0xa48   : > { %2623 = vrot.lane.b32.xlu1 %v7265_v15, %s7024_s24 }
 0xa4c   : > { %2671 = vrot.lane.b32.xlu1 %v7311_v27, %s7024_s24 }
 0xa5d   : > { %2575 = vrot.lane.b32.xlu0 %v7263_v13, %s7024_s24 }
 0xac0   : > { %v2532_v18 = vpop.xlane.xlu1 %2531 }
 0xac1   : > { %v2540_v24 = vsub.f32 %v2524_v57, %v2532_v18 }
 0xac3   : > { %v2545_v25 = vmul.f32 1.442695, %v2540_v24 }
 0xac4   : > { %v2624_v26 = vpop.permute.xlu1 %2623 }
 0xac5   : > { %6979 = vpow2.f32 %v2545_v25  ;;  %v2629_v28 = vsel %vm998_vm2, %v2624_v26, 0 }
 0xac6   : > { %6720 = vmatpush3.bf16.msra.mxu1 %v2629_v28  ;;  %v7007_v28 = vld [vmem:[%s7130_s27] sm:$0xff] }
 0xac7   : > { %6731 = vmatprep.subr.bf16.mxu1 %v7020_v31 }
 0xac8   : > { %v2538_v29 = vpop.xlane.xlu0 %2537  ;;  %v2672_v45 = vpop.permute.xlu1 %2671 }
 0xac9   : > { %v2542_v35 = vsub.f32 %v2526_v17, %v2538_v29  ;;  %v2677_v49 = vsel %vm998_vm2, %v2672_v45, 0 }
 0xacb   : > { %v2549_v36 = vmul.f32 1.442695, %v2542_v35 }
 0xacc   : > { %v2553_v15 = vpop.xlane.xlu0 %2552 }
 0xacd   : > { %6981 = vpow2.f32 %v2549_v36 }
 0xace   : > { %6983 = vrcp.f32 %v2553_v15 }
 0xad0   : > { %v2559_v27 = vpop.xlane.xlu0 %2558 }
 0xad1   : > { %6985 = vrcp.f32 %v2559_v27  ;;  %v7008_v27 = vld [vmem:[%s7130_s27 + $0x10] sm:$0xff] }
 0xad2   : > { %v6980_v7 = vpop.eup %6979 }
 0xad3   : > { %v2554_v13 = vsel %vm946_vm4, %v6980_v7, 0.0 }
 0xad4   : > { %2555 = vadd.xlane.f32.xlu1 %v2554_v13  ;;  %v2576_v39 = vpop.permute.xlu0 %2575  ;;  %v7009_v13 = vld [vmem:[%s7130_s27 + $0x8] sm:$0xff] }
 0xad5   : > { %v2581_v40 = vsel %vm998_vm2, %v2576_v39, 0 }
 0xad6   : > { %6714 = vmatpush3.bf16.msra.mxu0 %v2581_v40  ;;  %v7010_v40 = vld [vmem:[%s7130_s27 + $0x18] sm:$0xff] }
 0xad7   : > { %6725 = vmatprep.subr.bf16.mxu0 %v7020_v31 }
 0xada   : > { %v6982_v41 = vpop.eup %6981 }
 0xadb   : > { %v6984_v42 = vpop.eup %6983  ;;  %v2560_v51 = vsel %vm946_vm4, %v6982_v41, 0.0 }
 0xadc   : > { %2561 = vadd.xlane.f32.xlu1 %v2560_v51  ;;  %v2564_v44 = vmul.f32 %v6984_v42, %v6976_v56  ;;  %v3038_v51 = vld [vmem:[%s8625_s5 + $0x3c8] sm:$0xff] }
 0xade   : > { %v2571_v46 = vpack.c.bf16 %v2564_v44, %v2564_v44  ;;  %v6986_v55 = vpop.eup %6985 }
 0xadf   : > { %v2568_v60 = vmul.f32 %v6986_v55, %v6978_v21 }
 0xae0   : > { %6716 = vmatmul.mubr.msk.bf16.vlgmr.msra.gmra.mxu0 %vm946_vm4, %v2571_v46 }
 0xae1   : > { %6726 = vmatpush3.bf16.msra.mxu0 %v2677_v49  ;;  %6727 = vmatprep.mubr.msk.bf16.mxu0 %vm7021_vm0, %v7020_v31  ;;  %v2573_v62 = vpack.c.bf16 %v2568_v60, %v2568_v60 }
 0xae2   : > { %6737 = vmatprep.subr.bf16.mxu0 %v6797_v48 }
 0xae8   : > { %6728 = vmatmul.mubr.msk.bf16.vlgmr.msra.gmra.mxu0 %vm946_vm4, %v2573_v62 }
 0xae9   : > { %6738 = vmatpush3.bf16.msra.mxu0 %v6797_v48 }
 0xaed   : > { %2719 = vrot.lane.b32.xlu1 %v7315_v32, %s7024_s24 }
 0xb5d   : > { %v2556_v3 = vpop.xlane.xlu1 %2555 }
 0xb5e   : > { %6987 = vrcp.f32 %v2556_v3 }
 0xb65   : > { %v2562_v47 = vpop.xlane.xlu1 %2561 }
 0xb66   : > { %6989 = vrcp.f32 %v2562_v47 }
 0xb69   : > { %v2720_v58 = vpop.permute.xlu1 %2719 }
 0xb6a   : > { %v2725_v63 = vsel %vm998_vm2, %v2720_v58, 0 }
 0xb6b   : > { %v6988_v50 = vpop.eup %6987 }
 0xb6c   : > { %v2566_v53 = vmul.f32 %v6988_v50, %v6980_v7 }
 0xb6e   : > { %v2572_v61 = vpack.c.bf16 %v2566_v53, %v2566_v53 }
 0xb70   : > { %6722 = vmatmul.mubr.msk.bf16.vlgmr.msra.gmra.mxu1 %vm946_vm4, %v2572_v61 }
 0xb71   : > { %6732 = vmatpush3.bf16.msra.mxu1 %v2725_v63  ;;  %6733 = vmatprep.mubr.msk.bf16.mxu1 %vm7021_vm0, %v7020_v31  ;;  %v6798_v31 = vld [vmem:[%s8623_s3 + $0x30] sm:$0xff]  }
 0xb72   : > { %6739 = vmatprep.subr.bf16.mxu0 %v6798_v31 }
 0xb73   : > { %v6990_v1 = vpop.eup %6989  ;;  %6740 = vmatpush3.bf16.msra.mxu0 %v6798_v31  ;;  %v2997_v31 = vld [vmem:[%s8625_s5 + $0x280] sm:$0xff] }
 0xb74   : > { %v2570_v5 = vmul.f32 %v6990_v1, %v6982_v41 }
 0xb76   : > { %v2574_v8 = vpack.c.bf16 %v2570_v5, %v2570_v5 }
 0xb78   : > { %6734 = vmatmul.mubr.msk.bf16.vlgmr.msra.gmra.mxu1 %vm946_vm4, %v2574_v8 }
 0xb79   : > { %3801 = vmatprep.mubr.bf16.mxu1 %v7019_v2 }
 0xba0   : > { %v2617_v32 = vpop.f32.mrf.mxu0 }
 0xba2   : > { %v6717_v30 = vpop.f32.mrf.mxu0 }
 0xba3   : > { %v3013_v30 = vld [vmem:[%s8625_s5 + $0x300] sm:$0xff] }
 0xba4   : > { %v2620_v10 = vpop.f32.mrf.mxu0 }
 0xba5   : > { %v3021_v10 = vld [vmem:[%s8625_s5 + $0x340] sm:$0xff] }
 0xba6   : > { %v6718_v12 = vpop.f32.mrf.mxu0 }
 0xba7   : > { %v3014_v12 = vld [vmem:[%s8625_s5 + $0x308] sm:$0xff] }
 0xba8   : > { %v2713_v14 = vpop.f32.mrf.mxu0 }
 0xbaa   : > { %v6729_v57 = vpop.f32.mrf.mxu0 }
 0xbab   : > { %v3022_v57 = vld [vmem:[%s8625_s5 + $0x348] sm:$0xff] }
 0xbac   : > { %v2716_v22 = vpop.f32.mrf.mxu0  ;;  %v6025_v48 = vcombine.high %v3014_v12, %v3022_v57 }
 0xbad   : > { %v6022_v22 = vcombine.low %v3013_v30, %v3021_v10 }
 0xbae   : > { %v6730_v37 = vpop.f32.mrf.mxu0 }
 0xbaf   : > { %v6024_v37 = vcombine.low %v3014_v12, %v3022_v57  ;;  %v3039_v12 = vld [vmem:[%s8625_s5 + $0x3d0] sm:$0xff] }
 0xc30   : > { %v2665_v16 = vpop.f32.mrf.mxu1 }
 0xc31   : > { %v2767_v11 = vpack.c.bf16 %v2665_v16, %v2617_v32  ;;  %v3005_v16 = vld [vmem:[%s8625_s5 + $0x2c0] sm:$0xff] }
 0xc32   : > { %v6723_v43 = vpop.f32.mrf.mxu1 }
 0xc33   : > { %6741 = vmatprep.mubr.msk.bf16.mxu0 %vm753_vm1, %v2767_v11  ;;  %v2998_v11 = vld [vmem:[%s8625_s5 + $0x288] sm:$0xff]  ;;  %v6007_v43 = vcombine.high %v2997_v31, %v3005_v16 }
 0xc34   : > { %v2668_v17 = vpop.f32.mrf.mxu1 }
 0xc35   : > { %v3006_v17 = vld [vmem:[%s8625_s5 + $0x2c8] sm:$0xff] }
 0xc36   : > { %v6724_v19 = vpop.f32.mrf.mxu1 }
 0xc37   : > { %v6006_v19 = vcombine.low %v2997_v31, %v3005_v16 }
 0xc38   : > { %v2761_v54 = vpop.f32.mrf.mxu1 }
 0xc39   : > { %v2768_v56 = vpack.c.bf16 %v2761_v54, %v2713_v14  ;;  %v6023_v14 = vcombine.high %v3013_v30, %v3021_v10  ;;  %v6008_v54 = vcombine.low %v2998_v11, %v3006_v17  ;;  %v3031_v10 = vld [vmem:[%s8625_s5 + $0x390] sm:$0xff] }
 0xc3a   : > { %v6735_v20 = vpop.f32.mrf.mxu1  ;;  %v6043_v57 = vcombine.high %v3031_v10, %v3039_v12 }
 0xc3b   : > { %6742 = vmatmul.mubr.msk.bf16.vlgmr.msra.gmra.mxu0 %vm753_vm1, %v2768_v56  ;;  %v6009_v56 = vcombine.high %v2998_v11, %v3006_v17  ;;  %v2981_v20 = vld [vmem:[%s8625_s5 + $0x200] sm:$0xff] }
 0xc3c   : > { %v2764_v0 = vpop.f32.mrf.mxu1  ;;  %3854 = vmatprep.mubr.bf16.mxu0 %v7019_v2 }
 0xc3d   : > { %v2989_v0 = vld [vmem:[%s8625_s5 + $0x240] sm:$0xff] }
 0xc3e   : > { %v6736_v21 = vpop.f32.mrf.mxu1 }
 0xc3f   : > { %v2982_v21 = vld [vmem:[%s8625_s5 + $0x208] sm:$0xff] }
 0xcfb   : > { %v6743_v23 = vpop.f32.mrf.mxu0 }
 0xcfc   : > { %v2842_v26 = vadd.f32 %v6743_v23, %v7573_v52  ;;  %v3029_v52 = vld [vmem:[%s8625_s5 + $0x380] sm:$0xff]  ;;  %v5991_v23 = vcombine.high %v2981_v20, %v2989_v0 }
 0xcfd   : > { %v2825_v18 = vpop.f32.mrf.mxu0 }
 0xcfe   : > { %v2840_v24 = vadd.f32 %v2825_v18, %v7578_v59  ;;  %v2846_v7 = vadd.f32 %v7008_v27, %v2842_v26  ;;  %v3037_v59 = vld [vmem:[%s8625_s5 + $0x3c0] sm:$0xff]  ;;  %v2990_v18 = vld [vmem:[%s8625_s5 + $0x248] sm:$0xff] }
 0xcff   : > { %v6744_v25 = vpop.f32.mrf.mxu0  ;;  %v6039_v42 = vcombine.high %v3029_v52, %v3037_v59  ;;  %v5993_v26 = vcombine.high %v2982_v21, %v2990_v18 }
 0xd00   : > { %v2844_v29 = vadd.f32 %v7007_v28, %v2840_v24  ;;  %v2843_v15 = vadd.f32 %v6744_v25, %v7582_v6  ;;  %v3030_v6 = vld [vmem:[%s8625_s5 + $0x388] sm:$0xff]  ;;  %v5990_v24 = vcombine.low %v2981_v20, %v2989_v0  ;;  %v5992_v25 = vcombine.low %v2982_v21, %v2990_v18  ;;  %v2965_v28 = vld [vmem:[%s8625_s5 + $0x180] sm:$0xff] }
 0xd01   : > { %v2828_v35 = vpop.f32.mrf.mxu0  ;;  %v6040_v44 = vcombine.low %v3030_v6, %v3038_v51  ;;  %v6041_v45 = vcombine.high %v3030_v6, %v3038_v51  ;;  %3769 = vmatprep.subr.bf16.mxu1 %v6039_v42  ;;  %v2933_v51 = vld [vmem:[%s8625_s5 + $0x80] sm:$0xff] }
 0xd02   : > { %v2841_v36 = vadd.f32 %v2828_v35, %v7584_v9  ;;  %2850 = vadd.xlane.f32.xlu0 %v2844_v29  ;;  %v2847_v41 = vadd.f32 %v7010_v40, %v2843_v15  ;;  %v6038_v9 = vcombine.low %v3029_v52, %v3037_v59  ;;  %v2966_v35 = vld [vmem:[%s8625_s5 + $0x188] sm:$0xff]  ;;  %v2957_v40 = vld [vmem:[%s8625_s5 + $0x140] sm:$0xff] }
 0xd03   : > { %3822 = vmatprep.subr.bf16.mxu0 %v6041_v45  ;;  %v2974_v15 = vld [vmem:[%s8625_s5 + $0x1c8] sm:$0xff] }
 0xd04   : > { %v2845_v39 = vadd.f32 %v7009_v13, %v2841_v36  ;;  %3770 = vmatpush1.bf16.msra.mxu1 %v6038_v9  ;;  %3823 = vmatpush1.bf16.msra.mxu0 %v6040_v44  ;;  %v5977_v13 = vcombine.high %v2966_v35, %v2974_v15  ;;  %v2958_v59 = vld [vmem:[%s8625_s5 + $0x148] sm:$0xff]  ;;  %v2941_v44 = vld [vmem:[%s8625_s5 + $0xc0] sm:$0xff] }
 0xd05   : > { %3771 = vmatprep.subr.bf16.mxu1 %v6023_v14  ;;  %3824 = vmatprep.subr.bf16.mxu0 %v6025_v48  ;;  %v2934_v45 = vld [vmem:[%s8625_s5 + $0x88] sm:$0xff]  ;;  %v3032_v14 = vld [vmem:[%s8625_s5 + $0x398] sm:$0xff] }
 0xd06   : > { %2854 = vadd.xlane.f32.xlu0 %v2846_v7  ;;  %2852 = vadd.xlane.f32.xlu1 %v2845_v39 }
 0xd08   : > { %3772 = vmatpush1.bf16.msra.mxu1 %v6022_v22  ;;  %3825 = vmatpush1.bf16.msra.mxu0 %v6024_v37  ;;  %v3040_v22 = vld [vmem:[%s8625_s5 + $0x3d8] sm:$0xff]  ;;  %v6042_v37 = vcombine.low %v3031_v10, %v3039_v12 }
 0xd09   : > { %3773 = vmatprep.subr.bf16.mxu1 %v6007_v43  ;;  %3826 = vmatprep.subr.bf16.mxu0 %v6009_v56  ;;  %v6044_v48 = vcombine.low %v3032_v14, %v3040_v22  ;;  %v6045_v31 = vcombine.high %v3032_v14, %v3040_v22  ;;  %v2975_v22 = vld [vmem:[%s8625_s5 + $0x1d0] sm:$0xff] }
 0xd0a   : > { %2856 = vadd.xlane.f32.xlu0 %v2847_v41 }
 0xd0c   : > { %3774 = vmatpush1.bf16.msra.mxu1 %v6006_v19  ;;  %3827 = vmatpush1.bf16.msra.mxu0 %v6008_v54 }
 0xd0d   : > { %3775 = vmatprep.subr.bf16.mxu1 %v5991_v23  ;;  %3828 = vmatprep.subr.bf16.mxu0 %v5993_v26  ;;  %v5924_v26 = vld [vmem:[%s8629_s9] ss:$0 sm:$0xff] }
 0xd10   : > { %3776 = vmatpush1.bf16.msra.mxu1 %v5990_v24  ;;  %3829 = vmatpush1.bf16.msra.mxu0 %v5992_v25 }
 0xd11   : > { %3830 = vmatprep.subr.bf16.mxu0 %v5977_v13  ;;  %v3015_v13 = vld [vmem:[%s8625_s5 + $0x310] sm:$0xff] }
 0xd8b   : > { %v2851_v46 = vpop.xlane.xlu0 %2850 }
 0xd8c   : > { %v2859_v55 = vmul.f32 0.0078125, %v2851_v46  ;;  %v5943_v46 = vcombine.high %v2933_v51, %v2941_v44 }
 0xd8e   : > { %v7648_v49 = vsub.f32 %v2844_v29, %v2859_v55  ;;  %v2973_v29 = vld [vmem:[%s8625_s5 + $0x1c0] sm:$0xff]  ;;  %v2942_v55 = vld [vmem:[%s8625_s5 + $0xc8] sm:$0xff] }
 0xd8f   : > { %v2855_v60 = vpop.xlane.xlu0 %2854  ;;  %v2853_v62 = vpop.xlane.xlu1 %2852  ;;  %v5975_v36 = vcombine.high %v2965_v28, %v2973_v29  ;;  %v5974_v27 = vcombine.low %v2965_v28, %v2973_v29 }
 0xd90   : > { %v2861_v3 = vmul.f32 0.0078125, %v2855_v60  ;;  %v2860_v47 = vmul.f32 0.0078125, %v2853_v62  ;;  %v2867_v50 = vmul.f32 %v7648_v49, %v7648_v49  ;;  %v5942_v60 = vcombine.low %v2933_v51, %v2941_v44  ;;  %v2999_v51 = vld [vmem:[%s8625_s5 + $0x290] sm:$0xff] }
 0xd91   : > { %3777 = vmatprep.subr.bf16.mxu1 %v5975_v36  ;;  %v5944_v62 = vcombine.low %v2934_v45, %v2942_v55  ;;  %v3007_v44 = vld [vmem:[%s8625_s5 + $0x2d0] sm:$0xff] }
 0xd92   : > { %v7652_v53 = vsub.f32 %v2846_v7, %v2861_v3  ;;  %v7654_v58 = vsub.f32 %v2845_v39, %v2860_v47  ;;  %2871 = vadd.xlane.f32.xlu0 %v2867_v50  ;;  %v5976_v7 = vcombine.low %v2966_v35, %v2974_v15  ;;  %3778 = vmatpush1.bf16.msra.mxu1 %v5974_v27  ;;  %v2949_v39 = vld [vmem:[%s8625_s5 + $0x100] sm:$0xff] }
 0xd93   : > { %v2857_v61 = vpop.xlane.xlu0 %2856  ;;  %v5959_v52 = vcombine.high %v2949_v39, %v2957_v40  ;;  %v5958_v6 = vcombine.low %v2949_v39, %v2957_v40  ;;  %v5945_v3 = vcombine.high %v2934_v45, %v2942_v55  ;;  %v2917_v47 = vld [vmem:[%s8625_s5] sm:$0xff]  ;;  %v3023_v39 = vld [vmem:[%s8625_s5 + $0x350] sm:$0xff]  ;;  %v3024_v40 = vld [vmem:[%s8625_s5 + $0x358] sm:$0xff] }
 0xd94   : > { %v2862_v63 = vmul.f32 0.0078125, %v2857_v61  ;;  %v2869_v1 = vmul.f32 %v7652_v53, %v7652_v53  ;;  %v2868_v5 = vmul.f32 %v7654_v58, %v7654_v58  ;;  %3831 = vmatpush1.bf16.msra.mxu0 %v5976_v7  ;;  %v2925_v50 = vld [vmem:[%s8625_s5 + $0x40] sm:$0xff]  ;;  %v2918_v61 = vld [vmem:[%s8625_s5 + $0x8] sm:$0xff]  ;;  %v3008_v45 = vld [vmem:[%s8625_s5 + $0x2d8] sm:$0xff]  ;;  %v6026_v55 = vcombine.low %v3015_v13, %v3023_v39 }
 0xd95   : > { %3779 = vmatprep.subr.bf16.mxu1 %v5959_v52  ;;  %v5925_v15 = vld [vmem:[%s8630_s10] ss:$0 sm:$0xff] }
 0xd96   : > { %v7660_v8 = vsub.f32 %v2847_v41, %v2862_v63  ;;  %2875 = vadd.xlane.f32.xlu0 %v2869_v1  ;;  %2873 = vadd.xlane.f32.xlu1 %v2868_v5  ;;  %v2950_v41 = vld [vmem:[%s8625_s5 + $0x108] sm:$0xff]  ;;  %v5927_v63 = vcombine.high %v2917_v47, %v2925_v50  ;;  %v5926_v5 = vcombine.low %v2917_v47, %v2925_v50  ;;  %v2983_v50 = vld [vmem:[%s8625_s5 + $0x210] sm:$0xff] }
 0xd97   : > { %v5960_v9 = vcombine.low %v2950_v41, %v2958_v59  ;;  %v5961_v42 = vcombine.high %v2950_v41, %v2958_v59  ;;  %3780 = vmatpush1.bf16.msra.mxu1 %v5958_v6  ;;  %v2926_v1 = vld [vmem:[%s8625_s5 + $0x48] sm:$0xff] }
 0xd98   : > { %v2870_v32 = vmul.f32 %v7660_v8, %v7660_v8  ;;  %3781 = vmatprep.subr.bf16.mxu1 %v5943_v46  ;;  %v5929_v30 = vcombine.high %v2918_v61, %v2926_v1 }
 0xd99   : > { %3832 = vmatprep.subr.bf16.mxu0 %v5961_v42 }
 0xd9a   : > { %2877 = vadd.xlane.f32.xlu1 %v2870_v32  ;;  %3833 = vmatpush1.bf16.msra.mxu0 %v5960_v9  ;;  %v5928_v32 = vcombine.low %v2918_v61, %v2926_v1  ;;  %v6027_v9 = vcombine.high %v3015_v13, %v3023_v39  ;;  %v2991_v61 = vld [vmem:[%s8625_s5 + $0x250] sm:$0xff]  ;;  %v2992_v1 = vld [vmem:[%s8625_s5 + $0x258] sm:$0xff] }
 0xd9b   : > { %3834 = vmatprep.subr.bf16.mxu0 %v5945_v3  ;;  %3782 = vmatpush1.bf16.msra.mxu1 %v5942_v60  ;;  %v6011_v3 = vcombine.high %v2999_v51, %v3007_v44  ;;  %v5995_v12 = vcombine.high %v2983_v50, %v2991_v61  ;;  %v2928_v13 = vld [vmem:[%s8625_s5 + $0x58] sm:$0xff] }
 0xd9c   : > { %3783 = vmatprep.subr.bf16.mxu1 %v5927_v63  ;;  %v2984_v63 = vld [vmem:[%s8625_s5 + $0x218] sm:$0xff] }
 0xd9d   : > { %v5997_v14 = vcombine.high %v2984_v63, %v2992_v1 }
 0xd9e   : > { %3835 = vmatpush1.bf16.msra.mxu0 %v5944_v62 }
 0xd9f   : > { %3836 = vmatprep.subr.bf16.mxu0 %v5929_v30  ;;  %3784 = vmatpush1.bf16.msra.mxu1 %v5926_v5 }
 0xda0   : > { %3875 = vmatprep.subr.bf16.mxu1 %v6043_v57  ;;  %v2967_v57 = vld [vmem:[%s8625_s5 + $0x190] sm:$0xff] }
 0xda2   : > { %3837 = vmatpush1.bf16.msra.mxu0 %v5928_v32  ;;  %v6010_v32 = vcombine.low %v2999_v51, %v3007_v44 }
 0xda3   : > { %3928 = vmatprep.subr.bf16.mxu0 %v6045_v31  ;;  %v5994_v31 = vcombine.low %v2983_v50, %v2991_v61 }
 0xe1b   : > { %v2872_v16 = vpop.xlane.xlu0 %2871 }
 0xe1c   : > { %v2879_v11 = vmul.f32 0.0078125, %v2872_v16  ;;  %v5996_v16 = vcombine.low %v2984_v63, %v2992_v1  ;;  %v3001_v1 = vld [vmem:[%s8625_s5 + $0x2a0] sm:$0xff] }
 0xe1e   : > { %v2883_v43 = vadd.f32 1e-05, %v2879_v11  ;;  %v5979_v11 = vcombine.high %v2967_v57, %v2975_v22 }
 0xe1f   : > { %v2876_v17 = vpop.xlane.xlu0 %2875  ;;  %v2874_v19 = vpop.xlane.xlu1 %2873 }
 0xe20   : > { %6991 = vrsqrt.f32 %v2883_v43  ;;  %v2881_v54 = vmul.f32 0.0078125, %v2876_v17  ;;  %v2880_v56 = vmul.f32 0.0078125, %v2874_v19  ;;  %v2951_v17 = vld [vmem:[%s8625_s5 + $0x110] sm:$0xff] }
 0xe21   : > { %v2959_v19 = vld [vmem:[%s8625_s5 + $0x150] sm:$0xff] }
 0xe22   : > { %v2884_v20 = vadd.f32 1e-05, %v2880_v56  ;;  %v2885_v0 = vadd.f32 1e-05, %v2881_v54  ;;  %v2952_v54 = vld [vmem:[%s8625_s5 + $0x118] sm:$0xff] }
 0xe23   : > { %v2878_v21 = vpop.xlane.xlu1 %2877  ;;  %v2960_v56 = vld [vmem:[%s8625_s5 + $0x158] sm:$0xff] }
 0xe24   : > { %v2882_v23 = vmul.f32 0.0078125, %v2878_v21  ;;  %6993 = vrsqrt.f32 %v2884_v20  ;;  %v5978_v20 = vcombine.low %v2967_v57, %v2975_v22  ;;  %v5963_v21 = vcombine.high %v2951_v17, %v2959_v19 }
 0xe25   : > { %6995 = vrsqrt.f32 %v2885_v0 }
 0xe26   : > { %v2886_v18 = vadd.f32 1e-05, %v2882_v23  ;;  %v5965_v23 = vcombine.high %v2952_v54, %v2960_v56 }
 0xe28   : > { %6997 = vrsqrt.f32 %v2886_v18  ;;  %v2935_v18 = vld [vmem:[%s8625_s5 + $0x90] sm:$0xff] }
 0xe2d   : > { %v6992_v24 = vpop.eup %6991 }
 0xe2e   : > { %v2891_v25 = vmul.f32 %v6992_v24, %v7648_v49  ;;  %v2943_v24 = vld [vmem:[%s8625_s5 + $0xd0] sm:$0xff] }
 0xe30   : > { %v2901_v29 = vmul.f32 %v5924_v26, %v2891_v25  ;;  %v2936_v25 = vld [vmem:[%s8625_s5 + $0x98] sm:$0xff] }
 0xe31   : > { %v6994_v28 = vpop.eup %6993 }
 0xe32   : > { %v2892_v35 = vmul.f32 %v6994_v28, %v7654_v58  ;;  %v6996_v36 = vpop.eup %6995  ;;  %v3016_v58 = vld [vmem:[%s8625_s5 + $0x318] sm:$0xff]  ;;  %v7781_v41 = vadd.f32 %v5925_v15, %v2901_v29  ;;  %v5962_v28 = vcombine.low %v2951_v17, %v2959_v19  ;;  %v5964_v29 = vcombine.low %v2952_v54, %v2960_v56  ;;  %v2969_v56 = vld [vmem:[%s8625_s5 + $0x1a0] sm:$0xff] }
 0xe33   : > { %v2893_v52 = vmul.f32 %v6996_v36, %v7652_v53  ;;  %v6029_v42 = vcombine.high %v3016_v58, %v3024_v40  ;;  %v3000_v53 = vld [vmem:[%s8625_s5 + $0x298] sm:$0xff]  ;;  %v6028_v60 = vcombine.low %v3016_v58, %v3024_v40 }
 0xe34   : > { %v2902_v7 = vmul.f32 %v5924_v26, %v2892_v35  ;;  %v6013_v47 = vcombine.high %v3000_v53, %v3008_v45  ;;  %v6012_v30 = vcombine.low %v3000_v53, %v3008_v45  ;;  %v5947_v35 = vcombine.high %v2935_v18, %v2943_v24 }
 0xe35   : > { %v6998_v27 = vpop.eup %6997  ;;  %v2903_v46 = vmul.f32 %v5924_v26, %v2893_v52  ;;  %v3033_v52 = vld [vmem:[%s8625_s5 + $0x3a0] sm:$0xff] }
 0xe36   : > { %v2894_v49 = vmul.f32 %v6998_v27, %v7660_v8  ;;  %v7784_v59 = vadd.f32 %v5925_v15, %v2902_v7  ;;  %v2927_v27 = vld [vmem:[%s8625_s5 + $0x50] sm:$0xff]  ;;  %v2920_v7 = vld [vmem:[%s8625_s5 + $0x18] sm:$0xff] }
 0xe37   : > { %v7820_v5 = vadd.f32 %v5925_v15, %v2903_v46  ;;  %v5933_v40 = vcombine.high %v2920_v7, %v2928_v13  ;;  %v5932_v44 = vcombine.low %v2920_v7, %v2928_v13  ;;  %v3017_v46 = vld [vmem:[%s8625_s5 + $0x320] sm:$0xff] }
 0xe38   : > { %v7788_v8 = vpack.c.bf16 %v7784_v59, %v7781_v41  ;;  %v2904_v6 = vmul.f32 %v5924_v26, %v2894_v49  ;;  %v2944_v26 = vld [vmem:[%s8625_s5 + $0xd8] sm:$0xff]  ;;  %v5946_v49 = vcombine.low %v2935_v18, %v2943_v24  ;;  %v2937_v13 = vld [vmem:[%s8625_s5 + $0xa0] sm:$0xff] }
 0xe39   : > { %v5949_v36 = vcombine.high %v2936_v25, %v2944_v26  ;;  %v5948_v39 = vcombine.low %v2936_v25, %v2944_v26  ;;  %v2953_v26 = vld [vmem:[%s8625_s5 + $0x120] sm:$0xff] }
 0xe3a   : > { %3802 = vmatmul.mubr.bf16.vlgmr.msra.gmra.mxu1 %v7788_v8  ;;  %3855 = vmatmul.mubr.bf16.vlgmr.msra.gmra.mxu0 %v7788_v8  ;;  %v7804_v62 = vadd.f32 %v5925_v15, %v2904_v6  ;;  %v2919_v15 = vld [vmem:[%s8625_s5 + $0x10] sm:$0xff]  ;;  %v3041_v6 = vld [vmem:[%s8625_s5 + $0x3e0] sm:$0xff] }
 0xe3b   : > { %3876 = vmatpush1.bf16.msra.mxu1 %v6042_v37  ;;  %3929 = vmatpush1.bf16.msra.mxu0 %v6044_v48  ;;  %v2968_v37 = vld [vmem:[%s8625_s5 + $0x198] sm:$0xff]  ;;  %v5931_v58 = vcombine.high %v2919_v15, %v2927_v27  ;;  %v5930_v51 = vcombine.low %v2919_v15, %v2927_v27  ;;  %v6047_v53 = vcombine.high %v3033_v52, %v3041_v6 }
 0xe3c   : > { %8635 = vst [vmem:[#allocation2_spill] sm:$0xff] %v7804_v62  ;;  %3877 = vmatprep.subr.bf16.mxu1 %v6027_v9  ;;  %3930 = vmatprep.subr.bf16.mxu0 %v6029_v42  ;;  %v7824_v10 = vpack.c.bf16 %v7804_v62, %v7820_v5  ;;  %v2976_v48 = vld [vmem:[%s8625_s5 + $0x1d8] sm:$0xff]  ;;  %v3034_v9 = vld [vmem:[%s8625_s5 + $0x3a8] sm:$0xff] }
 0xe3d   : > { %3811 = vmatprep.mubr.bf16.mxu1 %v7019_v2  ;;  %3864 = vmatprep.mubr.bf16.mxu0 %v7019_v2  ;;  %v5981_v43 = vcombine.high %v2968_v37, %v2976_v48  ;;  %v5980_v0 = vcombine.low %v2968_v37, %v2976_v48  ;;  %v3042_v42 = vld [vmem:[%s8625_s5 + $0x3e8] sm:$0xff]  ;;  %v2985_v48 = vld [vmem:[%s8625_s5 + $0x220] sm:$0xff] }
 0xe3e   : > { %v6049_v45 = vcombine.high %v3034_v9, %v3042_v42  ;;  %v6048_v50 = vcombine.low %v3034_v9, %v3042_v42  ;;  %v2921_v42 = vld [vmem:[%s8625_s5 + $0x20] sm:$0xff] }
 0xe3f   : > { %3878 = vmatpush1.bf16.msra.mxu1 %v6026_v55  ;;  %3931 = vmatpush1.bf16.msra.mxu0 %v6028_v60  ;;  %v3025_v55 = vld [vmem:[%s8625_s5 + $0x360] sm:$0xff]  ;;  %v3018_v60 = vld [vmem:[%s8625_s5 + $0x328] sm:$0xff] }
 0xe40   : > { %3879 = vmatprep.subr.bf16.mxu1 %v6011_v3  ;;  %3932 = vmatprep.subr.bf16.mxu0 %v6013_v47  ;;  %v3026_v3 = vld [vmem:[%s8625_s5 + $0x368] sm:$0xff]  ;;  %v6046_v47 = vcombine.low %v3033_v52, %v3041_v6  ;;  %v6031_v61 = vcombine.high %v3017_v46, %v3025_v55 }
 0xe41   : > { %v6033_v63 = vcombine.high %v3018_v60, %v3026_v3  ;;  %v6032_v57 = vcombine.low %v3018_v60, %v3026_v3  ;;  %v3035_v3 = vld [vmem:[%s8625_s5 + $0x3b0] sm:$0xff] }
 0xe42   : > { %3812 = vmatmul.mubr.bf16.gmra.mxu1 %v7824_v10  ;;  %3865 = vmatmul.mubr.bf16.gmra.mxu0 %v7824_v10 }
 0xe43   : > { %3880 = vmatpush1.bf16.msra.mxu1 %v6010_v32  ;;  %3933 = vmatpush1.bf16.msra.mxu0 %v6012_v30  ;;  %v3009_v32 = vld [vmem:[%s8625_s5 + $0x2e0] sm:$0xff]  ;;  %v3002_v30 = vld [vmem:[%s8625_s5 + $0x2a8] sm:$0xff] }
 0xe44   : > { %3881 = vmatprep.subr.bf16.mxu1 %v5995_v12  ;;  %3934 = vmatprep.subr.bf16.mxu0 %v5997_v14  ;;  %v3010_v12 = vld [vmem:[%s8625_s5 + $0x2e8] sm:$0xff]  ;;  %v6030_v14 = vcombine.low %v3017_v46, %v3025_v55  ;;  %v6015_v22 = vcombine.high %v3001_v1, %v3009_v32 }
 0xe45   : > { %3907 = vmatprep.mubr.bf16.mxu1 %v7019_v2  ;;  %3960 = vmatprep.mubr.bf16.mxu0 %v7019_v2  ;;  %v6017_v37 = vcombine.high %v3002_v30, %v3010_v12  ;;  %v6016_v17 = vcombine.low %v3002_v30, %v3010_v12  ;;  %v3019_v12 = vld [vmem:[%s8625_s5 + $0x330] sm:$0xff] }
 0xe47   : > { %3882 = vmatpush1.bf16.msra.mxu1 %v5994_v31  ;;  %3935 = vmatpush1.bf16.msra.mxu0 %v5996_v16  ;;  %v2993_v31 = vld [vmem:[%s8625_s5 + $0x260] sm:$0xff]  ;;  %v2986_v16 = vld [vmem:[%s8625_s5 + $0x228] sm:$0xff] }
 0xe48   : > { %3883 = vmatprep.subr.bf16.mxu1 %v5979_v11  ;;  %3936 = vmatprep.subr.bf16.mxu0 %v5981_v43  ;;  %v2994_v11 = vld [vmem:[%s8625_s5 + $0x268] sm:$0xff]  ;;  %v6014_v43 = vcombine.low %v3001_v1, %v3009_v32  ;;  %v5999_v19 = vcombine.high %v2985_v48, %v2993_v31 }
 0xe49   : > { %v6001_v54 = vcombine.high %v2986_v16, %v2994_v11  ;;  %v6000_v18 = vcombine.low %v2986_v16, %v2994_v11  ;;  %v3003_v11 = vld [vmem:[%s8625_s5 + $0x2b0] sm:$0xff] }
 0xe4b   : > { %3884 = vmatpush1.bf16.msra.mxu1 %v5978_v20  ;;  %3937 = vmatpush1.bf16.msra.mxu0 %v5980_v0  ;;  %v2977_v20 = vld [vmem:[%s8625_s5 + $0x1e0] sm:$0xff]  ;;  %v2970_v0 = vld [vmem:[%s8625_s5 + $0x1a8] sm:$0xff] }
 0xe4c   : > { %3885 = vmatprep.subr.bf16.mxu1 %v5963_v21  ;;  %3938 = vmatprep.subr.bf16.mxu0 %v5965_v23  ;;  %v2978_v21 = vld [vmem:[%s8625_s5 + $0x1e8] sm:$0xff]  ;;  %v5998_v23 = vcombine.low %v2985_v48, %v2993_v31  ;;  %v5983_v24 = vcombine.high %v2969_v56, %v2977_v20 }
 0xe4d   : > { %v5985_v25 = vcombine.high %v2970_v0, %v2978_v21  ;;  %v5984_v15 = vcombine.low %v2970_v0, %v2978_v21  ;;  %v2987_v21 = vld [vmem:[%s8625_s5 + $0x230] sm:$0xff] }
 0xe4f   : > { %3886 = vmatpush1.bf16.msra.mxu1 %v5962_v28  ;;  %3939 = vmatpush1.bf16.msra.mxu0 %v5964_v29  ;;  %v2961_v28 = vld [vmem:[%s8625_s5 + $0x160] sm:$0xff]  ;;  %v2954_v29 = vld [vmem:[%s8625_s5 + $0x128] sm:$0xff] }
 0xe50   : > { %3887 = vmatprep.subr.bf16.mxu1 %v5947_v35  ;;  %3940 = vmatprep.subr.bf16.mxu0 %v5949_v36  ;;  %v2962_v35 = vld [vmem:[%s8625_s5 + $0x168] sm:$0xff]  ;;  %v5982_v36 = vcombine.low %v2969_v56, %v2977_v20  ;;  %v5967_v27 = vcombine.high %v2953_v26, %v2961_v28 }
 0xe51   : > { %v5969_v7 = vcombine.high %v2954_v29, %v2962_v35  ;;  %v5968_v52 = vcombine.low %v2954_v29, %v2962_v35  ;;  %v2971_v35 = vld [vmem:[%s8625_s5 + $0x1b0] sm:$0xff] }
 0xe53   : > { %3888 = vmatpush1.bf16.msra.mxu1 %v5946_v49  ;;  %3941 = vmatpush1.bf16.msra.mxu0 %v5948_v39  ;;  %v2945_v49 = vld [vmem:[%s8625_s5 + $0xe0] sm:$0xff]  ;;  %v2938_v39 = vld [vmem:[%s8625_s5 + $0xa8] sm:$0xff] }
 0xe54   : > { %3889 = vmatprep.subr.bf16.mxu1 %v5931_v58  ;;  %3942 = vmatprep.subr.bf16.mxu0 %v5933_v40  ;;  %v2946_v58 = vld [vmem:[%s8625_s5 + $0xe8] sm:$0xff]  ;;  %v5966_v40 = vcombine.low %v2953_v26, %v2961_v28  ;;  %v5951_v6 = vcombine.high %v2937_v13, %v2945_v49 }
 0xe55   : > { %v5953_v9 = vcombine.high %v2938_v39, %v2946_v58  ;;  %v5952_v46 = vcombine.low %v2938_v39, %v2946_v58  ;;  %v2955_v58 = vld [vmem:[%s8625_s5 + $0x130] sm:$0xff] }
 0xe57   : > { %3890 = vmatpush1.bf16.msra.mxu1 %v5930_v51  ;;  %3943 = vmatpush1.bf16.msra.mxu0 %v5932_v44  ;;  %v2929_v51 = vld [vmem:[%s8625_s5 + $0x60] sm:$0xff]  ;;  %v2922_v44 = vld [vmem:[%s8625_s5 + $0x28] sm:$0xff] }
 0xe58   : > { %3981 = vmatprep.subr.bf16.mxu1 %v6047_v53  ;;  %4034 = vmatprep.subr.bf16.mxu0 %v6049_v45  ;;  %v2930_v53 = vld [vmem:[%s8625_s5 + $0x68] sm:$0xff]  ;;  %v5950_v45 = vcombine.low %v2937_v13, %v2945_v49  ;;  %v5935_v55 = vcombine.high %v2921_v42, %v2929_v51 }
 0xe59   : > { %v5937_v60 = vcombine.high %v2922_v44, %v2930_v53  ;;  %v5936_v1 = vcombine.low %v2922_v44, %v2930_v53  ;;  %v2939_v53 = vld [vmem:[%s8625_s5 + $0xb0] sm:$0xff] }
 0xe5a   : > { %3908 = vmatmul.mubr.bf16.vlgmr.msra.gmra.mxu1 %v7788_v8  ;;  %3961 = vmatmul.mubr.bf16.vlgmr.msra.gmra.mxu0 %v7788_v8 }
 0xe5b   : > { %3982 = vmatpush1.bf16.msra.mxu1 %v6046_v47  ;;  %4035 = vmatpush1.bf16.msra.mxu0 %v6048_v50  ;;  %v3043_v47 = vld [vmem:[%s8625_s5 + $0x3f0] sm:$0xff]  ;;  %v3036_v50 = vld [vmem:[%s8625_s5 + $0x3b8] sm:$0xff] }
 0xe5c   : > { %3983 = vmatprep.subr.bf16.mxu1 %v6031_v61  ;;  %4036 = vmatprep.subr.bf16.mxu0 %v6033_v63  ;;  %v3044_v61 = vld [vmem:[%s8625_s5 + $0x3f8] sm:$0xff]  ;;  %v5934_v63 = vcombine.low %v2921_v42, %v2929_v51  ;;  %v6051_v32 = vcombine.high %v3035_v3, %v3043_v47 }
 0xe5d   : > { %3917 = vmatprep.mubr.bf16.mxu1 %v7019_v2  ;;  %3970 = vmatprep.mubr.bf16.mxu0 %v7019_v2  ;;  %v6053_v30 = vcombine.high %v3036_v50, %v3044_v61  ;;  %v6052_v48 = vcombine.low %v3036_v50, %v3044_v61  ;;  %v2923_v61 = vld [vmem:[%s8625_s5 + $0x30] sm:$0xff] }
 0xe5f   : > { %3984 = vmatpush1.bf16.msra.mxu1 %v6030_v14  ;;  %4037 = vmatpush1.bf16.msra.mxu0 %v6032_v57  ;;  %v3027_v14 = vld [vmem:[%s8625_s5 + $0x370] sm:$0xff]  ;;  %v3020_v57 = vld [vmem:[%s8625_s5 + $0x338] sm:$0xff] }
 0xe60   : > { %3985 = vmatprep.subr.bf16.mxu1 %v6015_v22  ;;  %4038 = vmatprep.subr.bf16.mxu0 %v6017_v37  ;;  %v3028_v22 = vld [vmem:[%s8625_s5 + $0x378] sm:$0xff]  ;;  %v6050_v37 = vcombine.low %v3035_v3, %v3043_v47  ;;  %v6035_v31 = vcombine.high %v3019_v12, %v3027_v14 }
 0xe61   : > { %v6037_v16 = vcombine.high %v3020_v57, %v3028_v22  ;;  %v6036_v56 = vcombine.low %v3020_v57, %v3028_v22 }
 0xe62   : > { %3918 = vmatmul.mubr.bf16.gmra.mxu1 %v7824_v10  ;;  %3971 = vmatmul.mubr.bf16.gmra.mxu0 %v7824_v10 }
 0xe63   : > { %3986 = vmatpush1.bf16.msra.mxu1 %v6014_v43  ;;  %4039 = vmatpush1.bf16.msra.mxu0 %v6016_v17  ;;  %v3011_v43 = vld [vmem:[%s8625_s5 + $0x2f0] sm:$0xff]  ;;  %v3004_v17 = vld [vmem:[%s8625_s5 + $0x2b8] sm:$0xff] }
 0xe64   : > { %3987 = vmatprep.subr.bf16.mxu1 %v5999_v19  ;;  %4040 = vmatprep.subr.bf16.mxu0 %v6001_v54  ;;  %v3012_v19 = vld [vmem:[%s8625_s5 + $0x2f8] sm:$0xff]  ;;  %v6034_v54 = vcombine.low %v3019_v12, %v3027_v14  ;;  %v6019_v20 = vcombine.high %v3003_v11, %v3011_v43 }
 0xe65   : > { %4013 = vmatprep.mubr.bf16.mxu1 %v7019_v2  ;;  %4066 = vmatprep.mubr.bf16.mxu0 %v7019_v2  ;;  %v6021_v0 = vcombine.high %v3004_v17, %v3012_v19  ;;  %v6020_v26 = vcombine.low %v3004_v17, %v3012_v19  ;;  %v6804_v17 = vld [vmem:[%s8627_s7 + $0xf0] sm:$0xff]  }
 0xe66   : > { %v6805_v19 = vld [vmem:[%s8627_s7 + $0x30] sm:$0xff]  }
 0xe67   : > { %3988 = vmatpush1.bf16.msra.mxu1 %v5998_v23  ;;  %4041 = vmatpush1.bf16.msra.mxu0 %v6000_v18  ;;  %v2995_v23 = vld [vmem:[%s8625_s5 + $0x270] sm:$0xff]  ;;  %v2988_v18 = vld [vmem:[%s8625_s5 + $0x238] sm:$0xff] }
 0xe68   : > { %3989 = vmatprep.subr.bf16.mxu1 %v5983_v24  ;;  %4042 = vmatprep.subr.bf16.mxu0 %v5985_v25  ;;  %v2996_v24 = vld [vmem:[%s8625_s5 + $0x278] sm:$0xff]  ;;  %v6018_v25 = vcombine.low %v3003_v11, %v3011_v43  ;;  %v6003_v28 = vcombine.high %v2987_v21, %v2995_v23  ;;  %v6803_v43 = vld [vmem:[%s8627_s7 + $0x70] sm:$0xff]  }
 0xe69   : > { %v6005_v29 = vcombine.high %v2988_v18, %v2996_v24  ;;  %v6004_v13 = vcombine.low %v2988_v18, %v2996_v24  ;;  %v6802_v11 = vld [vmem:[%s8627_s7 + $0xb8] sm:$0xff]   ;;  %v6814_v18 = vld [vmem:[%s8627_s7 + $0xa0] sm:$0xff]  }
 0xe6a   : > { %v6815_v24 = vld [vmem:[%s8627_s7 + $0x58] sm:$0xff]  }
 0xe6b   : > { %3990 = vmatpush1.bf16.msra.mxu1 %v5982_v36  ;;  %4043 = vmatpush1.bf16.msra.mxu0 %v5984_v15  ;;  %v2979_v36 = vld [vmem:[%s8625_s5 + $0x1f0] sm:$0xff]  ;;  %v2972_v15 = vld [vmem:[%s8625_s5 + $0x1b8] sm:$0xff] }
 0xe6c   : > { %3991 = vmatprep.subr.bf16.mxu1 %v5967_v27  ;;  %4044 = vmatprep.subr.bf16.mxu0 %v5969_v7  ;;  %v2980_v27 = vld [vmem:[%s8625_s5 + $0x1f8] sm:$0xff]  ;;  %v6002_v7 = vcombine.low %v2987_v21, %v2995_v23  ;;  %v5987_v49 = vcombine.high %v2971_v35, %v2979_v36  ;;  %v6812_v21 = vld [vmem:[%s8627_s7 + $0xe0] sm:$0xff]  }
 0xe6d   : > { %v5989_v39 = vcombine.high %v2972_v15, %v2980_v27  ;;  %v5988_v42 = vcombine.low %v2972_v15, %v2980_v27  ;;  %v6813_v23 = vld [vmem:[%s8627_s7 + $0x20] sm:$0xff]   ;;  %v6823_v15 = vld [vmem:[%s8627_s7 + $0x48] sm:$0xff]  }
 0xe6e   : > { %v6824_v27 = vld [vmem:[%s8627_s7 + $0xc8] sm:$0xff]  }
 0xe6f   : > { %3992 = vmatpush1.bf16.msra.mxu1 %v5966_v40  ;;  %4045 = vmatpush1.bf16.msra.mxu0 %v5968_v52  ;;  %v2963_v40 = vld [vmem:[%s8625_s5 + $0x170] sm:$0xff]  ;;  %v2956_v52 = vld [vmem:[%s8625_s5 + $0x138] sm:$0xff] }
 0xe70   : > { %3993 = vmatprep.subr.bf16.mxu1 %v5951_v6  ;;  %4046 = vmatprep.subr.bf16.mxu0 %v5953_v9  ;;  %v2964_v6 = vld [vmem:[%s8625_s5 + $0x178] sm:$0xff]  ;;  %v5986_v9 = vcombine.low %v2971_v35, %v2979_v36  ;;  %v5971_v51 = vcombine.high %v2955_v58, %v2963_v40  ;;  %v6821_v35 = vld [vmem:[%s8627_s7 + $0x10] sm:$0xff]  }
 0xe71   : > { %v5973_v44 = vcombine.high %v2956_v52, %v2964_v6  ;;  %v5972_v3 = vcombine.low %v2956_v52, %v2964_v6  ;;  %v6822_v36 = vld [vmem:[%s8627_s7 + $0x90] sm:$0xff]   ;;  %v6831_v52 = vld [vmem:[%s8627_s7 + $0x178] sm:$0xff]  }
 0xe72   : > { %v6832_v6 = vld [vmem:[%s8627_s7 + $0x1f8] sm:$0xff]  }
 0xe73   : > { %3994 = vmatpush1.bf16.msra.mxu1 %v5950_v45  ;;  %4047 = vmatpush1.bf16.msra.mxu0 %v5952_v46  ;;  %v2947_v45 = vld [vmem:[%s8625_s5 + $0xf0] sm:$0xff]  ;;  %v2940_v46 = vld [vmem:[%s8625_s5 + $0xb8] sm:$0xff] }
 0xe74   : > { %3995 = vmatprep.subr.bf16.mxu1 %v5935_v55  ;;  %4048 = vmatprep.subr.bf16.mxu0 %v5937_v60  ;;  %v2948_v55 = vld [vmem:[%s8625_s5 + $0xf8] sm:$0xff]  ;;  %v5970_v60 = vcombine.low %v2955_v58, %v2963_v40  ;;  %v5955_v47 = vcombine.high %v2939_v53, %v2947_v45  ;;  %v6829_v58 = vld [vmem:[%s8627_s7] sm:$0xff]  }
 0xe75   : > { %v5957_v50 = vcombine.high %v2940_v46, %v2948_v55  ;;  %v5956_v12 = vcombine.low %v2940_v46, %v2948_v55  ;;  %v6830_v40 = vld [vmem:[%s8627_s7 + $0x80] sm:$0xff]  }
 0xe77   : > { %3996 = vmatpush1.bf16.msra.mxu1 %v5934_v63  ;;  %4049 = vmatpush1.bf16.msra.mxu0 %v5936_v1  ;;  %v2931_v63 = vld [vmem:[%s8625_s5 + $0x70] sm:$0xff]  ;;  %v2924_v1 = vld [vmem:[%s8625_s5 + $0x38] sm:$0xff] }
 0xe78   : > { %4087 = vmatprep.subr.bf16.mxu1 %v6051_v32  ;;  %4140 = vmatprep.subr.bf16.mxu0 %v6053_v30  ;;  %v2932_v32 = vld [vmem:[%s8625_s5 + $0x78] sm:$0xff]  ;;  %v5954_v30 = vcombine.low %v2939_v53, %v2947_v45  ;;  %v5939_v14 = vcombine.high %v2923_v61, %v2931_v63  ;;  %v5938_v22 = vcombine.low %v2923_v61, %v2931_v63 }
 0xe79   : > { %v5941_v57 = vcombine.high %v2924_v1, %v2932_v32 }
 0xe7a   : > { %4014 = vmatmul.mubr.bf16.vlgmr.msra.gmra.mxu1 %v7788_v8  ;;  %4067 = vmatmul.mubr.bf16.vlgmr.msra.gmra.mxu0 %v7788_v8 }
 0xe7b   : > { %4088 = vmatpush1.bf16.msra.mxu1 %v6050_v37  ;;  %4141 = vmatpush1.bf16.msra.mxu0 %v6052_v48  ;;  %v5940_v37 = vcombine.low %v2924_v1, %v2932_v32  ;;  %v6799_v48 = vld [vmem:[%s8627_s7 + $0x78] sm:$0xff]  }
 0xe7c   : > { %4089 = vmatprep.subr.bf16.mxu1 %v6035_v31  ;;  %4142 = vmatprep.subr.bf16.mxu0 %v6037_v16  ;;  %v6800_v31 = vld [vmem:[%s8627_s7 + $0xf8] sm:$0xff]  }
 0xe7d   : > { %4023 = vmatprep.mubr.bf16.mxu1 %v7019_v2  ;;  %4076 = vmatprep.mubr.bf16.mxu0 %v7019_v2  ;;  %v6801_v16 = vld [vmem:[%s8627_s7 + $0x38] sm:$0xff]  }
 0xe7f   : > { %4090 = vmatpush1.bf16.msra.mxu1 %v6034_v54  ;;  %4143 = vmatpush1.bf16.msra.mxu0 %v6036_v56  ;;  %v6806_v54 = vld [vmem:[%s8627_s7 + $0xb0] sm:$0xff]   ;;  %v6809_v56 = vld [vmem:[%s8627_s7 + $0x28] sm:$0xff]  }
 0xe80   : > { %4091 = vmatprep.subr.bf16.mxu1 %v6019_v20  ;;  %4144 = vmatprep.subr.bf16.mxu0 %v6021_v0  ;;  %v6810_v20 = vld [vmem:[%s8627_s7 + $0xa8] sm:$0xff]   ;;  %v6811_v0 = vld [vmem:[%s8627_s7 + $0x60] sm:$0xff]  }
 0xe82   : > { %4024 = vmatmul.mubr.bf16.gmra.mxu1 %v7824_v10  ;;  %4077 = vmatmul.mubr.bf16.gmra.mxu0 %v7824_v10 }
 0xe83   : > { %4092 = vmatpush1.bf16.msra.mxu1 %v6018_v25  ;;  %4145 = vmatpush1.bf16.msra.mxu0 %v6020_v26  ;;  %v6817_v25 = vld [vmem:[%s8627_s7 + $0x18] sm:$0xff]  }
 0xe84   : > { %4093 = vmatprep.subr.bf16.mxu1 %v6003_v28  ;;  %4146 = vmatprep.subr.bf16.mxu0 %v6005_v29  ;;  %v6818_v26 = vld [vmem:[%s8627_s7 + $0x98] sm:$0xff]   ;;  %v6819_v28 = vld [vmem:[%s8627_s7 + $0x50] sm:$0xff]  }
 0xe85   : > { %4119 = vmatprep.mubr.bf16.mxu1 %v7019_v2  ;;  %4172 = vmatprep.mubr.bf16.mxu0 %v7019_v2  ;;  %v6820_v29 = vld [vmem:[%s8627_s7 + $0xd0] sm:$0xff]  }
 0xe87   : > { %4094 = vmatpush1.bf16.msra.mxu1 %v6002_v7  ;;  %4147 = vmatpush1.bf16.msra.mxu0 %v6004_v13  ;;  %v6825_v7 = vld [vmem:[%s8627_s7 + $0x8] sm:$0xff]  }
 0xe88   : > { %4095 = vmatprep.subr.bf16.mxu1 %v5987_v49  ;;  %4148 = vmatprep.subr.bf16.mxu0 %v5989_v39  ;;  %v6826_v13 = vld [vmem:[%s8627_s7 + $0x88] sm:$0xff]   ;;  %v6827_v49 = vld [vmem:[%s8627_s7 + $0x40] sm:$0xff]  }
 0xe89   : > { %v6828_v39 = vld [vmem:[%s8627_s7 + $0xc0] sm:$0xff]  }
 0xe8b   : > { %4096 = vmatpush1.bf16.msra.mxu1 %v5986_v9  ;;  %4149 = vmatpush1.bf16.msra.mxu0 %v5988_v42  ;;  %v3063_v9 = vsub.s32 3, %v7198_v33  ;;  %v8198_v42 = vld [vmem:[%s8626_s6] sm:$0xff] }
 0xe8c   : > { %4097 = vmatprep.subr.bf16.mxu1 %v5971_v51  ;;  %4150 = vmatprep.subr.bf16.mxu0 %v5973_v44  ;;  %v3056_v53 = vrot.slane %v8198_v42, %v7201_v34  ;;  %v3052_v46 = vrot.slane %v8198_v42, %v7208_v38  ;;  %v3060_v55 = vrot.slane %v8198_v42, %v7256_v4 }
 0xe8d   : > { %v3064_v45 = vrot.slane %v8198_v42, %v3063_v9 }
 0xe8f   : > { %4098 = vmatpush1.bf16.msra.mxu1 %v5970_v60  ;;  %4151 = vmatpush1.bf16.msra.mxu0 %v5972_v3 }
 0xe90   : > { %4099 = vmatprep.subr.bf16.mxu1 %v5955_v47  ;;  %4152 = vmatprep.subr.bf16.mxu0 %v5957_v50 }
 0xe93   : > { %4100 = vmatpush1.bf16.msra.mxu1 %v5954_v30  ;;  %4153 = vmatpush1.bf16.msra.mxu0 %v5956_v12 }
 0xe94   : > { %4101 = vmatprep.subr.bf16.mxu1 %v5939_v14  ;;  %4154 = vmatprep.subr.bf16.mxu0 %v5941_v57 }
 0xe97   : > { %4102 = vmatpush1.bf16.msra.mxu1 %v5938_v22  ;;  %4155 = vmatpush1.bf16.msra.mxu0 %v5940_v37 }
 0xe98   : > { %6277 = vmatprep.subr.bf16.mxu1 %v6799_v48  ;;  %6305 = vmatprep.subr.bf16.mxu0 %v6800_v31 }
 0xe9a   : > { %4120 = vmatmul.mubr.bf16.vlgmr.msra.gmra.mxu1 %v7788_v8  ;;  %4173 = vmatmul.mubr.bf16.vlgmr.msra.gmra.mxu0 %v7788_v8  ;;  %v6807_v8 = vld [vmem:[%s8627_s7 + $0x68] sm:$0xff]  }
 0xe9b   : > { %4129 = vmatprep.mubr.bf16.mxu1 %v7019_v2  ;;  %4182 = vmatprep.mubr.bf16.mxu0 %v7019_v2  ;;  %v6808_v2 = vld [vmem:[%s8627_s7 + $0xe8] sm:$0xff]  }
 0xe9c   : > { %6278 = vmatpush3.bf16.msra.mxu1 %v6801_v16  ;;  %6306 = vmatpush3.bf16.msra.mxu0 %v6802_v11 }
 0xe9d   : > { %6279 = vmatprep.subr.bf16.mxu1 %v6803_v43  ;;  %6307 = vmatprep.subr.bf16.mxu0 %v6804_v17 }
 0xea0   : > { %6280 = vmatpush3.bf16.msra.mxu1 %v6805_v19  ;;  %6308 = vmatpush3.bf16.msra.mxu0 %v6806_v54 }
 0xea1   : > { %6281 = vmatprep.subr.bf16.mxu1 %v6807_v8  ;;  %6309 = vmatprep.subr.bf16.mxu0 %v6808_v2 }
 0xea2   : > { %4130 = vmatmul.mubr.bf16.gmra.mxu1 %v7824_v10  ;;  %4183 = vmatmul.mubr.bf16.gmra.mxu0 %v7824_v10  ;;  %v6816_v10 = vld [vmem:[%s8627_s7 + $0xd8] sm:$0xff]  }
 0xea4   : > { %6282 = vmatpush3.bf16.msra.mxu1 %v6809_v56  ;;  %6310 = vmatpush3.bf16.msra.mxu0 %v6810_v20 }
 0xea5   : > { %6283 = vmatprep.subr.bf16.mxu1 %v6811_v0  ;;  %6311 = vmatprep.subr.bf16.mxu0 %v6812_v21 }
 0xea8   : > { %6284 = vmatpush3.bf16.msra.mxu1 %v6813_v23  ;;  %6312 = vmatpush3.bf16.msra.mxu0 %v6814_v18  ;;  %v6833_v23 = vld [vmem:[%s8627_s7 + $0x138] sm:$0xff]  }
 0xea9   : > { %6285 = vmatprep.subr.bf16.mxu1 %v6815_v24  ;;  %6313 = vmatprep.subr.bf16.mxu0 %v6816_v10  ;;  %v6834_v18 = vld [vmem:[%s8627_s7 + $0x1b8] sm:$0xff]  }
 0xeac   : > { %6286 = vmatpush3.bf16.msra.mxu1 %v6817_v25  ;;  %6314 = vmatpush3.bf16.msra.mxu0 %v6818_v26 }
 0xead   : > { %6287 = vmatprep.subr.bf16.mxu1 %v6819_v28  ;;  %6315 = vmatprep.subr.bf16.mxu0 %v6820_v29  ;;  %v6835_v29 = vld [vmem:[%s8627_s7 + $0x170] sm:$0xff]  }
 0xeb0   : > { %6288 = vmatpush3.bf16.msra.mxu1 %v6821_v35  ;;  %6316 = vmatpush3.bf16.msra.mxu0 %v6822_v36  ;;  %v6836_v35 = vld [vmem:[%s8627_s7 + $0x1f0] sm:$0xff]  }
 0xeb1   : > { %6289 = vmatprep.subr.bf16.mxu1 %v6823_v15  ;;  %6317 = vmatprep.subr.bf16.mxu0 %v6824_v27 }
 0xeb4   : > { %6290 = vmatpush3.bf16.msra.mxu1 %v6825_v7  ;;  %6318 = vmatpush3.bf16.msra.mxu0 %v6826_v13 }
 0xeb5   : > { %6291 = vmatprep.subr.bf16.mxu1 %v6827_v49  ;;  %6319 = vmatprep.subr.bf16.mxu0 %v6828_v39 }
 0xeb8   : > { %6292 = vmatpush3.bf16.msra.mxu1 %v6829_v58  ;;  %6320 = vmatpush3.bf16.msra.mxu0 %v6830_v40 }
 0xeb9   : > { %6333 = vmatprep.subr.bf16.mxu1 %v6831_v52  ;;  %6361 = vmatprep.subr.bf16.mxu0 %v6832_v6  ;;  %v6837_v52 = vld [vmem:[%s8627_s7 + $0x130] sm:$0xff]  }
 0xeba   : > { %v6838_v6 = vld [vmem:[%s8627_s7 + $0x1b0] sm:$0xff]  }
 0xefa   : > { %v3803_v51 = vpop.f32.mrf.mxu1  ;;  %v3856_v44 = vpop.f32.mrf.mxu0 }
 0xefb   : > { %v3804_v30 = vadd.f32 %v3803_v51, %v3052_v46  ;;  %v3857_v12 = vadd.f32 %v3856_v44, %v3060_v55 }
 0xefc   : > { %v3805_v60 = vpop.f32.mrf.mxu1  ;;  %v3858_v3 = vpop.f32.mrf.mxu0 }
 0xefd   : > { %v3806_v61 = vadd.f32 %v3805_v60, %v3056_v53  ;;  %v3859_v63 = vadd.f32 %v3858_v3, %v3064_v45  ;;  %v4193_v8 = vmax.f32 %v3804_v30, 0.0  ;;  %v4195_v2 = vmax.f32 %v3857_v12, 0.0 }
 0xefe   : > { %v3807_v47 = vpop.f32.mrf.mxu1  ;;  %v3860_v50 = vpop.f32.mrf.mxu0 }
 0xeff   : > { %v3808_v1 = vadd.f32 %v3807_v47, %v3052_v46  ;;  %v3861_v32 = vadd.f32 %v3860_v50, %v3060_v55  ;;  %v4194_v43 = vmax.f32 %v3806_v61, 0.0  ;;  %v4196_v17 = vmax.f32 %v3859_v63, 0.0 }
 0xf00   : > { %v3809_v14 = vpop.f32.mrf.mxu1  ;;  %v3862_v57 = vpop.f32.mrf.mxu0 }
 0xf01   : > { %v3810_v22 = vadd.f32 %v3809_v14, %v3056_v53  ;;  %v3863_v37 = vadd.f32 %v3862_v57, %v3064_v45  ;;  %v4209_v48 = vmax.f32 %v3808_v1, 0.0  ;;  %v4211_v31 = vmax.f32 %v3861_v32, 0.0  ;;  %v6841_v1 = vld [vmem:[%s8627_s7 + $0x128] sm:$0xff]   ;;  %v6843_v14 = vld [vmem:[%s8627_s7 + $0x160] sm:$0xff]  }
 0xf02   : > { %v3813_v16 = vpop.f32.mrf.mxu1  ;;  %v3866_v11 = vpop.f32.mrf.mxu0  ;;  %v6842_v32 = vld [vmem:[%s8627_s7 + $0x1a8] sm:$0xff]   ;;  %v6844_v57 = vld [vmem:[%s8627_s7 + $0x1e0] sm:$0xff]  }
 0xf03   : > { %v4210_v19 = vmax.f32 %v3810_v22, 0.0  ;;  %v4212_v54 = vmax.f32 %v3863_v37, 0.0  ;;  %v4257_v24 = vpack.c.bf16 %v4209_v48, %v4193_v8  ;;  %v4259_v10 = vpack.c.bf16 %v4211_v31, %v4195_v2  ;;  %v6845_v22 = vld [vmem:[%s8627_s7 + $0x120] sm:$0xff]   ;;  %v6847_v48 = vld [vmem:[%s8627_s7 + $0x158] sm:$0xff]  }
 0xf04   : > { %v3815_v56 = vpop.f32.mrf.mxu1  ;;  %v3868_v20 = vpop.f32.mrf.mxu0  ;;  %v3814_v7 = vadd.f32 %v3813_v16, %v3052_v46  ;;  %v3867_v13 = vadd.f32 %v3866_v11, %v3060_v55  ;;  %v6846_v37 = vld [vmem:[%s8627_s7 + $0x1a0] sm:$0xff]   ;;  %v6848_v31 = vld [vmem:[%s8627_s7 + $0x1d8] sm:$0xff]   ;;  %v3067_v8 = vsub.s32 4, %v7198_v33  ;;  %v3075_v2 = vsub.s32 6, %v7198_v33 }
 0xf05   : > { %v4258_v0 = vpack.c.bf16 %v4210_v19, %v4194_v43  ;;  %v4260_v21 = vpack.c.bf16 %v4212_v54, %v4196_v17  ;;  %v3816_v25 = vadd.f32 %v3815_v56, %v3056_v53  ;;  %v3869_v36 = vadd.f32 %v3868_v20, %v3064_v45  ;;  %v6849_v16 = vld [vmem:[%s8627_s7 + $0x118] sm:$0xff]   ;;  %v6851_v43 = vld [vmem:[%s8627_s7 + $0x150] sm:$0xff]  }
 0xf06   : > { %v3817_v26 = vpop.f32.mrf.mxu1  ;;  %v3870_v28 = vpop.f32.mrf.mxu0  ;;  %v4225_v47 = vmax.f32 %v3814_v7, 0.0  ;;  %v4227_v50 = vmax.f32 %v3867_v13, 0.0  ;;  %v6850_v11 = vld [vmem:[%s8627_s7 + $0x198] sm:$0xff]   ;;  %v6852_v17 = vld [vmem:[%s8627_s7 + $0x1d0] sm:$0xff]   ;;  %v3071_v19 = vsub.s32 5, %v7198_v33  ;;  %v3079_v54 = vsub.s32 7, %v7198_v33 }
 0xf07   : > { %v3818_v15 = vadd.f32 %v3817_v26, %v3052_v46  ;;  %v3871_v27 = vadd.f32 %v3870_v28, %v3060_v55  ;;  %5352 = vmatprep.mubr.bf16.mxu1 %v4258_v0  ;;  %5401 = vmatprep.mubr.bf16.mxu0 %v4260_v21  ;;  %v6839_v46 = vld [vmem:[%s8627_s7 + $0x168] sm:$0xff]   ;;  %v4228_v55 = vmax.f32 %v3869_v36, 0.0  ;;  %v6853_v56 = vld [vmem:[%s8627_s7 + $0x110] sm:$0xff]   ;;  %v8303_v26 = vrot.slane %v8198_v42, %v3075_v2  ;;  %v6860_v7 = vld [vmem:[%s8627_s7 + $0x1c0] sm:$0xff]  }
 0xf08   : > { %v3819_v49 = vpop.f32.mrf.mxu1  ;;  %v3872_v39 = vpop.f32.mrf.mxu0  ;;  %5353 = vmatmul.mubr.bf16.vlgmr.msra.gmra.mxu1 %v4257_v24  ;;  %5402 = vmatmul.mubr.bf16.vlgmr.msra.gmra.mxu0 %v4259_v10  ;;  %v6854_v20 = vld [vmem:[%s8627_s7 + $0x190] sm:$0xff]   ;;  %v8288_v24 = vrot.slane %v8198_v42, %v3071_v19  ;;  %v8293_v10 = vrot.slane %v8198_v42, %v3079_v54  ;;  %v6858_v36 = vld [vmem:[%s8627_s7 + $0x188] sm:$0xff]   ;;  %v6923_v33 = vld [vmem:[%s8627_s7 + $0x340] sm:$0xff]  }
 0xf09   : > { %v3820_v58 = vadd.f32 %v3819_v49, %v3056_v53  ;;  %v3873_v40 = vadd.f32 %v3872_v39, %v3064_v45  ;;  %6334 = vmatpush3.bf16.msra.mxu1 %v6833_v23  ;;  %6362 = vmatpush3.bf16.msra.mxu0 %v6834_v18  ;;  %v4241_v51 = vmax.f32 %v3818_v15, 0.0  ;;  %v4243_v44 = vmax.f32 %v3871_v27, 0.0  ;;  %v6840_v53 = vld [vmem:[%s8627_s7 + $0x1e8] sm:$0xff]  }
 0xf0a   : > { %6335 = vmatprep.subr.bf16.mxu1 %v6835_v29  ;;  %6363 = vmatprep.subr.bf16.mxu0 %v6836_v35  ;;  %v4226_v45 = vmax.f32 %v3816_v25, 0.0  ;;  %v6855_v23 = vld [vmem:[%s8627_s7 + $0x148] sm:$0xff]   ;;  %v8298_v25 = vrot.slane %v8198_v42, %v3067_v8  ;;  %v6859_v42 = vld [vmem:[%s8627_s7 + $0x140] sm:$0xff]  }
 0xf0b   : > { %v4242_v60 = vmax.f32 %v3820_v58, 0.0  ;;  %v4244_v3 = vmax.f32 %v3873_v40, 0.0  ;;  %v4273_v30 = vpack.c.bf16 %v4241_v51, %v4225_v47  ;;  %v4275_v12 = vpack.c.bf16 %v4243_v44, %v4227_v50  ;;  %v6856_v18 = vld [vmem:[%s8627_s7 + $0x1c8] sm:$0xff]   ;;  %v6862_v47 = vld [vmem:[%s8627_s7 + $0x180] sm:$0xff]   ;;  %v6863_v50 = vld [vmem:[%s8627_s7 + $0x278] sm:$0xff]  }
 0xf0c   : > { %v6857_v35 = vld [vmem:[%s8627_s7 + $0x108] sm:$0xff]  }
 0xf0d   : > { %v4274_v61 = vpack.c.bf16 %v4242_v60, %v4226_v45  ;;  %v4276_v63 = vpack.c.bf16 %v4244_v3, %v4228_v55  ;;  %6336 = vmatpush3.bf16.msra.mxu1 %v6837_v52  ;;  %6364 = vmatpush3.bf16.msra.mxu0 %v6838_v6 }
 0xf0e   : > { %6337 = vmatprep.subr.bf16.mxu1 %v6839_v46  ;;  %6365 = vmatprep.subr.bf16.mxu0 %v6840_v53  ;;  %v6861_v53 = vld [vmem:[%s8627_s7 + $0x100] sm:$0xff]  }
 0xf0f   : > { %5360 = vmatprep.mubr.bf16.mxu1 %v4274_v61  ;;  %5409 = vmatprep.mubr.bf16.mxu0 %v4276_v63 }
 0xf10   : > { %5361 = vmatmul.mubr.bf16.gmra.mxu1 %v4273_v30  ;;  %5410 = vmatmul.mubr.bf16.gmra.mxu0 %v4275_v12 }
 0xf11   : > { %6338 = vmatpush3.bf16.msra.mxu1 %v6841_v1  ;;  %6366 = vmatpush3.bf16.msra.mxu0 %v6842_v32 }
 0xf12   : > { %6339 = vmatprep.subr.bf16.mxu1 %v6843_v14  ;;  %6367 = vmatprep.subr.bf16.mxu0 %v6844_v57 }
 0xf15   : > { %6340 = vmatpush3.bf16.msra.mxu1 %v6845_v22  ;;  %6368 = vmatpush3.bf16.msra.mxu0 %v6846_v37  ;;  %v6864_v22 = vld [vmem:[%s8627_s7 + $0x2f8] sm:$0xff]  }
 0xf16   : > { %6341 = vmatprep.subr.bf16.mxu1 %v6847_v48  ;;  %6369 = vmatprep.subr.bf16.mxu0 %v6848_v31  ;;  %v6865_v31 = vld [vmem:[%s8627_s7 + $0x238] sm:$0xff]  }
 0xf19   : > { %6342 = vmatpush3.bf16.msra.mxu1 %v6849_v16  ;;  %6370 = vmatpush3.bf16.msra.mxu0 %v6850_v11 }
 0xf1a   : > { %v3909_v0 = vpop.f32.mrf.mxu1  ;;  %v3962_v21 = vpop.f32.mrf.mxu0  ;;  %6343 = vmatprep.subr.bf16.mxu1 %v6851_v43  ;;  %6371 = vmatprep.subr.bf16.mxu0 %v6852_v17 }
 0xf1b   : > { %v3910_v40 = vadd.f32 %v3909_v0, %v8298_v25  ;;  %v3963_v52 = vadd.f32 %v3962_v21, %v8303_v26  ;;  %v6867_v0 = vld [vmem:[%s8627_s7 + $0x270] sm:$0xff]  }
 0xf1c   : > { %v3911_v28 = vpop.f32.mrf.mxu1  ;;  %v3964_v29 = vpop.f32.mrf.mxu0 }
 0xf1d   : > { %6344 = vmatpush3.bf16.msra.mxu1 %v6853_v56  ;;  %6372 = vmatpush3.bf16.msra.mxu0 %v6854_v20  ;;  %v3912_v13 = vadd.f32 %v3911_v28, %v8288_v24  ;;  %v3965_v49 = vadd.f32 %v3964_v29, %v8293_v10  ;;  %v4197_v30 = vmax.f32 %v3910_v40, 0.0  ;;  %v4199_v12 = vmax.f32 %v3963_v52, 0.0  ;;  %v6866_v20 = vld [vmem:[%s8627_s7 + $0x2b8] sm:$0xff]   ;;  %v6868_v28 = vld [vmem:[%s8627_s7 + $0x2f0] sm:$0xff]   ;;  %v6872_v52 = vld [vmem:[%s8627_s7 + $0x2e8] sm:$0xff]  }
 0xf1e   : > { %v3913_v15 = vpop.f32.mrf.mxu1  ;;  %v3966_v27 = vpop.f32.mrf.mxu0  ;;  %6345 = vmatprep.subr.bf16.mxu1 %v6855_v23  ;;  %6373 = vmatprep.subr.bf16.mxu0 %v6856_v18 }
 0xf1f   : > { %v3914_v39 = vadd.f32 %v3913_v15, %v8298_v25  ;;  %v3967_v58 = vadd.f32 %v3966_v27, %v8303_v26  ;;  %v4198_v61 = vmax.f32 %v3912_v13, 0.0  ;;  %v4200_v63 = vmax.f32 %v3965_v49, 0.0 }
 0xf20   : > { %v3915_v6 = vpop.f32.mrf.mxu1  ;;  %v3968_v51 = vpop.f32.mrf.mxu0 }
 0xf21   : > { %v3916_v44 = vadd.f32 %v3915_v6, %v8288_v24  ;;  %v3969_v46 = vadd.f32 %v3968_v51, %v8293_v10  ;;  %6346 = vmatpush3.bf16.msra.mxu1 %v6857_v35  ;;  %6374 = vmatpush3.bf16.msra.mxu0 %v6858_v36  ;;  %v4213_v45 = vmax.f32 %v3914_v39, 0.0  ;;  %v4215_v55 = vmax.f32 %v3967_v58, 0.0 }
 0xf22   : > { %v3919_v60 = vpop.f32.mrf.mxu1  ;;  %v3972_v3 = vpop.f32.mrf.mxu0  ;;  %6347 = vmatprep.subr.bf16.mxu1 %v6859_v42  ;;  %6375 = vmatprep.subr.bf16.mxu0 %v6860_v7  ;;  %v6869_v7 = vld [vmem:[%s8627_s7 + $0x230] sm:$0xff]  }
 0xf23   : > { %v4214_v1 = vmax.f32 %v3916_v44, 0.0  ;;  %v4216_v32 = vmax.f32 %v3969_v46, 0.0  ;;  %v4261_v16 = vpack.c.bf16 %v4213_v45, %v4197_v30  ;;  %v4263_v11 = vpack.c.bf16 %v4215_v55, %v4199_v12  ;;  %v6873_v46 = vld [vmem:[%s8627_s7 + $0x228] sm:$0xff]   ;;  %v6875_v55 = vld [vmem:[%s8627_s7 + $0x260] sm:$0xff]   ;;  %v6883_v30 = vld [vmem:[%s8627_s7 + $0x250] sm:$0xff]  }
 0xf24   : > { %v3921_v14 = vpop.f32.mrf.mxu1  ;;  %v3974_v57 = vpop.f32.mrf.mxu0  ;;  %v3920_v29 = vadd.f32 %v3919_v60, %v8298_v25  ;;  %v3973_v15 = vadd.f32 %v3972_v3, %v8303_v26  ;;  %v6874_v45 = vld [vmem:[%s8627_s7 + $0x2a8] sm:$0xff]   ;;  %v6876_v3 = vld [vmem:[%s8627_s7 + $0x2e0] sm:$0xff]   ;;  %v6884_v12 = vld [vmem:[%s8627_s7 + $0x2d0] sm:$0xff]  }
 0xf25   : > { %v4262_v37 = vpack.c.bf16 %v4214_v1, %v4198_v61  ;;  %v4264_v48 = vpack.c.bf16 %v4216_v32, %v4200_v63  ;;  %6348 = vmatpush3.bf16.msra.mxu1 %v6861_v53  ;;  %v3922_v43 = vadd.f32 %v3921_v14, %v8288_v24  ;;  %6376 = vmatpush3.bf16.msra.mxu0 %v6862_v47  ;;  %v6877_v47 = vld [vmem:[%s8627_s7 + $0x220] sm:$0xff]   ;;  %v6879_v61 = vld [vmem:[%s8627_s7 + $0x258] sm:$0xff]   ;;  %v8408_v14 = vld [vmem:[%s8626_s6 + $0x8] sm:$0xff] }
 0xf26   : > { %v3923_v17 = vpop.f32.mrf.mxu1  ;;  %v3976_v56 = vpop.f32.mrf.mxu0  ;;  %6389 = vmatprep.subr.bf16.mxu1 %v6863_v50  ;;  %v3975_v21 = vadd.f32 %v3974_v57, %v8293_v10  ;;  %6417 = vmatprep.subr.bf16.mxu0 %v6864_v22  ;;  %v4229_v40 = vmax.f32 %v3920_v29, 0.0  ;;  %v4231_v6 = vmax.f32 %v3973_v15, 0.0  ;;  %v6878_v50 = vld [vmem:[%s8627_s7 + $0x2a0] sm:$0xff]   ;;  %v6880_v63 = vld [vmem:[%s8627_s7 + $0x2d8] sm:$0xff]   ;;  %v6885_v57 = vld [vmem:[%s8627_s7 + $0x210] sm:$0xff]  }
 0xf27   : > { %v3924_v23 = vadd.f32 %v3923_v17, %v8298_v25  ;;  %v3977_v18 = vadd.f32 %v3976_v56, %v8303_v26  ;;  %5450 = vmatprep.mubr.bf16.mxu1 %v4262_v37  ;;  %5499 = vmatprep.mubr.bf16.mxu0 %v4264_v48  ;;  %v4230_v13 = vmax.f32 %v3922_v43, 0.0  ;;  %v6870_v25 = vld [vmem:[%s8627_s7 + $0x2b0] sm:$0xff]   ;;  %v6881_v1 = vld [vmem:[%s8627_s7 + $0x218] sm:$0xff]   ;;  %v6888_v43 = vld [vmem:[%s8627_s7 + $0x2c8] sm:$0xff]   ;;  %v8433_v17 = vrot.slane %v8408_v14, %v7208_v38 }
 0xf28   : > { %v3925_v35 = vpop.f32.mrf.mxu1  ;;  %v3978_v36 = vpop.f32.mrf.mxu0  ;;  %5451 = vmatmul.mubr.bf16.vlgmr.msra.gmra.mxu1 %v4261_v16  ;;  %5500 = vmatmul.mubr.bf16.vlgmr.msra.gmra.mxu0 %v4263_v11  ;;  %v4232_v26 = vmax.f32 %v3975_v21, 0.0  ;;  %v6882_v32 = vld [vmem:[%s8627_s7 + $0x298] sm:$0xff]   ;;  %v6886_v48 = vld [vmem:[%s8627_s7 + $0x290] sm:$0xff]   ;;  %v8421_v16 = vrot.slane %v8408_v14, %v7201_v34  ;;  %v8426_v11 = vrot.slane %v8408_v14, %v3063_v9  ;;  %v8437_v56 = vrot.slane %v8408_v14, %v7256_v4  ;;  %v6889_v9 = vld [vmem:[%s8627_s7 + $0x208] sm:$0xff]  }
 0xf29   : > { %v3926_v27 = vadd.f32 %v3925_v35, %v8288_v24  ;;  %v3979_v42 = vadd.f32 %v3978_v36, %v8293_v10  ;;  %6390 = vmatpush3.bf16.msra.mxu1 %v6865_v31  ;;  %v4245_v49 = vmax.f32 %v3924_v23, 0.0  ;;  %6418 = vmatpush3.bf16.msra.mxu0 %v6866_v20  ;;  %v6871_v24 = vld [vmem:[%s8627_s7 + $0x268] sm:$0xff]   ;;  %v4247_v10 = vmax.f32 %v3977_v18, 0.0  ;;  %v6891_v4 = vld [vmem:[%s8627_s7 + $0x240] sm:$0xff]  }
 0xf2a   : > { %6391 = vmatprep.subr.bf16.mxu1 %v6867_v0  ;;  %6419 = vmatprep.subr.bf16.mxu0 %v6868_v28  ;;  %v6887_v31 = vld [vmem:[%s8627_s7 + $0x248] sm:$0xff]   ;;  %v6892_v35 = vld [vmem:[%s8627_s7 + $0x2c0] sm:$0xff]  }
 0xf2b   : > { %v4246_v39 = vmax.f32 %v3926_v27, 0.0  ;;  %v4248_v58 = vmax.f32 %v3979_v42, 0.0  ;;  %v4277_v53 = vpack.c.bf16 %v4245_v49, %v4229_v40  ;;  %v4279_v60 = vpack.c.bf16 %v4247_v10, %v4231_v6  ;;  %v6890_v38 = vld [vmem:[%s8627_s7 + $0x288] sm:$0xff]   ;;  %v6893_v49 = vld [vmem:[%s8627_s7 + $0x200] sm:$0xff]  }
 0xf2d   : > { %v4278_v51 = vpack.c.bf16 %v4246_v39, %v4230_v13  ;;  %v4280_v44 = vpack.c.bf16 %v4248_v58, %v4232_v26  ;;  %6392 = vmatpush3.bf16.msra.mxu1 %v6869_v7  ;;  %6420 = vmatpush3.bf16.msra.mxu0 %v6870_v25  ;;  %v6894_v39 = vld [vmem:[%s8627_s7 + $0x280] sm:$0xff]   ;;  %v6895_v58 = vld [vmem:[%s8627_s7 + $0x378] sm:$0xff]  }
 0xf2e   : > { %6393 = vmatprep.subr.bf16.mxu1 %v6871_v24  ;;  %6421 = vmatprep.subr.bf16.mxu0 %v6872_v52 }
 0xf2f   : > { %5458 = vmatprep.mubr.bf16.mxu1 %v4278_v51  ;;  %5507 = vmatprep.mubr.bf16.mxu0 %v4280_v44 }
 0xf30   : > { %5459 = vmatmul.mubr.bf16.gmra.mxu1 %v4277_v53  ;;  %5508 = vmatmul.mubr.bf16.gmra.mxu0 %v4279_v60 }
 0xf31   : > { %6394 = vmatpush3.bf16.msra.mxu1 %v6873_v46  ;;  %6422 = vmatpush3.bf16.msra.mxu0 %v6874_v45 }
 0xf32   : > { %6395 = vmatprep.subr.bf16.mxu1 %v6875_v55  ;;  %6423 = vmatprep.subr.bf16.mxu0 %v6876_v3  ;;  %v6896_v55 = vld [vmem:[%s8627_s7 + $0x3f8] sm:$0xff]  }
 0xf35   : > { %6396 = vmatpush3.bf16.msra.mxu1 %v6877_v47  ;;  %6424 = vmatpush3.bf16.msra.mxu0 %v6878_v50  ;;  %v6897_v47 = vld [vmem:[%s8627_s7 + $0x338] sm:$0xff]  }
 0xf36   : > { %6397 = vmatprep.subr.bf16.mxu1 %v6879_v61  ;;  %6425 = vmatprep.subr.bf16.mxu0 %v6880_v63 }
 0xf39   : > { %6398 = vmatpush3.bf16.msra.mxu1 %v6881_v1  ;;  %6426 = vmatpush3.bf16.msra.mxu0 %v6882_v32 }
 0xf3a   : > { %v4015_v22 = vpop.f32.mrf.mxu1  ;;  %v4068_v37 = vpop.f32.mrf.mxu0  ;;  %6399 = vmatprep.subr.bf16.mxu1 %v6883_v30  ;;  %6427 = vmatprep.subr.bf16.mxu0 %v6884_v12  ;;  %v6898_v30 = vld [vmem:[%s8627_s7 + $0x3b8] sm:$0xff]   ;;  %v6899_v12 = vld [vmem:[%s8627_s7 + $0x370] sm:$0xff]  }
 0xf3b   : > { %v4016_v36 = vadd.f32 %v4015_v22, %v8433_v17  ;;  %v4069_v15 = vadd.f32 %v4068_v37, %v8437_v56 }
 0xf3c   : > { %v4017_v34 = vpop.f32.mrf.mxu1  ;;  %v4070_v20 = vpop.f32.mrf.mxu0 }
 0xf3d   : > { %6400 = vmatpush3.bf16.msra.mxu1 %v6885_v57  ;;  %6428 = vmatpush3.bf16.msra.mxu0 %v6886_v48  ;;  %v4018_v23 = vadd.f32 %v4017_v34, %v8421_v16  ;;  %v4071_v18 = vadd.f32 %v4070_v20, %v8426_v11  ;;  %v4201_v44 = vmax.f32 %v4016_v36, 0.0  ;;  %v4203_v46 = vmax.f32 %v4069_v15, 0.0  ;;  %v6900_v48 = vld [vmem:[%s8627_s7 + $0x3f0] sm:$0xff]  }
 0xf3e   : > { %v4019_v0 = vpop.f32.mrf.mxu1  ;;  %v4072_v21 = vpop.f32.mrf.mxu0  ;;  %6401 = vmatprep.subr.bf16.mxu1 %v6887_v31  ;;  %6429 = vmatprep.subr.bf16.mxu0 %v6888_v43 }
 0xf3f   : > { %v4020_v28 = vadd.f32 %v4019_v0, %v8433_v17  ;;  %v4073_v29 = vadd.f32 %v4072_v21, %v8437_v56  ;;  %v4202_v40 = vmax.f32 %v4018_v23, 0.0  ;;  %v4204_v52 = vmax.f32 %v4071_v18, 0.0  ;;  %v6901_v21 = vld [vmem:[%s8627_s7 + $0x330] sm:$0xff]  }
 0xf40   : > { %v4021_v27 = vpop.f32.mrf.mxu1  ;;  %v4074_v42 = vpop.f32.mrf.mxu0 }
 0xf41   : > { %v4022_v7 = vadd.f32 %v4021_v27, %v8421_v16  ;;  %v4075_v13 = vadd.f32 %v4074_v42, %v8426_v11  ;;  %6402 = vmatpush3.bf16.msra.mxu1 %v6889_v9  ;;  %v4217_v25 = vmax.f32 %v4020_v28, 0.0  ;;  %v4219_v24 = vmax.f32 %v4073_v29, 0.0  ;;  %6430 = vmatpush3.bf16.msra.mxu0 %v6890_v38  ;;  %v6904_v29 = vld [vmem:[%s8627_s7 + $0x3e8] sm:$0xff]  }
 0xf42   : > { %v4025_v26 = vpop.f32.mrf.mxu1  ;;  %v4078_v10 = vpop.f32.mrf.mxu0  ;;  %6403 = vmatprep.subr.bf16.mxu1 %v6891_v4  ;;  %6431 = vmatprep.subr.bf16.mxu0 %v6892_v35  ;;  %v6905_v27 = vld [vmem:[%s8627_s7 + $0x328] sm:$0xff]  }
 0xf43   : > { %v4218_v6 = vmax.f32 %v4022_v7, 0.0  ;;  %v4220_v51 = vmax.f32 %v4075_v13, 0.0  ;;  %v4265_v50 = vpack.c.bf16 %v4217_v25, %v4201_v44  ;;  %v4267_v61 = vpack.c.bf16 %v4219_v24, %v4203_v46  ;;  %v6906_v7 = vld [vmem:[%s8627_s7 + $0x3a8] sm:$0xff]   ;;  %v6907_v13 = vld [vmem:[%s8627_s7 + $0x360] sm:$0xff]  }
 0xf44   : > { %v4027_v53 = vpop.f32.mrf.mxu1  ;;  %v4080_v45 = vpop.f32.mrf.mxu0  ;;  %v4026_v31 = vadd.f32 %v4025_v26, %v8433_v17  ;;  %v4079_v20 = vadd.f32 %v4078_v10, %v8437_v56  ;;  %v6908_v25 = vld [vmem:[%s8627_s7 + $0x3e0] sm:$0xff]   ;;  %v6911_v10 = vld [vmem:[%s8627_s7 + $0x358] sm:$0xff]  }
 0xf45   : > { %v4266_v60 = vpack.c.bf16 %v4218_v6, %v4202_v40  ;;  %v4268_v3 = vpack.c.bf16 %v4220_v51, %v4204_v52  ;;  %6404 = vmatpush3.bf16.msra.mxu1 %v6893_v49  ;;  %v4028_v63 = vadd.f32 %v4027_v53, %v8421_v16  ;;  %6432 = vmatpush3.bf16.msra.mxu0 %v6894_v39  ;;  %v6909_v24 = vld [vmem:[%s8627_s7 + $0x320] sm:$0xff]   ;;  %v6912_v39 = vld [vmem:[%s8627_s7 + $0x3d8] sm:$0xff]   ;;  %v6915_v52 = vld [vmem:[%s8627_s7 + $0x350] sm:$0xff]  }
 0xf46   : > { %v4029_v1 = vpop.f32.mrf.mxu1  ;;  %v4082_v32 = vpop.f32.mrf.mxu0  ;;  %6445 = vmatprep.subr.bf16.mxu1 %v6895_v58  ;;  %v4081_v57 = vadd.f32 %v4080_v45, %v8426_v11  ;;  %6473 = vmatprep.subr.bf16.mxu0 %v6896_v55  ;;  %v4233_v28 = vmax.f32 %v4026_v31, 0.0  ;;  %v4235_v35 = vmax.f32 %v4079_v20, 0.0  ;;  %v6910_v26 = vld [vmem:[%s8627_s7 + $0x3a0] sm:$0xff]   ;;  %v6913_v58 = vld [vmem:[%s8627_s7 + $0x318] sm:$0xff]   ;;  %v6916_v6 = vld [vmem:[%s8627_s7 + $0x3d0] sm:$0xff]   ;;  %v8551_v55 = vrot.slane %v8408_v14, %v3071_v19 }
 0xf47   : > { %v4030_v22 = vadd.f32 %v4029_v1, %v8433_v17  ;;  %v4083_v37 = vadd.f32 %v4082_v32, %v8437_v56  ;;  %5548 = vmatprep.mubr.bf16.mxu1 %v4266_v60  ;;  %5597 = vmatprep.mubr.bf16.mxu0 %v4268_v3  ;;  %v4234_v38 = vmax.f32 %v4028_v63, 0.0  ;;  %v6902_v17 = vld [vmem:[%s8627_s7 + $0x3b0] sm:$0xff]   ;;  %v6914_v40 = vld [vmem:[%s8627_s7 + $0x398] sm:$0xff]   ;;  %v6919_v45 = vld [vmem:[%s8627_s7 + $0x348] sm:$0xff]   ;;  %v8556_v60 = vrot.slane %v8408_v14, %v3079_v54 }
 0xf48   : > { %v4031_v43 = vpop.f32.mrf.mxu1  ;;  %v4084_v34 = vpop.f32.mrf.mxu0  ;;  %5549 = vmatmul.mubr.bf16.vlgmr.msra.gmra.mxu1 %v4265_v50  ;;  %5598 = vmatmul.mubr.bf16.vlgmr.msra.gmra.mxu0 %v4267_v61  ;;  %v4236_v56 = vmax.f32 %v4081_v57, 0.0  ;;  %v6917_v51 = vld [vmem:[%s8627_s7 + $0x310] sm:$0xff]   ;;  %v6920_v3 = vld [vmem:[%s8627_s7 + $0x3c8] sm:$0xff]   ;;  %v3108_v50 = vrot.slane %v8408_v14, %v3075_v2 }
 0xf49   : > { %v4032_v9 = vadd.f32 %v4031_v43, %v8421_v16  ;;  %v4085_v0 = vadd.f32 %v4084_v34, %v8426_v11  ;;  %6446 = vmatpush3.bf16.msra.mxu1 %v6897_v47  ;;  %v4249_v4 = vmax.f32 %v4030_v22, 0.0  ;;  %6474 = vmatpush3.bf16.msra.mxu0 %v6898_v30  ;;  %v6903_v16 = vld [vmem:[%s8627_s7 + $0x368] sm:$0xff]   ;;  %v4251_v11 = vmax.f32 %v4083_v37, 0.0  ;;  %v6918_v53 = vld [vmem:[%s8627_s7 + $0x390] sm:$0xff]   ;;  %v6925_v34 = vld [vmem:[%s8627_s7 + $0x300] sm:$0xff]  }
 0xf4a   : > { %6447 = vmatprep.subr.bf16.mxu1 %v6899_v12  ;;  %6475 = vmatprep.subr.bf16.mxu0 %v6900_v48  ;;  %v3100_v47 = vrot.slane %v8408_v14, %v3067_v8  ;;  %v6921_v54 = vld [vmem:[%s8627_s7 + $0x308] sm:$0xff]   ;;  %v6924_v12 = vld [vmem:[%s8627_s7 + $0x3c0] sm:$0xff]  }
 0xf4b   : > { %v4250_v23 = vmax.f32 %v4032_v9, 0.0  ;;  %v4252_v18 = vmax.f32 %v4085_v0, 0.0  ;;  %v4281_v42 = vpack.c.bf16 %v4249_v4, %v4233_v28  ;;  %v4283_v49 = vpack.c.bf16 %v4251_v11, %v4235_v35  ;;  %v6922_v32 = vld [vmem:[%s8627_s7 + $0x388] sm:$0xff]  }
 0xf4d   : > { %v4282_v36 = vpack.c.bf16 %v4250_v23, %v4234_v38  ;;  %v4284_v15 = vpack.c.bf16 %v4252_v18, %v4236_v56  ;;  %6448 = vmatpush3.bf16.msra.mxu1 %v6901_v21  ;;  %6476 = vmatpush3.bf16.msra.mxu0 %v6902_v17  ;;  %v6926_v38 = vld [vmem:[%s8627_s7 + $0x380] sm:$0xff]  }
 0xf4e   : > { %6449 = vmatprep.subr.bf16.mxu1 %v6903_v16  ;;  %6477 = vmatprep.subr.bf16.mxu0 %v6904_v29 }
 0xf4f   : > { %5556 = vmatprep.mubr.bf16.mxu1 %v4282_v36  ;;  %5605 = vmatprep.mubr.bf16.mxu0 %v4284_v15 }
 0xf50   : > { %5557 = vmatmul.mubr.bf16.gmra.mxu1 %v4281_v42  ;;  %5606 = vmatmul.mubr.bf16.gmra.mxu0 %v4283_v49 }
 0xf51   : > { %6450 = vmatpush3.bf16.msra.mxu1 %v6905_v27  ;;  %6478 = vmatpush3.bf16.msra.mxu0 %v6906_v7 }
 0xf52   : > { %6451 = vmatprep.subr.bf16.mxu1 %v6907_v13  ;;  %6479 = vmatprep.subr.bf16.mxu0 %v6908_v25 }
 0xf55   : > { %6452 = vmatpush3.bf16.msra.mxu1 %v6909_v24  ;;  %6480 = vmatpush3.bf16.msra.mxu0 %v6910_v26 }
 0xf56   : > { %6453 = vmatprep.subr.bf16.mxu1 %v6911_v10  ;;  %6481 = vmatprep.subr.bf16.mxu0 %v6912_v39 }
 0xf59   : > { %6454 = vmatpush3.bf16.msra.mxu1 %v6913_v58  ;;  %6482 = vmatpush3.bf16.msra.mxu0 %v6914_v40 }
 0xf5a   : > { %v4121_v44 = vpop.f32.mrf.mxu1  ;;  %v4174_v46 = vpop.f32.mrf.mxu0  ;;  %6455 = vmatprep.subr.bf16.mxu1 %v6915_v52  ;;  %6483 = vmatprep.subr.bf16.mxu0 %v6916_v6 }
 0xf5b   : > { %v4122_v57 = vadd.f32 %v4121_v44, %v3100_v47  ;;  %v4175_v22 = vadd.f32 %v4174_v46, %v3108_v50 }
 0xf5c   : > { %v4123_v19 = vpop.f32.mrf.mxu1  ;;  %v4176_v61 = vpop.f32.mrf.mxu0 }
 0xf5d   : > { %6456 = vmatpush3.bf16.msra.mxu1 %v6917_v51  ;;  %6484 = vmatpush3.bf16.msra.mxu0 %v6918_v53  ;;  %v4124_v8 = vadd.f32 %v4123_v19, %v8551_v55  ;;  %v4177_v2 = vadd.f32 %v4176_v61, %v8556_v60  ;;  %v4205_v11 = vmax.f32 %v4122_v57, 0.0  ;;  %v4207_v23 = vmax.f32 %v4175_v22, 0.0 }
 0xf5e   : > { %v4125_v63 = vpop.f32.mrf.mxu1  ;;  %v4178_v1 = vpop.f32.mrf.mxu0  ;;  %6457 = vmatprep.subr.bf16.mxu1 %v6919_v45  ;;  %6485 = vmatprep.subr.bf16.mxu0 %v6920_v3 }
 0xf5f   : > { %v4126_v14 = vadd.f32 %v4125_v63, %v3100_v47  ;;  %v4179_v30 = vadd.f32 %v4178_v1, %v3108_v50  ;;  %v4206_v4 = vmax.f32 %v4124_v8, 0.0  ;;  %v4208_v17 = vmax.f32 %v4177_v2, 0.0 }
 0xf60   : > { %v4127_v37 = vpop.f32.mrf.mxu1  ;;  %v4180_v48 = vpop.f32.mrf.mxu0 }
 0xf61   : > { %v4128_v31 = vadd.f32 %v4127_v37, %v8551_v55  ;;  %v4181_v43 = vadd.f32 %v4180_v48, %v8556_v60  ;;  %6458 = vmatpush3.bf16.msra.mxu1 %v6921_v54  ;;  %v4221_v20 = vmax.f32 %v4126_v14, 0.0  ;;  %v4223_v9 = vmax.f32 %v4179_v30, 0.0  ;;  %6486 = vmatpush3.bf16.msra.mxu0 %v6922_v32 }
 0xf62   : > { %v4131_v0 = vpop.f32.mrf.mxu1  ;;  %v4184_v21 = vpop.f32.mrf.mxu0  ;;  %6459 = vmatprep.subr.bf16.mxu1 %v6923_v33  ;;  %6487 = vmatprep.subr.bf16.mxu0 %v6924_v12 }
 0xf63   : > { %v4222_v16 = vmax.f32 %v4128_v31, 0.0  ;;  %v4224_v56 = vmax.f32 %v4181_v43, 0.0  ;;  %v4269_v36 = vpack.c.bf16 %v4221_v20, %v4205_v11  ;;  %v4271_v15 = vpack.c.bf16 %v4223_v9, %v4207_v23 }
 0xf64   : > { %v4133_v18 = vpop.f32.mrf.mxu1  ;;  %v4186_v28 = vpop.f32.mrf.mxu0  ;;  %v4132_v24 = vadd.f32 %v4131_v0, %v3100_v47  ;;  %v4185_v39 = vadd.f32 %v4184_v21, %v3108_v50 }
 0xf65   : > { %v4270_v29 = vpack.c.bf16 %v4222_v16, %v4206_v4  ;;  %v4272_v35 = vpack.c.bf16 %v4224_v56, %v4208_v17  ;;  %6460 = vmatpush3.bf16.msra.mxu1 %v6925_v34  ;;  %v4134_v27 = vadd.f32 %v4133_v18, %v8551_v55  ;;  %6488 = vmatpush3.bf16.msra.mxu0 %v6926_v38 }
 0xf66   : > { %v4135_v42 = vpop.f32.mrf.mxu1  ;;  %v4188_v7 = vpop.f32.mrf.mxu0  ;;  %v4187_v13 = vadd.f32 %v4186_v28, %v8556_v60  ;;  %v4237_v45 = vmax.f32 %v4132_v24, 0.0  ;;  %v4239_v3 = vmax.f32 %v4185_v39, 0.0 }
 0xf67   : > { %v4136_v49 = vadd.f32 %v4135_v42, %v3100_v47  ;;  %v4189_v25 = vadd.f32 %v4188_v7, %v3108_v50  ;;  %5646 = vmatprep.mubr.bf16.mxu1 %v4270_v29  ;;  %5695 = vmatprep.mubr.bf16.mxu0 %v4272_v35  ;;  %v4238_v52 = vmax.f32 %v4134_v27, 0.0 }
 0xf68   : > { %v4137_v26 = vpop.f32.mrf.mxu1  ;;  %v4190_v10 = vpop.f32.mrf.mxu0  ;;  %5647 = vmatmul.mubr.bf16.vlgmr.msra.gmra.mxu1 %v4269_v36  ;;  %5696 = vmatmul.mubr.bf16.vlgmr.msra.gmra.mxu0 %v4271_v15  ;;  %v4240_v51 = vmax.f32 %v4187_v13, 0.0 }
 0xf69   : > { %v4138_v58 = vadd.f32 %v4137_v26, %v8551_v55  ;;  %v4191_v40 = vadd.f32 %v4190_v10, %v8556_v60  ;;  %v4253_v6 = vmax.f32 %v4136_v49, 0.0  ;;  %v4255_v44 = vmax.f32 %v4189_v25, 0.0  ;;  %v6054_v25 = vld [vmem:[%s8628_s8] ss:$0 sm:$0xff] }
 0xf6b   : > { %v4254_v46 = vmax.f32 %v4138_v58, 0.0  ;;  %v4256_v53 = vmax.f32 %v4191_v40, 0.0  ;;  %v4285_v47 = vpack.c.bf16 %v4253_v6, %v4237_v45  ;;  %v4287_v54 = vpack.c.bf16 %v4255_v44, %v4239_v3 }
 0xf6d   : > { %v4286_v19 = vpack.c.bf16 %v4254_v46, %v4238_v52  ;;  %v4288_v61 = vpack.c.bf16 %v4256_v53, %v4240_v51 }
 0xf6f   : > { %5654 = vmatprep.mubr.bf16.mxu1 %v4286_v19  ;;  %5703 = vmatprep.mubr.bf16.mxu0 %v4288_v61 }
 0xf70   : > { %5655 = vmatmul.mubr.bf16.gmra.mxu1 %v4285_v47  ;;  %5704 = vmatmul.mubr.bf16.gmra.mxu0 %v4287_v54 }
 0xfc8   : > { %v6293_v55 = vpop.f32.mrf.mxu1  ;;  %v6321_v50 = vpop.f32.mrf.mxu0 }
 0xfca   : > { %v6294_v60 = vpop.f32.mrf.mxu1  ;;  %v6322_v63 = vpop.f32.mrf.mxu0 }
 0xfcb   : > { %v6295_v13 = vadd.f32 %v6294_v60, %v6293_v55  ;;  %v6323_v58 = vadd.f32 %v6322_v63, %v6321_v50 }
 0xfcc   : > { %v6296_v1 = vpop.f32.mrf.mxu1  ;;  %v6324_v32 = vpop.f32.mrf.mxu0 }
 0xfcd   : > { %v5355_v10 = vadd.f32 %v6295_v13, %v6054_v25 }
 0xfce   : > { %v6297_v33 = vpop.f32.mrf.mxu1  ;;  %v6325_v8 = vpop.f32.mrf.mxu0 }
 0xfcf   : > { %v6298_v24 = vadd.f32 %v6297_v33, %v6296_v1  ;;  %v5404_v51 = vadd.f32 %v6323_v58, %v5355_v10  ;;  %v6326_v53 = vadd.f32 %v6325_v8, %v6324_v32 }
 0xfd0   : > { %v6299_v2 = vpop.f32.mrf.mxu1  ;;  %v6327_v14 = vpop.f32.mrf.mxu0 }
 0xfd1   : > { %v5358_v52 = vadd.f32 %v6298_v24, %v6054_v25 }
 0xfd2   : > { %v6300_v30 = vpop.f32.mrf.mxu1  ;;  %v6328_v12 = vpop.f32.mrf.mxu0 }
 0xfd3   : > { %v6301_v44 = vadd.f32 %v6300_v30, %v6299_v2  ;;  %v5407_v19 = vadd.f32 %v6326_v53, %v5358_v52  ;;  %v6329_v13 = vadd.f32 %v6328_v12, %v6327_v14 }
 0xfd4   : > { %v6302_v57 = vpop.f32.mrf.mxu1  ;;  %v6330_v22 = vpop.f32.mrf.mxu0 }
 0xfd5   : > { %v5363_v54 = vadd.f32 %v6301_v44, %v6054_v25 }
 0xfd6   : > { %v6303_v37 = vpop.f32.mrf.mxu1  ;;  %v6331_v48 = vpop.f32.mrf.mxu0 }
 0xfd7   : > { %v6304_v61 = vadd.f32 %v6303_v37, %v6302_v57  ;;  %v5412_v2 = vadd.f32 %v6329_v13, %v5363_v54  ;;  %v6332_v8 = vadd.f32 %v6331_v48, %v6330_v22 }
 0xfd9   : > { %v5366_v63 = vadd.f32 %v6304_v61, %v6054_v25 }
 0xfe8   : > { %v6349_v31 = vpop.f32.mrf.mxu1  ;;  %v6377_v43 = vpop.f32.mrf.mxu0 }
 0xfea   : > { %v6350_v34 = vpop.f32.mrf.mxu1  ;;  %v6378_v20 = vpop.f32.mrf.mxu0 }
 0xfeb   : > { %v6351_v40 = vadd.f32 %v6350_v34, %v6349_v31  ;;  %v6379_v55 = vadd.f32 %v6378_v20, %v6377_v43  ;;  %v5415_v20 = vadd.f32 %v6332_v8, %v5366_v63 }
 0xfec   : > { %v6352_v9 = vpop.f32.mrf.mxu1  ;;  %v6380_v0 = vpop.f32.mrf.mxu0 }
 0xfed   : > { %v5453_v3 = vadd.f32 %v6351_v40, %v5404_v51 }
 0xfee   : > { %v6353_v21 = vpop.f32.mrf.mxu1  ;;  %v6381_v38 = vpop.f32.mrf.mxu0 }
 0xfef   : > { %v6354_v45 = vadd.f32 %v6353_v21, %v6352_v9  ;;  %v5502_v62 = vadd.f32 %v6379_v55, %v5453_v3  ;;  %v6382_v31 = vadd.f32 %v6381_v38, %v6380_v0 }
 0xff0   : > { %v6355_v4 = vpop.f32.mrf.mxu1  ;;  %v6383_v17 = vpop.f32.mrf.mxu0 }
 0xff1   : > { %v5456_v33 = vadd.f32 %v6354_v45, %v5407_v19 }
 0xff2   : > { %v6356_v16 = vpop.f32.mrf.mxu1  ;;  %v6384_v56 = vpop.f32.mrf.mxu0 }
 0xff3   : > { %v6357_v50 = vadd.f32 %v6356_v16, %v6355_v4  ;;  %v5505_v9 = vadd.f32 %v6382_v31, %v5456_v33  ;;  %v6385_v14 = vadd.f32 %v6384_v56, %v6383_v17 }
 0xff4   : > { %v6358_v11 = vpop.f32.mrf.mxu1  ;;  %v8593_v23 = vpop.f32.mrf.mxu0 }
 0xff5   : > { %v5461_v37 = vadd.f32 %v6357_v50, %v5412_v2  ;;  %v8636_v2 = vld [vmem:[#allocation2_spill] sm:$0xff] }
 0xff6   : > { %v6359_v18 = vpop.f32.mrf.mxu1  ;;  %v8595_v28 = vpop.f32.mrf.mxu0 }
 0xff7   : > { %v6360_v21 = vadd.f32 %v6359_v18, %v6358_v11  ;;  %v6388_v11 = vadd.f32 %v8595_v28, %v8593_v23 }
 0xff9   : > { %v5464_v38 = vadd.f32 %v6360_v21, %v5415_v20 }
0x1008   : > { %v6405_v29 = vpop.f32.mrf.mxu1  ;;  %v6433_v35 = vpop.f32.mrf.mxu0 }
0x100a   : > { %v6406_v36 = vpop.f32.mrf.mxu1  ;;  %v6434_v15 = vpop.f32.mrf.mxu0 }
0x100b   : > { %v6407_v60 = vadd.f32 %v6406_v36, %v6405_v29  ;;  %v6435_v10 = vadd.f32 %v6434_v15, %v6433_v35 }
0x100c   : > { %v6408_v27 = vpop.f32.mrf.mxu1  ;;  %v6436_v42 = vpop.f32.mrf.mxu0 }
0x100d   : > { %v5551_v30 = vadd.f32 %v6407_v60, %v5502_v62  ;;  %v5510_v62 = vadd.f32 %v6385_v14, %v5461_v37 }
0x100e   : > { %v6409_v7 = vpop.f32.mrf.mxu1  ;;  %v6437_v49 = vpop.f32.mrf.mxu0 }
0x100f   : > { %v6410_v34 = vadd.f32 %v6409_v7, %v6408_v27  ;;  %v5600_v12 = vadd.f32 %v6435_v10, %v5551_v30  ;;  %v6438_v27 = vadd.f32 %v6437_v49, %v6436_v42 }
0x1010   : > { %v6411_v26 = vpop.f32.mrf.mxu1  ;;  %v6439_v39 = vpop.f32.mrf.mxu0 }
0x1011   : > { %v5554_v29 = vadd.f32 %v6410_v34, %v5505_v9 }
0x1012   : > { %v6412_v6 = vpop.f32.mrf.mxu1  ;;  %v6440_v46 = vpop.f32.mrf.mxu0 }
0x1013   : > { %v6413_v4 = vadd.f32 %v6412_v6, %v6411_v26  ;;  %v5603_v18 = vadd.f32 %v6438_v27, %v5554_v29  ;;  %v5513_v26 = vadd.f32 %v6388_v11, %v5464_v38  ;;  %v6441_v6 = vadd.f32 %v6440_v46, %v6439_v39 }
0x1014   : > { %v6414_v47 = vpop.f32.mrf.mxu1  ;;  %v6442_v1 = vpop.f32.mrf.mxu0 }
0x1015   : > { %v5559_v15 = vadd.f32 %v6413_v4, %v5510_v62 }
0x1016   : > { %v6415_v24 = vpop.f32.mrf.mxu1  ;;  %v6443_v32 = vpop.f32.mrf.mxu0 }
0x1017   : > { %v6416_v58 = vadd.f32 %v6415_v24, %v6414_v47  ;;  %v5608_v45 = vadd.f32 %v6441_v6, %v5559_v15  ;;  %v6444_v47 = vadd.f32 %v6443_v32, %v6442_v1  ;;  %v6183_v15 = vld [vmem:[%s8631_s11] ss:$0 sm:$0xff] }
0x1019   : > { %v5562_v3 = vadd.f32 %v6416_v58, %v5513_v26 }
0x101b   : > { %v5611_v46 = vadd.f32 %v6444_v47, %v5562_v3 }
0x1028   : > { %v6461_v57 = vpop.f32.mrf.mxu1  ;;  %v6489_v43 = vpop.f32.mrf.mxu0 }
0x102a   : > { %v6462_v36 = vpop.f32.mrf.mxu1  ;;  %v6490_v0 = vpop.f32.mrf.mxu0 }
0x102b   : > { %v6463_v16 = vadd.f32 %v6462_v36, %v6461_v57  ;;  %v6491_v22 = vadd.f32 %v6490_v0, %v6489_v43 }
0x102c   : > { %v6464_v7 = vpop.f32.mrf.mxu1  ;;  %v6492_v48 = vpop.f32.mrf.mxu0 }
0x102d   : > { %v5649_v25 = vadd.f32 %v6463_v16, %v5600_v12 }
0x102e   : > { %v6465_v35 = vpop.f32.mrf.mxu1  ;;  %v6493_v56 = vpop.f32.mrf.mxu0 }
0x102f   : > { %v5698_v40 = vadd.f32 %v6491_v22, %v5649_v25  ;;  %v6466_v17 = vadd.f32 %v6465_v35, %v6464_v7  ;;  %v6494_v42 = vadd.f32 %v6493_v56, %v6492_v48 }
0x1030   : > { %v6467_v52 = vpop.f32.mrf.mxu1  ;;  %v6495_v49 = vpop.f32.mrf.mxu0 }
0x1031   : > { %v5652_v51 = vadd.f32 %v6466_v17, %v5603_v18  ;;  %v5712_v44 = vadd.f32 %v5698_v40, %v7781_v41  ;;  %v6184_v40 = vld [vmem:[%s8632_s12] ss:$0 sm:$0xff] }
0x1032   : > { %v6468_v53 = vpop.f32.mrf.mxu1  ;;  %v6496_v28 = vpop.f32.mrf.mxu0 }
0x1033   : > { %v5701_v19 = vadd.f32 %v6494_v42, %v5652_v51  ;;  %v6469_v23 = vadd.f32 %v6468_v53, %v6467_v52  ;;  %5718 = vadd.xlane.f32.xlu0 %v5712_v44  ;;  %v6497_v55 = vadd.f32 %v6496_v28, %v6495_v49 }
0x1034   : > { %v6470_v61 = vpop.f32.mrf.mxu1  ;;  %v6498_v60 = vpop.f32.mrf.mxu0 }
0x1035   : > { %v5657_v54 = vadd.f32 %v6469_v23, %v5608_v45  ;;  %v5713_v33 = vadd.f32 %v5701_v19, %v7784_v59 }
0x1036   : > { %v6471_v39 = vpop.f32.mrf.mxu1  ;;  %v6499_v63 = vpop.f32.mrf.mxu0 }
0x1037   : > { %v5706_v13 = vadd.f32 %v6497_v55, %v5657_v54  ;;  %v6472_v50 = vadd.f32 %v6471_v39, %v6470_v61  ;;  %5720 = vadd.xlane.f32.xlu1 %v5713_v33  ;;  %v6500_v31 = vadd.f32 %v6499_v63, %v6498_v60 }
0x1039   : > { %v5660_v41 = vadd.f32 %v6472_v50, %v5611_v46  ;;  %v5714_v34 = vadd.f32 %v5706_v13, %v7820_v5 }
0x103b   : > { %v5709_v24 = vadd.f32 %v6500_v31, %v5660_v41  ;;  %5722 = vadd.xlane.f32.xlu0 %v5714_v34 }
0x103d   : > { %v5715_v30 = vadd.f32 %v5709_v24, %v8636_v2 }
0x103f   : > { %5724 = vadd.xlane.f32.xlu1 %v5715_v30 }
0x10bc   : > { %v5719_v1 = vpop.xlane.xlu0 %5718 }
0x10bd   : > { %v5726_v32 = vmul.f32 0.0078125, %v5719_v1 }
0x10bf   : > { %v5730_v8 = vsub.f32 %v5712_v44, %v5726_v32 }
0x10c0   : > { %v5721_v9 = vpop.xlane.xlu1 %5720 }
0x10c1   : > { %v5727_v59 = vmul.f32 0.0078125, %v5721_v9  ;;  %v5734_v21 = vmul.f32 %v5730_v8, %v5730_v8 }
0x10c3   : > { %v5731_v57 = vsub.f32 %v5713_v33, %v5727_v59  ;;  %5738 = vadd.xlane.f32.xlu0 %v5734_v21 }
0x10c4   : > { %v5723_v37 = vpop.xlane.xlu0 %5722 }
0x10c5   : > { %v5728_v10 = vmul.f32 0.0078125, %v5723_v37  ;;  %v5735_v43 = vmul.f32 %v5731_v57, %v5731_v57 }
0x10c7   : > { %v5732_v20 = vsub.f32 %v5714_v34, %v5728_v10  ;;  %5740 = vadd.xlane.f32.xlu1 %v5735_v43 }
0x10c8   : > { %v5725_v29 = vpop.xlane.xlu1 %5724 }
0x10c9   : > { %v5729_v5 = vmul.f32 0.0078125, %v5725_v29  ;;  %v5736_v36 = vmul.f32 %v5732_v20, %v5732_v20 }
0x10cb   : > { %v5733_v14 = vsub.f32 %v5715_v30, %v5729_v5  ;;  %5742 = vadd.xlane.f32.xlu0 %v5736_v36 }
0x10cd   : > { %v5737_v12 = vmul.f32 %v5733_v14, %v5733_v14 }
0x10cf   : > { %5744 = vadd.xlane.f32.xlu1 %v5737_v12 }
0x114c   : > { %v5739_v4 = vpop.xlane.xlu0 %5738 }
0x114d   : > { %v5746_v16 = vmul.f32 0.0078125, %v5739_v4 }
0x114f   : > { %v5750_v0 = vadd.f32 1e-05, %v5746_v16 }
0x1150   : > { %v5741_v38 = vpop.xlane.xlu1 %5740 }
0x1151   : > { %6999 = vrsqrt.f32 %v5750_v0  ;;  %v5747_v27 = vmul.f32 0.0078125, %v5741_v38 }
0x1153   : > { %v5751_v7 = vadd.f32 1e-05, %v5747_v27 }
0x1154   : > { %v5743_v62 = vpop.xlane.xlu0 %5742 }
0x1155   : > { %7001 = vrsqrt.f32 %v5751_v7  ;;  %v5748_v25 = vmul.f32 0.0078125, %v5743_v62 }
0x1157   : > { %v5752_v22 = vadd.f32 1e-05, %v5748_v25 }
0x1158   : > { %v5745_v48 = vpop.xlane.xlu1 %5744 }
0x1159   : > { %7003 = vrsqrt.f32 %v5752_v22  ;;  %v5749_v11 = vmul.f32 0.0078125, %v5745_v48 }
0x115b   : > { %v5753_v18 = vadd.f32 1e-05, %v5749_v11 }
0x115d   : > { %7005 = vrsqrt.f32 %v5753_v18 }
0x115e   : > { %v7000_v35 = vpop.eup %6999 }
0x115f   : > { %v5758_v58 = vmul.f32 %v7000_v35, %v5730_v8 }
0x1161   : > { %v5768_v17 = vmul.f32 %v6183_v15, %v5758_v58 }
0x1162   : > { %v7002_v56 = vpop.eup %7001 }
0x1163   : > { %v5778_v26 = vadd.f32 %v6184_v40, %v5768_v17  ;;  %v5759_v52 = vmul.f32 %v7002_v56, %v5731_v57 }
0x1165   : > { %5782 = vst [vmem:[%s442_s15] sm:$0xff] %v5778_v26  ;;  %v5769_v6 = vmul.f32 %v6183_v15, %v5759_v52 }
0x1166   : > { %v7004_v51 = vpop.eup %7003 }
0x1167   : > { %v5779_v42 = vadd.f32 %v6184_v40, %v5769_v6  ;;  %v5760_v49 = vmul.f32 %v7004_v51, %v5732_v20 }
0x1169   : > { %5783 = vst [vmem:[%s442_s15 + $0x8] sm:$0xff] %v5779_v42  ;;  %v5770_v44 = vmul.f32 %v6183_v15, %v5760_v49 }
0x116a   : > { %v7006_v53 = vpop.eup %7005 }
0x116b   : > { %v5780_v45 = vadd.f32 %v6184_v40, %v5770_v44  ;;  %v5761_v3 = vmul.f32 %v7006_v53, %v5733_v14 }
0x116d   : > { %5784 = vst [vmem:[%s442_s15 + $0x10] sm:$0xff] %v5780_v45  ;;  %v5771_v19 = vmul.f32 %v6183_v15, %v5761_v3 }
0x116f   : > { %v5781_v23 = vadd.f32 %v6184_v40, %v5771_v19 }
0x1171   : > { %5785 = vst [vmem:[%s442_s15 + $0x18] sm:$0xff] %v5781_v23 }
0x1172 PF: > { %s23_s25 = sadd.s32 1, %s7017_s25  }
0x1173   : > { %p20_p4 = scmp.ge.s32.totalorder %s23_s25, 4  }
0x1175   :  { %22 = sbr.rel (!%p20_p4) target bundleno = 1 (0x1), region = 102 }

</bundles_post_ra>
